<compile_context>
chip_gen: v7x
topology: tpu7x:2x2x1
jax: 0.10.0
libtpu: 0.0.40
codegen_flags: <defaults>
</compile_context>

<pallas_src>
import functools

import numpy as np
import jax
import jax.numpy as jnp
from jax import lax
from jax.experimental import pallas as pl
from jax.experimental.pallas import tpu as pltpu

EPS = 1e-5          # norm_epsilon
D_STATE = 16        # create_block hard-codes d_state=16
D_CONV = 4          # Mamba default
EXPAND = 2          # Mamba default
PAD = 8             # sublane-aligned zero pad for the conv scratch (>= D_CONV-1)


def _softplus(x):
    m = jnp.maximum(x, 0.0)
    return m + jnp.log(jnp.exp(x - m) + jnp.exp(-m))


def _silu(x):
    return x * (1.0 / (1.0 + jnp.exp(-x)))


# ----------------------------------------------------------------------------
# Fused Block kernel: add+LN, in_proj, causal/anti-causal depthwise conv,
# fused x_proj, dt_proj, chunked selective scan, gating, out_proj, and the
# forward+backward accumulation.  Runs once per (batch, direction) grid point.
# ----------------------------------------------------------------------------
def _block_kernel(h_ref, r_ref, g_ref, b_ref,
                  w_inx_ref, w_inz_ref, cw_ref, cb_ref,
                  w_x_ref, w_dt_ref, b_dt_ref, a_t_ref, dskip_ref, w_out_ref,
                  out_ref, resout_ref,
                  u0pad_s, delta_s, u_s, bc_s, y_s,
                  *, T):
    L, _ = h_ref.shape
    d_inner = w_inx_ref.shape[1]
    NS = a_t_ref.shape[0]
    K = cw_ref.shape[0]
    NC = L // T
    assert PAD >= K - 1

    is_fwd = pl.program_id(1) == 0
    mm_dtype = w_inx_ref.dtype          # bf16 (default) or f32 for projections

    # ---------------- residual add + LayerNorm (Block prologue) --------------
    r = r_ref[...] + h_ref[...]                            # (L, D)
    resout_ref[...] = r                                    # same for d = 0, 1
    mean = jnp.mean(r, axis=-1, keepdims=True)
    xc = r - mean
    var = jnp.mean(xc * xc, axis=-1, keepdims=True)
    normed = xc * lax.rsqrt(var + EPS) * g_ref[...] + b_ref[...]

    # ---------------- in_proj (x branch) --------------------------------------
    u0 = jnp.dot(normed.astype(mm_dtype), w_inx_ref[...],
                 preferred_element_type=jnp.float32)       # (L, d_inner)

    # --------- depthwise conv1d: causal (fwd) / anti-causal (bwd) -------------
    # Shifted reads from a zero-padded scratch; replaces O(L^2) shift matrices.
    u0pad_s[...] = jnp.zeros_like(u0pad_s)
    u0pad_s[pl.ds(PAD, L), :] = u0
    cw = cw_ref[...]                                       # (K, d_inner)
    acc = jnp.zeros((L, d_inner), jnp.float32)
    for k in range(K):                                     # static K = 4
        s_off = K - 1 - k
        if s_off == 0:
            start = PAD
        else:
            start = jnp.where(is_fwd, PAD - s_off, PAD + s_off)
        acc = acc + u0pad_s[pl.ds(start, L), :] * cw[k:k + 1, :]
    u = _silu(acc + cb_ref[...])                           # (L, d_inner)
    u_s[...] = u

    # ------------- fused x_proj (B | C | dt) + dt_proj ------------------------
    xbcd = jnp.dot(u.astype(mm_dtype), w_x_ref[...],
                   preferred_element_type=jnp.float32)     # (L, 2*NS + dt_rank)
    bc_s[...] = xbcd[:, :2 * NS]                           # [B | C]
    dt_low = xbcd[:, 2 * NS:]
    delta = _softplus(
        jnp.dot(dt_low.astype(mm_dtype), w_dt_ref[...],
                preferred_element_type=jnp.float32) + b_dt_ref[...])
    delta_s[...] = delta                                   # (L, d_inner)

    # ------------------------- chunked selective scan -------------------------
    a_t = a_t_ref[...]                                     # (NS, d_inner) = A^T
    rn = lax.broadcasted_iota(jnp.int32, (NS, NS), 0)
    cn = lax.broadcasted_iota(jnp.int32, (NS, NS), 1)
    eye_ns = (rn == cn).astype(jnp.float32)                # for B^T via MXU
    row_ids = lax.broadcasted_iota(jnp.int32, (T, 1), 0)

    def chunk_scan(reverse):
        def run():
            def body(c, h):                                # h: (NS, d_inner)
                rstart = (L - (c + 1) * T) if reverse else (c * T)
                if T % 8 == 0 and L % 8 == 0:
                    rstart = pl.multiple_of(rstart, 8)
                d_c = delta_s[pl.ds(rstart, T), :]         # (T, d_inner)
                w_c = d_c * u_s[pl.ds(rstart, T), :]       # delta * u
                bc_c = bc_s[pl.ds(rstart, T), :]           # (T, 2*NS)
                B_c = bc_c[:, :NS]
                C_c = bc_c[:, NS:2 * NS]
                # one tiny transpose per chunk (was one per timestep)
                BT_c = lax.dot_general(eye_ns, B_c, (((1,), (1,)), ((), ())),
                                       preferred_element_type=jnp.float32)  # (NS, T)
                y_chunk = jnp.zeros((T, d_inner), jnp.float32)
                steps = range(T - 1, -1, -1) if reverse else range(T)
                for s in steps:                            # unrolled: exp / C@h
                    dA = jnp.exp(d_c[s:s + 1, :] * a_t)    # don't sit on the h
                    h = dA * h + BT_c[:, s:s + 1] * w_c[s:s + 1, :]  # chain
                    y_row = jnp.dot(C_c[s:s + 1, :], h,
                                    preferred_element_type=jnp.float32)  # (1, d_inner)
                    y_chunk = jnp.where(row_ids == s, y_row, y_chunk)
                y_s[pl.ds(rstart, T), :] = y_chunk         # full-sublane store
                return h
            lax.fori_loop(0, NC, body, jnp.zeros((NS, d_inner), jnp.float32))
        return run

    pl.when(is_fwd)(chunk_scan(False))
    pl.when(pl.program_id(1) == 1)(chunk_scan(True))

    # ---------- D skip, gating, out_proj, fwd+bwd accumulation ----------------
    z = jnp.dot(normed.astype(mm_dtype), w_inz_ref[...],
                preferred_element_type=jnp.float32)        # (L, d_inner)
    y = y_s[...] + u_s[...] * dskip_ref[...]
    y = y * _silu(z)
    contrib = jnp.dot(y.astype(mm_dtype), w_out_ref[...],
                      preferred_element_type=jnp.float32)  # (L, D)

    @pl.when(is_fwd)
    def _():
        out_ref[...] = contrib

    @pl.when(pl.program_id(1) == 1)
    def _():
        out_ref[...] = out_ref[...] + contrib


def block_fused(hidden, residual, bp, mm_dtype=jnp.bfloat16):
    """One ViM Block: (hidden, residual) -> (new_hidden, new_residual)."""
    B, L, D = hidden.shape
    d_inner = bp['w_inx_t'].shape[1]
    NS = bp['a_t'].shape[0]
    T = next(t for t in (16, 8, 4, 2, 1) if L % t == 0)    # scan chunk length

    cast = lambda w: w.astype(mm_dtype)
    weights = [
        bp['ln_g'], bp['ln_b'],
        cast(bp['w_inx_t']), cast(bp['w_inz_t']),
        bp['conv_w'], bp['conv_b'],
        cast(bp['w_x_fused']), cast(bp['w_dt_t']), bp['b_dt'],
        bp['a_t'], bp['d_skip'], cast(bp['w_out_t']),
    ]

    seq_spec = pl.BlockSpec((None, L, D), lambda b, d: (b, 0, 0))
    w_specs = [pl.BlockSpec(w.shape, lambda b, d: (0, 0)) for w in weights]

    out, res_out = pl.pallas_call(
        functools.partial(_block_kernel, T=T),
        grid=(B, 2),                                       # (batch, direction)
        in_specs=[seq_spec, seq_spec] + w_specs,
        out_specs=(seq_spec, seq_spec),
        out_shape=(jax.ShapeDtypeStruct((B, L, D), jnp.float32),
                   jax.ShapeDtypeStruct((B, L, D), jnp.float32)),
        scratch_shapes=[
            pltpu.VMEM((L + 2 * PAD, d_inner), jnp.float32),  # zero-padded conv in
            pltpu.VMEM((L, d_inner), jnp.float32),            # delta
            pltpu.VMEM((L, d_inner), jnp.float32),            # u (post conv+silu)
            pltpu.VMEM((L, 2 * NS), jnp.float32),             # [B | C]
            pltpu.VMEM((L, d_inner), jnp.float32),            # y (scan output)
        ],
        compiler_params=pltpu.CompilerParams(
            dimension_semantics=("parallel", "arbitrary"),
            vmem_limit_bytes=32 * 1024 * 1024,  # raise for large L/D on 128-MiB parts
        ),
    )(hidden, residual, *weights)
    return out, res_out


def basic_layer_forward(x, params, mm_dtype=jnp.bfloat16):
    hidden = x
    residual = jnp.zeros_like(x)     # first block: residual = hidden_states
    for bp in params:
        hidden, residual = block_fused(hidden, residual, bp, mm_dtype)
    return hidden                    # downsample is None


# ----------------------------------------------------------------------------
# Deterministic parameter init (Mamba defaults: d_conv=4, expand=2, bias=False,
# conv_bias=True, dt_rank=ceil(d_model/16), d_state=16)
# ----------------------------------------------------------------------------
def init_block_params(key, D):
    d_inner = EXPAND * D
    dt_rank = int(np.ceil(D / 16))
    ks = jax.random.split(key, 8)

    def nrm(k, shape, scale):
        return jax.random.normal(k, shape, jnp.float32) * scale

    W_in = nrm(ks[0], (2 * d_inner, D), 1.0 / np.sqrt(D))          # in_proj.weight
    conv_w = nrm(ks[1], (d_inner, D_CONV), 1.0 / np.sqrt(D_CONV))  # conv1d.weight[:,0,:]
    conv_b = nrm(ks[2], (d_inner,), 0.1)                           # conv1d.bias
    W_x = nrm(ks[3], (dt_rank + 2 * D_STATE, d_inner), 1.0 / np.sqrt(d_inner))
    W_dt = nrm(ks[4], (d_inner, dt_rank), dt_rank ** -0.5)
    b_dt = jax.random.uniform(ks[5], (d_inner,), jnp.float32, minval=-4.0, maxval=-2.0)
    A_log = jnp.log(jnp.tile(jnp.arange(1, D_STATE + 1, dtype=jnp.float32)[None, :],
                             (d_inner, 1)))
    D_skip = jnp.ones((d_inner,), jnp.float32)
    W_out = nrm(ks[6], (D, d_inner), 1.0 / np.sqrt(d_inner))

    w_xdt_t = W_x[:dt_rank].T                     # (d_inner, dt_rank)
    w_xb_t = W_x[dt_rank:dt_rank + D_STATE].T     # (d_inner, d_state)
    w_xc_t = W_x[dt_rank + D_STATE:].T            # (d_inner, d_state)

    return {
        'ln_g': jnp.ones((1, D), jnp.float32),
        'ln_b': jnp.zeros((1, D), jnp.float32),
        'w_inx_t': W_in[:d_inner].T,              # (D, d_inner)
        'w_inz_t': W_in[d_inner:].T,              # (D, d_inner)
        'conv_w': conv_w.T,                       # (K, d_inner)
        'conv_b': conv_b[None, :],                # (1, d_inner)
        'w_xdt_t': w_xdt_t,
        'w_xb_t': w_xb_t,
        'w_xc_t': w_xc_t,
        # fused x_proj, ordered [B | C | dt] so B/C sit at lane offset 0
        'w_x_fused': jnp.concatenate([w_xb_t, w_xc_t, w_xdt_t], axis=1),
        'w_dt_t': W_dt.T,                         # (dt_rank, d_inner)
        'b_dt': b_dt[None, :],                    # (1, d_inner)
        'a_t': (-jnp.exp(A_log)).T,               # (d_state, d_inner) = A^T
        'd_skip': D_skip[None, :],                # (1, d_inner)
        'w_out_t': W_out.T,                       # (d_inner, D)
    }


# ----------------------------------------------------------------------------
# Pure-JAX reference (sanity check)
# ----------------------------------------------------------------------------
def _mamba_ref(x, bp):
    Bn, L, _ = x.shape
    u0 = x @ bp['w_inx_t']
    z = x @ bp['w_inz_t']
    K, d_inner = bp['conv_w'].shape
    acc = jnp.zeros_like(u0)
    for k in range(K):
        shift = K - 1 - k
        shifted = u0 if shift == 0 else jnp.concatenate(
            [jnp.zeros((Bn, shift, d_inner), u0.dtype), u0[:, :L - shift, :]], axis=1)
        acc = acc + shifted * bp['conv_w'][k][None, None, :]
    u = jax.nn.silu(acc + bp['conv_b'][None])
    dt_low = u @ bp['w_xdt_t']
    Bm = u @ bp['w_xb_t']
    Cm = u @ bp['w_xc_t']
    delta = jax.nn.softplus(dt_low @ bp['w_dt_t'] + bp['b_dt'][None])
    A = bp['a_t'].T
    d_state = A.shape[1]

    def step(h, inp):
        d_t, u_t, b_t, c_t = inp
        dA = jnp.exp(d_t[..., None] * A[None])
        dBu = (d_t * u_t)[..., None] * b_t[:, None, :]
        h = dA * h + dBu
        return h, jnp.einsum('bdn,bn->bd', h, c_t)

    xs = (jnp.moveaxis(delta, 1, 0), jnp.moveaxis(u, 1, 0),
          jnp.moveaxis(Bm, 1, 0), jnp.moveaxis(Cm, 1, 0))
    h0 = jnp.zeros((Bn, d_inner, d_state), jnp.float32)
    _, ys = lax.scan(step, h0, xs)
    y = jnp.moveaxis(ys, 0, 1)
    y = y + u * bp['d_skip'][None]
    y = y * jax.nn.silu(z)
    return y @ bp['w_out_t']


def _basic_layer_ref(x, params):
    hidden, residual = x, jnp.zeros_like(x)
    for bp in params:
        residual = residual + hidden
        mean = residual.mean(-1, keepdims=True)
        var = ((residual - mean) ** 2).mean(-1, keepdims=True)
        normed = (residual - mean) / jnp.sqrt(var + EPS) * bp['ln_g'] + bp['ln_b']
        y_f = _mamba_ref(normed, bp)
        y_b = jnp.flip(_mamba_ref(jnp.flip(normed, axis=1), bp), axis=1)
        hidden = y_f + y_b
    return hidden


# ----------------------------------------------------------------------------
if __name__ == "__main__":
    B, H_res, W_res, D = 2, 4, 4, 32       # input_resolution=(4,4) -> L=16 tokens
    L = H_res * W_res
    depth = 2

    key = jax.random.PRNGKey(0)
    kx, kp = jax.random.split(key)
    x = jax.random.normal(kx, (B, L, D), jnp.float32)
    params = [init_block_params(k, D) for k in jax.random.split(kp, depth)]

    ref = _basic_layer_ref(x, params)

    # fp32 matmul path: strict algorithmic check against the pure-JAX reference
    out32 = jax.jit(functools.partial(basic_layer_forward, mm_dtype=jnp.float32))(x, params)
    jax.block_until_ready(out32)
    err32 = float(jnp.max(jnp.abs(out32 - ref)))
    assert err32 < 5e-3, f"fp32 Pallas/ref mismatch: max abs err = {err32}"

    # bf16 matmul path (default, MXU-friendly): loose check
    out16 = jax.jit(basic_layer_forward)(x, params)
    jax.block_until_ready(out16)
    err16 = float(jnp.max(jnp.abs(out16 - ref)))
    scale = float(jnp.max(jnp.abs(ref))) + 1e-6
    assert err16 / scale < 0.1, f"bf16 Pallas/ref mismatch: rel err = {err16 / scale}"

    print("KERNEL_OK")
</pallas_src>

<mosaic_0001>
module attributes {stable_mosaic.version = 11 : i64} {
  func.func @_block_kernel(%arg0: i32, %arg1: i32, %arg2: memref<1x16x32xf32, #tpu.memory_space<vmem>>, %arg3: memref<1x16x32xf32, #tpu.memory_space<vmem>>, %arg4: memref<1x32xf32, #tpu.memory_space<vmem>>, %arg5: memref<1x32xf32, #tpu.memory_space<vmem>>, %arg6: memref<32x64xf32, #tpu.memory_space<vmem>>, %arg7: memref<32x64xf32, #tpu.memory_space<vmem>>, %arg8: memref<4x64xf32, #tpu.memory_space<vmem>>, %arg9: memref<1x64xf32, #tpu.memory_space<vmem>>, %arg10: memref<64x34xf32, #tpu.memory_space<vmem>>, %arg11: memref<2x64xf32, #tpu.memory_space<vmem>>, %arg12: memref<1x64xf32, #tpu.memory_space<vmem>>, %arg13: memref<16x64xf32, #tpu.memory_space<vmem>>, %arg14: memref<1x64xf32, #tpu.memory_space<vmem>>, %arg15: memref<64x32xf32, #tpu.memory_space<vmem>>, %arg16: memref<1x16x32xf32, #tpu.memory_space<vmem>>, %arg17: memref<1x16x32xf32, #tpu.memory_space<vmem>>, %arg18: memref<32x64xf32, #tpu.memory_space<vmem>>, %arg19: memref<16x64xf32, #tpu.memory_space<vmem>>, %arg20: memref<16x64xf32, #tpu.memory_space<vmem>>, %arg21: memref<16x32xf32, #tpu.memory_space<vmem>>, %arg22: memref<16x64xf32, #tpu.memory_space<vmem>>) attributes {dimension_semantics = [#tpu.dimension_semantics<parallel>, #tpu.dimension_semantics<arbitrary>], iteration_bounds = array<i64: 2, 2>, scalar_prefetch = 0 : i64, scratch_operands = 5 : i64, tpu.core_type = #tpu.core_type<tc>, window_params = [{transform_indices = @transform_0, window_bounds = array<i64: 1, 16, 32>}, {transform_indices = @transform_1, window_bounds = array<i64: 1, 16, 32>}, {pipeline_mode = #tpu.pipeline_mode<synchronous>, transform_indices = @transform_2, window_bounds = array<i64: 1, 32>}, {pipeline_mode = #tpu.pipeline_mode<synchronous>, transform_indices = @transform_3, window_bounds = array<i64: 1, 32>}, {pipeline_mode = #tpu.pipeline_mode<synchronous>, transform_indices = @transform_4, window_bounds = array<i64: 32, 64>}, {pipeline_mode = #tpu.pipeline_mode<synchronous>, transform_indices = @transform_5, window_bounds = array<i64: 32, 64>}, {pipeline_mode = #tpu.pipeline_mode<synchronous>, transform_indices = @transform_6, window_bounds = array<i64: 4, 64>}, {pipeline_mode = #tpu.pipeline_mode<synchronous>, transform_indices = @transform_7, window_bounds = array<i64: 1, 64>}, {pipeline_mode = #tpu.pipeline_mode<synchronous>, transform_indices = @transform_8, window_bounds = array<i64: 64, 34>}, {pipeline_mode = #tpu.pipeline_mode<synchronous>, transform_indices = @transform_9, window_bounds = array<i64: 2, 64>}, {pipeline_mode = #tpu.pipeline_mode<synchronous>, transform_indices = @transform_10, window_bounds = array<i64: 1, 64>}, {pipeline_mode = #tpu.pipeline_mode<synchronous>, transform_indices = @transform_11, window_bounds = array<i64: 16, 64>}, {pipeline_mode = #tpu.pipeline_mode<synchronous>, transform_indices = @transform_12, window_bounds = array<i64: 1, 64>}, {pipeline_mode = #tpu.pipeline_mode<synchronous>, transform_indices = @transform_13, window_bounds = array<i64: 64, 32>}, {transform_indices = @transform_14, window_bounds = array<i64: 1, 16, 32>}, {transform_indices = @transform_15, window_bounds = array<i64: 1, 16, 32>}]} {
    %c0_i32 = arith.constant 0 : i32
    %0 = arith.cmpi eq, %arg1, %c0_i32 : i32
    %c0 = arith.constant 0 : index
    %c0_0 = arith.constant 0 : index
    %c0_1 = arith.constant 0 : index
    %1 = vector.load %arg3[%c0, %c0_0, %c0_1] : memref<1x16x32xf32, #tpu.memory_space<vmem>>, vector<1x16x32xf32>
    %2 = vector.shape_cast %1 : vector<1x16x32xf32> to vector<16x32xf32>
    %c0_2 = arith.constant 0 : index
    %c0_3 = arith.constant 0 : index
    %c0_4 = arith.constant 0 : index
    %3 = vector.load %arg2[%c0_2, %c0_3, %c0_4] : memref<1x16x32xf32, #tpu.memory_space<vmem>>, vector<1x16x32xf32>
    %4 = vector.shape_cast %3 : vector<1x16x32xf32> to vector<16x32xf32>
    %5 = arith.addf %2, %4 : vector<16x32xf32>
    %c0_5 = arith.constant 0 : index
    %c0_6 = arith.constant 0 : index
    %c0_7 = arith.constant 0 : index
    %6 = vector.load %arg17[%c0_5, %c0_6, %c0_7] : memref<1x16x32xf32, #tpu.memory_space<vmem>>, vector<1x16x32xf32>
    %7 = vector.shape_cast %6 : vector<1x16x32xf32> to vector<16x32xf32>
    %8 = vector.shape_cast %5 : vector<16x32xf32> to vector<1x16x32xf32>
    tpu.vector_store %arg17[%c0_5, %c0_6, %c0_7], %8 {strides = array<i32>} : memref<1x16x32xf32, #tpu.memory_space<vmem>>, vector<1x16x32xf32>,
    %cst = arith.constant dense<0.000000e+00> : vector<16xf32>
    %9 = vector.multi_reduction <add>, %5, %cst [1] : vector<16x32xf32> to vector<16xf32>
    %10 = vector.shape_cast %9 : vector<16xf32> to vector<16x1xf32>
    %cst_8 = arith.constant 3.200000e+01 : f32
    %11 = vector.broadcast %cst_8 : f32 to vector<16x1xf32>
    %12 = arith.divf %10, %11 : vector<16x1xf32>
    %13 = vector.broadcast %12 : vector<16x1xf32> to vector<16x32xf32>
    %14 = arith.subf %5, %13 : vector<16x32xf32>
    %15 = arith.mulf %14, %14 : vector<16x32xf32>
    %cst_9 = arith.constant dense<0.000000e+00> : vector<16xf32>
    %16 = vector.multi_reduction <add>, %15, %cst_9 [1] : vector<16x32xf32> to vector<16xf32>
    %17 = vector.shape_cast %16 : vector<16xf32> to vector<16x1xf32>
    %cst_10 = arith.constant 3.200000e+01 : f32
    %18 = vector.broadcast %cst_10 : f32 to vector<16x1xf32>
    %19 = arith.divf %17, %18 : vector<16x1xf32>
    %cst_11 = arith.constant 9.99999974E-6 : f32
    %20 = vector.broadcast %cst_11 : f32 to vector<16x1xf32>
    %21 = arith.addf %19, %20 : vector<16x1xf32>
    %22 = math.rsqrt %21 : vector<16x1xf32>
    %23 = vector.broadcast %22 : vector<16x1xf32> to vector<16x32xf32>
    %24 = arith.mulf %14, %23 : vector<16x32xf32>
    %c0_12 = arith.constant 0 : index
    %c0_13 = arith.constant 0 : index
    %25 = vector.load %arg4[%c0_12, %c0_13] : memref<1x32xf32, #tpu.memory_space<vmem>>, vector<1x32xf32>
    %26 = vector.broadcast %25 : vector<1x32xf32> to vector<16x32xf32>
    %27 = arith.mulf %24, %26 : vector<16x32xf32>
    %c0_14 = arith.constant 0 : index
    %c0_15 = arith.constant 0 : index
    %28 = vector.load %arg5[%c0_14, %c0_15] : memref<1x32xf32, #tpu.memory_space<vmem>>, vector<1x32xf32>
    %29 = vector.broadcast %28 : vector<1x32xf32> to vector<16x32xf32>
    %30 = arith.addf %27, %29 : vector<16x32xf32>
    %c0_16 = arith.constant 0 : index
    %c0_17 = arith.constant 0 : index
    %31 = vector.load %arg6[%c0_16, %c0_17] : memref<32x64xf32, #tpu.memory_space<vmem>>, vector<32x64xf32>
    %cst_18 = arith.constant dense<0.000000e+00> : vector<16x64xf32>
    %32 = tpu.matmul %30, %31, %cst_18 {dimension_numbers = #tpu.dot_dimension_numbers<[1], [0], [0], [1], [0, 0, 1, 1], [], []>} : vector<16x32xf32>, vector<32x64xf32>, vector<16x64xf32> -> vector<16x64xf32>
    %cst_19 = arith.constant 0.000000e+00 : f32
    %33 = vector.broadcast %cst_19 : f32 to vector<32x64xf32>
    %c0_20 = arith.constant 0 : index
    %c0_21 = arith.constant 0 : index
    %34 = vector.load %arg18[%c0_20, %c0_21] : memref<32x64xf32, #tpu.memory_space<vmem>>, vector<32x64xf32>
    tpu.vector_store %arg18[%c0_20, %c0_21], %33 {strides = array<i32>} : memref<32x64xf32, #tpu.memory_space<vmem>>, vector<32x64xf32>,
    %c8 = arith.constant 8 : index
    %c0_22 = arith.constant 0 : index
    %35 = vector.load %arg18[%c8, %c0_22] : memref<32x64xf32, #tpu.memory_space<vmem>>, vector<16x64xf32>
    tpu.vector_store %arg18[%c8, %c0_22], %32 {strides = array<i32>} : memref<32x64xf32, #tpu.memory_space<vmem>>, vector<16x64xf32>,
    %c0_23 = arith.constant 0 : index
    %c0_24 = arith.constant 0 : index
    %36 = vector.load %arg8[%c0_23, %c0_24] : memref<4x64xf32, #tpu.memory_space<vmem>>, vector<4x64xf32>
    %cst_25 = arith.constant 0.000000e+00 : f32
    %37 = vector.broadcast %cst_25 : f32 to vector<16x64xf32>
    %c5_i32 = arith.constant 5 : i32
    %c11_i32 = arith.constant 11 : i32
    %38 = arith.select %0, %c5_i32, %c11_i32 : i32
    %39 = arith.index_cast %38 : i32 to index
    %c0_26 = arith.constant 0 : index
    %40 = vector.load %arg18[%39, %c0_26] : memref<32x64xf32, #tpu.memory_space<vmem>>, vector<16x64xf32>
    %41 = vector.extract_strided_slice %36 {offsets = [0, 0], sizes = [1, 64], strides = [1, 1]} : vector<4x64xf32> to vector<1x64xf32>
    %42 = vector.broadcast %41 : vector<1x64xf32> to vector<16x64xf32>
    %43 = arith.mulf %40, %42 : vector<16x64xf32>
    %44 = arith.addf %37, %43 : vector<16x64xf32>
    %c6_i32 = arith.constant 6 : i32
    %c10_i32 = arith.constant 10 : i32
    %45 = arith.select %0, %c6_i32, %c10_i32 : i32
    %46 = arith.index_cast %45 : i32 to index
    %c0_27 = arith.constant 0 : index
    %47 = vector.load %arg18[%46, %c0_27] : memref<32x64xf32, #tpu.memory_space<vmem>>, vector<16x64xf32>
    %48 = vector.extract_strided_slice %36 {offsets = [1, 0], sizes = [1, 64], strides = [1, 1]} : vector<4x64xf32> to vector<1x64xf32>
    %49 = vector.broadcast %48 : vector<1x64xf32> to vector<16x64xf32>
    %50 = arith.mulf %47, %49 : vector<16x64xf32>
    %51 = arith.addf %44, %50 : vector<16x64xf32>
    %c7_i32 = arith.constant 7 : i32
    %c9_i32 = arith.constant 9 : i32
    %52 = arith.select %0, %c7_i32, %c9_i32 : i32
    %53 = arith.index_cast %52 : i32 to index
    %c0_28 = arith.constant 0 : index
    %54 = vector.load %arg18[%53, %c0_28] : memref<32x64xf32, #tpu.memory_space<vmem>>, vector<16x64xf32>
    %55 = vector.extract_strided_slice %36 {offsets = [2, 0], sizes = [1, 64], strides = [1, 1]} : vector<4x64xf32> to vector<1x64xf32>
    %56 = vector.broadcast %55 : vector<1x64xf32> to vector<16x64xf32>
    %57 = arith.mulf %54, %56 : vector<16x64xf32>
    %58 = arith.addf %51, %57 : vector<16x64xf32>
    %c8_29 = arith.constant 8 : index
    %c0_30 = arith.constant 0 : index
    %59 = vector.load %arg18[%c8_29, %c0_30] : memref<32x64xf32, #tpu.memory_space<vmem>>, vector<16x64xf32>
    %60 = vector.extract_strided_slice %36 {offsets = [3, 0], sizes = [1, 64], strides = [1, 1]} : vector<4x64xf32> to vector<1x64xf32>
    %61 = vector.broadcast %60 : vector<1x64xf32> to vector<16x64xf32>
    %62 = arith.mulf %59, %61 : vector<16x64xf32>
    %63 = arith.addf %58, %62 : vector<16x64xf32>
    %c0_31 = arith.constant 0 : index
    %c0_32 = arith.constant 0 : index
    %64 = vector.load %arg9[%c0_31, %c0_32] : memref<1x64xf32, #tpu.memory_space<vmem>>, vector<1x64xf32>
    %65 = vector.broadcast %64 : vector<1x64xf32> to vector<16x64xf32>
    %66 = arith.addf %63, %65 : vector<16x64xf32>
    %cst_33 = arith.constant 0.000000e+00 : f32
    %67 = vector.broadcast %cst_33 : f32 to vector<16x64xf32>
    %68 = arith.subf %67, %66 : vector<16x64xf32>
    %69 = math.exp %68 : vector<16x64xf32>
    %cst_34 = arith.constant 1.000000e+00 : f32
    %70 = vector.broadcast %cst_34 : f32 to vector<16x64xf32>
    %71 = arith.addf %70, %69 : vector<16x64xf32>
    %cst_35 = arith.constant 1.000000e+00 : f32
    %72 = vector.broadcast %cst_35 : f32 to vector<16x64xf32>
    %73 = arith.divf %72, %71 : vector<16x64xf32>
    %74 = arith.mulf %66, %73 : vector<16x64xf32>
    %c0_36 = arith.constant 0 : index
    %c0_37 = arith.constant 0 : index
    %75 = vector.load %arg20[%c0_36, %c0_37] : memref<16x64xf32, #tpu.memory_space<vmem>>, vector<16x64xf32>
    tpu.vector_store %arg20[%c0_36, %c0_37], %74 {strides = array<i32>} : memref<16x64xf32, #tpu.memory_space<vmem>>, vector<16x64xf32>,
    %c0_38 = arith.constant 0 : index
    %c0_39 = arith.constant 0 : index
    %76 = vector.load %arg10[%c0_38, %c0_39] : memref<64x34xf32, #tpu.memory_space<vmem>>, vector<64x34xf32>
    %cst_40 = arith.constant dense<0.000000e+00> : vector<16x34xf32>
    %77 = tpu.matmul %74, %76, %cst_40 {dimension_numbers = #tpu.dot_dimension_numbers<[1], [0], [0], [1], [0, 0, 1, 1], [], []>} : vector<16x64xf32>, vector<64x34xf32>, vector<16x34xf32> -> vector<16x34xf32>
    %78 = vector.extract_strided_slice %77 {offsets = [0, 0], sizes = [16, 32], strides = [1, 1]} : vector<16x34xf32> to vector<16x32xf32>
    %c0_41 = arith.constant 0 : index
    %c0_42 = arith.constant 0 : index
    %79 = vector.load %arg21[%c0_41, %c0_42] : memref<16x32xf32, #tpu.memory_space<vmem>>, vector<16x32xf32>
    tpu.vector_store %arg21[%c0_41, %c0_42], %78 {strides = array<i32>} : memref<16x32xf32, #tpu.memory_space<vmem>>, vector<16x32xf32>,
    %80 = vector.extract_strided_slice %77 {offsets = [0, 32], sizes = [16, 2], strides = [1, 1]} : vector<16x34xf32> to vector<16x2xf32>
    %c0_43 = arith.constant 0 : index
    %c0_44 = arith.constant 0 : index
    %81 = vector.load %arg11[%c0_43, %c0_44] : memref<2x64xf32, #tpu.memory_space<vmem>>, vector<2x64xf32>
    %cst_45 = arith.constant dense<0.000000e+00> : vector<16x64xf32>
    %82 = tpu.matmul %80, %81, %cst_45 {dimension_numbers = #tpu.dot_dimension_numbers<[1], [0], [0], [1], [0, 0, 1, 1], [], []>} : vector<16x2xf32>, vector<2x64xf32>, vector<16x64xf32> -> vector<16x64xf32>
    %c0_46 = arith.constant 0 : index
    %c0_47 = arith.constant 0 : index
    %83 = vector.load %arg12[%c0_46, %c0_47] : memref<1x64xf32, #tpu.memory_space<vmem>>, vector<1x64xf32>
    %84 = vector.broadcast %83 : vector<1x64xf32> to vector<16x64xf32>
    %85 = arith.addf %82, %84 : vector<16x64xf32>
    %cst_48 = arith.constant 0.000000e+00 : f32
    %86 = vector.broadcast %cst_48 : f32 to vector<16x64xf32>
    %87 = arith.maximumf %85, %86 : vector<16x64xf32>
    %88 = arith.subf %85, %87 : vector<16x64xf32>
    %89 = math.exp %88 : vector<16x64xf32>
    %cst_49 = arith.constant 0.000000e+00 : f32
    %90 = vector.broadcast %cst_49 : f32 to vector<16x64xf32>
    %91 = arith.subf %90, %87 : vector<16x64xf32>
    %92 = math.exp %91 : vector<16x64xf32>
    %93 = arith.addf %89, %92 : vector<16x64xf32>
    %94 = math.log %93 : vector<16x64xf32>
    %95 = arith.addf %87, %94 : vector<16x64xf32>
    %c0_50 = arith.constant 0 : index
    %c0_51 = arith.constant 0 : index
    %96 = vector.load %arg19[%c0_50, %c0_51] : memref<16x64xf32, #tpu.memory_space<vmem>>, vector<16x64xf32>
    tpu.vector_store %arg19[%c0_50, %c0_51], %95 {strides = array<i32>} : memref<16x64xf32, #tpu.memory_space<vmem>>, vector<16x64xf32>,
    %c0_52 = arith.constant 0 : index
    %c0_53 = arith.constant 0 : index
    %97 = vector.load %arg13[%c0_52, %c0_53] : memref<16x64xf32, #tpu.memory_space<vmem>>, vector<16x64xf32>
    %98 = tpu.iota {dimensions = array<i32: 0>} : vector<16x16xi32>
    %99 = tpu.iota {dimensions = array<i32: 1>} : vector<16x16xi32>
    %100 = arith.cmpi eq, %98, %99 : vector<16x16xi32>
    %101 = arith.extui %100 : vector<16x16xi1> to vector<16x16xi32>
    %102 = arith.sitofp %101 : vector<16x16xi32> to vector<16x16xf32>
    %103 = tpu.iota {dimensions = array<i32: 0>} : vector<16x1xi32>
    %104 = arith.extui %0 : i1 to i32
    %c0_i32_54 = arith.constant 0 : i32
    %105 = arith.cmpi ne, %104, %c0_i32_54 : i32
    scf.if %105 {
      %cst_74 = arith.constant 0.000000e+00 : f32
      %133 = vector.broadcast %cst_74 : f32 to vector<16x64xf32>
      %c0_i32_75 = arith.constant 0 : i32
      %c16_i32 = arith.constant 16 : i32
      %134 = arith.muli %c0_i32_75, %c16_i32 : i32
      %135 = tpu.assume_multiple %134, 8 : i32
      %136 = arith.index_cast %135 : i32 to index
      %c0_76 = arith.constant 0 : index
      %137 = vector.load %arg19[%136, %c0_76] : memref<16x64xf32, #tpu.memory_space<vmem>>, vector<16x64xf32>
      %138 = arith.index_cast %135 : i32 to index
      %c0_77 = arith.constant 0 : index
      %139 = vector.load %arg20[%138, %c0_77] : memref<16x64xf32, #tpu.memory_space<vmem>>, vector<16x64xf32>
      %140 = arith.mulf %137, %139 : vector<16x64xf32>
      %141 = arith.index_cast %135 : i32 to index
      %c0_78 = arith.constant 0 : index
      %142 = vector.load %arg21[%141, %c0_78] : memref<16x32xf32, #tpu.memory_space<vmem>>, vector<16x32xf32>
      %143 = vector.extract_strided_slice %142 {offsets = [0, 0], sizes = [16, 16], strides = [1, 1]} : vector<16x32xf32> to vector<16x16xf32>
      %144 = vector.extract_strided_slice %142 {offsets = [0, 16], sizes = [16, 16], strides = [1, 1]} : vector<16x32xf32> to vector<16x16xf32>
      %cst_79 = arith.constant dense<0.000000e+00> : vector<16x16xf32>
      %145 = tpu.matmul %102, %143, %cst_79 {dimension_numbers = #tpu.dot_dimension_numbers<[1], [1], [0], [0], [0, 0, 1, 0], [], []>} : vector<16x16xf32>, vector<16x16xf32>, vector<16x16xf32> -> vector<16x16xf32>
      %cst_80 = arith.constant 0.000000e+00 : f32
      %146 = vector.broadcast %cst_80 : f32 to vector<16x64xf32>
      %147 = vector.extract_strided_slice %137 {offsets = [0, 0], sizes = [1, 64], strides = [1, 1]} : vector<16x64xf32> to vector<1x64xf32>
      %148 = vector.broadcast %147 : vector<1x64xf32> to vector<16x64xf32>
      %149 = arith.mulf %148, %97 : vector<16x64xf32>
      %150 = math.exp %149 : vector<16x64xf32>
      %151 = arith.mulf %150, %133 : vector<16x64xf32>
      %152 = vector.extract_strided_slice %145 {offsets = [0, 0], sizes = [16, 1], strides = [1, 1]} : vector<16x16xf32> to vector<16x1xf32>
      %153 = vector.extract_strided_slice %140 {offsets = [0, 0], sizes = [1, 64], strides = [1, 1]} : vector<16x64xf32> to vector<1x64xf32>
      %154 = vector.broadcast %152 : vector<16x1xf32> to vector<16x64xf32>
      %155 = vector.broadcast %153 : vector<1x64xf32> to vector<16x64xf32>
      %156 = arith.mulf %154, %155 : vector<16x64xf32>
      %157 = arith.addf %151, %156 : vector<16x64xf32>
      %158 = vector.extract_strided_slice %144 {offsets = [0, 0], sizes = [1, 16], strides = [1, 1]} : vector<16x16xf32> to vector<1x16xf32>
      %cst_81 = arith.constant dense<0.000000e+00> : vector<1x64xf32>
      %159 = tpu.matmul %158, %157, %cst_81 {dimension_numbers = #tpu.dot_dimension_numbers<[1], [0], [0], [1], [0, 0, 1, 1], [], []>} : vector<1x16xf32>, vector<16x64xf32>, vector<1x64xf32> -> vector<1x64xf32>
      %c0_i32_82 = arith.constant 0 : i32
      %160 = vector.broadcast %c0_i32_82 : i32 to vector<16x1xi32>
      %161 = arith.cmpi eq, %103, %160 : vector<16x1xi32>
      %162 = vector.shape_cast %161 : vector<16x1xi1> to vector<16x1xi1>
      %163 = vector.broadcast %162 : vector<16x1xi1> to vector<16x64xi1>
      %164 = vector.shape_cast %159 : vector<1x64xf32> to vector<1x64xf32>
      %165 = vector.broadcast %164 : vector<1x64xf32> to vector<16x64xf32>
      %166 = arith.select %163, %165, %146 : vector<16x64xi1>, vector<16x64xf32>
      %167 = vector.extract_strided_slice %137 {offsets = [1, 0], sizes = [1, 64], strides = [1, 1]} : vector<16x64xf32> to vector<1x64xf32>
      %168 = vector.broadcast %167 : vector<1x64xf32> to vector<16x64xf32>
      %169 = arith.mulf %168, %97 : vector<16x64xf32>
      %170 = math.exp %169 : vector<16x64xf32>
      %171 = arith.mulf %170, %157 : vector<16x64xf32>
      %172 = vector.extract_strided_slice %145 {offsets = [0, 1], sizes = [16, 1], strides = [1, 1]} : vector<16x16xf32> to vector<16x1xf32>
      %173 = vector.extract_strided_slice %140 {offsets = [1, 0], sizes = [1, 64], strides = [1, 1]} : vector<16x64xf32> to vector<1x64xf32>
      %174 = vector.broadcast %172 : vector<16x1xf32> to vector<16x64xf32>
      %175 = vector.broadcast %173 : vector<1x64xf32> to vector<16x64xf32>
      %176 = arith.mulf %174, %175 : vector<16x64xf32>
      %177 = arith.addf %171, %176 : vector<16x64xf32>
      %178 = vector.extract_strided_slice %144 {offsets = [1, 0], sizes = [1, 16], strides = [1, 1]} : vector<16x16xf32> to vector<1x16xf32>
      %cst_83 = arith.constant dense<0.000000e+00> : vector<1x64xf32>
      %179 = tpu.matmul %178, %177, %cst_83 {dimension_numbers = #tpu.dot_dimension_numbers<[1], [0], [0], [1], [0, 0, 1, 1], [], []>} : vector<1x16xf32>, vector<16x64xf32>, vector<1x64xf32> -> vector<1x64xf32>
      %c1_i32_84 = arith.constant 1 : i32
      %180 = vector.broadcast %c1_i32_84 : i32 to vector<16x1xi32>
      %181 = arith.cmpi eq, %103, %180 : vector<16x1xi32>
      %182 = vector.shape_cast %181 : vector<16x1xi1> to vector<16x1xi1>
      %183 = vector.broadcast %182 : vector<16x1xi1> to vector<16x64xi1>
      %184 = vector.shape_cast %179 : vector<1x64xf32> to vector<1x64xf32>
      %185 = vector.broadcast %184 : vector<1x64xf32> to vector<16x64xf32>
      %186 = arith.select %183, %185, %166 : vector<16x64xi1>, vector<16x64xf32>
      %187 = vector.extract_strided_slice %137 {offsets = [2, 0], sizes = [1, 64], strides = [1, 1]} : vector<16x64xf32> to vector<1x64xf32>
      %188 = vector.broadcast %187 : vector<1x64xf32> to vector<16x64xf32>
      %189 = arith.mulf %188, %97 : vector<16x64xf32>
      %190 = math.exp %189 : vector<16x64xf32>
      %191 = arith.mulf %190, %177 : vector<16x64xf32>
      %192 = vector.extract_strided_slice %145 {offsets = [0, 2], sizes = [16, 1], strides = [1, 1]} : vector<16x16xf32> to vector<16x1xf32>
      %193 = vector.extract_strided_slice %140 {offsets = [2, 0], sizes = [1, 64], strides = [1, 1]} : vector<16x64xf32> to vector<1x64xf32>
      %194 = vector.broadcast %192 : vector<16x1xf32> to vector<16x64xf32>
      %195 = vector.broadcast %193 : vector<1x64xf32> to vector<16x64xf32>
      %196 = arith.mulf %194, %195 : vector<16x64xf32>
      %197 = arith.addf %191, %196 : vector<16x64xf32>
      %198 = vector.extract_strided_slice %144 {offsets = [2, 0], sizes = [1, 16], strides = [1, 1]} : vector<16x16xf32> to vector<1x16xf32>
      %cst_85 = arith.constant dense<0.000000e+00> : vector<1x64xf32>
      %199 = tpu.matmul %198, %197, %cst_85 {dimension_numbers = #tpu.dot_dimension_numbers<[1], [0], [0], [1], [0, 0, 1, 1], [], []>} : vector<1x16xf32>, vector<16x64xf32>, vector<1x64xf32> -> vector<1x64xf32>
      %c2_i32 = arith.constant 2 : i32
      %200 = vector.broadcast %c2_i32 : i32 to vector<16x1xi32>
      %201 = arith.cmpi eq, %103, %200 : vector<16x1xi32>
      %202 = vector.shape_cast %201 : vector<16x1xi1> to vector<16x1xi1>
      %203 = vector.broadcast %202 : vector<16x1xi1> to vector<16x64xi1>
      %204 = vector.shape_cast %199 : vector<1x64xf32> to vector<1x64xf32>
      %205 = vector.broadcast %204 : vector<1x64xf32> to vector<16x64xf32>
      %206 = arith.select %203, %205, %186 : vector<16x64xi1>, vector<16x64xf32>
      %207 = vector.extract_strided_slice %137 {offsets = [3, 0], sizes = [1, 64], strides = [1, 1]} : vector<16x64xf32> to vector<1x64xf32>
      %208 = vector.broadcast %207 : vector<1x64xf32> to vector<16x64xf32>
      %209 = arith.mulf %208, %97 : vector<16x64xf32>
      %210 = math.exp %209 : vector<16x64xf32>
      %211 = arith.mulf %210, %197 : vector<16x64xf32>
      %212 = vector.extract_strided_slice %145 {offsets = [0, 3], sizes = [16, 1], strides = [1, 1]} : vector<16x16xf32> to vector<16x1xf32>
      %213 = vector.extract_strided_slice %140 {offsets = [3, 0], sizes = [1, 64], strides = [1, 1]} : vector<16x64xf32> to vector<1x64xf32>
      %214 = vector.broadcast %212 : vector<16x1xf32> to vector<16x64xf32>
      %215 = vector.broadcast %213 : vector<1x64xf32> to vector<16x64xf32>
      %216 = arith.mulf %214, %215 : vector<16x64xf32>
      %217 = arith.addf %211, %216 : vector<16x64xf32>
      %218 = vector.extract_strided_slice %144 {offsets = [3, 0], sizes = [1, 16], strides = [1, 1]} : vector<16x16xf32> to vector<1x16xf32>
      %cst_86 = arith.constant dense<0.000000e+00> : vector<1x64xf32>
      %219 = tpu.matmul %218, %217, %cst_86 {dimension_numbers = #tpu.dot_dimension_numbers<[1], [0], [0], [1], [0, 0, 1, 1], [], []>} : vector<1x16xf32>, vector<16x64xf32>, vector<1x64xf32> -> vector<1x64xf32>
      %c3_i32 = arith.constant 3 : i32
      %220 = vector.broadcast %c3_i32 : i32 to vector<16x1xi32>
      %221 = arith.cmpi eq, %103, %220 : vector<16x1xi32>
      %222 = vector.shape_cast %221 : vector<16x1xi1> to vector<16x1xi1>
      %223 = vector.broadcast %222 : vector<16x1xi1> to vector<16x64xi1>
      %224 = vector.shape_cast %219 : vector<1x64xf32> to vector<1x64xf32>
      %225 = vector.broadcast %224 : vector<1x64xf32> to vector<16x64xf32>
      %226 = arith.select %223, %225, %206 : vector<16x64xi1>, vector<16x64xf32>
      %227 = vector.extract_strided_slice %137 {offsets = [4, 0], sizes = [1, 64], strides = [1, 1]} : vector<16x64xf32> to vector<1x64xf32>
      %228 = vector.broadcast %227 : vector<1x64xf32> to vector<16x64xf32>
      %229 = arith.mulf %228, %97 : vector<16x64xf32>
      %230 = math.exp %229 : vector<16x64xf32>
      %231 = arith.mulf %230, %217 : vector<16x64xf32>
      %232 = vector.extract_strided_slice %145 {offsets = [0, 4], sizes = [16, 1], strides = [1, 1]} : vector<16x16xf32> to vector<16x1xf32>
      %233 = vector.extract_strided_slice %140 {offsets = [4, 0], sizes = [1, 64], strides = [1, 1]} : vector<16x64xf32> to vector<1x64xf32>
      %234 = vector.broadcast %232 : vector<16x1xf32> to vector<16x64xf32>
      %235 = vector.broadcast %233 : vector<1x64xf32> to vector<16x64xf32>
      %236 = arith.mulf %234, %235 : vector<16x64xf32>
      %237 = arith.addf %231, %236 : vector<16x64xf32>
      %238 = vector.extract_strided_slice %144 {offsets = [4, 0], sizes = [1, 16], strides = [1, 1]} : vector<16x16xf32> to vector<1x16xf32>
      %cst_87 = arith.constant dense<0.000000e+00> : vector<1x64xf32>
      %239 = tpu.matmul %238, %237, %cst_87 {dimension_numbers = #tpu.dot_dimension_numbers<[1], [0], [0], [1], [0, 0, 1, 1], [], []>} : vector<1x16xf32>, vector<16x64xf32>, vector<1x64xf32> -> vector<1x64xf32>
      %c4_i32 = arith.constant 4 : i32
      %240 = vector.broadcast %c4_i32 : i32 to vector<16x1xi32>
      %241 = arith.cmpi eq, %103, %240 : vector<16x1xi32>
      %242 = vector.shape_cast %241 : vector<16x1xi1> to vector<16x1xi1>
      %243 = vector.broadcast %242 : vector<16x1xi1> to vector<16x64xi1>
      %244 = vector.shape_cast %239 : vector<1x64xf32> to vector<1x64xf32>
      %245 = vector.broadcast %244 : vector<1x64xf32> to vector<16x64xf32>
      %246 = arith.select %243, %245, %226 : vector<16x64xi1>, vector<16x64xf32>
      %247 = vector.extract_strided_slice %137 {offsets = [5, 0], sizes = [1, 64], strides = [1, 1]} : vector<16x64xf32> to vector<1x64xf32>
      %248 = vector.broadcast %247 : vector<1x64xf32> to vector<16x64xf32>
      %249 = arith.mulf %248, %97 : vector<16x64xf32>
      %250 = math.exp %249 : vector<16x64xf32>
      %251 = arith.mulf %250, %237 : vector<16x64xf32>
      %252 = vector.extract_strided_slice %145 {offsets = [0, 5], sizes = [16, 1], strides = [1, 1]} : vector<16x16xf32> to vector<16x1xf32>
      %253 = vector.extract_strided_slice %140 {offsets = [5, 0], sizes = [1, 64], strides = [1, 1]} : vector<16x64xf32> to vector<1x64xf32>
      %254 = vector.broadcast %252 : vector<16x1xf32> to vector<16x64xf32>
      %255 = vector.broadcast %253 : vector<1x64xf32> to vector<16x64xf32>
      %256 = arith.mulf %254, %255 : vector<16x64xf32>
      %257 = arith.addf %251, %256 : vector<16x64xf32>
      %258 = vector.extract_strided_slice %144 {offsets = [5, 0], sizes = [1, 16], strides = [1, 1]} : vector<16x16xf32> to vector<1x16xf32>
      %cst_88 = arith.constant dense<0.000000e+00> : vector<1x64xf32>
      %259 = tpu.matmul %258, %257, %cst_88 {dimension_numbers = #tpu.dot_dimension_numbers<[1], [0], [0], [1], [0, 0, 1, 1], [], []>} : vector<1x16xf32>, vector<16x64xf32>, vector<1x64xf32> -> vector<1x64xf32>
      %c5_i32_89 = arith.constant 5 : i32
      %260 = vector.broadcast %c5_i32_89 : i32 to vector<16x1xi32>
      %261 = arith.cmpi eq, %103, %260 : vector<16x1xi32>
      %262 = vector.shape_cast %261 : vector<16x1xi1> to vector<16x1xi1>
      %263 = vector.broadcast %262 : vector<16x1xi1> to vector<16x64xi1>
      %264 = vector.shape_cast %259 : vector<1x64xf32> to vector<1x64xf32>
      %265 = vector.broadcast %264 : vector<1x64xf32> to vector<16x64xf32>
      %266 = arith.select %263, %265, %246 : vector<16x64xi1>, vector<16x64xf32>
      %267 = vector.extract_strided_slice %137 {offsets = [6, 0], sizes = [1, 64], strides = [1, 1]} : vector<16x64xf32> to vector<1x64xf32>
      %268 = vector.broadcast %267 : vector<1x64xf32> to vector<16x64xf32>
      %269 = arith.mulf %268, %97 : vector<16x64xf32>
      %270 = math.exp %269 : vector<16x64xf32>
      %271 = arith.mulf %270, %257 : vector<16x64xf32>
      %272 = vector.extract_strided_slice %145 {offsets = [0, 6], sizes = [16, 1], strides = [1, 1]} : vector<16x16xf32> to vector<16x1xf32>
      %273 = vector.extract_strided_slice %140 {offsets = [6, 0], sizes = [1, 64], strides = [1, 1]} : vector<16x64xf32> to vector<1x64xf32>
      %274 = vector.broadcast %272 : vector<16x1xf32> to vector<16x64xf32>
      %275 = vector.broadcast %273 : vector<1x64xf32> to vector<16x64xf32>
      %276 = arith.mulf %274, %275 : vector<16x64xf32>
      %277 = arith.addf %271, %276 : vector<16x64xf32>
      %278 = vector.extract_strided_slice %144 {offsets = [6, 0], sizes = [1, 16], strides = [1, 1]} : vector<16x16xf32> to vector<1x16xf32>
      %cst_90 = arith.constant dense<0.000000e+00> : vector<1x64xf32>
      %279 = tpu.matmul %278, %277, %cst_90 {dimension_numbers = #tpu.dot_dimension_numbers<[1], [0], [0], [1], [0, 0, 1, 1], [], []>} : vector<1x16xf32>, vector<16x64xf32>, vector<1x64xf32> -> vector<1x64xf32>
      %c6_i32_91 = arith.constant 6 : i32
      %280 = vector.broadcast %c6_i32_91 : i32 to vector<16x1xi32>
      %281 = arith.cmpi eq, %103, %280 : vector<16x1xi32>
      %282 = vector.shape_cast %281 : vector<16x1xi1> to vector<16x1xi1>
      %283 = vector.broadcast %282 : vector<16x1xi1> to vector<16x64xi1>
      %284 = vector.shape_cast %279 : vector<1x64xf32> to vector<1x64xf32>
      %285 = vector.broadcast %284 : vector<1x64xf32> to vector<16x64xf32>
      %286 = arith.select %283, %285, %266 : vector<16x64xi1>, vector<16x64xf32>
      %287 = vector.extract_strided_slice %137 {offsets = [7, 0], sizes = [1, 64], strides = [1, 1]} : vector<16x64xf32> to vector<1x64xf32>
      %288 = vector.broadcast %287 : vector<1x64xf32> to vector<16x64xf32>
      %289 = arith.mulf %288, %97 : vector<16x64xf32>
      %290 = math.exp %289 : vector<16x64xf32>
      %291 = arith.mulf %290, %277 : vector<16x64xf32>
      %292 = vector.extract_strided_slice %145 {offsets = [0, 7], sizes = [16, 1], strides = [1, 1]} : vector<16x16xf32> to vector<16x1xf32>
      %293 = vector.extract_strided_slice %140 {offsets = [7, 0], sizes = [1, 64], strides = [1, 1]} : vector<16x64xf32> to vector<1x64xf32>
      %294 = vector.broadcast %292 : vector<16x1xf32> to vector<16x64xf32>
      %295 = vector.broadcast %293 : vector<1x64xf32> to vector<16x64xf32>
      %296 = arith.mulf %294, %295 : vector<16x64xf32>
      %297 = arith.addf %291, %296 : vector<16x64xf32>
      %298 = vector.extract_strided_slice %144 {offsets = [7, 0], sizes = [1, 16], strides = [1, 1]} : vector<16x16xf32> to vector<1x16xf32>
      %cst_92 = arith.constant dense<0.000000e+00> : vector<1x64xf32>
      %299 = tpu.matmul %298, %297, %cst_92 {dimension_numbers = #tpu.dot_dimension_numbers<[1], [0], [0], [1], [0, 0, 1, 1], [], []>} : vector<1x16xf32>, vector<16x64xf32>, vector<1x64xf32> -> vector<1x64xf32>
      %c7_i32_93 = arith.constant 7 : i32
      %300 = vector.broadcast %c7_i32_93 : i32 to vector<16x1xi32>
      %301 = arith.cmpi eq, %103, %300 : vector<16x1xi32>
      %302 = vector.shape_cast %301 : vector<16x1xi1> to vector<16x1xi1>
      %303 = vector.broadcast %302 : vector<16x1xi1> to vector<16x64xi1>
      %304 = vector.shape_cast %299 : vector<1x64xf32> to vector<1x64xf32>
      %305 = vector.broadcast %304 : vector<1x64xf32> to vector<16x64xf32>
      %306 = arith.select %303, %305, %286 : vector<16x64xi1>, vector<16x64xf32>
      %307 = vector.extract_strided_slice %137 {offsets = [8, 0], sizes = [1, 64], strides = [1, 1]} : vector<16x64xf32> to vector<1x64xf32>
      %308 = vector.broadcast %307 : vector<1x64xf32> to vector<16x64xf32>
      %309 = arith.mulf %308, %97 : vector<16x64xf32>
      %310 = math.exp %309 : vector<16x64xf32>
      %311 = arith.mulf %310, %297 : vector<16x64xf32>
      %312 = vector.extract_strided_slice %145 {offsets = [0, 8], sizes = [16, 1], strides = [1, 1]} : vector<16x16xf32> to vector<16x1xf32>
      %313 = vector.extract_strided_slice %140 {offsets = [8, 0], sizes = [1, 64], strides = [1, 1]} : vector<16x64xf32> to vector<1x64xf32>
      %314 = vector.broadcast %312 : vector<16x1xf32> to vector<16x64xf32>
      %315 = vector.broadcast %313 : vector<1x64xf32> to vector<16x64xf32>
      %316 = arith.mulf %314, %315 : vector<16x64xf32>
      %317 = arith.addf %311, %316 : vector<16x64xf32>
      %318 = vector.extract_strided_slice %144 {offsets = [8, 0], sizes = [1, 16], strides = [1, 1]} : vector<16x16xf32> to vector<1x16xf32>
      %cst_94 = arith.constant dense<0.000000e+00> : vector<1x64xf32>
      %319 = tpu.matmul %318, %317, %cst_94 {dimension_numbers = #tpu.dot_dimension_numbers<[1], [0], [0], [1], [0, 0, 1, 1], [], []>} : vector<1x16xf32>, vector<16x64xf32>, vector<1x64xf32> -> vector<1x64xf32>
      %c8_i32 = arith.constant 8 : i32
      %320 = vector.broadcast %c8_i32 : i32 to vector<16x1xi32>
      %321 = arith.cmpi eq, %103, %320 : vector<16x1xi32>
      %322 = vector.shape_cast %321 : vector<16x1xi1> to vector<16x1xi1>
      %323 = vector.broadcast %322 : vector<16x1xi1> to vector<16x64xi1>
      %324 = vector.shape_cast %319 : vector<1x64xf32> to vector<1x64xf32>
      %325 = vector.broadcast %324 : vector<1x64xf32> to vector<16x64xf32>
      %326 = arith.select %323, %325, %306 : vector<16x64xi1>, vector<16x64xf32>
      %327 = vector.extract_strided_slice %137 {offsets = [9, 0], sizes = [1, 64], strides = [1, 1]} : vector<16x64xf32> to vector<1x64xf32>
      %328 = vector.broadcast %327 : vector<1x64xf32> to vector<16x64xf32>
      %329 = arith.mulf %328, %97 : vector<16x64xf32>
      %330 = math.exp %329 : vector<16x64xf32>
      %331 = arith.mulf %330, %317 : vector<16x64xf32>
      %332 = vector.extract_strided_slice %145 {offsets = [0, 9], sizes = [16, 1], strides = [1, 1]} : vector<16x16xf32> to vector<16x1xf32>
      %333 = vector.extract_strided_slice %140 {offsets = [9, 0], sizes = [1, 64], strides = [1, 1]} : vector<16x64xf32> to vector<1x64xf32>
      %334 = vector.broadcast %332 : vector<16x1xf32> to vector<16x64xf32>
      %335 = vector.broadcast %333 : vector<1x64xf32> to vector<16x64xf32>
      %336 = arith.mulf %334, %335 : vector<16x64xf32>
      %337 = arith.addf %331, %336 : vector<16x64xf32>
      %338 = vector.extract_strided_slice %144 {offsets = [9, 0], sizes = [1, 16], strides = [1, 1]} : vector<16x16xf32> to vector<1x16xf32>
      %cst_95 = arith.constant dense<0.000000e+00> : vector<1x64xf32>
      %339 = tpu.matmul %338, %337, %cst_95 {dimension_numbers = #tpu.dot_dimension_numbers<[1], [0], [0], [1], [0, 0, 1, 1], [], []>} : vector<1x16xf32>, vector<16x64xf32>, vector<1x64xf32> -> vector<1x64xf32>
      %c9_i32_96 = arith.constant 9 : i32
      %340 = vector.broadcast %c9_i32_96 : i32 to vector<16x1xi32>
      %341 = arith.cmpi eq, %103, %340 : vector<16x1xi32>
      %342 = vector.shape_cast %341 : vector<16x1xi1> to vector<16x1xi1>
      %343 = vector.broadcast %342 : vector<16x1xi1> to vector<16x64xi1>
      %344 = vector.shape_cast %339 : vector<1x64xf32> to vector<1x64xf32>
      %345 = vector.broadcast %344 : vector<1x64xf32> to vector<16x64xf32>
      %346 = arith.select %343, %345, %326 : vector<16x64xi1>, vector<16x64xf32>
      %347 = vector.extract_strided_slice %137 {offsets = [10, 0], sizes = [1, 64], strides = [1, 1]} : vector<16x64xf32> to vector<1x64xf32>
      %348 = vector.broadcast %347 : vector<1x64xf32> to vector<16x64xf32>
      %349 = arith.mulf %348, %97 : vector<16x64xf32>
      %350 = math.exp %349 : vector<16x64xf32>
      %351 = arith.mulf %350, %337 : vector<16x64xf32>
      %352 = vector.extract_strided_slice %145 {offsets = [0, 10], sizes = [16, 1], strides = [1, 1]} : vector<16x16xf32> to vector<16x1xf32>
      %353 = vector.extract_strided_slice %140 {offsets = [10, 0], sizes = [1, 64], strides = [1, 1]} : vector<16x64xf32> to vector<1x64xf32>
      %354 = vector.broadcast %352 : vector<16x1xf32> to vector<16x64xf32>
      %355 = vector.broadcast %353 : vector<1x64xf32> to vector<16x64xf32>
      %356 = arith.mulf %354, %355 : vector<16x64xf32>
      %357 = arith.addf %351, %356 : vector<16x64xf32>
      %358 = vector.extract_strided_slice %144 {offsets = [10, 0], sizes = [1, 16], strides = [1, 1]} : vector<16x16xf32> to vector<1x16xf32>
      %cst_97 = arith.constant dense<0.000000e+00> : vector<1x64xf32>
      %359 = tpu.matmul %358, %357, %cst_97 {dimension_numbers = #tpu.dot_dimension_numbers<[1], [0], [0], [1], [0, 0, 1, 1], [], []>} : vector<1x16xf32>, vector<16x64xf32>, vector<1x64xf32> -> vector<1x64xf32>
      %c10_i32_98 = arith.constant 10 : i32
      %360 = vector.broadcast %c10_i32_98 : i32 to vector<16x1xi32>
      %361 = arith.cmpi eq, %103, %360 : vector<16x1xi32>
      %362 = vector.shape_cast %361 : vector<16x1xi1> to vector<16x1xi1>
      %363 = vector.broadcast %362 : vector<16x1xi1> to vector<16x64xi1>
      %364 = vector.shape_cast %359 : vector<1x64xf32> to vector<1x64xf32>
      %365 = vector.broadcast %364 : vector<1x64xf32> to vector<16x64xf32>
      %366 = arith.select %363, %365, %346 : vector<16x64xi1>, vector<16x64xf32>
      %367 = vector.extract_strided_slice %137 {offsets = [11, 0], sizes = [1, 64], strides = [1, 1]} : vector<16x64xf32> to vector<1x64xf32>
      %368 = vector.broadcast %367 : vector<1x64xf32> to vector<16x64xf32>
      %369 = arith.mulf %368, %97 : vector<16x64xf32>
      %370 = math.exp %369 : vector<16x64xf32>
      %371 = arith.mulf %370, %357 : vector<16x64xf32>
      %372 = vector.extract_strided_slice %145 {offsets = [0, 11], sizes = [16, 1], strides = [1, 1]} : vector<16x16xf32> to vector<16x1xf32>
      %373 = vector.extract_strided_slice %140 {offsets = [11, 0], sizes = [1, 64], strides = [1, 1]} : vector<16x64xf32> to vector<1x64xf32>
      %374 = vector.broadcast %372 : vector<16x1xf32> to vector<16x64xf32>
      %375 = vector.broadcast %373 : vector<1x64xf32> to vector<16x64xf32>
      %376 = arith.mulf %374, %375 : vector<16x64xf32>
      %377 = arith.addf %371, %376 : vector<16x64xf32>
      %378 = vector.extract_strided_slice %144 {offsets = [11, 0], sizes = [1, 16], strides = [1, 1]} : vector<16x16xf32> to vector<1x16xf32>
      %cst_99 = arith.constant dense<0.000000e+00> : vector<1x64xf32>
      %379 = tpu.matmul %378, %377, %cst_99 {dimension_numbers = #tpu.dot_dimension_numbers<[1], [0], [0], [1], [0, 0, 1, 1], [], []>} : vector<1x16xf32>, vector<16x64xf32>, vector<1x64xf32> -> vector<1x64xf32>
      %c11_i32_100 = arith.constant 11 : i32
      %380 = vector.broadcast %c11_i32_100 : i32 to vector<16x1xi32>
      %381 = arith.cmpi eq, %103, %380 : vector<16x1xi32>
      %382 = vector.shape_cast %381 : vector<16x1xi1> to vector<16x1xi1>
      %383 = vector.broadcast %382 : vector<16x1xi1> to vector<16x64xi1>
      %384 = vector.shape_cast %379 : vector<1x64xf32> to vector<1x64xf32>
      %385 = vector.broadcast %384 : vector<1x64xf32> to vector<16x64xf32>
      %386 = arith.select %383, %385, %366 : vector<16x64xi1>, vector<16x64xf32>
      %387 = vector.extract_strided_slice %137 {offsets = [12, 0], sizes = [1, 64], strides = [1, 1]} : vector<16x64xf32> to vector<1x64xf32>
      %388 = vector.broadcast %387 : vector<1x64xf32> to vector<16x64xf32>
      %389 = arith.mulf %388, %97 : vector<16x64xf32>
      %390 = math.exp %389 : vector<16x64xf32>
      %391 = arith.mulf %390, %377 : vector<16x64xf32>
      %392 = vector.extract_strided_slice %145 {offsets = [0, 12], sizes = [16, 1], strides = [1, 1]} : vector<16x16xf32> to vector<16x1xf32>
      %393 = vector.extract_strided_slice %140 {offsets = [12, 0], sizes = [1, 64], strides = [1, 1]} : vector<16x64xf32> to vector<1x64xf32>
      %394 = vector.broadcast %392 : vector<16x1xf32> to vector<16x64xf32>
      %395 = vector.broadcast %393 : vector<1x64xf32> to vector<16x64xf32>
      %396 = arith.mulf %394, %395 : vector<16x64xf32>
      %397 = arith.addf %391, %396 : vector<16x64xf32>
      %398 = vector.extract_strided_slice %144 {offsets = [12, 0], sizes = [1, 16], strides = [1, 1]} : vector<16x16xf32> to vector<1x16xf32>
      %cst_101 = arith.constant dense<0.000000e+00> : vector<1x64xf32>
      %399 = tpu.matmul %398, %397, %cst_101 {dimension_numbers = #tpu.dot_dimension_numbers<[1], [0], [0], [1], [0, 0, 1, 1], [], []>} : vector<1x16xf32>, vector<16x64xf32>, vector<1x64xf32> -> vector<1x64xf32>
      %c12_i32 = arith.constant 12 : i32
      %400 = vector.broadcast %c12_i32 : i32 to vector<16x1xi32>
      %401 = arith.cmpi eq, %103, %400 : vector<16x1xi32>
      %402 = vector.shape_cast %401 : vector<16x1xi1> to vector<16x1xi1>
      %403 = vector.broadcast %402 : vector<16x1xi1> to vector<16x64xi1>
      %404 = vector.shape_cast %399 : vector<1x64xf32> to vector<1x64xf32>
      %405 = vector.broadcast %404 : vector<1x64xf32> to vector<16x64xf32>
      %406 = arith.select %403, %405, %386 : vector<16x64xi1>, vector<16x64xf32>
      %407 = vector.extract_strided_slice %137 {offsets = [13, 0], sizes = [1, 64], strides = [1, 1]} : vector<16x64xf32> to vector<1x64xf32>
      %408 = vector.broadcast %407 : vector<1x64xf32> to vector<16x64xf32>
      %409 = arith.mulf %408, %97 : vector<16x64xf32>
      %410 = math.exp %409 : vector<16x64xf32>
      %411 = arith.mulf %410, %397 : vector<16x64xf32>
      %412 = vector.extract_strided_slice %145 {offsets = [0, 13], sizes = [16, 1], strides = [1, 1]} : vector<16x16xf32> to vector<16x1xf32>
      %413 = vector.extract_strided_slice %140 {offsets = [13, 0], sizes = [1, 64], strides = [1, 1]} : vector<16x64xf32> to vector<1x64xf32>
      %414 = vector.broadcast %412 : vector<16x1xf32> to vector<16x64xf32>
      %415 = vector.broadcast %413 : vector<1x64xf32> to vector<16x64xf32>
      %416 = arith.mulf %414, %415 : vector<16x64xf32>
      %417 = arith.addf %411, %416 : vector<16x64xf32>
      %418 = vector.extract_strided_slice %144 {offsets = [13, 0], sizes = [1, 16], strides = [1, 1]} : vector<16x16xf32> to vector<1x16xf32>
      %cst_102 = arith.constant dense<0.000000e+00> : vector<1x64xf32>
      %419 = tpu.matmul %418, %417, %cst_102 {dimension_numbers = #tpu.dot_dimension_numbers<[1], [0], [0], [1], [0, 0, 1, 1], [], []>} : vector<1x16xf32>, vector<16x64xf32>, vector<1x64xf32> -> vector<1x64xf32>
      %c13_i32 = arith.constant 13 : i32
      %420 = vector.broadcast %c13_i32 : i32 to vector<16x1xi32>
      %421 = arith.cmpi eq, %103, %420 : vector<16x1xi32>
      %422 = vector.shape_cast %421 : vector<16x1xi1> to vector<16x1xi1>
      %423 = vector.broadcast %422 : vector<16x1xi1> to vector<16x64xi1>
      %424 = vector.shape_cast %419 : vector<1x64xf32> to vector<1x64xf32>
      %425 = vector.broadcast %424 : vector<1x64xf32> to vector<16x64xf32>
      %426 = arith.select %423, %425, %406 : vector<16x64xi1>, vector<16x64xf32>
      %427 = vector.extract_strided_slice %137 {offsets = [14, 0], sizes = [1, 64], strides = [1, 1]} : vector<16x64xf32> to vector<1x64xf32>
      %428 = vector.broadcast %427 : vector<1x64xf32> to vector<16x64xf32>
      %429 = arith.mulf %428, %97 : vector<16x64xf32>
      %430 = math.exp %429 : vector<16x64xf32>
      %431 = arith.mulf %430, %417 : vector<16x64xf32>
      %432 = vector.extract_strided_slice %145 {offsets = [0, 14], sizes = [16, 1], strides = [1, 1]} : vector<16x16xf32> to vector<16x1xf32>
      %433 = vector.extract_strided_slice %140 {offsets = [14, 0], sizes = [1, 64], strides = [1, 1]} : vector<16x64xf32> to vector<1x64xf32>
      %434 = vector.broadcast %432 : vector<16x1xf32> to vector<16x64xf32>
      %435 = vector.broadcast %433 : vector<1x64xf32> to vector<16x64xf32>
      %436 = arith.mulf %434, %435 : vector<16x64xf32>
      %437 = arith.addf %431, %436 : vector<16x64xf32>
      %438 = vector.extract_strided_slice %144 {offsets = [14, 0], sizes = [1, 16], strides = [1, 1]} : vector<16x16xf32> to vector<1x16xf32>
      %cst_103 = arith.constant dense<0.000000e+00> : vector<1x64xf32>
      %439 = tpu.matmul %438, %437, %cst_103 {dimension_numbers = #tpu.dot_dimension_numbers<[1], [0], [0], [1], [0, 0, 1, 1], [], []>} : vector<1x16xf32>, vector<16x64xf32>, vector<1x64xf32> -> vector<1x64xf32>
      %c14_i32 = arith.constant 14 : i32
      %440 = vector.broadcast %c14_i32 : i32 to vector<16x1xi32>
      %441 = arith.cmpi eq, %103, %440 : vector<16x1xi32>
      %442 = vector.shape_cast %441 : vector<16x1xi1> to vector<16x1xi1>
      %443 = vector.broadcast %442 : vector<16x1xi1> to vector<16x64xi1>
      %444 = vector.shape_cast %439 : vector<1x64xf32> to vector<1x64xf32>
      %445 = vector.broadcast %444 : vector<1x64xf32> to vector<16x64xf32>
      %446 = arith.select %443, %445, %426 : vector<16x64xi1>, vector<16x64xf32>
      %447 = vector.extract_strided_slice %137 {offsets = [15, 0], sizes = [1, 64], strides = [1, 1]} : vector<16x64xf32> to vector<1x64xf32>
      %448 = vector.broadcast %447 : vector<1x64xf32> to vector<16x64xf32>
      %449 = arith.mulf %448, %97 : vector<16x64xf32>
      %450 = math.exp %449 : vector<16x64xf32>
      %451 = arith.mulf %450, %437 : vector<16x64xf32>
      %452 = vector.extract_strided_slice %145 {offsets = [0, 15], sizes = [16, 1], strides = [1, 1]} : vector<16x16xf32> to vector<16x1xf32>
      %453 = vector.extract_strided_slice %140 {offsets = [15, 0], sizes = [1, 64], strides = [1, 1]} : vector<16x64xf32> to vector<1x64xf32>
      %454 = vector.broadcast %452 : vector<16x1xf32> to vector<16x64xf32>
      %455 = vector.broadcast %453 : vector<1x64xf32> to vector<16x64xf32>
      %456 = arith.mulf %454, %455 : vector<16x64xf32>
      %457 = arith.addf %451, %456 : vector<16x64xf32>
      %458 = vector.extract_strided_slice %144 {offsets = [15, 0], sizes = [1, 16], strides = [1, 1]} : vector<16x16xf32> to vector<1x16xf32>
      %cst_104 = arith.constant dense<0.000000e+00> : vector<1x64xf32>
      %459 = tpu.matmul %458, %457, %cst_104 {dimension_numbers = #tpu.dot_dimension_numbers<[1], [0], [0], [1], [0, 0, 1, 1], [], []>} : vector<1x16xf32>, vector<16x64xf32>, vector<1x64xf32> -> vector<1x64xf32>
      %c15_i32 = arith.constant 15 : i32
      %460 = vector.broadcast %c15_i32 : i32 to vector<16x1xi32>
      %461 = arith.cmpi eq, %103, %460 : vector<16x1xi32>
      %462 = vector.shape_cast %461 : vector<16x1xi1> to vector<16x1xi1>
      %463 = vector.broadcast %462 : vector<16x1xi1> to vector<16x64xi1>
      %464 = vector.shape_cast %459 : vector<1x64xf32> to vector<1x64xf32>
      %465 = vector.broadcast %464 : vector<1x64xf32> to vector<16x64xf32>
      %466 = arith.select %463, %465, %446 : vector<16x64xi1>, vector<16x64xf32>
      %467 = arith.index_cast %135 : i32 to index
      %c0_105 = arith.constant 0 : index
      %468 = vector.load %arg22[%467, %c0_105] : memref<16x64xf32, #tpu.memory_space<vmem>>, vector<16x64xf32>
      tpu.vector_store %arg22[%467, %c0_105], %466 {strides = array<i32>} : memref<16x64xf32, #tpu.memory_space<vmem>>, vector<16x64xf32>,
      %c1_i32_106 = arith.constant 1 : i32
    } else {
    }
    %c1_i32 = arith.constant 1 : i32
    %106 = arith.cmpi eq, %arg1, %c1_i32 : i32
    %107 = arith.extui %106 : i1 to i32
    %c0_i32_55 = arith.constant 0 : i32
    %108 = arith.cmpi ne, %107, %c0_i32_55 : i32
    scf.if %108 {
      %cst_74 = arith.constant 0.000000e+00 : f32
      %133 = vector.broadcast %cst_74 : f32 to vector<16x64xf32>
      %c0_i32_75 = arith.constant 0 : i32
      %c1_i32_76 = arith.constant 1 : i32
      %134 = arith.addi %c0_i32_75, %c1_i32_76 : i32
      %c16_i32 = arith.constant 16 : i32
      %135 = arith.muli %134, %c16_i32 : i32
      %c16_i32_77 = arith.constant 16 : i32
      %136 = arith.subi %c16_i32_77, %135 : i32
      %137 = tpu.assume_multiple %136, 8 : i32
      %138 = arith.index_cast %137 : i32 to index
      %c0_78 = arith.constant 0 : index
      %139 = vector.load %arg19[%138, %c0_78] : memref<16x64xf32, #tpu.memory_space<vmem>>, vector<16x64xf32>
      %140 = arith.index_cast %137 : i32 to index
      %c0_79 = arith.constant 0 : index
      %141 = vector.load %arg20[%140, %c0_79] : memref<16x64xf32, #tpu.memory_space<vmem>>, vector<16x64xf32>
      %142 = arith.mulf %139, %141 : vector<16x64xf32>
      %143 = arith.index_cast %137 : i32 to index
      %c0_80 = arith.constant 0 : index
      %144 = vector.load %arg21[%143, %c0_80] : memref<16x32xf32, #tpu.memory_space<vmem>>, vector<16x32xf32>
      %145 = vector.extract_strided_slice %144 {offsets = [0, 0], sizes = [16, 16], strides = [1, 1]} : vector<16x32xf32> to vector<16x16xf32>
      %146 = vector.extract_strided_slice %144 {offsets = [0, 16], sizes = [16, 16], strides = [1, 1]} : vector<16x32xf32> to vector<16x16xf32>
      %cst_81 = arith.constant dense<0.000000e+00> : vector<16x16xf32>
      %147 = tpu.matmul %102, %145, %cst_81 {dimension_numbers = #tpu.dot_dimension_numbers<[1], [1], [0], [0], [0, 0, 1, 0], [], []>} : vector<16x16xf32>, vector<16x16xf32>, vector<16x16xf32> -> vector<16x16xf32>
      %cst_82 = arith.constant 0.000000e+00 : f32
      %148 = vector.broadcast %cst_82 : f32 to vector<16x64xf32>
      %149 = vector.extract_strided_slice %139 {offsets = [15, 0], sizes = [1, 64], strides = [1, 1]} : vector<16x64xf32> to vector<1x64xf32>
      %150 = vector.broadcast %149 : vector<1x64xf32> to vector<16x64xf32>
      %151 = arith.mulf %150, %97 : vector<16x64xf32>
      %152 = math.exp %151 : vector<16x64xf32>
      %153 = arith.mulf %152, %133 : vector<16x64xf32>
      %154 = vector.extract_strided_slice %147 {offsets = [0, 15], sizes = [16, 1], strides = [1, 1]} : vector<16x16xf32> to vector<16x1xf32>
      %155 = vector.extract_strided_slice %142 {offsets = [15, 0], sizes = [1, 64], strides = [1, 1]} : vector<16x64xf32> to vector<1x64xf32>
      %156 = vector.broadcast %154 : vector<16x1xf32> to vector<16x64xf32>
      %157 = vector.broadcast %155 : vector<1x64xf32> to vector<16x64xf32>
      %158 = arith.mulf %156, %157 : vector<16x64xf32>
      %159 = arith.addf %153, %158 : vector<16x64xf32>
      %160 = vector.extract_strided_slice %146 {offsets = [15, 0], sizes = [1, 16], strides = [1, 1]} : vector<16x16xf32> to vector<1x16xf32>
      %cst_83 = arith.constant dense<0.000000e+00> : vector<1x64xf32>
      %161 = tpu.matmul %160, %159, %cst_83 {dimension_numbers = #tpu.dot_dimension_numbers<[1], [0], [0], [1], [0, 0, 1, 1], [], []>} : vector<1x16xf32>, vector<16x64xf32>, vector<1x64xf32> -> vector<1x64xf32>
      %c15_i32 = arith.constant 15 : i32
      %162 = vector.broadcast %c15_i32 : i32 to vector<16x1xi32>
      %163 = arith.cmpi eq, %103, %162 : vector<16x1xi32>
      %164 = vector.shape_cast %163 : vector<16x1xi1> to vector<16x1xi1>
      %165 = vector.broadcast %164 : vector<16x1xi1> to vector<16x64xi1>
      %166 = vector.shape_cast %161 : vector<1x64xf32> to vector<1x64xf32>
      %167 = vector.broadcast %166 : vector<1x64xf32> to vector<16x64xf32>
      %168 = arith.select %165, %167, %148 : vector<16x64xi1>, vector<16x64xf32>
      %169 = vector.extract_strided_slice %139 {offsets = [14, 0], sizes = [1, 64], strides = [1, 1]} : vector<16x64xf32> to vector<1x64xf32>
      %170 = vector.broadcast %169 : vector<1x64xf32> to vector<16x64xf32>
      %171 = arith.mulf %170, %97 : vector<16x64xf32>
      %172 = math.exp %171 : vector<16x64xf32>
      %173 = arith.mulf %172, %159 : vector<16x64xf32>
      %174 = vector.extract_strided_slice %147 {offsets = [0, 14], sizes = [16, 1], strides = [1, 1]} : vector<16x16xf32> to vector<16x1xf32>
      %175 = vector.extract_strided_slice %142 {offsets = [14, 0], sizes = [1, 64], strides = [1, 1]} : vector<16x64xf32> to vector<1x64xf32>
      %176 = vector.broadcast %174 : vector<16x1xf32> to vector<16x64xf32>
      %177 = vector.broadcast %175 : vector<1x64xf32> to vector<16x64xf32>
      %178 = arith.mulf %176, %177 : vector<16x64xf32>
      %179 = arith.addf %173, %178 : vector<16x64xf32>
      %180 = vector.extract_strided_slice %146 {offsets = [14, 0], sizes = [1, 16], strides = [1, 1]} : vector<16x16xf32> to vector<1x16xf32>
      %cst_84 = arith.constant dense<0.000000e+00> : vector<1x64xf32>
      %181 = tpu.matmul %180, %179, %cst_84 {dimension_numbers = #tpu.dot_dimension_numbers<[1], [0], [0], [1], [0, 0, 1, 1], [], []>} : vector<1x16xf32>, vector<16x64xf32>, vector<1x64xf32> -> vector<1x64xf32>
      %c14_i32 = arith.constant 14 : i32
      %182 = vector.broadcast %c14_i32 : i32 to vector<16x1xi32>
      %183 = arith.cmpi eq, %103, %182 : vector<16x1xi32>
      %184 = vector.shape_cast %183 : vector<16x1xi1> to vector<16x1xi1>
      %185 = vector.broadcast %184 : vector<16x1xi1> to vector<16x64xi1>
      %186 = vector.shape_cast %181 : vector<1x64xf32> to vector<1x64xf32>
      %187 = vector.broadcast %186 : vector<1x64xf32> to vector<16x64xf32>
      %188 = arith.select %185, %187, %168 : vector<16x64xi1>, vector<16x64xf32>
      %189 = vector.extract_strided_slice %139 {offsets = [13, 0], sizes = [1, 64], strides = [1, 1]} : vector<16x64xf32> to vector<1x64xf32>
      %190 = vector.broadcast %189 : vector<1x64xf32> to vector<16x64xf32>
      %191 = arith.mulf %190, %97 : vector<16x64xf32>
      %192 = math.exp %191 : vector<16x64xf32>
      %193 = arith.mulf %192, %179 : vector<16x64xf32>
      %194 = vector.extract_strided_slice %147 {offsets = [0, 13], sizes = [16, 1], strides = [1, 1]} : vector<16x16xf32> to vector<16x1xf32>
      %195 = vector.extract_strided_slice %142 {offsets = [13, 0], sizes = [1, 64], strides = [1, 1]} : vector<16x64xf32> to vector<1x64xf32>
      %196 = vector.broadcast %194 : vector<16x1xf32> to vector<16x64xf32>
      %197 = vector.broadcast %195 : vector<1x64xf32> to vector<16x64xf32>
      %198 = arith.mulf %196, %197 : vector<16x64xf32>
      %199 = arith.addf %193, %198 : vector<16x64xf32>
      %200 = vector.extract_strided_slice %146 {offsets = [13, 0], sizes = [1, 16], strides = [1, 1]} : vector<16x16xf32> to vector<1x16xf32>
      %cst_85 = arith.constant dense<0.000000e+00> : vector<1x64xf32>
      %201 = tpu.matmul %200, %199, %cst_85 {dimension_numbers = #tpu.dot_dimension_numbers<[1], [0], [0], [1], [0, 0, 1, 1], [], []>} : vector<1x16xf32>, vector<16x64xf32>, vector<1x64xf32> -> vector<1x64xf32>
      %c13_i32 = arith.constant 13 : i32
      %202 = vector.broadcast %c13_i32 : i32 to vector<16x1xi32>
      %203 = arith.cmpi eq, %103, %202 : vector<16x1xi32>
      %204 = vector.shape_cast %203 : vector<16x1xi1> to vector<16x1xi1>
      %205 = vector.broadcast %204 : vector<16x1xi1> to vector<16x64xi1>
      %206 = vector.shape_cast %201 : vector<1x64xf32> to vector<1x64xf32>
      %207 = vector.broadcast %206 : vector<1x64xf32> to vector<16x64xf32>
      %208 = arith.select %205, %207, %188 : vector<16x64xi1>, vector<16x64xf32>
      %209 = vector.extract_strided_slice %139 {offsets = [12, 0], sizes = [1, 64], strides = [1, 1]} : vector<16x64xf32> to vector<1x64xf32>
      %210 = vector.broadcast %209 : vector<1x64xf32> to vector<16x64xf32>
      %211 = arith.mulf %210, %97 : vector<16x64xf32>
      %212 = math.exp %211 : vector<16x64xf32>
      %213 = arith.mulf %212, %199 : vector<16x64xf32>
      %214 = vector.extract_strided_slice %147 {offsets = [0, 12], sizes = [16, 1], strides = [1, 1]} : vector<16x16xf32> to vector<16x1xf32>
      %215 = vector.extract_strided_slice %142 {offsets = [12, 0], sizes = [1, 64], strides = [1, 1]} : vector<16x64xf32> to vector<1x64xf32>
      %216 = vector.broadcast %214 : vector<16x1xf32> to vector<16x64xf32>
      %217 = vector.broadcast %215 : vector<1x64xf32> to vector<16x64xf32>
      %218 = arith.mulf %216, %217 : vector<16x64xf32>
      %219 = arith.addf %213, %218 : vector<16x64xf32>
      %220 = vector.extract_strided_slice %146 {offsets = [12, 0], sizes = [1, 16], strides = [1, 1]} : vector<16x16xf32> to vector<1x16xf32>
      %cst_86 = arith.constant dense<0.000000e+00> : vector<1x64xf32>
      %221 = tpu.matmul %220, %219, %cst_86 {dimension_numbers = #tpu.dot_dimension_numbers<[1], [0], [0], [1], [0, 0, 1, 1], [], []>} : vector<1x16xf32>, vector<16x64xf32>, vector<1x64xf32> -> vector<1x64xf32>
      %c12_i32 = arith.constant 12 : i32
      %222 = vector.broadcast %c12_i32 : i32 to vector<16x1xi32>
      %223 = arith.cmpi eq, %103, %222 : vector<16x1xi32>
      %224 = vector.shape_cast %223 : vector<16x1xi1> to vector<16x1xi1>
      %225 = vector.broadcast %224 : vector<16x1xi1> to vector<16x64xi1>
      %226 = vector.shape_cast %221 : vector<1x64xf32> to vector<1x64xf32>
      %227 = vector.broadcast %226 : vector<1x64xf32> to vector<16x64xf32>
      %228 = arith.select %225, %227, %208 : vector<16x64xi1>, vector<16x64xf32>
      %229 = vector.extract_strided_slice %139 {offsets = [11, 0], sizes = [1, 64], strides = [1, 1]} : vector<16x64xf32> to vector<1x64xf32>
      %230 = vector.broadcast %229 : vector<1x64xf32> to vector<16x64xf32>
      %231 = arith.mulf %230, %97 : vector<16x64xf32>
      %232 = math.exp %231 : vector<16x64xf32>
      %233 = arith.mulf %232, %219 : vector<16x64xf32>
      %234 = vector.extract_strided_slice %147 {offsets = [0, 11], sizes = [16, 1], strides = [1, 1]} : vector<16x16xf32> to vector<16x1xf32>
      %235 = vector.extract_strided_slice %142 {offsets = [11, 0], sizes = [1, 64], strides = [1, 1]} : vector<16x64xf32> to vector<1x64xf32>
      %236 = vector.broadcast %234 : vector<16x1xf32> to vector<16x64xf32>
      %237 = vector.broadcast %235 : vector<1x64xf32> to vector<16x64xf32>
      %238 = arith.mulf %236, %237 : vector<16x64xf32>
      %239 = arith.addf %233, %238 : vector<16x64xf32>
      %240 = vector.extract_strided_slice %146 {offsets = [11, 0], sizes = [1, 16], strides = [1, 1]} : vector<16x16xf32> to vector<1x16xf32>
      %cst_87 = arith.constant dense<0.000000e+00> : vector<1x64xf32>
      %241 = tpu.matmul %240, %239, %cst_87 {dimension_numbers = #tpu.dot_dimension_numbers<[1], [0], [0], [1], [0, 0, 1, 1], [], []>} : vector<1x16xf32>, vector<16x64xf32>, vector<1x64xf32> -> vector<1x64xf32>
      %c11_i32_88 = arith.constant 11 : i32
      %242 = vector.broadcast %c11_i32_88 : i32 to vector<16x1xi32>
      %243 = arith.cmpi eq, %103, %242 : vector<16x1xi32>
      %244 = vector.shape_cast %243 : vector<16x1xi1> to vector<16x1xi1>
      %245 = vector.broadcast %244 : vector<16x1xi1> to vector<16x64xi1>
      %246 = vector.shape_cast %241 : vector<1x64xf32> to vector<1x64xf32>
      %247 = vector.broadcast %246 : vector<1x64xf32> to vector<16x64xf32>
      %248 = arith.select %245, %247, %228 : vector<16x64xi1>, vector<16x64xf32>
      %249 = vector.extract_strided_slice %139 {offsets = [10, 0], sizes = [1, 64], strides = [1, 1]} : vector<16x64xf32> to vector<1x64xf32>
      %250 = vector.broadcast %249 : vector<1x64xf32> to vector<16x64xf32>
      %251 = arith.mulf %250, %97 : vector<16x64xf32>
      %252 = math.exp %251 : vector<16x64xf32>
      %253 = arith.mulf %252, %239 : vector<16x64xf32>
      %254 = vector.extract_strided_slice %147 {offsets = [0, 10], sizes = [16, 1], strides = [1, 1]} : vector<16x16xf32> to vector<16x1xf32>
      %255 = vector.extract_strided_slice %142 {offsets = [10, 0], sizes = [1, 64], strides = [1, 1]} : vector<16x64xf32> to vector<1x64xf32>
      %256 = vector.broadcast %254 : vector<16x1xf32> to vector<16x64xf32>
      %257 = vector.broadcast %255 : vector<1x64xf32> to vector<16x64xf32>
      %258 = arith.mulf %256, %257 : vector<16x64xf32>
      %259 = arith.addf %253, %258 : vector<16x64xf32>
      %260 = vector.extract_strided_slice %146 {offsets = [10, 0], sizes = [1, 16], strides = [1, 1]} : vector<16x16xf32> to vector<1x16xf32>
      %cst_89 = arith.constant dense<0.000000e+00> : vector<1x64xf32>
      %261 = tpu.matmul %260, %259, %cst_89 {dimension_numbers = #tpu.dot_dimension_numbers<[1], [0], [0], [1], [0, 0, 1, 1], [], []>} : vector<1x16xf32>, vector<16x64xf32>, vector<1x64xf32> -> vector<1x64xf32>
      %c10_i32_90 = arith.constant 10 : i32
      %262 = vector.broadcast %c10_i32_90 : i32 to vector<16x1xi32>
      %263 = arith.cmpi eq, %103, %262 : vector<16x1xi32>
      %264 = vector.shape_cast %263 : vector<16x1xi1> to vector<16x1xi1>
      %265 = vector.broadcast %264 : vector<16x1xi1> to vector<16x64xi1>
      %266 = vector.shape_cast %261 : vector<1x64xf32> to vector<1x64xf32>
      %267 = vector.broadcast %266 : vector<1x64xf32> to vector<16x64xf32>
      %268 = arith.select %265, %267, %248 : vector<16x64xi1>, vector<16x64xf32>
      %269 = vector.extract_strided_slice %139 {offsets = [9, 0], sizes = [1, 64], strides = [1, 1]} : vector<16x64xf32> to vector<1x64xf32>
      %270 = vector.broadcast %269 : vector<1x64xf32> to vector<16x64xf32>
      %271 = arith.mulf %270, %97 : vector<16x64xf32>
      %272 = math.exp %271 : vector<16x64xf32>
      %273 = arith.mulf %272, %259 : vector<16x64xf32>
      %274 = vector.extract_strided_slice %147 {offsets = [0, 9], sizes = [16, 1], strides = [1, 1]} : vector<16x16xf32> to vector<16x1xf32>
      %275 = vector.extract_strided_slice %142 {offsets = [9, 0], sizes = [1, 64], strides = [1, 1]} : vector<16x64xf32> to vector<1x64xf32>
      %276 = vector.broadcast %274 : vector<16x1xf32> to vector<16x64xf32>
      %277 = vector.broadcast %275 : vector<1x64xf32> to vector<16x64xf32>
      %278 = arith.mulf %276, %277 : vector<16x64xf32>
      %279 = arith.addf %273, %278 : vector<16x64xf32>
      %280 = vector.extract_strided_slice %146 {offsets = [9, 0], sizes = [1, 16], strides = [1, 1]} : vector<16x16xf32> to vector<1x16xf32>
      %cst_91 = arith.constant dense<0.000000e+00> : vector<1x64xf32>
      %281 = tpu.matmul %280, %279, %cst_91 {dimension_numbers = #tpu.dot_dimension_numbers<[1], [0], [0], [1], [0, 0, 1, 1], [], []>} : vector<1x16xf32>, vector<16x64xf32>, vector<1x64xf32> -> vector<1x64xf32>
      %c9_i32_92 = arith.constant 9 : i32
      %282 = vector.broadcast %c9_i32_92 : i32 to vector<16x1xi32>
      %283 = arith.cmpi eq, %103, %282 : vector<16x1xi32>
      %284 = vector.shape_cast %283 : vector<16x1xi1> to vector<16x1xi1>
      %285 = vector.broadcast %284 : vector<16x1xi1> to vector<16x64xi1>
      %286 = vector.shape_cast %281 : vector<1x64xf32> to vector<1x64xf32>
      %287 = vector.broadcast %286 : vector<1x64xf32> to vector<16x64xf32>
      %288 = arith.select %285, %287, %268 : vector<16x64xi1>, vector<16x64xf32>
      %289 = vector.extract_strided_slice %139 {offsets = [8, 0], sizes = [1, 64], strides = [1, 1]} : vector<16x64xf32> to vector<1x64xf32>
      %290 = vector.broadcast %289 : vector<1x64xf32> to vector<16x64xf32>
      %291 = arith.mulf %290, %97 : vector<16x64xf32>
      %292 = math.exp %291 : vector<16x64xf32>
      %293 = arith.mulf %292, %279 : vector<16x64xf32>
      %294 = vector.extract_strided_slice %147 {offsets = [0, 8], sizes = [16, 1], strides = [1, 1]} : vector<16x16xf32> to vector<16x1xf32>
      %295 = vector.extract_strided_slice %142 {offsets = [8, 0], sizes = [1, 64], strides = [1, 1]} : vector<16x64xf32> to vector<1x64xf32>
      %296 = vector.broadcast %294 : vector<16x1xf32> to vector<16x64xf32>
      %297 = vector.broadcast %295 : vector<1x64xf32> to vector<16x64xf32>
      %298 = arith.mulf %296, %297 : vector<16x64xf32>
      %299 = arith.addf %293, %298 : vector<16x64xf32>
      %300 = vector.extract_strided_slice %146 {offsets = [8, 0], sizes = [1, 16], strides = [1, 1]} : vector<16x16xf32> to vector<1x16xf32>
      %cst_93 = arith.constant dense<0.000000e+00> : vector<1x64xf32>
      %301 = tpu.matmul %300, %299, %cst_93 {dimension_numbers = #tpu.dot_dimension_numbers<[1], [0], [0], [1], [0, 0, 1, 1], [], []>} : vector<1x16xf32>, vector<16x64xf32>, vector<1x64xf32> -> vector<1x64xf32>
      %c8_i32 = arith.constant 8 : i32
      %302 = vector.broadcast %c8_i32 : i32 to vector<16x1xi32>
      %303 = arith.cmpi eq, %103, %302 : vector<16x1xi32>
      %304 = vector.shape_cast %303 : vector<16x1xi1> to vector<16x1xi1>
      %305 = vector.broadcast %304 : vector<16x1xi1> to vector<16x64xi1>
      %306 = vector.shape_cast %301 : vector<1x64xf32> to vector<1x64xf32>
      %307 = vector.broadcast %306 : vector<1x64xf32> to vector<16x64xf32>
      %308 = arith.select %305, %307, %288 : vector<16x64xi1>, vector<16x64xf32>
      %309 = vector.extract_strided_slice %139 {offsets = [7, 0], sizes = [1, 64], strides = [1, 1]} : vector<16x64xf32> to vector<1x64xf32>
      %310 = vector.broadcast %309 : vector<1x64xf32> to vector<16x64xf32>
      %311 = arith.mulf %310, %97 : vector<16x64xf32>
      %312 = math.exp %311 : vector<16x64xf32>
      %313 = arith.mulf %312, %299 : vector<16x64xf32>
      %314 = vector.extract_strided_slice %147 {offsets = [0, 7], sizes = [16, 1], strides = [1, 1]} : vector<16x16xf32> to vector<16x1xf32>
      %315 = vector.extract_strided_slice %142 {offsets = [7, 0], sizes = [1, 64], strides = [1, 1]} : vector<16x64xf32> to vector<1x64xf32>
      %316 = vector.broadcast %314 : vector<16x1xf32> to vector<16x64xf32>
      %317 = vector.broadcast %315 : vector<1x64xf32> to vector<16x64xf32>
      %318 = arith.mulf %316, %317 : vector<16x64xf32>
      %319 = arith.addf %313, %318 : vector<16x64xf32>
      %320 = vector.extract_strided_slice %146 {offsets = [7, 0], sizes = [1, 16], strides = [1, 1]} : vector<16x16xf32> to vector<1x16xf32>
      %cst_94 = arith.constant dense<0.000000e+00> : vector<1x64xf32>
      %321 = tpu.matmul %320, %319, %cst_94 {dimension_numbers = #tpu.dot_dimension_numbers<[1], [0], [0], [1], [0, 0, 1, 1], [], []>} : vector<1x16xf32>, vector<16x64xf32>, vector<1x64xf32> -> vector<1x64xf32>
      %c7_i32_95 = arith.constant 7 : i32
      %322 = vector.broadcast %c7_i32_95 : i32 to vector<16x1xi32>
      %323 = arith.cmpi eq, %103, %322 : vector<16x1xi32>
      %324 = vector.shape_cast %323 : vector<16x1xi1> to vector<16x1xi1>
      %325 = vector.broadcast %324 : vector<16x1xi1> to vector<16x64xi1>
      %326 = vector.shape_cast %321 : vector<1x64xf32> to vector<1x64xf32>
      %327 = vector.broadcast %326 : vector<1x64xf32> to vector<16x64xf32>
      %328 = arith.select %325, %327, %308 : vector<16x64xi1>, vector<16x64xf32>
      %329 = vector.extract_strided_slice %139 {offsets = [6, 0], sizes = [1, 64], strides = [1, 1]} : vector<16x64xf32> to vector<1x64xf32>
      %330 = vector.broadcast %329 : vector<1x64xf32> to vector<16x64xf32>
      %331 = arith.mulf %330, %97 : vector<16x64xf32>
      %332 = math.exp %331 : vector<16x64xf32>
      %333 = arith.mulf %332, %319 : vector<16x64xf32>
      %334 = vector.extract_strided_slice %147 {offsets = [0, 6], sizes = [16, 1], strides = [1, 1]} : vector<16x16xf32> to vector<16x1xf32>
      %335 = vector.extract_strided_slice %142 {offsets = [6, 0], sizes = [1, 64], strides = [1, 1]} : vector<16x64xf32> to vector<1x64xf32>
      %336 = vector.broadcast %334 : vector<16x1xf32> to vector<16x64xf32>
      %337 = vector.broadcast %335 : vector<1x64xf32> to vector<16x64xf32>
      %338 = arith.mulf %336, %337 : vector<16x64xf32>
      %339 = arith.addf %333, %338 : vector<16x64xf32>
      %340 = vector.extract_strided_slice %146 {offsets = [6, 0], sizes = [1, 16], strides = [1, 1]} : vector<16x16xf32> to vector<1x16xf32>
      %cst_96 = arith.constant dense<0.000000e+00> : vector<1x64xf32>
      %341 = tpu.matmul %340, %339, %cst_96 {dimension_numbers = #tpu.dot_dimension_numbers<[1], [0], [0], [1], [0, 0, 1, 1], [], []>} : vector<1x16xf32>, vector<16x64xf32>, vector<1x64xf32> -> vector<1x64xf32>
      %c6_i32_97 = arith.constant 6 : i32
      %342 = vector.broadcast %c6_i32_97 : i32 to vector<16x1xi32>
      %343 = arith.cmpi eq, %103, %342 : vector<16x1xi32>
      %344 = vector.shape_cast %343 : vector<16x1xi1> to vector<16x1xi1>
      %345 = vector.broadcast %344 : vector<16x1xi1> to vector<16x64xi1>
      %346 = vector.shape_cast %341 : vector<1x64xf32> to vector<1x64xf32>
      %347 = vector.broadcast %346 : vector<1x64xf32> to vector<16x64xf32>
      %348 = arith.select %345, %347, %328 : vector<16x64xi1>, vector<16x64xf32>
      %349 = vector.extract_strided_slice %139 {offsets = [5, 0], sizes = [1, 64], strides = [1, 1]} : vector<16x64xf32> to vector<1x64xf32>
      %350 = vector.broadcast %349 : vector<1x64xf32> to vector<16x64xf32>
      %351 = arith.mulf %350, %97 : vector<16x64xf32>
      %352 = math.exp %351 : vector<16x64xf32>
      %353 = arith.mulf %352, %339 : vector<16x64xf32>
      %354 = vector.extract_strided_slice %147 {offsets = [0, 5], sizes = [16, 1], strides = [1, 1]} : vector<16x16xf32> to vector<16x1xf32>
      %355 = vector.extract_strided_slice %142 {offsets = [5, 0], sizes = [1, 64], strides = [1, 1]} : vector<16x64xf32> to vector<1x64xf32>
      %356 = vector.broadcast %354 : vector<16x1xf32> to vector<16x64xf32>
      %357 = vector.broadcast %355 : vector<1x64xf32> to vector<16x64xf32>
      %358 = arith.mulf %356, %357 : vector<16x64xf32>
      %359 = arith.addf %353, %358 : vector<16x64xf32>
      %360 = vector.extract_strided_slice %146 {offsets = [5, 0], sizes = [1, 16], strides = [1, 1]} : vector<16x16xf32> to vector<1x16xf32>
      %cst_98 = arith.constant dense<0.000000e+00> : vector<1x64xf32>
      %361 = tpu.matmul %360, %359, %cst_98 {dimension_numbers = #tpu.dot_dimension_numbers<[1], [0], [0], [1], [0, 0, 1, 1], [], []>} : vector<1x16xf32>, vector<16x64xf32>, vector<1x64xf32> -> vector<1x64xf32>
      %c5_i32_99 = arith.constant 5 : i32
      %362 = vector.broadcast %c5_i32_99 : i32 to vector<16x1xi32>
      %363 = arith.cmpi eq, %103, %362 : vector<16x1xi32>
      %364 = vector.shape_cast %363 : vector<16x1xi1> to vector<16x1xi1>
      %365 = vector.broadcast %364 : vector<16x1xi1> to vector<16x64xi1>
      %366 = vector.shape_cast %361 : vector<1x64xf32> to vector<1x64xf32>
      %367 = vector.broadcast %366 : vector<1x64xf32> to vector<16x64xf32>
      %368 = arith.select %365, %367, %348 : vector<16x64xi1>, vector<16x64xf32>
      %369 = vector.extract_strided_slice %139 {offsets = [4, 0], sizes = [1, 64], strides = [1, 1]} : vector<16x64xf32> to vector<1x64xf32>
      %370 = vector.broadcast %369 : vector<1x64xf32> to vector<16x64xf32>
      %371 = arith.mulf %370, %97 : vector<16x64xf32>
      %372 = math.exp %371 : vector<16x64xf32>
      %373 = arith.mulf %372, %359 : vector<16x64xf32>
      %374 = vector.extract_strided_slice %147 {offsets = [0, 4], sizes = [16, 1], strides = [1, 1]} : vector<16x16xf32> to vector<16x1xf32>
      %375 = vector.extract_strided_slice %142 {offsets = [4, 0], sizes = [1, 64], strides = [1, 1]} : vector<16x64xf32> to vector<1x64xf32>
      %376 = vector.broadcast %374 : vector<16x1xf32> to vector<16x64xf32>
      %377 = vector.broadcast %375 : vector<1x64xf32> to vector<16x64xf32>
      %378 = arith.mulf %376, %377 : vector<16x64xf32>
      %379 = arith.addf %373, %378 : vector<16x64xf32>
      %380 = vector.extract_strided_slice %146 {offsets = [4, 0], sizes = [1, 16], strides = [1, 1]} : vector<16x16xf32> to vector<1x16xf32>
      %cst_100 = arith.constant dense<0.000000e+00> : vector<1x64xf32>
      %381 = tpu.matmul %380, %379, %cst_100 {dimension_numbers = #tpu.dot_dimension_numbers<[1], [0], [0], [1], [0, 0, 1, 1], [], []>} : vector<1x16xf32>, vector<16x64xf32>, vector<1x64xf32> -> vector<1x64xf32>
      %c4_i32 = arith.constant 4 : i32
      %382 = vector.broadcast %c4_i32 : i32 to vector<16x1xi32>
      %383 = arith.cmpi eq, %103, %382 : vector<16x1xi32>
      %384 = vector.shape_cast %383 : vector<16x1xi1> to vector<16x1xi1>
      %385 = vector.broadcast %384 : vector<16x1xi1> to vector<16x64xi1>
      %386 = vector.shape_cast %381 : vector<1x64xf32> to vector<1x64xf32>
      %387 = vector.broadcast %386 : vector<1x64xf32> to vector<16x64xf32>
      %388 = arith.select %385, %387, %368 : vector<16x64xi1>, vector<16x64xf32>
      %389 = vector.extract_strided_slice %139 {offsets = [3, 0], sizes = [1, 64], strides = [1, 1]} : vector<16x64xf32> to vector<1x64xf32>
      %390 = vector.broadcast %389 : vector<1x64xf32> to vector<16x64xf32>
      %391 = arith.mulf %390, %97 : vector<16x64xf32>
      %392 = math.exp %391 : vector<16x64xf32>
      %393 = arith.mulf %392, %379 : vector<16x64xf32>
      %394 = vector.extract_strided_slice %147 {offsets = [0, 3], sizes = [16, 1], strides = [1, 1]} : vector<16x16xf32> to vector<16x1xf32>
      %395 = vector.extract_strided_slice %142 {offsets = [3, 0], sizes = [1, 64], strides = [1, 1]} : vector<16x64xf32> to vector<1x64xf32>
      %396 = vector.broadcast %394 : vector<16x1xf32> to vector<16x64xf32>
      %397 = vector.broadcast %395 : vector<1x64xf32> to vector<16x64xf32>
      %398 = arith.mulf %396, %397 : vector<16x64xf32>
      %399 = arith.addf %393, %398 : vector<16x64xf32>
      %400 = vector.extract_strided_slice %146 {offsets = [3, 0], sizes = [1, 16], strides = [1, 1]} : vector<16x16xf32> to vector<1x16xf32>
      %cst_101 = arith.constant dense<0.000000e+00> : vector<1x64xf32>
      %401 = tpu.matmul %400, %399, %cst_101 {dimension_numbers = #tpu.dot_dimension_numbers<[1], [0], [0], [1], [0, 0, 1, 1], [], []>} : vector<1x16xf32>, vector<16x64xf32>, vector<1x64xf32> -> vector<1x64xf32>
      %c3_i32 = arith.constant 3 : i32
      %402 = vector.broadcast %c3_i32 : i32 to vector<16x1xi32>
      %403 = arith.cmpi eq, %103, %402 : vector<16x1xi32>
      %404 = vector.shape_cast %403 : vector<16x1xi1> to vector<16x1xi1>
      %405 = vector.broadcast %404 : vector<16x1xi1> to vector<16x64xi1>
      %406 = vector.shape_cast %401 : vector<1x64xf32> to vector<1x64xf32>
      %407 = vector.broadcast %406 : vector<1x64xf32> to vector<16x64xf32>
      %408 = arith.select %405, %407, %388 : vector<16x64xi1>, vector<16x64xf32>
      %409 = vector.extract_strided_slice %139 {offsets = [2, 0], sizes = [1, 64], strides = [1, 1]} : vector<16x64xf32> to vector<1x64xf32>
      %410 = vector.broadcast %409 : vector<1x64xf32> to vector<16x64xf32>
      %411 = arith.mulf %410, %97 : vector<16x64xf32>
      %412 = math.exp %411 : vector<16x64xf32>
      %413 = arith.mulf %412, %399 : vector<16x64xf32>
      %414 = vector.extract_strided_slice %147 {offsets = [0, 2], sizes = [16, 1], strides = [1, 1]} : vector<16x16xf32> to vector<16x1xf32>
      %415 = vector.extract_strided_slice %142 {offsets = [2, 0], sizes = [1, 64], strides = [1, 1]} : vector<16x64xf32> to vector<1x64xf32>
      %416 = vector.broadcast %414 : vector<16x1xf32> to vector<16x64xf32>
      %417 = vector.broadcast %415 : vector<1x64xf32> to vector<16x64xf32>
      %418 = arith.mulf %416, %417 : vector<16x64xf32>
      %419 = arith.addf %413, %418 : vector<16x64xf32>
      %420 = vector.extract_strided_slice %146 {offsets = [2, 0], sizes = [1, 16], strides = [1, 1]} : vector<16x16xf32> to vector<1x16xf32>
      %cst_102 = arith.constant dense<0.000000e+00> : vector<1x64xf32>
      %421 = tpu.matmul %420, %419, %cst_102 {dimension_numbers = #tpu.dot_dimension_numbers<[1], [0], [0], [1], [0, 0, 1, 1], [], []>} : vector<1x16xf32>, vector<16x64xf32>, vector<1x64xf32> -> vector<1x64xf32>
      %c2_i32 = arith.constant 2 : i32
      %422 = vector.broadcast %c2_i32 : i32 to vector<16x1xi32>
      %423 = arith.cmpi eq, %103, %422 : vector<16x1xi32>
      %424 = vector.shape_cast %423 : vector<16x1xi1> to vector<16x1xi1>
      %425 = vector.broadcast %424 : vector<16x1xi1> to vector<16x64xi1>
      %426 = vector.shape_cast %421 : vector<1x64xf32> to vector<1x64xf32>
      %427 = vector.broadcast %426 : vector<1x64xf32> to vector<16x64xf32>
      %428 = arith.select %425, %427, %408 : vector<16x64xi1>, vector<16x64xf32>
      %429 = vector.extract_strided_slice %139 {offsets = [1, 0], sizes = [1, 64], strides = [1, 1]} : vector<16x64xf32> to vector<1x64xf32>
      %430 = vector.broadcast %429 : vector<1x64xf32> to vector<16x64xf32>
      %431 = arith.mulf %430, %97 : vector<16x64xf32>
      %432 = math.exp %431 : vector<16x64xf32>
      %433 = arith.mulf %432, %419 : vector<16x64xf32>
      %434 = vector.extract_strided_slice %147 {offsets = [0, 1], sizes = [16, 1], strides = [1, 1]} : vector<16x16xf32> to vector<16x1xf32>
      %435 = vector.extract_strided_slice %142 {offsets = [1, 0], sizes = [1, 64], strides = [1, 1]} : vector<16x64xf32> to vector<1x64xf32>
      %436 = vector.broadcast %434 : vector<16x1xf32> to vector<16x64xf32>
      %437 = vector.broadcast %435 : vector<1x64xf32> to vector<16x64xf32>
      %438 = arith.mulf %436, %437 : vector<16x64xf32>
      %439 = arith.addf %433, %438 : vector<16x64xf32>
      %440 = vector.extract_strided_slice %146 {offsets = [1, 0], sizes = [1, 16], strides = [1, 1]} : vector<16x16xf32> to vector<1x16xf32>
      %cst_103 = arith.constant dense<0.000000e+00> : vector<1x64xf32>
      %441 = tpu.matmul %440, %439, %cst_103 {dimension_numbers = #tpu.dot_dimension_numbers<[1], [0], [0], [1], [0, 0, 1, 1], [], []>} : vector<1x16xf32>, vector<16x64xf32>, vector<1x64xf32> -> vector<1x64xf32>
      %c1_i32_104 = arith.constant 1 : i32
      %442 = vector.broadcast %c1_i32_104 : i32 to vector<16x1xi32>
      %443 = arith.cmpi eq, %103, %442 : vector<16x1xi32>
      %444 = vector.shape_cast %443 : vector<16x1xi1> to vector<16x1xi1>
      %445 = vector.broadcast %444 : vector<16x1xi1> to vector<16x64xi1>
      %446 = vector.shape_cast %441 : vector<1x64xf32> to vector<1x64xf32>
      %447 = vector.broadcast %446 : vector<1x64xf32> to vector<16x64xf32>
      %448 = arith.select %445, %447, %428 : vector<16x64xi1>, vector<16x64xf32>
      %449 = vector.extract_strided_slice %139 {offsets = [0, 0], sizes = [1, 64], strides = [1, 1]} : vector<16x64xf32> to vector<1x64xf32>
      %450 = vector.broadcast %449 : vector<1x64xf32> to vector<16x64xf32>
      %451 = arith.mulf %450, %97 : vector<16x64xf32>
      %452 = math.exp %451 : vector<16x64xf32>
      %453 = arith.mulf %452, %439 : vector<16x64xf32>
      %454 = vector.extract_strided_slice %147 {offsets = [0, 0], sizes = [16, 1], strides = [1, 1]} : vector<16x16xf32> to vector<16x1xf32>
      %455 = vector.extract_strided_slice %142 {offsets = [0, 0], sizes = [1, 64], strides = [1, 1]} : vector<16x64xf32> to vector<1x64xf32>
      %456 = vector.broadcast %454 : vector<16x1xf32> to vector<16x64xf32>
      %457 = vector.broadcast %455 : vector<1x64xf32> to vector<16x64xf32>
      %458 = arith.mulf %456, %457 : vector<16x64xf32>
      %459 = arith.addf %453, %458 : vector<16x64xf32>
      %460 = vector.extract_strided_slice %146 {offsets = [0, 0], sizes = [1, 16], strides = [1, 1]} : vector<16x16xf32> to vector<1x16xf32>
      %cst_105 = arith.constant dense<0.000000e+00> : vector<1x64xf32>
      %461 = tpu.matmul %460, %459, %cst_105 {dimension_numbers = #tpu.dot_dimension_numbers<[1], [0], [0], [1], [0, 0, 1, 1], [], []>} : vector<1x16xf32>, vector<16x64xf32>, vector<1x64xf32> -> vector<1x64xf32>
      %c0_i32_106 = arith.constant 0 : i32
      %462 = vector.broadcast %c0_i32_106 : i32 to vector<16x1xi32>
      %463 = arith.cmpi eq, %103, %462 : vector<16x1xi32>
      %464 = vector.shape_cast %463 : vector<16x1xi1> to vector<16x1xi1>
      %465 = vector.broadcast %464 : vector<16x1xi1> to vector<16x64xi1>
      %466 = vector.shape_cast %461 : vector<1x64xf32> to vector<1x64xf32>
      %467 = vector.broadcast %466 : vector<1x64xf32> to vector<16x64xf32>
      %468 = arith.select %465, %467, %448 : vector<16x64xi1>, vector<16x64xf32>
      %469 = arith.index_cast %137 : i32 to index
      %c0_107 = arith.constant 0 : index
      %470 = vector.load %arg22[%469, %c0_107] : memref<16x64xf32, #tpu.memory_space<vmem>>, vector<16x64xf32>
      tpu.vector_store %arg22[%469, %c0_107], %468 {strides = array<i32>} : memref<16x64xf32, #tpu.memory_space<vmem>>, vector<16x64xf32>,
      %c1_i32_108 = arith.constant 1 : i32
    } else {
    }
    %c0_56 = arith.constant 0 : index
    %c0_57 = arith.constant 0 : index
    %109 = vector.load %arg7[%c0_56, %c0_57] : memref<32x64xf32, #tpu.memory_space<vmem>>, vector<32x64xf32>
    %cst_58 = arith.constant dense<0.000000e+00> : vector<16x64xf32>
    %110 = tpu.matmul %30, %109, %cst_58 {dimension_numbers = #tpu.dot_dimension_numbers<[1], [0], [0], [1], [0, 0, 1, 1], [], []>} : vector<16x32xf32>, vector<32x64xf32>, vector<16x64xf32> -> vector<16x64xf32>
    %c0_59 = arith.constant 0 : index
    %c0_60 = arith.constant 0 : index
    %111 = vector.load %arg22[%c0_59, %c0_60] : memref<16x64xf32, #tpu.memory_space<vmem>>, vector<16x64xf32>
    %c0_61 = arith.constant 0 : index
    %c0_62 = arith.constant 0 : index
    %112 = vector.load %arg20[%c0_61, %c0_62] : memref<16x64xf32, #tpu.memory_space<vmem>>, vector<16x64xf32>
    %c0_63 = arith.constant 0 : index
    %c0_64 = arith.constant 0 : index
    %113 = vector.load %arg14[%c0_63, %c0_64] : memref<1x64xf32, #tpu.memory_space<vmem>>, vector<1x64xf32>
    %114 = vector.broadcast %113 : vector<1x64xf32> to vector<16x64xf32>
    %115 = arith.mulf %112, %114 : vector<16x64xf32>
    %116 = arith.addf %111, %115 : vector<16x64xf32>
    %cst_65 = arith.constant 0.000000e+00 : f32
    %117 = vector.broadcast %cst_65 : f32 to vector<16x64xf32>
    %118 = arith.subf %117, %110 : vector<16x64xf32>
    %119 = math.exp %118 : vector<16x64xf32>
    %cst_66 = arith.constant 1.000000e+00 : f32
    %120 = vector.broadcast %cst_66 : f32 to vector<16x64xf32>
    %121 = arith.addf %120, %119 : vector<16x64xf32>
    %cst_67 = arith.constant 1.000000e+00 : f32
    %122 = vector.broadcast %cst_67 : f32 to vector<16x64xf32>
    %123 = arith.divf %122, %121 : vector<16x64xf32>
    %124 = arith.mulf %110, %123 : vector<16x64xf32>
    %125 = arith.mulf %116, %124 : vector<16x64xf32>
    %c0_68 = arith.constant 0 : index
    %c0_69 = arith.constant 0 : index
    %126 = vector.load %arg15[%c0_68, %c0_69] : memref<64x32xf32, #tpu.memory_space<vmem>>, vector<64x32xf32>
    %cst_70 = arith.constant dense<0.000000e+00> : vector<16x32xf32>
    %127 = tpu.matmul %125, %126, %cst_70 {dimension_numbers = #tpu.dot_dimension_numbers<[1], [0], [0], [1], [0, 0, 1, 1], [], []>} : vector<16x64xf32>, vector<64x32xf32>, vector<16x32xf32> -> vector<16x32xf32>
    %128 = arith.extui %0 : i1 to i32
    %c0_i32_71 = arith.constant 0 : i32
    %129 = arith.cmpi ne, %128, %c0_i32_71 : i32
    scf.if %129 {
      %c0_74 = arith.constant 0 : index
      %c0_75 = arith.constant 0 : index
      %c0_76 = arith.constant 0 : index
      %133 = vector.load %arg16[%c0_74, %c0_75, %c0_76] : memref<1x16x32xf32, #tpu.memory_space<vmem>>, vector<1x16x32xf32>
      %134 = vector.shape_cast %133 : vector<1x16x32xf32> to vector<16x32xf32>
      %135 = vector.shape_cast %127 : vector<16x32xf32> to vector<1x16x32xf32>
      tpu.vector_store %arg16[%c0_74, %c0_75, %c0_76], %135 {strides = array<i32>} : memref<1x16x32xf32, #tpu.memory_space<vmem>>, vector<1x16x32xf32>,
    } else {
    }
    %c1_i32_72 = arith.constant 1 : i32
    %130 = arith.cmpi eq, %arg1, %c1_i32_72 : i32
    %131 = arith.extui %130 : i1 to i32
    %c0_i32_73 = arith.constant 0 : i32
    %132 = arith.cmpi ne, %131, %c0_i32_73 : i32
    scf.if %132 {
      %c0_74 = arith.constant 0 : index
      %c0_75 = arith.constant 0 : index
      %c0_76 = arith.constant 0 : index
      %133 = vector.load %arg16[%c0_74, %c0_75, %c0_76] : memref<1x16x32xf32, #tpu.memory_space<vmem>>, vector<1x16x32xf32>
      %134 = vector.shape_cast %133 : vector<1x16x32xf32> to vector<16x32xf32>
      %135 = arith.addf %134, %127 : vector<16x32xf32>
      %c0_77 = arith.constant 0 : index
      %c0_78 = arith.constant 0 : index
      %c0_79 = arith.constant 0 : index
      %136 = vector.load %arg16[%c0_77, %c0_78, %c0_79] : memref<1x16x32xf32, #tpu.memory_space<vmem>>, vector<1x16x32xf32>
      %137 = vector.shape_cast %136 : vector<1x16x32xf32> to vector<16x32xf32>
      %138 = vector.shape_cast %135 : vector<16x32xf32> to vector<1x16x32xf32>
      tpu.vector_store %arg16[%c0_77, %c0_78, %c0_79], %138 {strides = array<i32>} : memref<1x16x32xf32, #tpu.memory_space<vmem>>, vector<1x16x32xf32>,
    } else {
    }
    return
  }
  func.func @transform_0(%arg0: i32, %arg1: i32) -> (i32, i32, i32) {
    %c0_i32 = arith.constant 0 : i32
    %c0_i32_0 = arith.constant 0 : i32
    %c0_i32_1 = arith.constant 0 : i32
    return %arg0, %c0_i32, %c0_i32_0 : i32, i32, i32
  }
  func.func @transform_1(%arg0: i32, %arg1: i32) -> (i32, i32, i32) {
    %c0_i32 = arith.constant 0 : i32
    %c0_i32_0 = arith.constant 0 : i32
    %c0_i32_1 = arith.constant 0 : i32
    return %arg0, %c0_i32, %c0_i32_0 : i32, i32, i32
  }
  func.func @transform_2(%arg0: i32, %arg1: i32) -> (i32, i32) {
    %c0_i32 = arith.constant 0 : i32
    %c0_i32_0 = arith.constant 0 : i32
    %c0_i32_1 = arith.constant 0 : i32
    return %c0_i32, %c0_i32_0 : i32, i32
  }
  func.func @transform_3(%arg0: i32, %arg1: i32) -> (i32, i32) {
    %c0_i32 = arith.constant 0 : i32
    %c0_i32_0 = arith.constant 0 : i32
    %c0_i32_1 = arith.constant 0 : i32
    return %c0_i32, %c0_i32_0 : i32, i32
  }
  func.func @transform_4(%arg0: i32, %arg1: i32) -> (i32, i32) {
    %c0_i32 = arith.constant 0 : i32
    %c0_i32_0 = arith.constant 0 : i32
    %c0_i32_1 = arith.constant 0 : i32
    return %c0_i32, %c0_i32_0 : i32, i32
  }
  func.func @transform_5(%arg0: i32, %arg1: i32) -> (i32, i32) {
    %c0_i32 = arith.constant 0 : i32
    %c0_i32_0 = arith.constant 0 : i32
    %c0_i32_1 = arith.constant 0 : i32
    return %c0_i32, %c0_i32_0 : i32, i32
  }
  func.func @transform_6(%arg0: i32, %arg1: i32) -> (i32, i32) {
    %c0_i32 = arith.constant 0 : i32
    %c0_i32_0 = arith.constant 0 : i32
    %c0_i32_1 = arith.constant 0 : i32
    return %c0_i32, %c0_i32_0 : i32, i32
  }
  func.func @transform_7(%arg0: i32, %arg1: i32) -> (i32, i32) {
    %c0_i32 = arith.constant 0 : i32
    %c0_i32_0 = arith.constant 0 : i32
    %c0_i32_1 = arith.constant 0 : i32
    return %c0_i32, %c0_i32_0 : i32, i32
  }
  func.func @transform_8(%arg0: i32, %arg1: i32) -> (i32, i32) {
    %c0_i32 = arith.constant 0 : i32
    %c0_i32_0 = arith.constant 0 : i32
    %c0_i32_1 = arith.constant 0 : i32
    return %c0_i32, %c0_i32_0 : i32, i32
  }
  func.func @transform_9(%arg0: i32, %arg1: i32) -> (i32, i32) {
    %c0_i32 = arith.constant 0 : i32
    %c0_i32_0 = arith.constant 0 : i32
    %c0_i32_1 = arith.constant 0 : i32
    return %c0_i32, %c0_i32_0 : i32, i32
  }
  func.func @transform_10(%arg0: i32, %arg1: i32) -> (i32, i32) {
    %c0_i32 = arith.constant 0 : i32
    %c0_i32_0 = arith.constant 0 : i32
    %c0_i32_1 = arith.constant 0 : i32
    return %c0_i32, %c0_i32_0 : i32, i32
  }
  func.func @transform_11(%arg0: i32, %arg1: i32) -> (i32, i32) {
    %c0_i32 = arith.constant 0 : i32
    %c0_i32_0 = arith.constant 0 : i32
    %c0_i32_1 = arith.constant 0 : i32
    return %c0_i32, %c0_i32_0 : i32, i32
  }
  func.func @transform_12(%arg0: i32, %arg1: i32) -> (i32, i32) {
    %c0_i32 = arith.constant 0 : i32
    %c0_i32_0 = arith.constant 0 : i32
    %c0_i32_1 = arith.constant 0 : i32
    return %c0_i32, %c0_i32_0 : i32, i32
  }
  func.func @transform_13(%arg0: i32, %arg1: i32) -> (i32, i32) {
    %c0_i32 = arith.constant 0 : i32
    %c0_i32_0 = arith.constant 0 : i32
    %c0_i32_1 = arith.constant 0 : i32
    return %c0_i32, %c0_i32_0 : i32, i32
  }
  func.func @transform_14(%arg0: i32, %arg1: i32) -> (i32, i32, i32) {
    %c0_i32 = arith.constant 0 : i32
    %c0_i32_0 = arith.constant 0 : i32
    %c0_i32_1 = arith.constant 0 : i32
    return %arg0, %c0_i32, %c0_i32_0 : i32, i32, i32
  }
  func.func @transform_15(%arg0: i32, %arg1: i32) -> (i32, i32, i32) {
    %c0_i32 = arith.constant 0 : i32
    %c0_i32_0 = arith.constant 0 : i32
    %c0_i32_1 = arith.constant 0 : i32
    return %arg0, %c0_i32, %c0_i32_0 : i32, i32, i32
  }
}

module attributes {stable_mosaic.version = 11 : i64} {
  func.func @_block_kernel(%arg0: i32, %arg1: i32, %arg2: memref<1x16x32xf32, #tpu.memory_space<vmem>>, %arg3: memref<1x16x32xf32, #tpu.memory_space<vmem>>, %arg4: memref<1x32xf32, #tpu.memory_space<vmem>>, %arg5: memref<1x32xf32, #tpu.memory_space<vmem>>, %arg6: memref<32x64xf32, #tpu.memory_space<vmem>>, %arg7: memref<32x64xf32, #tpu.memory_space<vmem>>, %arg8: memref<4x64xf32, #tpu.memory_space<vmem>>, %arg9: memref<1x64xf32, #tpu.memory_space<vmem>>, %arg10: memref<64x34xf32, #tpu.memory_space<vmem>>, %arg11: memref<2x64xf32, #tpu.memory_space<vmem>>, %arg12: memref<1x64xf32, #tpu.memory_space<vmem>>, %arg13: memref<16x64xf32, #tpu.memory_space<vmem>>, %arg14: memref<1x64xf32, #tpu.memory_space<vmem>>, %arg15: memref<64x32xf32, #tpu.memory_space<vmem>>, %arg16: memref<1x16x32xf32, #tpu.memory_space<vmem>>, %arg17: memref<1x16x32xf32, #tpu.memory_space<vmem>>, %arg18: memref<32x64xf32, #tpu.memory_space<vmem>>, %arg19: memref<16x64xf32, #tpu.memory_space<vmem>>, %arg20: memref<16x64xf32, #tpu.memory_space<vmem>>, %arg21: memref<16x32xf32, #tpu.memory_space<vmem>>, %arg22: memref<16x64xf32, #tpu.memory_space<vmem>>) attributes {dimension_semantics = [#tpu.dimension_semantics<parallel>, #tpu.dimension_semantics<arbitrary>], iteration_bounds = array<i64: 2, 2>, scalar_prefetch = 0 : i64, scratch_operands = 5 : i64, tpu.core_type = #tpu.core_type<tc>, window_params = [{transform_indices = @transform_0, window_bounds = array<i64: 1, 16, 32>}, {transform_indices = @transform_1, window_bounds = array<i64: 1, 16, 32>}, {pipeline_mode = #tpu.pipeline_mode<synchronous>, transform_indices = @transform_2, window_bounds = array<i64: 1, 32>}, {pipeline_mode = #tpu.pipeline_mode<synchronous>, transform_indices = @transform_3, window_bounds = array<i64: 1, 32>}, {pipeline_mode = #tpu.pipeline_mode<synchronous>, transform_indices = @transform_4, window_bounds = array<i64: 32, 64>}, {pipeline_mode = #tpu.pipeline_mode<synchronous>, transform_indices = @transform_5, window_bounds = array<i64: 32, 64>}, {pipeline_mode = #tpu.pipeline_mode<synchronous>, transform_indices = @transform_6, window_bounds = array<i64: 4, 64>}, {pipeline_mode = #tpu.pipeline_mode<synchronous>, transform_indices = @transform_7, window_bounds = array<i64: 1, 64>}, {pipeline_mode = #tpu.pipeline_mode<synchronous>, transform_indices = @transform_8, window_bounds = array<i64: 64, 34>}, {pipeline_mode = #tpu.pipeline_mode<synchronous>, transform_indices = @transform_9, window_bounds = array<i64: 2, 64>}, {pipeline_mode = #tpu.pipeline_mode<synchronous>, transform_indices = @transform_10, window_bounds = array<i64: 1, 64>}, {pipeline_mode = #tpu.pipeline_mode<synchronous>, transform_indices = @transform_11, window_bounds = array<i64: 16, 64>}, {pipeline_mode = #tpu.pipeline_mode<synchronous>, transform_indices = @transform_12, window_bounds = array<i64: 1, 64>}, {pipeline_mode = #tpu.pipeline_mode<synchronous>, transform_indices = @transform_13, window_bounds = array<i64: 64, 32>}, {transform_indices = @transform_14, window_bounds = array<i64: 1, 16, 32>}, {transform_indices = @transform_15, window_bounds = array<i64: 1, 16, 32>}]} {
    %c0_i32 = arith.constant 0 : i32
    %0 = arith.cmpi eq, %arg1, %c0_i32 : i32
    %c0 = arith.constant 0 : index
    %c0_0 = arith.constant 0 : index
    %c0_1 = arith.constant 0 : index
    %1 = vector.load %arg3[%c0, %c0_0, %c0_1] : memref<1x16x32xf32, #tpu.memory_space<vmem>>, vector<1x16x32xf32>
    %2 = vector.shape_cast %1 : vector<1x16x32xf32> to vector<16x32xf32>
    %c0_2 = arith.constant 0 : index
    %c0_3 = arith.constant 0 : index
    %c0_4 = arith.constant 0 : index
    %3 = vector.load %arg2[%c0_2, %c0_3, %c0_4] : memref<1x16x32xf32, #tpu.memory_space<vmem>>, vector<1x16x32xf32>
    %4 = vector.shape_cast %3 : vector<1x16x32xf32> to vector<16x32xf32>
    %5 = arith.addf %2, %4 : vector<16x32xf32>
    %c0_5 = arith.constant 0 : index
    %c0_6 = arith.constant 0 : index
    %c0_7 = arith.constant 0 : index
    %6 = vector.load %arg17[%c0_5, %c0_6, %c0_7] : memref<1x16x32xf32, #tpu.memory_space<vmem>>, vector<1x16x32xf32>
    %7 = vector.shape_cast %6 : vector<1x16x32xf32> to vector<16x32xf32>
    %8 = vector.shape_cast %5 : vector<16x32xf32> to vector<1x16x32xf32>
    tpu.vector_store %arg17[%c0_5, %c0_6, %c0_7], %8 {strides = array<i32>} : memref<1x16x32xf32, #tpu.memory_space<vmem>>, vector<1x16x32xf32>,
    %cst = arith.constant dense<0.000000e+00> : vector<16xf32>
    %9 = vector.multi_reduction <add>, %5, %cst [1] : vector<16x32xf32> to vector<16xf32>
    %10 = vector.shape_cast %9 : vector<16xf32> to vector<16x1xf32>
    %cst_8 = arith.constant 3.200000e+01 : f32
    %11 = vector.broadcast %cst_8 : f32 to vector<16x1xf32>
    %12 = arith.divf %10, %11 : vector<16x1xf32>
    %13 = vector.broadcast %12 : vector<16x1xf32> to vector<16x32xf32>
    %14 = arith.subf %5, %13 : vector<16x32xf32>
    %15 = arith.mulf %14, %14 : vector<16x32xf32>
    %cst_9 = arith.constant dense<0.000000e+00> : vector<16xf32>
    %16 = vector.multi_reduction <add>, %15, %cst_9 [1] : vector<16x32xf32> to vector<16xf32>
    %17 = vector.shape_cast %16 : vector<16xf32> to vector<16x1xf32>
    %cst_10 = arith.constant 3.200000e+01 : f32
    %18 = vector.broadcast %cst_10 : f32 to vector<16x1xf32>
    %19 = arith.divf %17, %18 : vector<16x1xf32>
    %cst_11 = arith.constant 9.99999974E-6 : f32
    %20 = vector.broadcast %cst_11 : f32 to vector<16x1xf32>
    %21 = arith.addf %19, %20 : vector<16x1xf32>
    %22 = math.rsqrt %21 : vector<16x1xf32>
    %23 = vector.broadcast %22 : vector<16x1xf32> to vector<16x32xf32>
    %24 = arith.mulf %14, %23 : vector<16x32xf32>
    %c0_12 = arith.constant 0 : index
    %c0_13 = arith.constant 0 : index
    %25 = vector.load %arg4[%c0_12, %c0_13] : memref<1x32xf32, #tpu.memory_space<vmem>>, vector<1x32xf32>
    %26 = vector.broadcast %25 : vector<1x32xf32> to vector<16x32xf32>
    %27 = arith.mulf %24, %26 : vector<16x32xf32>
    %c0_14 = arith.constant 0 : index
    %c0_15 = arith.constant 0 : index
    %28 = vector.load %arg5[%c0_14, %c0_15] : memref<1x32xf32, #tpu.memory_space<vmem>>, vector<1x32xf32>
    %29 = vector.broadcast %28 : vector<1x32xf32> to vector<16x32xf32>
    %30 = arith.addf %27, %29 : vector<16x32xf32>
    %c0_16 = arith.constant 0 : index
    %c0_17 = arith.constant 0 : index
    %31 = vector.load %arg6[%c0_16, %c0_17] : memref<32x64xf32, #tpu.memory_space<vmem>>, vector<32x64xf32>
    %cst_18 = arith.constant dense<0.000000e+00> : vector<16x64xf32>
    %32 = tpu.matmul %30, %31, %cst_18 {dimension_numbers = #tpu.dot_dimension_numbers<[1], [0], [0], [1], [0, 0, 1, 1], [], []>} : vector<16x32xf32>, vector<32x64xf32>, vector<16x64xf32> -> vector<16x64xf32>
    %cst_19 = arith.constant 0.000000e+00 : f32
    %33 = vector.broadcast %cst_19 : f32 to vector<32x64xf32>
    %c0_20 = arith.constant 0 : index
    %c0_21 = arith.constant 0 : index
    %34 = vector.load %arg18[%c0_20, %c0_21] : memref<32x64xf32, #tpu.memory_space<vmem>>, vector<32x64xf32>
    tpu.vector_store %arg18[%c0_20, %c0_21], %33 {strides = array<i32>} : memref<32x64xf32, #tpu.memory_space<vmem>>, vector<32x64xf32>,
    %c8 = arith.constant 8 : index
    %c0_22 = arith.constant 0 : index
    %35 = vector.load %arg18[%c8, %c0_22] : memref<32x64xf32, #tpu.memory_space<vmem>>, vector<16x64xf32>
    tpu.vector_store %arg18[%c8, %c0_22], %32 {strides = array<i32>} : memref<32x64xf32, #tpu.memory_space<vmem>>, vector<16x64xf32>,
    %c0_23 = arith.constant 0 : index
    %c0_24 = arith.constant 0 : index
    %36 = vector.load %arg8[%c0_23, %c0_24] : memref<4x64xf32, #tpu.memory_space<vmem>>, vector<4x64xf32>
    %cst_25 = arith.constant 0.000000e+00 : f32
    %37 = vector.broadcast %cst_25 : f32 to vector<16x64xf32>
    %c5_i32 = arith.constant 5 : i32
    %c11_i32 = arith.constant 11 : i32
    %38 = arith.select %0, %c5_i32, %c11_i32 : i32
    %39 = arith.index_cast %38 : i32 to index
    %c0_26 = arith.constant 0 : index
    %40 = vector.load %arg18[%39, %c0_26] : memref<32x64xf32, #tpu.memory_space<vmem>>, vector<16x64xf32>
    %41 = vector.extract_strided_slice %36 {offsets = [0, 0], sizes = [1, 64], strides = [1, 1]} : vector<4x64xf32> to vector<1x64xf32>
    %42 = vector.broadcast %41 : vector<1x64xf32> to vector<16x64xf32>
    %43 = arith.mulf %40, %42 : vector<16x64xf32>
    %44 = arith.addf %37, %43 : vector<16x64xf32>
    %c6_i32 = arith.constant 6 : i32
    %c10_i32 = arith.constant 10 : i32
    %45 = arith.select %0, %c6_i32, %c10_i32 : i32
    %46 = arith.index_cast %45 : i32 to index
    %c0_27 = arith.constant 0 : index
    %47 = vector.load %arg18[%46, %c0_27] : memref<32x64xf32, #tpu.memory_space<vmem>>, vector<16x64xf32>
    %48 = vector.extract_strided_slice %36 {offsets = [1, 0], sizes = [1, 64], strides = [1, 1]} : vector<4x64xf32> to vector<1x64xf32>
    %49 = vector.broadcast %48 : vector<1x64xf32> to vector<16x64xf32>
    %50 = arith.mulf %47, %49 : vector<16x64xf32>
    %51 = arith.addf %44, %50 : vector<16x64xf32>
    %c7_i32 = arith.constant 7 : i32
    %c9_i32 = arith.constant 9 : i32
    %52 = arith.select %0, %c7_i32, %c9_i32 : i32
    %53 = arith.index_cast %52 : i32 to index
    %c0_28 = arith.constant 0 : index
    %54 = vector.load %arg18[%53, %c0_28] : memref<32x64xf32, #tpu.memory_space<vmem>>, vector<16x64xf32>
    %55 = vector.extract_strided_slice %36 {offsets = [2, 0], sizes = [1, 64], strides = [1, 1]} : vector<4x64xf32> to vector<1x64xf32>
    %56 = vector.broadcast %55 : vector<1x64xf32> to vector<16x64xf32>
    %57 = arith.mulf %54, %56 : vector<16x64xf32>
    %58 = arith.addf %51, %57 : vector<16x64xf32>
    %c8_29 = arith.constant 8 : index
    %c0_30 = arith.constant 0 : index
    %59 = vector.load %arg18[%c8_29, %c0_30] : memref<32x64xf32, #tpu.memory_space<vmem>>, vector<16x64xf32>
    %60 = vector.extract_strided_slice %36 {offsets = [3, 0], sizes = [1, 64], strides = [1, 1]} : vector<4x64xf32> to vector<1x64xf32>
    %61 = vector.broadcast %60 : vector<1x64xf32> to vector<16x64xf32>
    %62 = arith.mulf %59, %61 : vector<16x64xf32>
    %63 = arith.addf %58, %62 : vector<16x64xf32>
    %c0_31 = arith.constant 0 : index
    %c0_32 = arith.constant 0 : index
    %64 = vector.load %arg9[%c0_31, %c0_32] : memref<1x64xf32, #tpu.memory_space<vmem>>, vector<1x64xf32>
    %65 = vector.broadcast %64 : vector<1x64xf32> to vector<16x64xf32>
    %66 = arith.addf %63, %65 : vector<16x64xf32>
    %cst_33 = arith.constant 0.000000e+00 : f32
    %67 = vector.broadcast %cst_33 : f32 to vector<16x64xf32>
    %68 = arith.subf %67, %66 : vector<16x64xf32>
    %69 = math.exp %68 : vector<16x64xf32>
    %cst_34 = arith.constant 1.000000e+00 : f32
    %70 = vector.broadcast %cst_34 : f32 to vector<16x64xf32>
    %71 = arith.addf %70, %69 : vector<16x64xf32>
    %cst_35 = arith.constant 1.000000e+00 : f32
    %72 = vector.broadcast %cst_35 : f32 to vector<16x64xf32>
    %73 = arith.divf %72, %71 : vector<16x64xf32>
    %74 = arith.mulf %66, %73 : vector<16x64xf32>
    %c0_36 = arith.constant 0 : index
    %c0_37 = arith.constant 0 : index
    %75 = vector.load %arg20[%c0_36, %c0_37] : memref<16x64xf32, #tpu.memory_space<vmem>>, vector<16x64xf32>
    tpu.vector_store %arg20[%c0_36, %c0_37], %74 {strides = array<i32>} : memref<16x64xf32, #tpu.memory_space<vmem>>, vector<16x64xf32>,
    %c0_38 = arith.constant 0 : index
    %c0_39 = arith.constant 0 : index
    %76 = vector.load %arg10[%c0_38, %c0_39] : memref<64x34xf32, #tpu.memory_space<vmem>>, vector<64x34xf32>
    %cst_40 = arith.constant dense<0.000000e+00> : vector<16x34xf32>
    %77 = tpu.matmul %74, %76, %cst_40 {dimension_numbers = #tpu.dot_dimension_numbers<[1], [0], [0], [1], [0, 0, 1, 1], [], []>} : vector<16x64xf32>, vector<64x34xf32>, vector<16x34xf32> -> vector<16x34xf32>
    %78 = vector.extract_strided_slice %77 {offsets = [0, 0], sizes = [16, 32], strides = [1, 1]} : vector<16x34xf32> to vector<16x32xf32>
    %c0_41 = arith.constant 0 : index
    %c0_42 = arith.constant 0 : index
    %79 = vector.load %arg21[%c0_41, %c0_42] : memref<16x32xf32, #tpu.memory_space<vmem>>, vector<16x32xf32>
    tpu.vector_store %arg21[%c0_41, %c0_42], %78 {strides = array<i32>} : memref<16x32xf32, #tpu.memory_space<vmem>>, vector<16x32xf32>,
    %80 = vector.extract_strided_slice %77 {offsets = [0, 32], sizes = [16, 2], strides = [1, 1]} : vector<16x34xf32> to vector<16x2xf32>
    %c0_43 = arith.constant 0 : index
    %c0_44 = arith.constant 0 : index
    %81 = vector.load %arg11[%c0_43, %c0_44] : memref<2x64xf32, #tpu.memory_space<vmem>>, vector<2x64xf32>
    %cst_45 = arith.constant dense<0.000000e+00> : vector<16x64xf32>
    %82 = tpu.matmul %80, %81, %cst_45 {dimension_numbers = #tpu.dot_dimension_numbers<[1], [0], [0], [1], [0, 0, 1, 1], [], []>} : vector<16x2xf32>, vector<2x64xf32>, vector<16x64xf32> -> vector<16x64xf32>
    %c0_46 = arith.constant 0 : index
    %c0_47 = arith.constant 0 : index
    %83 = vector.load %arg12[%c0_46, %c0_47] : memref<1x64xf32, #tpu.memory_space<vmem>>, vector<1x64xf32>
    %84 = vector.broadcast %83 : vector<1x64xf32> to vector<16x64xf32>
    %85 = arith.addf %82, %84 : vector<16x64xf32>
    %cst_48 = arith.constant 0.000000e+00 : f32
    %86 = vector.broadcast %cst_48 : f32 to vector<16x64xf32>
    %87 = arith.maximumf %85, %86 : vector<16x64xf32>
    %88 = arith.subf %85, %87 : vector<16x64xf32>
    %89 = math.exp %88 : vector<16x64xf32>
    %cst_49 = arith.constant 0.000000e+00 : f32
    %90 = vector.broadcast %cst_49 : f32 to vector<16x64xf32>
    %91 = arith.subf %90, %87 : vector<16x64xf32>
    %92 = math.exp %91 : vector<16x64xf32>
    %93 = arith.addf %89, %92 : vector<16x64xf32>
    %94 = math.log %93 : vector<16x64xf32>
    %95 = arith.addf %87, %94 : vector<16x64xf32>
    %c0_50 = arith.constant 0 : index
    %c0_51 = arith.constant 0 : index
    %96 = vector.load %arg19[%c0_50, %c0_51] : memref<16x64xf32, #tpu.memory_space<vmem>>, vector<16x64xf32>
    tpu.vector_store %arg19[%c0_50, %c0_51], %95 {strides = array<i32>} : memref<16x64xf32, #tpu.memory_space<vmem>>, vector<16x64xf32>,
    %c0_52 = arith.constant 0 : index
    %c0_53 = arith.constant 0 : index
    %97 = vector.load %arg13[%c0_52, %c0_53] : memref<16x64xf32, #tpu.memory_space<vmem>>, vector<16x64xf32>
    %98 = tpu.iota {dimensions = array<i32: 0>} : vector<16x16xi32>
    %99 = tpu.iota {dimensions = array<i32: 1>} : vector<16x16xi32>
    %100 = arith.cmpi eq, %98, %99 : vector<16x16xi32>
    %101 = arith.extui %100 : vector<16x16xi1> to vector<16x16xi32>
    %102 = arith.sitofp %101 : vector<16x16xi32> to vector<16x16xf32>
    %103 = tpu.iota {dimensions = array<i32: 0>} : vector<16x1xi32>
    %104 = arith.extui %0 : i1 to i32
    %c0_i32_54 = arith.constant 0 : i32
    %105 = arith.cmpi ne, %104, %c0_i32_54 : i32
    scf.if %105 {
      %cst_74 = arith.constant 0.000000e+00 : f32
      %133 = vector.broadcast %cst_74 : f32 to vector<16x64xf32>
      %c0_i32_75 = arith.constant 0 : i32
      %c16_i32 = arith.constant 16 : i32
      %134 = arith.muli %c0_i32_75, %c16_i32 : i32
      %135 = tpu.assume_multiple %134, 8 : i32
      %136 = arith.index_cast %135 : i32 to index
      %c0_76 = arith.constant 0 : index
      %137 = vector.load %arg19[%136, %c0_76] : memref<16x64xf32, #tpu.memory_space<vmem>>, vector<16x64xf32>
      %138 = arith.index_cast %135 : i32 to index
      %c0_77 = arith.constant 0 : index
      %139 = vector.load %arg20[%138, %c0_77] : memref<16x64xf32, #tpu.memory_space<vmem>>, vector<16x64xf32>
      %140 = arith.mulf %137, %139 : vector<16x64xf32>
      %141 = arith.index_cast %135 : i32 to index
      %c0_78 = arith.constant 0 : index
      %142 = vector.load %arg21[%141, %c0_78] : memref<16x32xf32, #tpu.memory_space<vmem>>, vector<16x32xf32>
      %143 = vector.extract_strided_slice %142 {offsets = [0, 0], sizes = [16, 16], strides = [1, 1]} : vector<16x32xf32> to vector<16x16xf32>
      %144 = vector.extract_strided_slice %142 {offsets = [0, 16], sizes = [16, 16], strides = [1, 1]} : vector<16x32xf32> to vector<16x16xf32>
      %cst_79 = arith.constant dense<0.000000e+00> : vector<16x16xf32>
      %145 = tpu.matmul %102, %143, %cst_79 {dimension_numbers = #tpu.dot_dimension_numbers<[1], [1], [0], [0], [0, 0, 1, 0], [], []>} : vector<16x16xf32>, vector<16x16xf32>, vector<16x16xf32> -> vector<16x16xf32>
      %cst_80 = arith.constant 0.000000e+00 : f32
      %146 = vector.broadcast %cst_80 : f32 to vector<16x64xf32>
      %147 = vector.extract_strided_slice %137 {offsets = [0, 0], sizes = [1, 64], strides = [1, 1]} : vector<16x64xf32> to vector<1x64xf32>
      %148 = vector.broadcast %147 : vector<1x64xf32> to vector<16x64xf32>
      %149 = arith.mulf %148, %97 : vector<16x64xf32>
      %150 = math.exp %149 : vector<16x64xf32>
      %151 = arith.mulf %150, %133 : vector<16x64xf32>
      %152 = vector.extract_strided_slice %145 {offsets = [0, 0], sizes = [16, 1], strides = [1, 1]} : vector<16x16xf32> to vector<16x1xf32>
      %153 = vector.extract_strided_slice %140 {offsets = [0, 0], sizes = [1, 64], strides = [1, 1]} : vector<16x64xf32> to vector<1x64xf32>
      %154 = vector.broadcast %152 : vector<16x1xf32> to vector<16x64xf32>
      %155 = vector.broadcast %153 : vector<1x64xf32> to vector<16x64xf32>
      %156 = arith.mulf %154, %155 : vector<16x64xf32>
      %157 = arith.addf %151, %156 : vector<16x64xf32>
      %158 = vector.extract_strided_slice %144 {offsets = [0, 0], sizes = [1, 16], strides = [1, 1]} : vector<16x16xf32> to vector<1x16xf32>
      %cst_81 = arith.constant dense<0.000000e+00> : vector<1x64xf32>
      %159 = tpu.matmul %158, %157, %cst_81 {dimension_numbers = #tpu.dot_dimension_numbers<[1], [0], [0], [1], [0, 0, 1, 1], [], []>} : vector<1x16xf32>, vector<16x64xf32>, vector<1x64xf32> -> vector<1x64xf32>
      %c0_i32_82 = arith.constant 0 : i32
      %160 = vector.broadcast %c0_i32_82 : i32 to vector<16x1xi32>
      %161 = arith.cmpi eq, %103, %160 : vector<16x1xi32>
      %162 = vector.shape_cast %161 : vector<16x1xi1> to vector<16x1xi1>
      %163 = vector.broadcast %162 : vector<16x1xi1> to vector<16x64xi1>
      %164 = vector.shape_cast %159 : vector<1x64xf32> to vector<1x64xf32>
      %165 = vector.broadcast %164 : vector<1x64xf32> to vector<16x64xf32>
      %166 = arith.select %163, %165, %146 : vector<16x64xi1>, vector<16x64xf32>
      %167 = vector.extract_strided_slice %137 {offsets = [1, 0], sizes = [1, 64], strides = [1, 1]} : vector<16x64xf32> to vector<1x64xf32>
      %168 = vector.broadcast %167 : vector<1x64xf32> to vector<16x64xf32>
      %169 = arith.mulf %168, %97 : vector<16x64xf32>
      %170 = math.exp %169 : vector<16x64xf32>
      %171 = arith.mulf %170, %157 : vector<16x64xf32>
      %172 = vector.extract_strided_slice %145 {offsets = [0, 1], sizes = [16, 1], strides = [1, 1]} : vector<16x16xf32> to vector<16x1xf32>
      %173 = vector.extract_strided_slice %140 {offsets = [1, 0], sizes = [1, 64], strides = [1, 1]} : vector<16x64xf32> to vector<1x64xf32>
      %174 = vector.broadcast %172 : vector<16x1xf32> to vector<16x64xf32>
      %175 = vector.broadcast %173 : vector<1x64xf32> to vector<16x64xf32>
      %176 = arith.mulf %174, %175 : vector<16x64xf32>
      %177 = arith.addf %171, %176 : vector<16x64xf32>
      %178 = vector.extract_strided_slice %144 {offsets = [1, 0], sizes = [1, 16], strides = [1, 1]} : vector<16x16xf32> to vector<1x16xf32>
      %cst_83 = arith.constant dense<0.000000e+00> : vector<1x64xf32>
      %179 = tpu.matmul %178, %177, %cst_83 {dimension_numbers = #tpu.dot_dimension_numbers<[1], [0], [0], [1], [0, 0, 1, 1], [], []>} : vector<1x16xf32>, vector<16x64xf32>, vector<1x64xf32> -> vector<1x64xf32>
      %c1_i32_84 = arith.constant 1 : i32
      %180 = vector.broadcast %c1_i32_84 : i32 to vector<16x1xi32>
      %181 = arith.cmpi eq, %103, %180 : vector<16x1xi32>
      %182 = vector.shape_cast %181 : vector<16x1xi1> to vector<16x1xi1>
      %183 = vector.broadcast %182 : vector<16x1xi1> to vector<16x64xi1>
      %184 = vector.shape_cast %179 : vector<1x64xf32> to vector<1x64xf32>
      %185 = vector.broadcast %184 : vector<1x64xf32> to vector<16x64xf32>
      %186 = arith.select %183, %185, %166 : vector<16x64xi1>, vector<16x64xf32>
      %187 = vector.extract_strided_slice %137 {offsets = [2, 0], sizes = [1, 64], strides = [1, 1]} : vector<16x64xf32> to vector<1x64xf32>
      %188 = vector.broadcast %187 : vector<1x64xf32> to vector<16x64xf32>
      %189 = arith.mulf %188, %97 : vector<16x64xf32>
      %190 = math.exp %189 : vector<16x64xf32>
      %191 = arith.mulf %190, %177 : vector<16x64xf32>
      %192 = vector.extract_strided_slice %145 {offsets = [0, 2], sizes = [16, 1], strides = [1, 1]} : vector<16x16xf32> to vector<16x1xf32>
      %193 = vector.extract_strided_slice %140 {offsets = [2, 0], sizes = [1, 64], strides = [1, 1]} : vector<16x64xf32> to vector<1x64xf32>
      %194 = vector.broadcast %192 : vector<16x1xf32> to vector<16x64xf32>
      %195 = vector.broadcast %193 : vector<1x64xf32> to vector<16x64xf32>
      %196 = arith.mulf %194, %195 : vector<16x64xf32>
      %197 = arith.addf %191, %196 : vector<16x64xf32>
      %198 = vector.extract_strided_slice %144 {offsets = [2, 0], sizes = [1, 16], strides = [1, 1]} : vector<16x16xf32> to vector<1x16xf32>
      %cst_85 = arith.constant dense<0.000000e+00> : vector<1x64xf32>
      %199 = tpu.matmul %198, %197, %cst_85 {dimension_numbers = #tpu.dot_dimension_numbers<[1], [0], [0], [1], [0, 0, 1, 1], [], []>} : vector<1x16xf32>, vector<16x64xf32>, vector<1x64xf32> -> vector<1x64xf32>
      %c2_i32 = arith.constant 2 : i32
      %200 = vector.broadcast %c2_i32 : i32 to vector<16x1xi32>
      %201 = arith.cmpi eq, %103, %200 : vector<16x1xi32>
      %202 = vector.shape_cast %201 : vector<16x1xi1> to vector<16x1xi1>
      %203 = vector.broadcast %202 : vector<16x1xi1> to vector<16x64xi1>
      %204 = vector.shape_cast %199 : vector<1x64xf32> to vector<1x64xf32>
      %205 = vector.broadcast %204 : vector<1x64xf32> to vector<16x64xf32>
      %206 = arith.select %203, %205, %186 : vector<16x64xi1>, vector<16x64xf32>
      %207 = vector.extract_strided_slice %137 {offsets = [3, 0], sizes = [1, 64], strides = [1, 1]} : vector<16x64xf32> to vector<1x64xf32>
      %208 = vector.broadcast %207 : vector<1x64xf32> to vector<16x64xf32>
      %209 = arith.mulf %208, %97 : vector<16x64xf32>
      %210 = math.exp %209 : vector<16x64xf32>
      %211 = arith.mulf %210, %197 : vector<16x64xf32>
      %212 = vector.extract_strided_slice %145 {offsets = [0, 3], sizes = [16, 1], strides = [1, 1]} : vector<16x16xf32> to vector<16x1xf32>
      %213 = vector.extract_strided_slice %140 {offsets = [3, 0], sizes = [1, 64], strides = [1, 1]} : vector<16x64xf32> to vector<1x64xf32>
      %214 = vector.broadcast %212 : vector<16x1xf32> to vector<16x64xf32>
      %215 = vector.broadcast %213 : vector<1x64xf32> to vector<16x64xf32>
      %216 = arith.mulf %214, %215 : vector<16x64xf32>
      %217 = arith.addf %211, %216 : vector<16x64xf32>
      %218 = vector.extract_strided_slice %144 {offsets = [3, 0], sizes = [1, 16], strides = [1, 1]} : vector<16x16xf32> to vector<1x16xf32>
      %cst_86 = arith.constant dense<0.000000e+00> : vector<1x64xf32>
      %219 = tpu.matmul %218, %217, %cst_86 {dimension_numbers = #tpu.dot_dimension_numbers<[1], [0], [0], [1], [0, 0, 1, 1], [], []>} : vector<1x16xf32>, vector<16x64xf32>, vector<1x64xf32> -> vector<1x64xf32>
      %c3_i32 = arith.constant 3 : i32
      %220 = vector.broadcast %c3_i32 : i32 to vector<16x1xi32>
      %221 = arith.cmpi eq, %103, %220 : vector<16x1xi32>
      %222 = vector.shape_cast %221 : vector<16x1xi1> to vector<16x1xi1>
      %223 = vector.broadcast %222 : vector<16x1xi1> to vector<16x64xi1>
      %224 = vector.shape_cast %219 : vector<1x64xf32> to vector<1x64xf32>
      %225 = vector.broadcast %224 : vector<1x64xf32> to vector<16x64xf32>
      %226 = arith.select %223, %225, %206 : vector<16x64xi1>, vector<16x64xf32>
      %227 = vector.extract_strided_slice %137 {offsets = [4, 0], sizes = [1, 64], strides = [1, 1]} : vector<16x64xf32> to vector<1x64xf32>
      %228 = vector.broadcast %227 : vector<1x64xf32> to vector<16x64xf32>
      %229 = arith.mulf %228, %97 : vector<16x64xf32>
      %230 = math.exp %229 : vector<16x64xf32>
      %231 = arith.mulf %230, %217 : vector<16x64xf32>
      %232 = vector.extract_strided_slice %145 {offsets = [0, 4], sizes = [16, 1], strides = [1, 1]} : vector<16x16xf32> to vector<16x1xf32>
      %233 = vector.extract_strided_slice %140 {offsets = [4, 0], sizes = [1, 64], strides = [1, 1]} : vector<16x64xf32> to vector<1x64xf32>
      %234 = vector.broadcast %232 : vector<16x1xf32> to vector<16x64xf32>
      %235 = vector.broadcast %233 : vector<1x64xf32> to vector<16x64xf32>
      %236 = arith.mulf %234, %235 : vector<16x64xf32>
      %237 = arith.addf %231, %236 : vector<16x64xf32>
      %238 = vector.extract_strided_slice %144 {offsets = [4, 0], sizes = [1, 16], strides = [1, 1]} : vector<16x16xf32> to vector<1x16xf32>
      %cst_87 = arith.constant dense<0.000000e+00> : vector<1x64xf32>
      %239 = tpu.matmul %238, %237, %cst_87 {dimension_numbers = #tpu.dot_dimension_numbers<[1], [0], [0], [1], [0, 0, 1, 1], [], []>} : vector<1x16xf32>, vector<16x64xf32>, vector<1x64xf32> -> vector<1x64xf32>
      %c4_i32 = arith.constant 4 : i32
      %240 = vector.broadcast %c4_i32 : i32 to vector<16x1xi32>
      %241 = arith.cmpi eq, %103, %240 : vector<16x1xi32>
      %242 = vector.shape_cast %241 : vector<16x1xi1> to vector<16x1xi1>
      %243 = vector.broadcast %242 : vector<16x1xi1> to vector<16x64xi1>
      %244 = vector.shape_cast %239 : vector<1x64xf32> to vector<1x64xf32>
      %245 = vector.broadcast %244 : vector<1x64xf32> to vector<16x64xf32>
      %246 = arith.select %243, %245, %226 : vector<16x64xi1>, vector<16x64xf32>
      %247 = vector.extract_strided_slice %137 {offsets = [5, 0], sizes = [1, 64], strides = [1, 1]} : vector<16x64xf32> to vector<1x64xf32>
      %248 = vector.broadcast %247 : vector<1x64xf32> to vector<16x64xf32>
      %249 = arith.mulf %248, %97 : vector<16x64xf32>
      %250 = math.exp %249 : vector<16x64xf32>
      %251 = arith.mulf %250, %237 : vector<16x64xf32>
      %252 = vector.extract_strided_slice %145 {offsets = [0, 5], sizes = [16, 1], strides = [1, 1]} : vector<16x16xf32> to vector<16x1xf32>
      %253 = vector.extract_strided_slice %140 {offsets = [5, 0], sizes = [1, 64], strides = [1, 1]} : vector<16x64xf32> to vector<1x64xf32>
      %254 = vector.broadcast %252 : vector<16x1xf32> to vector<16x64xf32>
      %255 = vector.broadcast %253 : vector<1x64xf32> to vector<16x64xf32>
      %256 = arith.mulf %254, %255 : vector<16x64xf32>
      %257 = arith.addf %251, %256 : vector<16x64xf32>
      %258 = vector.extract_strided_slice %144 {offsets = [5, 0], sizes = [1, 16], strides = [1, 1]} : vector<16x16xf32> to vector<1x16xf32>
      %cst_88 = arith.constant dense<0.000000e+00> : vector<1x64xf32>
      %259 = tpu.matmul %258, %257, %cst_88 {dimension_numbers = #tpu.dot_dimension_numbers<[1], [0], [0], [1], [0, 0, 1, 1], [], []>} : vector<1x16xf32>, vector<16x64xf32>, vector<1x64xf32> -> vector<1x64xf32>
      %c5_i32_89 = arith.constant 5 : i32
      %260 = vector.broadcast %c5_i32_89 : i32 to vector<16x1xi32>
      %261 = arith.cmpi eq, %103, %260 : vector<16x1xi32>
      %262 = vector.shape_cast %261 : vector<16x1xi1> to vector<16x1xi1>
      %263 = vector.broadcast %262 : vector<16x1xi1> to vector<16x64xi1>
      %264 = vector.shape_cast %259 : vector<1x64xf32> to vector<1x64xf32>
      %265 = vector.broadcast %264 : vector<1x64xf32> to vector<16x64xf32>
      %266 = arith.select %263, %265, %246 : vector<16x64xi1>, vector<16x64xf32>
      %267 = vector.extract_strided_slice %137 {offsets = [6, 0], sizes = [1, 64], strides = [1, 1]} : vector<16x64xf32> to vector<1x64xf32>
      %268 = vector.broadcast %267 : vector<1x64xf32> to vector<16x64xf32>
      %269 = arith.mulf %268, %97 : vector<16x64xf32>
      %270 = math.exp %269 : vector<16x64xf32>
      %271 = arith.mulf %270, %257 : vector<16x64xf32>
      %272 = vector.extract_strided_slice %145 {offsets = [0, 6], sizes = [16, 1], strides = [1, 1]} : vector<16x16xf32> to vector<16x1xf32>
      %273 = vector.extract_strided_slice %140 {offsets = [6, 0], sizes = [1, 64], strides = [1, 1]} : vector<16x64xf32> to vector<1x64xf32>
      %274 = vector.broadcast %272 : vector<16x1xf32> to vector<16x64xf32>
      %275 = vector.broadcast %273 : vector<1x64xf32> to vector<16x64xf32>
      %276 = arith.mulf %274, %275 : vector<16x64xf32>
      %277 = arith.addf %271, %276 : vector<16x64xf32>
      %278 = vector.extract_strided_slice %144 {offsets = [6, 0], sizes = [1, 16], strides = [1, 1]} : vector<16x16xf32> to vector<1x16xf32>
      %cst_90 = arith.constant dense<0.000000e+00> : vector<1x64xf32>
      %279 = tpu.matmul %278, %277, %cst_90 {dimension_numbers = #tpu.dot_dimension_numbers<[1], [0], [0], [1], [0, 0, 1, 1], [], []>} : vector<1x16xf32>, vector<16x64xf32>, vector<1x64xf32> -> vector<1x64xf32>
      %c6_i32_91 = arith.constant 6 : i32
      %280 = vector.broadcast %c6_i32_91 : i32 to vector<16x1xi32>
      %281 = arith.cmpi eq, %103, %280 : vector<16x1xi32>
      %282 = vector.shape_cast %281 : vector<16x1xi1> to vector<16x1xi1>
      %283 = vector.broadcast %282 : vector<16x1xi1> to vector<16x64xi1>
      %284 = vector.shape_cast %279 : vector<1x64xf32> to vector<1x64xf32>
      %285 = vector.broadcast %284 : vector<1x64xf32> to vector<16x64xf32>
      %286 = arith.select %283, %285, %266 : vector<16x64xi1>, vector<16x64xf32>
      %287 = vector.extract_strided_slice %137 {offsets = [7, 0], sizes = [1, 64], strides = [1, 1]} : vector<16x64xf32> to vector<1x64xf32>
      %288 = vector.broadcast %287 : vector<1x64xf32> to vector<16x64xf32>
      %289 = arith.mulf %288, %97 : vector<16x64xf32>
      %290 = math.exp %289 : vector<16x64xf32>
      %291 = arith.mulf %290, %277 : vector<16x64xf32>
      %292 = vector.extract_strided_slice %145 {offsets = [0, 7], sizes = [16, 1], strides = [1, 1]} : vector<16x16xf32> to vector<16x1xf32>
      %293 = vector.extract_strided_slice %140 {offsets = [7, 0], sizes = [1, 64], strides = [1, 1]} : vector<16x64xf32> to vector<1x64xf32>
      %294 = vector.broadcast %292 : vector<16x1xf32> to vector<16x64xf32>
      %295 = vector.broadcast %293 : vector<1x64xf32> to vector<16x64xf32>
      %296 = arith.mulf %294, %295 : vector<16x64xf32>
      %297 = arith.addf %291, %296 : vector<16x64xf32>
      %298 = vector.extract_strided_slice %144 {offsets = [7, 0], sizes = [1, 16], strides = [1, 1]} : vector<16x16xf32> to vector<1x16xf32>
      %cst_92 = arith.constant dense<0.000000e+00> : vector<1x64xf32>
      %299 = tpu.matmul %298, %297, %cst_92 {dimension_numbers = #tpu.dot_dimension_numbers<[1], [0], [0], [1], [0, 0, 1, 1], [], []>} : vector<1x16xf32>, vector<16x64xf32>, vector<1x64xf32> -> vector<1x64xf32>
      %c7_i32_93 = arith.constant 7 : i32
      %300 = vector.broadcast %c7_i32_93 : i32 to vector<16x1xi32>
      %301 = arith.cmpi eq, %103, %300 : vector<16x1xi32>
      %302 = vector.shape_cast %301 : vector<16x1xi1> to vector<16x1xi1>
      %303 = vector.broadcast %302 : vector<16x1xi1> to vector<16x64xi1>
      %304 = vector.shape_cast %299 : vector<1x64xf32> to vector<1x64xf32>
      %305 = vector.broadcast %304 : vector<1x64xf32> to vector<16x64xf32>
      %306 = arith.select %303, %305, %286 : vector<16x64xi1>, vector<16x64xf32>
      %307 = vector.extract_strided_slice %137 {offsets = [8, 0], sizes = [1, 64], strides = [1, 1]} : vector<16x64xf32> to vector<1x64xf32>
      %308 = vector.broadcast %307 : vector<1x64xf32> to vector<16x64xf32>
      %309 = arith.mulf %308, %97 : vector<16x64xf32>
      %310 = math.exp %309 : vector<16x64xf32>
      %311 = arith.mulf %310, %297 : vector<16x64xf32>
      %312 = vector.extract_strided_slice %145 {offsets = [0, 8], sizes = [16, 1], strides = [1, 1]} : vector<16x16xf32> to vector<16x1xf32>
      %313 = vector.extract_strided_slice %140 {offsets = [8, 0], sizes = [1, 64], strides = [1, 1]} : vector<16x64xf32> to vector<1x64xf32>
      %314 = vector.broadcast %312 : vector<16x1xf32> to vector<16x64xf32>
      %315 = vector.broadcast %313 : vector<1x64xf32> to vector<16x64xf32>
      %316 = arith.mulf %314, %315 : vector<16x64xf32>
      %317 = arith.addf %311, %316 : vector<16x64xf32>
      %318 = vector.extract_strided_slice %144 {offsets = [8, 0], sizes = [1, 16], strides = [1, 1]} : vector<16x16xf32> to vector<1x16xf32>
      %cst_94 = arith.constant dense<0.000000e+00> : vector<1x64xf32>
      %319 = tpu.matmul %318, %317, %cst_94 {dimension_numbers = #tpu.dot_dimension_numbers<[1], [0], [0], [1], [0, 0, 1, 1], [], []>} : vector<1x16xf32>, vector<16x64xf32>, vector<1x64xf32> -> vector<1x64xf32>
      %c8_i32 = arith.constant 8 : i32
      %320 = vector.broadcast %c8_i32 : i32 to vector<16x1xi32>
      %321 = arith.cmpi eq, %103, %320 : vector<16x1xi32>
      %322 = vector.shape_cast %321 : vector<16x1xi1> to vector<16x1xi1>
      %323 = vector.broadcast %322 : vector<16x1xi1> to vector<16x64xi1>
      %324 = vector.shape_cast %319 : vector<1x64xf32> to vector<1x64xf32>
      %325 = vector.broadcast %324 : vector<1x64xf32> to vector<16x64xf32>
      %326 = arith.select %323, %325, %306 : vector<16x64xi1>, vector<16x64xf32>
      %327 = vector.extract_strided_slice %137 {offsets = [9, 0], sizes = [1, 64], strides = [1, 1]} : vector<16x64xf32> to vector<1x64xf32>
      %328 = vector.broadcast %327 : vector<1x64xf32> to vector<16x64xf32>
      %329 = arith.mulf %328, %97 : vector<16x64xf32>
      %330 = math.exp %329 : vector<16x64xf32>
      %331 = arith.mulf %330, %317 : vector<16x64xf32>
      %332 = vector.extract_strided_slice %145 {offsets = [0, 9], sizes = [16, 1], strides = [1, 1]} : vector<16x16xf32> to vector<16x1xf32>
      %333 = vector.extract_strided_slice %140 {offsets = [9, 0], sizes = [1, 64], strides = [1, 1]} : vector<16x64xf32> to vector<1x64xf32>
      %334 = vector.broadcast %332 : vector<16x1xf32> to vector<16x64xf32>
      %335 = vector.broadcast %333 : vector<1x64xf32> to vector<16x64xf32>
      %336 = arith.mulf %334, %335 : vector<16x64xf32>
      %337 = arith.addf %331, %336 : vector<16x64xf32>
      %338 = vector.extract_strided_slice %144 {offsets = [9, 0], sizes = [1, 16], strides = [1, 1]} : vector<16x16xf32> to vector<1x16xf32>
      %cst_95 = arith.constant dense<0.000000e+00> : vector<1x64xf32>
      %339 = tpu.matmul %338, %337, %cst_95 {dimension_numbers = #tpu.dot_dimension_numbers<[1], [0], [0], [1], [0, 0, 1, 1], [], []>} : vector<1x16xf32>, vector<16x64xf32>, vector<1x64xf32> -> vector<1x64xf32>
      %c9_i32_96 = arith.constant 9 : i32
      %340 = vector.broadcast %c9_i32_96 : i32 to vector<16x1xi32>
      %341 = arith.cmpi eq, %103, %340 : vector<16x1xi32>
      %342 = vector.shape_cast %341 : vector<16x1xi1> to vector<16x1xi1>
      %343 = vector.broadcast %342 : vector<16x1xi1> to vector<16x64xi1>
      %344 = vector.shape_cast %339 : vector<1x64xf32> to vector<1x64xf32>
      %345 = vector.broadcast %344 : vector<1x64xf32> to vector<16x64xf32>
      %346 = arith.select %343, %345, %326 : vector<16x64xi1>, vector<16x64xf32>
      %347 = vector.extract_strided_slice %137 {offsets = [10, 0], sizes = [1, 64], strides = [1, 1]} : vector<16x64xf32> to vector<1x64xf32>
      %348 = vector.broadcast %347 : vector<1x64xf32> to vector<16x64xf32>
      %349 = arith.mulf %348, %97 : vector<16x64xf32>
      %350 = math.exp %349 : vector<16x64xf32>
      %351 = arith.mulf %350, %337 : vector<16x64xf32>
      %352 = vector.extract_strided_slice %145 {offsets = [0, 10], sizes = [16, 1], strides = [1, 1]} : vector<16x16xf32> to vector<16x1xf32>
      %353 = vector.extract_strided_slice %140 {offsets = [10, 0], sizes = [1, 64], strides = [1, 1]} : vector<16x64xf32> to vector<1x64xf32>
      %354 = vector.broadcast %352 : vector<16x1xf32> to vector<16x64xf32>
      %355 = vector.broadcast %353 : vector<1x64xf32> to vector<16x64xf32>
      %356 = arith.mulf %354, %355 : vector<16x64xf32>
      %357 = arith.addf %351, %356 : vector<16x64xf32>
      %358 = vector.extract_strided_slice %144 {offsets = [10, 0], sizes = [1, 16], strides = [1, 1]} : vector<16x16xf32> to vector<1x16xf32>
      %cst_97 = arith.constant dense<0.000000e+00> : vector<1x64xf32>
      %359 = tpu.matmul %358, %357, %cst_97 {dimension_numbers = #tpu.dot_dimension_numbers<[1], [0], [0], [1], [0, 0, 1, 1], [], []>} : vector<1x16xf32>, vector<16x64xf32>, vector<1x64xf32> -> vector<1x64xf32>
      %c10_i32_98 = arith.constant 10 : i32
      %360 = vector.broadcast %c10_i32_98 : i32 to vector<16x1xi32>
      %361 = arith.cmpi eq, %103, %360 : vector<16x1xi32>
      %362 = vector.shape_cast %361 : vector<16x1xi1> to vector<16x1xi1>
      %363 = vector.broadcast %362 : vector<16x1xi1> to vector<16x64xi1>
      %364 = vector.shape_cast %359 : vector<1x64xf32> to vector<1x64xf32>
      %365 = vector.broadcast %364 : vector<1x64xf32> to vector<16x64xf32>
      %366 = arith.select %363, %365, %346 : vector<16x64xi1>, vector<16x64xf32>
      %367 = vector.extract_strided_slice %137 {offsets = [11, 0], sizes = [1, 64], strides = [1, 1]} : vector<16x64xf32> to vector<1x64xf32>
      %368 = vector.broadcast %367 : vector<1x64xf32> to vector<16x64xf32>
      %369 = arith.mulf %368, %97 : vector<16x64xf32>
      %370 = math.exp %369 : vector<16x64xf32>
      %371 = arith.mulf %370, %357 : vector<16x64xf32>
      %372 = vector.extract_strided_slice %145 {offsets = [0, 11], sizes = [16, 1], strides = [1, 1]} : vector<16x16xf32> to vector<16x1xf32>
      %373 = vector.extract_strided_slice %140 {offsets = [11, 0], sizes = [1, 64], strides = [1, 1]} : vector<16x64xf32> to vector<1x64xf32>
      %374 = vector.broadcast %372 : vector<16x1xf32> to vector<16x64xf32>
      %375 = vector.broadcast %373 : vector<1x64xf32> to vector<16x64xf32>
      %376 = arith.mulf %374, %375 : vector<16x64xf32>
      %377 = arith.addf %371, %376 : vector<16x64xf32>
      %378 = vector.extract_strided_slice %144 {offsets = [11, 0], sizes = [1, 16], strides = [1, 1]} : vector<16x16xf32> to vector<1x16xf32>
      %cst_99 = arith.constant dense<0.000000e+00> : vector<1x64xf32>
      %379 = tpu.matmul %378, %377, %cst_99 {dimension_numbers = #tpu.dot_dimension_numbers<[1], [0], [0], [1], [0, 0, 1, 1], [], []>} : vector<1x16xf32>, vector<16x64xf32>, vector<1x64xf32> -> vector<1x64xf32>
      %c11_i32_100 = arith.constant 11 : i32
      %380 = vector.broadcast %c11_i32_100 : i32 to vector<16x1xi32>
      %381 = arith.cmpi eq, %103, %380 : vector<16x1xi32>
      %382 = vector.shape_cast %381 : vector<16x1xi1> to vector<16x1xi1>
      %383 = vector.broadcast %382 : vector<16x1xi1> to vector<16x64xi1>
      %384 = vector.shape_cast %379 : vector<1x64xf32> to vector<1x64xf32>
      %385 = vector.broadcast %384 : vector<1x64xf32> to vector<16x64xf32>
      %386 = arith.select %383, %385, %366 : vector<16x64xi1>, vector<16x64xf32>
      %387 = vector.extract_strided_slice %137 {offsets = [12, 0], sizes = [1, 64], strides = [1, 1]} : vector<16x64xf32> to vector<1x64xf32>
      %388 = vector.broadcast %387 : vector<1x64xf32> to vector<16x64xf32>
      %389 = arith.mulf %388, %97 : vector<16x64xf32>
      %390 = math.exp %389 : vector<16x64xf32>
      %391 = arith.mulf %390, %377 : vector<16x64xf32>
      %392 = vector.extract_strided_slice %145 {offsets = [0, 12], sizes = [16, 1], strides = [1, 1]} : vector<16x16xf32> to vector<16x1xf32>
      %393 = vector.extract_strided_slice %140 {offsets = [12, 0], sizes = [1, 64], strides = [1, 1]} : vector<16x64xf32> to vector<1x64xf32>
      %394 = vector.broadcast %392 : vector<16x1xf32> to vector<16x64xf32>
      %395 = vector.broadcast %393 : vector<1x64xf32> to vector<16x64xf32>
      %396 = arith.mulf %394, %395 : vector<16x64xf32>
      %397 = arith.addf %391, %396 : vector<16x64xf32>
      %398 = vector.extract_strided_slice %144 {offsets = [12, 0], sizes = [1, 16], strides = [1, 1]} : vector<16x16xf32> to vector<1x16xf32>
      %cst_101 = arith.constant dense<0.000000e+00> : vector<1x64xf32>
      %399 = tpu.matmul %398, %397, %cst_101 {dimension_numbers = #tpu.dot_dimension_numbers<[1], [0], [0], [1], [0, 0, 1, 1], [], []>} : vector<1x16xf32>, vector<16x64xf32>, vector<1x64xf32> -> vector<1x64xf32>
      %c12_i32 = arith.constant 12 : i32
      %400 = vector.broadcast %c12_i32 : i32 to vector<16x1xi32>
      %401 = arith.cmpi eq, %103, %400 : vector<16x1xi32>
      %402 = vector.shape_cast %401 : vector<16x1xi1> to vector<16x1xi1>
      %403 = vector.broadcast %402 : vector<16x1xi1> to vector<16x64xi1>
      %404 = vector.shape_cast %399 : vector<1x64xf32> to vector<1x64xf32>
      %405 = vector.broadcast %404 : vector<1x64xf32> to vector<16x64xf32>
      %406 = arith.select %403, %405, %386 : vector<16x64xi1>, vector<16x64xf32>
      %407 = vector.extract_strided_slice %137 {offsets = [13, 0], sizes = [1, 64], strides = [1, 1]} : vector<16x64xf32> to vector<1x64xf32>
      %408 = vector.broadcast %407 : vector<1x64xf32> to vector<16x64xf32>
      %409 = arith.mulf %408, %97 : vector<16x64xf32>
      %410 = math.exp %409 : vector<16x64xf32>
      %411 = arith.mulf %410, %397 : vector<16x64xf32>
      %412 = vector.extract_strided_slice %145 {offsets = [0, 13], sizes = [16, 1], strides = [1, 1]} : vector<16x16xf32> to vector<16x1xf32>
      %413 = vector.extract_strided_slice %140 {offsets = [13, 0], sizes = [1, 64], strides = [1, 1]} : vector<16x64xf32> to vector<1x64xf32>
      %414 = vector.broadcast %412 : vector<16x1xf32> to vector<16x64xf32>
      %415 = vector.broadcast %413 : vector<1x64xf32> to vector<16x64xf32>
      %416 = arith.mulf %414, %415 : vector<16x64xf32>
      %417 = arith.addf %411, %416 : vector<16x64xf32>
      %418 = vector.extract_strided_slice %144 {offsets = [13, 0], sizes = [1, 16], strides = [1, 1]} : vector<16x16xf32> to vector<1x16xf32>
      %cst_102 = arith.constant dense<0.000000e+00> : vector<1x64xf32>
      %419 = tpu.matmul %418, %417, %cst_102 {dimension_numbers = #tpu.dot_dimension_numbers<[1], [0], [0], [1], [0, 0, 1, 1], [], []>} : vector<1x16xf32>, vector<16x64xf32>, vector<1x64xf32> -> vector<1x64xf32>
      %c13_i32 = arith.constant 13 : i32
      %420 = vector.broadcast %c13_i32 : i32 to vector<16x1xi32>
      %421 = arith.cmpi eq, %103, %420 : vector<16x1xi32>
      %422 = vector.shape_cast %421 : vector<16x1xi1> to vector<16x1xi1>
      %423 = vector.broadcast %422 : vector<16x1xi1> to vector<16x64xi1>
      %424 = vector.shape_cast %419 : vector<1x64xf32> to vector<1x64xf32>
      %425 = vector.broadcast %424 : vector<1x64xf32> to vector<16x64xf32>
      %426 = arith.select %423, %425, %406 : vector<16x64xi1>, vector<16x64xf32>
      %427 = vector.extract_strided_slice %137 {offsets = [14, 0], sizes = [1, 64], strides = [1, 1]} : vector<16x64xf32> to vector<1x64xf32>
      %428 = vector.broadcast %427 : vector<1x64xf32> to vector<16x64xf32>
      %429 = arith.mulf %428, %97 : vector<16x64xf32>
      %430 = math.exp %429 : vector<16x64xf32>
      %431 = arith.mulf %430, %417 : vector<16x64xf32>
      %432 = vector.extract_strided_slice %145 {offsets = [0, 14], sizes = [16, 1], strides = [1, 1]} : vector<16x16xf32> to vector<16x1xf32>
      %433 = vector.extract_strided_slice %140 {offsets = [14, 0], sizes = [1, 64], strides = [1, 1]} : vector<16x64xf32> to vector<1x64xf32>
      %434 = vector.broadcast %432 : vector<16x1xf32> to vector<16x64xf32>
      %435 = vector.broadcast %433 : vector<1x64xf32> to vector<16x64xf32>
      %436 = arith.mulf %434, %435 : vector<16x64xf32>
      %437 = arith.addf %431, %436 : vector<16x64xf32>
      %438 = vector.extract_strided_slice %144 {offsets = [14, 0], sizes = [1, 16], strides = [1, 1]} : vector<16x16xf32> to vector<1x16xf32>
      %cst_103 = arith.constant dense<0.000000e+00> : vector<1x64xf32>
      %439 = tpu.matmul %438, %437, %cst_103 {dimension_numbers = #tpu.dot_dimension_numbers<[1], [0], [0], [1], [0, 0, 1, 1], [], []>} : vector<1x16xf32>, vector<16x64xf32>, vector<1x64xf32> -> vector<1x64xf32>
      %c14_i32 = arith.constant 14 : i32
      %440 = vector.broadcast %c14_i32 : i32 to vector<16x1xi32>
      %441 = arith.cmpi eq, %103, %440 : vector<16x1xi32>
      %442 = vector.shape_cast %441 : vector<16x1xi1> to vector<16x1xi1>
      %443 = vector.broadcast %442 : vector<16x1xi1> to vector<16x64xi1>
      %444 = vector.shape_cast %439 : vector<1x64xf32> to vector<1x64xf32>
      %445 = vector.broadcast %444 : vector<1x64xf32> to vector<16x64xf32>
      %446 = arith.select %443, %445, %426 : vector<16x64xi1>, vector<16x64xf32>
      %447 = vector.extract_strided_slice %137 {offsets = [15, 0], sizes = [1, 64], strides = [1, 1]} : vector<16x64xf32> to vector<1x64xf32>
      %448 = vector.broadcast %447 : vector<1x64xf32> to vector<16x64xf32>
      %449 = arith.mulf %448, %97 : vector<16x64xf32>
      %450 = math.exp %449 : vector<16x64xf32>
      %451 = arith.mulf %450, %437 : vector<16x64xf32>
      %452 = vector.extract_strided_slice %145 {offsets = [0, 15], sizes = [16, 1], strides = [1, 1]} : vector<16x16xf32> to vector<16x1xf32>
      %453 = vector.extract_strided_slice %140 {offsets = [15, 0], sizes = [1, 64], strides = [1, 1]} : vector<16x64xf32> to vector<1x64xf32>
      %454 = vector.broadcast %452 : vector<16x1xf32> to vector<16x64xf32>
      %455 = vector.broadcast %453 : vector<1x64xf32> to vector<16x64xf32>
      %456 = arith.mulf %454, %455 : vector<16x64xf32>
      %457 = arith.addf %451, %456 : vector<16x64xf32>
      %458 = vector.extract_strided_slice %144 {offsets = [15, 0], sizes = [1, 16], strides = [1, 1]} : vector<16x16xf32> to vector<1x16xf32>
      %cst_104 = arith.constant dense<0.000000e+00> : vector<1x64xf32>
      %459 = tpu.matmul %458, %457, %cst_104 {dimension_numbers = #tpu.dot_dimension_numbers<[1], [0], [0], [1], [0, 0, 1, 1], [], []>} : vector<1x16xf32>, vector<16x64xf32>, vector<1x64xf32> -> vector<1x64xf32>
      %c15_i32 = arith.constant 15 : i32
      %460 = vector.broadcast %c15_i32 : i32 to vector<16x1xi32>
      %461 = arith.cmpi eq, %103, %460 : vector<16x1xi32>
      %462 = vector.shape_cast %461 : vector<16x1xi1> to vector<16x1xi1>
      %463 = vector.broadcast %462 : vector<16x1xi1> to vector<16x64xi1>
      %464 = vector.shape_cast %459 : vector<1x64xf32> to vector<1x64xf32>
      %465 = vector.broadcast %464 : vector<1x64xf32> to vector<16x64xf32>
      %466 = arith.select %463, %465, %446 : vector<16x64xi1>, vector<16x64xf32>
      %467 = arith.index_cast %135 : i32 to index
      %c0_105 = arith.constant 0 : index
      %468 = vector.load %arg22[%467, %c0_105] : memref<16x64xf32, #tpu.memory_space<vmem>>, vector<16x64xf32>
      tpu.vector_store %arg22[%467, %c0_105], %466 {strides = array<i32>} : memref<16x64xf32, #tpu.memory_space<vmem>>, vector<16x64xf32>,
      %c1_i32_106 = arith.constant 1 : i32
    } else {
    }
    %c1_i32 = arith.constant 1 : i32
    %106 = arith.cmpi eq, %arg1, %c1_i32 : i32
    %107 = arith.extui %106 : i1 to i32
    %c0_i32_55 = arith.constant 0 : i32
    %108 = arith.cmpi ne, %107, %c0_i32_55 : i32
    scf.if %108 {
      %cst_74 = arith.constant 0.000000e+00 : f32
      %133 = vector.broadcast %cst_74 : f32 to vector<16x64xf32>
      %c0_i32_75 = arith.constant 0 : i32
      %c1_i32_76 = arith.constant 1 : i32
      %134 = arith.addi %c0_i32_75, %c1_i32_76 : i32
      %c16_i32 = arith.constant 16 : i32
      %135 = arith.muli %134, %c16_i32 : i32
      %c16_i32_77 = arith.constant 16 : i32
      %136 = arith.subi %c16_i32_77, %135 : i32
      %137 = tpu.assume_multiple %136, 8 : i32
      %138 = arith.index_cast %137 : i32 to index
      %c0_78 = arith.constant 0 : index
      %139 = vector.load %arg19[%138, %c0_78] : memref<16x64xf32, #tpu.memory_space<vmem>>, vector<16x64xf32>
      %140 = arith.index_cast %137 : i32 to index
      %c0_79 = arith.constant 0 : index
      %141 = vector.load %arg20[%140, %c0_79] : memref<16x64xf32, #tpu.memory_space<vmem>>, vector<16x64xf32>
      %142 = arith.mulf %139, %141 : vector<16x64xf32>
      %143 = arith.index_cast %137 : i32 to index
      %c0_80 = arith.constant 0 : index
      %144 = vector.load %arg21[%143, %c0_80] : memref<16x32xf32, #tpu.memory_space<vmem>>, vector<16x32xf32>
      %145 = vector.extract_strided_slice %144 {offsets = [0, 0], sizes = [16, 16], strides = [1, 1]} : vector<16x32xf32> to vector<16x16xf32>
      %146 = vector.extract_strided_slice %144 {offsets = [0, 16], sizes = [16, 16], strides = [1, 1]} : vector<16x32xf32> to vector<16x16xf32>
      %cst_81 = arith.constant dense<0.000000e+00> : vector<16x16xf32>
      %147 = tpu.matmul %102, %145, %cst_81 {dimension_numbers = #tpu.dot_dimension_numbers<[1], [1], [0], [0], [0, 0, 1, 0], [], []>} : vector<16x16xf32>, vector<16x16xf32>, vector<16x16xf32> -> vector<16x16xf32>
      %cst_82 = arith.constant 0.000000e+00 : f32
      %148 = vector.broadcast %cst_82 : f32 to vector<16x64xf32>
      %149 = vector.extract_strided_slice %139 {offsets = [15, 0], sizes = [1, 64], strides = [1, 1]} : vector<16x64xf32> to vector<1x64xf32>
      %150 = vector.broadcast %149 : vector<1x64xf32> to vector<16x64xf32>
      %151 = arith.mulf %150, %97 : vector<16x64xf32>
      %152 = math.exp %151 : vector<16x64xf32>
      %153 = arith.mulf %152, %133 : vector<16x64xf32>
      %154 = vector.extract_strided_slice %147 {offsets = [0, 15], sizes = [16, 1], strides = [1, 1]} : vector<16x16xf32> to vector<16x1xf32>
      %155 = vector.extract_strided_slice %142 {offsets = [15, 0], sizes = [1, 64], strides = [1, 1]} : vector<16x64xf32> to vector<1x64xf32>
      %156 = vector.broadcast %154 : vector<16x1xf32> to vector<16x64xf32>
      %157 = vector.broadcast %155 : vector<1x64xf32> to vector<16x64xf32>
      %158 = arith.mulf %156, %157 : vector<16x64xf32>
      %159 = arith.addf %153, %158 : vector<16x64xf32>
      %160 = vector.extract_strided_slice %146 {offsets = [15, 0], sizes = [1, 16], strides = [1, 1]} : vector<16x16xf32> to vector<1x16xf32>
      %cst_83 = arith.constant dense<0.000000e+00> : vector<1x64xf32>
      %161 = tpu.matmul %160, %159, %cst_83 {dimension_numbers = #tpu.dot_dimension_numbers<[1], [0], [0], [1], [0, 0, 1, 1], [], []>} : vector<1x16xf32>, vector<16x64xf32>, vector<1x64xf32> -> vector<1x64xf32>
      %c15_i32 = arith.constant 15 : i32
      %162 = vector.broadcast %c15_i32 : i32 to vector<16x1xi32>
      %163 = arith.cmpi eq, %103, %162 : vector<16x1xi32>
      %164 = vector.shape_cast %163 : vector<16x1xi1> to vector<16x1xi1>
      %165 = vector.broadcast %164 : vector<16x1xi1> to vector<16x64xi1>
      %166 = vector.shape_cast %161 : vector<1x64xf32> to vector<1x64xf32>
      %167 = vector.broadcast %166 : vector<1x64xf32> to vector<16x64xf32>
      %168 = arith.select %165, %167, %148 : vector<16x64xi1>, vector<16x64xf32>
      %169 = vector.extract_strided_slice %139 {offsets = [14, 0], sizes = [1, 64], strides = [1, 1]} : vector<16x64xf32> to vector<1x64xf32>
      %170 = vector.broadcast %169 : vector<1x64xf32> to vector<16x64xf32>
      %171 = arith.mulf %170, %97 : vector<16x64xf32>
      %172 = math.exp %171 : vector<16x64xf32>
      %173 = arith.mulf %172, %159 : vector<16x64xf32>
      %174 = vector.extract_strided_slice %147 {offsets = [0, 14], sizes = [16, 1], strides = [1, 1]} : vector<16x16xf32> to vector<16x1xf32>
      %175 = vector.extract_strided_slice %142 {offsets = [14, 0], sizes = [1, 64], strides = [1, 1]} : vector<16x64xf32> to vector<1x64xf32>
      %176 = vector.broadcast %174 : vector<16x1xf32> to vector<16x64xf32>
      %177 = vector.broadcast %175 : vector<1x64xf32> to vector<16x64xf32>
      %178 = arith.mulf %176, %177 : vector<16x64xf32>
      %179 = arith.addf %173, %178 : vector<16x64xf32>
      %180 = vector.extract_strided_slice %146 {offsets = [14, 0], sizes = [1, 16], strides = [1, 1]} : vector<16x16xf32> to vector<1x16xf32>
      %cst_84 = arith.constant dense<0.000000e+00> : vector<1x64xf32>
      %181 = tpu.matmul %180, %179, %cst_84 {dimension_numbers = #tpu.dot_dimension_numbers<[1], [0], [0], [1], [0, 0, 1, 1], [], []>} : vector<1x16xf32>, vector<16x64xf32>, vector<1x64xf32> -> vector<1x64xf32>
      %c14_i32 = arith.constant 14 : i32
      %182 = vector.broadcast %c14_i32 : i32 to vector<16x1xi32>
      %183 = arith.cmpi eq, %103, %182 : vector<16x1xi32>
      %184 = vector.shape_cast %183 : vector<16x1xi1> to vector<16x1xi1>
      %185 = vector.broadcast %184 : vector<16x1xi1> to vector<16x64xi1>
      %186 = vector.shape_cast %181 : vector<1x64xf32> to vector<1x64xf32>
      %187 = vector.broadcast %186 : vector<1x64xf32> to vector<16x64xf32>
      %188 = arith.select %185, %187, %168 : vector<16x64xi1>, vector<16x64xf32>
      %189 = vector.extract_strided_slice %139 {offsets = [13, 0], sizes = [1, 64], strides = [1, 1]} : vector<16x64xf32> to vector<1x64xf32>
      %190 = vector.broadcast %189 : vector<1x64xf32> to vector<16x64xf32>
      %191 = arith.mulf %190, %97 : vector<16x64xf32>
      %192 = math.exp %191 : vector<16x64xf32>
      %193 = arith.mulf %192, %179 : vector<16x64xf32>
      %194 = vector.extract_strided_slice %147 {offsets = [0, 13], sizes = [16, 1], strides = [1, 1]} : vector<16x16xf32> to vector<16x1xf32>
      %195 = vector.extract_strided_slice %142 {offsets = [13, 0], sizes = [1, 64], strides = [1, 1]} : vector<16x64xf32> to vector<1x64xf32>
      %196 = vector.broadcast %194 : vector<16x1xf32> to vector<16x64xf32>
      %197 = vector.broadcast %195 : vector<1x64xf32> to vector<16x64xf32>
      %198 = arith.mulf %196, %197 : vector<16x64xf32>
      %199 = arith.addf %193, %198 : vector<16x64xf32>
      %200 = vector.extract_strided_slice %146 {offsets = [13, 0], sizes = [1, 16], strides = [1, 1]} : vector<16x16xf32> to vector<1x16xf32>
      %cst_85 = arith.constant dense<0.000000e+00> : vector<1x64xf32>
      %201 = tpu.matmul %200, %199, %cst_85 {dimension_numbers = #tpu.dot_dimension_numbers<[1], [0], [0], [1], [0, 0, 1, 1], [], []>} : vector<1x16xf32>, vector<16x64xf32>, vector<1x64xf32> -> vector<1x64xf32>
      %c13_i32 = arith.constant 13 : i32
      %202 = vector.broadcast %c13_i32 : i32 to vector<16x1xi32>
      %203 = arith.cmpi eq, %103, %202 : vector<16x1xi32>
      %204 = vector.shape_cast %203 : vector<16x1xi1> to vector<16x1xi1>
      %205 = vector.broadcast %204 : vector<16x1xi1> to vector<16x64xi1>
      %206 = vector.shape_cast %201 : vector<1x64xf32> to vector<1x64xf32>
      %207 = vector.broadcast %206 : vector<1x64xf32> to vector<16x64xf32>
      %208 = arith.select %205, %207, %188 : vector<16x64xi1>, vector<16x64xf32>
      %209 = vector.extract_strided_slice %139 {offsets = [12, 0], sizes = [1, 64], strides = [1, 1]} : vector<16x64xf32> to vector<1x64xf32>
      %210 = vector.broadcast %209 : vector<1x64xf32> to vector<16x64xf32>
      %211 = arith.mulf %210, %97 : vector<16x64xf32>
      %212 = math.exp %211 : vector<16x64xf32>
      %213 = arith.mulf %212, %199 : vector<16x64xf32>
      %214 = vector.extract_strided_slice %147 {offsets = [0, 12], sizes = [16, 1], strides = [1, 1]} : vector<16x16xf32> to vector<16x1xf32>
      %215 = vector.extract_strided_slice %142 {offsets = [12, 0], sizes = [1, 64], strides = [1, 1]} : vector<16x64xf32> to vector<1x64xf32>
      %216 = vector.broadcast %214 : vector<16x1xf32> to vector<16x64xf32>
      %217 = vector.broadcast %215 : vector<1x64xf32> to vector<16x64xf32>
      %218 = arith.mulf %216, %217 : vector<16x64xf32>
      %219 = arith.addf %213, %218 : vector<16x64xf32>
      %220 = vector.extract_strided_slice %146 {offsets = [12, 0], sizes = [1, 16], strides = [1, 1]} : vector<16x16xf32> to vector<1x16xf32>
      %cst_86 = arith.constant dense<0.000000e+00> : vector<1x64xf32>
      %221 = tpu.matmul %220, %219, %cst_86 {dimension_numbers = #tpu.dot_dimension_numbers<[1], [0], [0], [1], [0, 0, 1, 1], [], []>} : vector<1x16xf32>, vector<16x64xf32>, vector<1x64xf32> -> vector<1x64xf32>
      %c12_i32 = arith.constant 12 : i32
      %222 = vector.broadcast %c12_i32 : i32 to vector<16x1xi32>
      %223 = arith.cmpi eq, %103, %222 : vector<16x1xi32>
      %224 = vector.shape_cast %223 : vector<16x1xi1> to vector<16x1xi1>
      %225 = vector.broadcast %224 : vector<16x1xi1> to vector<16x64xi1>
      %226 = vector.shape_cast %221 : vector<1x64xf32> to vector<1x64xf32>
      %227 = vector.broadcast %226 : vector<1x64xf32> to vector<16x64xf32>
      %228 = arith.select %225, %227, %208 : vector<16x64xi1>, vector<16x64xf32>
      %229 = vector.extract_strided_slice %139 {offsets = [11, 0], sizes = [1, 64], strides = [1, 1]} : vector<16x64xf32> to vector<1x64xf32>
      %230 = vector.broadcast %229 : vector<1x64xf32> to vector<16x64xf32>
      %231 = arith.mulf %230, %97 : vector<16x64xf32>
      %232 = math.exp %231 : vector<16x64xf32>
      %233 = arith.mulf %232, %219 : vector<16x64xf32>
      %234 = vector.extract_strided_slice %147 {offsets = [0, 11], sizes = [16, 1], strides = [1, 1]} : vector<16x16xf32> to vector<16x1xf32>
      %235 = vector.extract_strided_slice %142 {offsets = [11, 0], sizes = [1, 64], strides = [1, 1]} : vector<16x64xf32> to vector<1x64xf32>
      %236 = vector.broadcast %234 : vector<16x1xf32> to vector<16x64xf32>
      %237 = vector.broadcast %235 : vector<1x64xf32> to vector<16x64xf32>
      %238 = arith.mulf %236, %237 : vector<16x64xf32>
      %239 = arith.addf %233, %238 : vector<16x64xf32>
      %240 = vector.extract_strided_slice %146 {offsets = [11, 0], sizes = [1, 16], strides = [1, 1]} : vector<16x16xf32> to vector<1x16xf32>
      %cst_87 = arith.constant dense<0.000000e+00> : vector<1x64xf32>
      %241 = tpu.matmul %240, %239, %cst_87 {dimension_numbers = #tpu.dot_dimension_numbers<[1], [0], [0], [1], [0, 0, 1, 1], [], []>} : vector<1x16xf32>, vector<16x64xf32>, vector<1x64xf32> -> vector<1x64xf32>
      %c11_i32_88 = arith.constant 11 : i32
      %242 = vector.broadcast %c11_i32_88 : i32 to vector<16x1xi32>
      %243 = arith.cmpi eq, %103, %242 : vector<16x1xi32>
      %244 = vector.shape_cast %243 : vector<16x1xi1> to vector<16x1xi1>
      %245 = vector.broadcast %244 : vector<16x1xi1> to vector<16x64xi1>
      %246 = vector.shape_cast %241 : vector<1x64xf32> to vector<1x64xf32>
      %247 = vector.broadcast %246 : vector<1x64xf32> to vector<16x64xf32>
      %248 = arith.select %245, %247, %228 : vector<16x64xi1>, vector<16x64xf32>
      %249 = vector.extract_strided_slice %139 {offsets = [10, 0], sizes = [1, 64], strides = [1, 1]} : vector<16x64xf32> to vector<1x64xf32>
      %250 = vector.broadcast %249 : vector<1x64xf32> to vector<16x64xf32>
      %251 = arith.mulf %250, %97 : vector<16x64xf32>
      %252 = math.exp %251 : vector<16x64xf32>
      %253 = arith.mulf %252, %239 : vector<16x64xf32>
      %254 = vector.extract_strided_slice %147 {offsets = [0, 10], sizes = [16, 1], strides = [1, 1]} : vector<16x16xf32> to vector<16x1xf32>
      %255 = vector.extract_strided_slice %142 {offsets = [10, 0], sizes = [1, 64], strides = [1, 1]} : vector<16x64xf32> to vector<1x64xf32>
      %256 = vector.broadcast %254 : vector<16x1xf32> to vector<16x64xf32>
      %257 = vector.broadcast %255 : vector<1x64xf32> to vector<16x64xf32>
      %258 = arith.mulf %256, %257 : vector<16x64xf32>
      %259 = arith.addf %253, %258 : vector<16x64xf32>
      %260 = vector.extract_strided_slice %146 {offsets = [10, 0], sizes = [1, 16], strides = [1, 1]} : vector<16x16xf32> to vector<1x16xf32>
      %cst_89 = arith.constant dense<0.000000e+00> : vector<1x64xf32>
      %261 = tpu.matmul %260, %259, %cst_89 {dimension_numbers = #tpu.dot_dimension_numbers<[1], [0], [0], [1], [0, 0, 1, 1], [], []>} : vector<1x16xf32>, vector<16x64xf32>, vector<1x64xf32> -> vector<1x64xf32>
      %c10_i32_90 = arith.constant 10 : i32
      %262 = vector.broadcast %c10_i32_90 : i32 to vector<16x1xi32>
      %263 = arith.cmpi eq, %103, %262 : vector<16x1xi32>
      %264 = vector.shape_cast %263 : vector<16x1xi1> to vector<16x1xi1>
      %265 = vector.broadcast %264 : vector<16x1xi1> to vector<16x64xi1>
      %266 = vector.shape_cast %261 : vector<1x64xf32> to vector<1x64xf32>
      %267 = vector.broadcast %266 : vector<1x64xf32> to vector<16x64xf32>
      %268 = arith.select %265, %267, %248 : vector<16x64xi1>, vector<16x64xf32>
      %269 = vector.extract_strided_slice %139 {offsets = [9, 0], sizes = [1, 64], strides = [1, 1]} : vector<16x64xf32> to vector<1x64xf32>
      %270 = vector.broadcast %269 : vector<1x64xf32> to vector<16x64xf32>
      %271 = arith.mulf %270, %97 : vector<16x64xf32>
      %272 = math.exp %271 : vector<16x64xf32>
      %273 = arith.mulf %272, %259 : vector<16x64xf32>
      %274 = vector.extract_strided_slice %147 {offsets = [0, 9], sizes = [16, 1], strides = [1, 1]} : vector<16x16xf32> to vector<16x1xf32>
      %275 = vector.extract_strided_slice %142 {offsets = [9, 0], sizes = [1, 64], strides = [1, 1]} : vector<16x64xf32> to vector<1x64xf32>
      %276 = vector.broadcast %274 : vector<16x1xf32> to vector<16x64xf32>
      %277 = vector.broadcast %275 : vector<1x64xf32> to vector<16x64xf32>
      %278 = arith.mulf %276, %277 : vector<16x64xf32>
      %279 = arith.addf %273, %278 : vector<16x64xf32>
      %280 = vector.extract_strided_slice %146 {offsets = [9, 0], sizes = [1, 16], strides = [1, 1]} : vector<16x16xf32> to vector<1x16xf32>
      %cst_91 = arith.constant dense<0.000000e+00> : vector<1x64xf32>
      %281 = tpu.matmul %280, %279, %cst_91 {dimension_numbers = #tpu.dot_dimension_numbers<[1], [0], [0], [1], [0, 0, 1, 1], [], []>} : vector<1x16xf32>, vector<16x64xf32>, vector<1x64xf32> -> vector<1x64xf32>
      %c9_i32_92 = arith.constant 9 : i32
      %282 = vector.broadcast %c9_i32_92 : i32 to vector<16x1xi32>
      %283 = arith.cmpi eq, %103, %282 : vector<16x1xi32>
      %284 = vector.shape_cast %283 : vector<16x1xi1> to vector<16x1xi1>
      %285 = vector.broadcast %284 : vector<16x1xi1> to vector<16x64xi1>
      %286 = vector.shape_cast %281 : vector<1x64xf32> to vector<1x64xf32>
      %287 = vector.broadcast %286 : vector<1x64xf32> to vector<16x64xf32>
      %288 = arith.select %285, %287, %268 : vector<16x64xi1>, vector<16x64xf32>
      %289 = vector.extract_strided_slice %139 {offsets = [8, 0], sizes = [1, 64], strides = [1, 1]} : vector<16x64xf32> to vector<1x64xf32>
      %290 = vector.broadcast %289 : vector<1x64xf32> to vector<16x64xf32>
      %291 = arith.mulf %290, %97 : vector<16x64xf32>
      %292 = math.exp %291 : vector<16x64xf32>
      %293 = arith.mulf %292, %279 : vector<16x64xf32>
      %294 = vector.extract_strided_slice %147 {offsets = [0, 8], sizes = [16, 1], strides = [1, 1]} : vector<16x16xf32> to vector<16x1xf32>
      %295 = vector.extract_strided_slice %142 {offsets = [8, 0], sizes = [1, 64], strides = [1, 1]} : vector<16x64xf32> to vector<1x64xf32>
      %296 = vector.broadcast %294 : vector<16x1xf32> to vector<16x64xf32>
      %297 = vector.broadcast %295 : vector<1x64xf32> to vector<16x64xf32>
      %298 = arith.mulf %296, %297 : vector<16x64xf32>
      %299 = arith.addf %293, %298 : vector<16x64xf32>
      %300 = vector.extract_strided_slice %146 {offsets = [8, 0], sizes = [1, 16], strides = [1, 1]} : vector<16x16xf32> to vector<1x16xf32>
      %cst_93 = arith.constant dense<0.000000e+00> : vector<1x64xf32>
      %301 = tpu.matmul %300, %299, %cst_93 {dimension_numbers = #tpu.dot_dimension_numbers<[1], [0], [0], [1], [0, 0, 1, 1], [], []>} : vector<1x16xf32>, vector<16x64xf32>, vector<1x64xf32> -> vector<1x64xf32>
      %c8_i32 = arith.constant 8 : i32
      %302 = vector.broadcast %c8_i32 : i32 to vector<16x1xi32>
      %303 = arith.cmpi eq, %103, %302 : vector<16x1xi32>
      %304 = vector.shape_cast %303 : vector<16x1xi1> to vector<16x1xi1>
      %305 = vector.broadcast %304 : vector<16x1xi1> to vector<16x64xi1>
      %306 = vector.shape_cast %301 : vector<1x64xf32> to vector<1x64xf32>
      %307 = vector.broadcast %306 : vector<1x64xf32> to vector<16x64xf32>
      %308 = arith.select %305, %307, %288 : vector<16x64xi1>, vector<16x64xf32>
      %309 = vector.extract_strided_slice %139 {offsets = [7, 0], sizes = [1, 64], strides = [1, 1]} : vector<16x64xf32> to vector<1x64xf32>
      %310 = vector.broadcast %309 : vector<1x64xf32> to vector<16x64xf32>
      %311 = arith.mulf %310, %97 : vector<16x64xf32>
      %312 = math.exp %311 : vector<16x64xf32>
      %313 = arith.mulf %312, %299 : vector<16x64xf32>
      %314 = vector.extract_strided_slice %147 {offsets = [0, 7], sizes = [16, 1], strides = [1, 1]} : vector<16x16xf32> to vector<16x1xf32>
      %315 = vector.extract_strided_slice %142 {offsets = [7, 0], sizes = [1, 64], strides = [1, 1]} : vector<16x64xf32> to vector<1x64xf32>
      %316 = vector.broadcast %314 : vector<16x1xf32> to vector<16x64xf32>
      %317 = vector.broadcast %315 : vector<1x64xf32> to vector<16x64xf32>
      %318 = arith.mulf %316, %317 : vector<16x64xf32>
      %319 = arith.addf %313, %318 : vector<16x64xf32>
      %320 = vector.extract_strided_slice %146 {offsets = [7, 0], sizes = [1, 16], strides = [1, 1]} : vector<16x16xf32> to vector<1x16xf32>
      %cst_94 = arith.constant dense<0.000000e+00> : vector<1x64xf32>
      %321 = tpu.matmul %320, %319, %cst_94 {dimension_numbers = #tpu.dot_dimension_numbers<[1], [0], [0], [1], [0, 0, 1, 1], [], []>} : vector<1x16xf32>, vector<16x64xf32>, vector<1x64xf32> -> vector<1x64xf32>
      %c7_i32_95 = arith.constant 7 : i32
      %322 = vector.broadcast %c7_i32_95 : i32 to vector<16x1xi32>
      %323 = arith.cmpi eq, %103, %322 : vector<16x1xi32>
      %324 = vector.shape_cast %323 : vector<16x1xi1> to vector<16x1xi1>
      %325 = vector.broadcast %324 : vector<16x1xi1> to vector<16x64xi1>
      %326 = vector.shape_cast %321 : vector<1x64xf32> to vector<1x64xf32>
      %327 = vector.broadcast %326 : vector<1x64xf32> to vector<16x64xf32>
      %328 = arith.select %325, %327, %308 : vector<16x64xi1>, vector<16x64xf32>
      %329 = vector.extract_strided_slice %139 {offsets = [6, 0], sizes = [1, 64], strides = [1, 1]} : vector<16x64xf32> to vector<1x64xf32>
      %330 = vector.broadcast %329 : vector<1x64xf32> to vector<16x64xf32>
      %331 = arith.mulf %330, %97 : vector<16x64xf32>
      %332 = math.exp %331 : vector<16x64xf32>
      %333 = arith.mulf %332, %319 : vector<16x64xf32>
      %334 = vector.extract_strided_slice %147 {offsets = [0, 6], sizes = [16, 1], strides = [1, 1]} : vector<16x16xf32> to vector<16x1xf32>
      %335 = vector.extract_strided_slice %142 {offsets = [6, 0], sizes = [1, 64], strides = [1, 1]} : vector<16x64xf32> to vector<1x64xf32>
      %336 = vector.broadcast %334 : vector<16x1xf32> to vector<16x64xf32>
      %337 = vector.broadcast %335 : vector<1x64xf32> to vector<16x64xf32>
      %338 = arith.mulf %336, %337 : vector<16x64xf32>
      %339 = arith.addf %333, %338 : vector<16x64xf32>
      %340 = vector.extract_strided_slice %146 {offsets = [6, 0], sizes = [1, 16], strides = [1, 1]} : vector<16x16xf32> to vector<1x16xf32>
      %cst_96 = arith.constant dense<0.000000e+00> : vector<1x64xf32>
      %341 = tpu.matmul %340, %339, %cst_96 {dimension_numbers = #tpu.dot_dimension_numbers<[1], [0], [0], [1], [0, 0, 1, 1], [], []>} : vector<1x16xf32>, vector<16x64xf32>, vector<1x64xf32> -> vector<1x64xf32>
      %c6_i32_97 = arith.constant 6 : i32
      %342 = vector.broadcast %c6_i32_97 : i32 to vector<16x1xi32>
      %343 = arith.cmpi eq, %103, %342 : vector<16x1xi32>
      %344 = vector.shape_cast %343 : vector<16x1xi1> to vector<16x1xi1>
      %345 = vector.broadcast %344 : vector<16x1xi1> to vector<16x64xi1>
      %346 = vector.shape_cast %341 : vector<1x64xf32> to vector<1x64xf32>
      %347 = vector.broadcast %346 : vector<1x64xf32> to vector<16x64xf32>
      %348 = arith.select %345, %347, %328 : vector<16x64xi1>, vector<16x64xf32>
      %349 = vector.extract_strided_slice %139 {offsets = [5, 0], sizes = [1, 64], strides = [1, 1]} : vector<16x64xf32> to vector<1x64xf32>
      %350 = vector.broadcast %349 : vector<1x64xf32> to vector<16x64xf32>
      %351 = arith.mulf %350, %97 : vector<16x64xf32>
      %352 = math.exp %351 : vector<16x64xf32>
      %353 = arith.mulf %352, %339 : vector<16x64xf32>
      %354 = vector.extract_strided_slice %147 {offsets = [0, 5], sizes = [16, 1], strides = [1, 1]} : vector<16x16xf32> to vector<16x1xf32>
      %355 = vector.extract_strided_slice %142 {offsets = [5, 0], sizes = [1, 64], strides = [1, 1]} : vector<16x64xf32> to vector<1x64xf32>
      %356 = vector.broadcast %354 : vector<16x1xf32> to vector<16x64xf32>
      %357 = vector.broadcast %355 : vector<1x64xf32> to vector<16x64xf32>
      %358 = arith.mulf %356, %357 : vector<16x64xf32>
      %359 = arith.addf %353, %358 : vector<16x64xf32>
      %360 = vector.extract_strided_slice %146 {offsets = [5, 0], sizes = [1, 16], strides = [1, 1]} : vector<16x16xf32> to vector<1x16xf32>
      %cst_98 = arith.constant dense<0.000000e+00> : vector<1x64xf32>
      %361 = tpu.matmul %360, %359, %cst_98 {dimension_numbers = #tpu.dot_dimension_numbers<[1], [0], [0], [1], [0, 0, 1, 1], [], []>} : vector<1x16xf32>, vector<16x64xf32>, vector<1x64xf32> -> vector<1x64xf32>
      %c5_i32_99 = arith.constant 5 : i32
      %362 = vector.broadcast %c5_i32_99 : i32 to vector<16x1xi32>
      %363 = arith.cmpi eq, %103, %362 : vector<16x1xi32>
      %364 = vector.shape_cast %363 : vector<16x1xi1> to vector<16x1xi1>
      %365 = vector.broadcast %364 : vector<16x1xi1> to vector<16x64xi1>
      %366 = vector.shape_cast %361 : vector<1x64xf32> to vector<1x64xf32>
      %367 = vector.broadcast %366 : vector<1x64xf32> to vector<16x64xf32>
      %368 = arith.select %365, %367, %348 : vector<16x64xi1>, vector<16x64xf32>
      %369 = vector.extract_strided_slice %139 {offsets = [4, 0], sizes = [1, 64], strides = [1, 1]} : vector<16x64xf32> to vector<1x64xf32>
      %370 = vector.broadcast %369 : vector<1x64xf32> to vector<16x64xf32>
      %371 = arith.mulf %370, %97 : vector<16x64xf32>
      %372 = math.exp %371 : vector<16x64xf32>
      %373 = arith.mulf %372, %359 : vector<16x64xf32>
      %374 = vector.extract_strided_slice %147 {offsets = [0, 4], sizes = [16, 1], strides = [1, 1]} : vector<16x16xf32> to vector<16x1xf32>
      %375 = vector.extract_strided_slice %142 {offsets = [4, 0], sizes = [1, 64], strides = [1, 1]} : vector<16x64xf32> to vector<1x64xf32>
      %376 = vector.broadcast %374 : vector<16x1xf32> to vector<16x64xf32>
      %377 = vector.broadcast %375 : vector<1x64xf32> to vector<16x64xf32>
      %378 = arith.mulf %376, %377 : vector<16x64xf32>
      %379 = arith.addf %373, %378 : vector<16x64xf32>
      %380 = vector.extract_strided_slice %146 {offsets = [4, 0], sizes = [1, 16], strides = [1, 1]} : vector<16x16xf32> to vector<1x16xf32>
      %cst_100 = arith.constant dense<0.000000e+00> : vector<1x64xf32>
      %381 = tpu.matmul %380, %379, %cst_100 {dimension_numbers = #tpu.dot_dimension_numbers<[1], [0], [0], [1], [0, 0, 1, 1], [], []>} : vector<1x16xf32>, vector<16x64xf32>, vector<1x64xf32> -> vector<1x64xf32>
      %c4_i32 = arith.constant 4 : i32
      %382 = vector.broadcast %c4_i32 : i32 to vector<16x1xi32>
      %383 = arith.cmpi eq, %103, %382 : vector<16x1xi32>
      %384 = vector.shape_cast %383 : vector<16x1xi1> to vector<16x1xi1>
      %385 = vector.broadcast %384 : vector<16x1xi1> to vector<16x64xi1>
      %386 = vector.shape_cast %381 : vector<1x64xf32> to vector<1x64xf32>
      %387 = vector.broadcast %386 : vector<1x64xf32> to vector<16x64xf32>
      %388 = arith.select %385, %387, %368 : vector<16x64xi1>, vector<16x64xf32>
      %389 = vector.extract_strided_slice %139 {offsets = [3, 0], sizes = [1, 64], strides = [1, 1]} : vector<16x64xf32> to vector<1x64xf32>
      %390 = vector.broadcast %389 : vector<1x64xf32> to vector<16x64xf32>
      %391 = arith.mulf %390, %97 : vector<16x64xf32>
      %392 = math.exp %391 : vector<16x64xf32>
      %393 = arith.mulf %392, %379 : vector<16x64xf32>
      %394 = vector.extract_strided_slice %147 {offsets = [0, 3], sizes = [16, 1], strides = [1, 1]} : vector<16x16xf32> to vector<16x1xf32>
      %395 = vector.extract_strided_slice %142 {offsets = [3, 0], sizes = [1, 64], strides = [1, 1]} : vector<16x64xf32> to vector<1x64xf32>
      %396 = vector.broadcast %394 : vector<16x1xf32> to vector<16x64xf32>
      %397 = vector.broadcast %395 : vector<1x64xf32> to vector<16x64xf32>
      %398 = arith.mulf %396, %397 : vector<16x64xf32>
      %399 = arith.addf %393, %398 : vector<16x64xf32>
      %400 = vector.extract_strided_slice %146 {offsets = [3, 0], sizes = [1, 16], strides = [1, 1]} : vector<16x16xf32> to vector<1x16xf32>
      %cst_101 = arith.constant dense<0.000000e+00> : vector<1x64xf32>
      %401 = tpu.matmul %400, %399, %cst_101 {dimension_numbers = #tpu.dot_dimension_numbers<[1], [0], [0], [1], [0, 0, 1, 1], [], []>} : vector<1x16xf32>, vector<16x64xf32>, vector<1x64xf32> -> vector<1x64xf32>
      %c3_i32 = arith.constant 3 : i32
      %402 = vector.broadcast %c3_i32 : i32 to vector<16x1xi32>
      %403 = arith.cmpi eq, %103, %402 : vector<16x1xi32>
      %404 = vector.shape_cast %403 : vector<16x1xi1> to vector<16x1xi1>
      %405 = vector.broadcast %404 : vector<16x1xi1> to vector<16x64xi1>
      %406 = vector.shape_cast %401 : vector<1x64xf32> to vector<1x64xf32>
      %407 = vector.broadcast %406 : vector<1x64xf32> to vector<16x64xf32>
      %408 = arith.select %405, %407, %388 : vector<16x64xi1>, vector<16x64xf32>
      %409 = vector.extract_strided_slice %139 {offsets = [2, 0], sizes = [1, 64], strides = [1, 1]} : vector<16x64xf32> to vector<1x64xf32>
      %410 = vector.broadcast %409 : vector<1x64xf32> to vector<16x64xf32>
      %411 = arith.mulf %410, %97 : vector<16x64xf32>
      %412 = math.exp %411 : vector<16x64xf32>
      %413 = arith.mulf %412, %399 : vector<16x64xf32>
      %414 = vector.extract_strided_slice %147 {offsets = [0, 2], sizes = [16, 1], strides = [1, 1]} : vector<16x16xf32> to vector<16x1xf32>
      %415 = vector.extract_strided_slice %142 {offsets = [2, 0], sizes = [1, 64], strides = [1, 1]} : vector<16x64xf32> to vector<1x64xf32>
      %416 = vector.broadcast %414 : vector<16x1xf32> to vector<16x64xf32>
      %417 = vector.broadcast %415 : vector<1x64xf32> to vector<16x64xf32>
      %418 = arith.mulf %416, %417 : vector<16x64xf32>
      %419 = arith.addf %413, %418 : vector<16x64xf32>
      %420 = vector.extract_strided_slice %146 {offsets = [2, 0], sizes = [1, 16], strides = [1, 1]} : vector<16x16xf32> to vector<1x16xf32>
      %cst_102 = arith.constant dense<0.000000e+00> : vector<1x64xf32>
      %421 = tpu.matmul %420, %419, %cst_102 {dimension_numbers = #tpu.dot_dimension_numbers<[1], [0], [0], [1], [0, 0, 1, 1], [], []>} : vector<1x16xf32>, vector<16x64xf32>, vector<1x64xf32> -> vector<1x64xf32>
      %c2_i32 = arith.constant 2 : i32
      %422 = vector.broadcast %c2_i32 : i32 to vector<16x1xi32>
      %423 = arith.cmpi eq, %103, %422 : vector<16x1xi32>
      %424 = vector.shape_cast %423 : vector<16x1xi1> to vector<16x1xi1>
      %425 = vector.broadcast %424 : vector<16x1xi1> to vector<16x64xi1>
      %426 = vector.shape_cast %421 : vector<1x64xf32> to vector<1x64xf32>
      %427 = vector.broadcast %426 : vector<1x64xf32> to vector<16x64xf32>
      %428 = arith.select %425, %427, %408 : vector<16x64xi1>, vector<16x64xf32>
      %429 = vector.extract_strided_slice %139 {offsets = [1, 0], sizes = [1, 64], strides = [1, 1]} : vector<16x64xf32> to vector<1x64xf32>
      %430 = vector.broadcast %429 : vector<1x64xf32> to vector<16x64xf32>
      %431 = arith.mulf %430, %97 : vector<16x64xf32>
      %432 = math.exp %431 : vector<16x64xf32>
      %433 = arith.mulf %432, %419 : vector<16x64xf32>
      %434 = vector.extract_strided_slice %147 {offsets = [0, 1], sizes = [16, 1], strides = [1, 1]} : vector<16x16xf32> to vector<16x1xf32>
      %435 = vector.extract_strided_slice %142 {offsets = [1, 0], sizes = [1, 64], strides = [1, 1]} : vector<16x64xf32> to vector<1x64xf32>
      %436 = vector.broadcast %434 : vector<16x1xf32> to vector<16x64xf32>
      %437 = vector.broadcast %435 : vector<1x64xf32> to vector<16x64xf32>
      %438 = arith.mulf %436, %437 : vector<16x64xf32>
      %439 = arith.addf %433, %438 : vector<16x64xf32>
      %440 = vector.extract_strided_slice %146 {offsets = [1, 0], sizes = [1, 16], strides = [1, 1]} : vector<16x16xf32> to vector<1x16xf32>
      %cst_103 = arith.constant dense<0.000000e+00> : vector<1x64xf32>
      %441 = tpu.matmul %440, %439, %cst_103 {dimension_numbers = #tpu.dot_dimension_numbers<[1], [0], [0], [1], [0, 0, 1, 1], [], []>} : vector<1x16xf32>, vector<16x64xf32>, vector<1x64xf32> -> vector<1x64xf32>
      %c1_i32_104 = arith.constant 1 : i32
      %442 = vector.broadcast %c1_i32_104 : i32 to vector<16x1xi32>
      %443 = arith.cmpi eq, %103, %442 : vector<16x1xi32>
      %444 = vector.shape_cast %443 : vector<16x1xi1> to vector<16x1xi1>
      %445 = vector.broadcast %444 : vector<16x1xi1> to vector<16x64xi1>
      %446 = vector.shape_cast %441 : vector<1x64xf32> to vector<1x64xf32>
      %447 = vector.broadcast %446 : vector<1x64xf32> to vector<16x64xf32>
      %448 = arith.select %445, %447, %428 : vector<16x64xi1>, vector<16x64xf32>
      %449 = vector.extract_strided_slice %139 {offsets = [0, 0], sizes = [1, 64], strides = [1, 1]} : vector<16x64xf32> to vector<1x64xf32>
      %450 = vector.broadcast %449 : vector<1x64xf32> to vector<16x64xf32>
      %451 = arith.mulf %450, %97 : vector<16x64xf32>
      %452 = math.exp %451 : vector<16x64xf32>
      %453 = arith.mulf %452, %439 : vector<16x64xf32>
      %454 = vector.extract_strided_slice %147 {offsets = [0, 0], sizes = [16, 1], strides = [1, 1]} : vector<16x16xf32> to vector<16x1xf32>
      %455 = vector.extract_strided_slice %142 {offsets = [0, 0], sizes = [1, 64], strides = [1, 1]} : vector<16x64xf32> to vector<1x64xf32>
      %456 = vector.broadcast %454 : vector<16x1xf32> to vector<16x64xf32>
      %457 = vector.broadcast %455 : vector<1x64xf32> to vector<16x64xf32>
      %458 = arith.mulf %456, %457 : vector<16x64xf32>
      %459 = arith.addf %453, %458 : vector<16x64xf32>
      %460 = vector.extract_strided_slice %146 {offsets = [0, 0], sizes = [1, 16], strides = [1, 1]} : vector<16x16xf32> to vector<1x16xf32>
      %cst_105 = arith.constant dense<0.000000e+00> : vector<1x64xf32>
      %461 = tpu.matmul %460, %459, %cst_105 {dimension_numbers = #tpu.dot_dimension_numbers<[1], [0], [0], [1], [0, 0, 1, 1], [], []>} : vector<1x16xf32>, vector<16x64xf32>, vector<1x64xf32> -> vector<1x64xf32>
      %c0_i32_106 = arith.constant 0 : i32
      %462 = vector.broadcast %c0_i32_106 : i32 to vector<16x1xi32>
      %463 = arith.cmpi eq, %103, %462 : vector<16x1xi32>
      %464 = vector.shape_cast %463 : vector<16x1xi1> to vector<16x1xi1>
      %465 = vector.broadcast %464 : vector<16x1xi1> to vector<16x64xi1>
      %466 = vector.shape_cast %461 : vector<1x64xf32> to vector<1x64xf32>
      %467 = vector.broadcast %466 : vector<1x64xf32> to vector<16x64xf32>
      %468 = arith.select %465, %467, %448 : vector<16x64xi1>, vector<16x64xf32>
      %469 = arith.index_cast %137 : i32 to index
      %c0_107 = arith.constant 0 : index
      %470 = vector.load %arg22[%469, %c0_107] : memref<16x64xf32, #tpu.memory_space<vmem>>, vector<16x64xf32>
      tpu.vector_store %arg22[%469, %c0_107], %468 {strides = array<i32>} : memref<16x64xf32, #tpu.memory_space<vmem>>, vector<16x64xf32>,
      %c1_i32_108 = arith.constant 1 : i32
    } else {
    }
    %c0_56 = arith.constant 0 : index
    %c0_57 = arith.constant 0 : index
    %109 = vector.load %arg7[%c0_56, %c0_57] : memref<32x64xf32, #tpu.memory_space<vmem>>, vector<32x64xf32>
    %cst_58 = arith.constant dense<0.000000e+00> : vector<16x64xf32>
    %110 = tpu.matmul %30, %109, %cst_58 {dimension_numbers = #tpu.dot_dimension_numbers<[1], [0], [0], [1], [0, 0, 1, 1], [], []>} : vector<16x32xf32>, vector<32x64xf32>, vector<16x64xf32> -> vector<16x64xf32>
    %c0_59 = arith.constant 0 : index
    %c0_60 = arith.constant 0 : index
    %111 = vector.load %arg22[%c0_59, %c0_60] : memref<16x64xf32, #tpu.memory_space<vmem>>, vector<16x64xf32>
    %c0_61 = arith.constant 0 : index
    %c0_62 = arith.constant 0 : index
    %112 = vector.load %arg20[%c0_61, %c0_62] : memref<16x64xf32, #tpu.memory_space<vmem>>, vector<16x64xf32>
    %c0_63 = arith.constant 0 : index
    %c0_64 = arith.constant 0 : index
    %113 = vector.load %arg14[%c0_63, %c0_64] : memref<1x64xf32, #tpu.memory_space<vmem>>, vector<1x64xf32>
    %114 = vector.broadcast %113 : vector<1x64xf32> to vector<16x64xf32>
    %115 = arith.mulf %112, %114 : vector<16x64xf32>
    %116 = arith.addf %111, %115 : vector<16x64xf32>
    %cst_65 = arith.constant 0.000000e+00 : f32
    %117 = vector.broadcast %cst_65 : f32 to vector<16x64xf32>
    %118 = arith.subf %117, %110 : vector<16x64xf32>
    %119 = math.exp %118 : vector<16x64xf32>
    %cst_66 = arith.constant 1.000000e+00 : f32
    %120 = vector.broadcast %cst_66 : f32 to vector<16x64xf32>
    %121 = arith.addf %120, %119 : vector<16x64xf32>
    %cst_67 = arith.constant 1.000000e+00 : f32
    %122 = vector.broadcast %cst_67 : f32 to vector<16x64xf32>
    %123 = arith.divf %122, %121 : vector<16x64xf32>
    %124 = arith.mulf %110, %123 : vector<16x64xf32>
    %125 = arith.mulf %116, %124 : vector<16x64xf32>
    %c0_68 = arith.constant 0 : index
    %c0_69 = arith.constant 0 : index
    %126 = vector.load %arg15[%c0_68, %c0_69] : memref<64x32xf32, #tpu.memory_space<vmem>>, vector<64x32xf32>
    %cst_70 = arith.constant dense<0.000000e+00> : vector<16x32xf32>
    %127 = tpu.matmul %125, %126, %cst_70 {dimension_numbers = #tpu.dot_dimension_numbers<[1], [0], [0], [1], [0, 0, 1, 1], [], []>} : vector<16x64xf32>, vector<64x32xf32>, vector<16x32xf32> -> vector<16x32xf32>
    %128 = arith.extui %0 : i1 to i32
    %c0_i32_71 = arith.constant 0 : i32
    %129 = arith.cmpi ne, %128, %c0_i32_71 : i32
    scf.if %129 {
      %c0_74 = arith.constant 0 : index
      %c0_75 = arith.constant 0 : index
      %c0_76 = arith.constant 0 : index
      %133 = vector.load %arg16[%c0_74, %c0_75, %c0_76] : memref<1x16x32xf32, #tpu.memory_space<vmem>>, vector<1x16x32xf32>
      %134 = vector.shape_cast %133 : vector<1x16x32xf32> to vector<16x32xf32>
      %135 = vector.shape_cast %127 : vector<16x32xf32> to vector<1x16x32xf32>
      tpu.vector_store %arg16[%c0_74, %c0_75, %c0_76], %135 {strides = array<i32>} : memref<1x16x32xf32, #tpu.memory_space<vmem>>, vector<1x16x32xf32>,
    } else {
    }
    %c1_i32_72 = arith.constant 1 : i32
    %130 = arith.cmpi eq, %arg1, %c1_i32_72 : i32
    %131 = arith.extui %130 : i1 to i32
    %c0_i32_73 = arith.constant 0 : i32
    %132 = arith.cmpi ne, %131, %c0_i32_73 : i32
    scf.if %132 {
      %c0_74 = arith.constant 0 : index
      %c0_75 = arith.constant 0 : index
      %c0_76 = arith.constant 0 : index
      %133 = vector.load %arg16[%c0_74, %c0_75, %c0_76] : memref<1x16x32xf32, #tpu.memory_space<vmem>>, vector<1x16x32xf32>
      %134 = vector.shape_cast %133 : vector<1x16x32xf32> to vector<16x32xf32>
      %135 = arith.addf %134, %127 : vector<16x32xf32>
      %c0_77 = arith.constant 0 : index
      %c0_78 = arith.constant 0 : index
      %c0_79 = arith.constant 0 : index
      %136 = vector.load %arg16[%c0_77, %c0_78, %c0_79] : memref<1x16x32xf32, #tpu.memory_space<vmem>>, vector<1x16x32xf32>
      %137 = vector.shape_cast %136 : vector<1x16x32xf32> to vector<16x32xf32>
      %138 = vector.shape_cast %135 : vector<16x32xf32> to vector<1x16x32xf32>
      tpu.vector_store %arg16[%c0_77, %c0_78, %c0_79], %138 {strides = array<i32>} : memref<1x16x32xf32, #tpu.memory_space<vmem>>, vector<1x16x32xf32>,
    } else {
    }
    return
  }
  func.func @transform_0(%arg0: i32, %arg1: i32) -> (i32, i32, i32) {
    %c0_i32 = arith.constant 0 : i32
    %c0_i32_0 = arith.constant 0 : i32
    %c0_i32_1 = arith.constant 0 : i32
    return %arg0, %c0_i32, %c0_i32_0 : i32, i32, i32
  }
  func.func @transform_1(%arg0: i32, %arg1: i32) -> (i32, i32, i32) {
    %c0_i32 = arith.constant 0 : i32
    %c0_i32_0 = arith.constant 0 : i32
    %c0_i32_1 = arith.constant 0 : i32
    return %arg0, %c0_i32, %c0_i32_0 : i32, i32, i32
  }
  func.func @transform_2(%arg0: i32, %arg1: i32) -> (i32, i32) {
    %c0_i32 = arith.constant 0 : i32
    %c0_i32_0 = arith.constant 0 : i32
    %c0_i32_1 = arith.constant 0 : i32
    return %c0_i32, %c0_i32_0 : i32, i32
  }
  func.func @transform_3(%arg0: i32, %arg1: i32) -> (i32, i32) {
    %c0_i32 = arith.constant 0 : i32
    %c0_i32_0 = arith.constant 0 : i32
    %c0_i32_1 = arith.constant 0 : i32
    return %c0_i32, %c0_i32_0 : i32, i32
  }
  func.func @transform_4(%arg0: i32, %arg1: i32) -> (i32, i32) {
    %c0_i32 = arith.constant 0 : i32
    %c0_i32_0 = arith.constant 0 : i32
    %c0_i32_1 = arith.constant 0 : i32
    return %c0_i32, %c0_i32_0 : i32, i32
  }
  func.func @transform_5(%arg0: i32, %arg1: i32) -> (i32, i32) {
    %c0_i32 = arith.constant 0 : i32
    %c0_i32_0 = arith.constant 0 : i32
    %c0_i32_1 = arith.constant 0 : i32
    return %c0_i32, %c0_i32_0 : i32, i32
  }
  func.func @transform_6(%arg0: i32, %arg1: i32) -> (i32, i32) {
    %c0_i32 = arith.constant 0 : i32
    %c0_i32_0 = arith.constant 0 : i32
    %c0_i32_1 = arith.constant 0 : i32
    return %c0_i32, %c0_i32_0 : i32, i32
  }
  func.func @transform_7(%arg0: i32, %arg1: i32) -> (i32, i32) {
    %c0_i32 = arith.constant 0 : i32
    %c0_i32_0 = arith.constant 0 : i32
    %c0_i32_1 = arith.constant 0 : i32
    return %c0_i32, %c0_i32_0 : i32, i32
  }
  func.func @transform_8(%arg0: i32, %arg1: i32) -> (i32, i32) {
    %c0_i32 = arith.constant 0 : i32
    %c0_i32_0 = arith.constant 0 : i32
    %c0_i32_1 = arith.constant 0 : i32
    return %c0_i32, %c0_i32_0 : i32, i32
  }
  func.func @transform_9(%arg0: i32, %arg1: i32) -> (i32, i32) {
    %c0_i32 = arith.constant 0 : i32
    %c0_i32_0 = arith.constant 0 : i32
    %c0_i32_1 = arith.constant 0 : i32
    return %c0_i32, %c0_i32_0 : i32, i32
  }
  func.func @transform_10(%arg0: i32, %arg1: i32) -> (i32, i32) {
    %c0_i32 = arith.constant 0 : i32
    %c0_i32_0 = arith.constant 0 : i32
    %c0_i32_1 = arith.constant 0 : i32
    return %c0_i32, %c0_i32_0 : i32, i32
  }
  func.func @transform_11(%arg0: i32, %arg1: i32) -> (i32, i32) {
    %c0_i32 = arith.constant 0 : i32
    %c0_i32_0 = arith.constant 0 : i32
    %c0_i32_1 = arith.constant 0 : i32
    return %c0_i32, %c0_i32_0 : i32, i32
  }
  func.func @transform_12(%arg0: i32, %arg1: i32) -> (i32, i32) {
    %c0_i32 = arith.constant 0 : i32
    %c0_i32_0 = arith.constant 0 : i32
    %c0_i32_1 = arith.constant 0 : i32
    return %c0_i32, %c0_i32_0 : i32, i32
  }
  func.func @transform_13(%arg0: i32, %arg1: i32) -> (i32, i32) {
    %c0_i32 = arith.constant 0 : i32
    %c0_i32_0 = arith.constant 0 : i32
    %c0_i32_1 = arith.constant 0 : i32
    return %c0_i32, %c0_i32_0 : i32, i32
  }
  func.func @transform_14(%arg0: i32, %arg1: i32) -> (i32, i32, i32) {
    %c0_i32 = arith.constant 0 : i32
    %c0_i32_0 = arith.constant 0 : i32
    %c0_i32_1 = arith.constant 0 : i32
    return %arg0, %c0_i32, %c0_i32_0 : i32, i32, i32
  }
  func.func @transform_15(%arg0: i32, %arg1: i32) -> (i32, i32, i32) {
    %c0_i32 = arith.constant 0 : i32
    %c0_i32_0 = arith.constant 0 : i32
    %c0_i32_1 = arith.constant 0 : i32
    return %arg0, %c0_i32, %c0_i32_0 : i32, i32, i32
  }
}

</mosaic_0001>

<bundles_post_ra>
// kernel: basic_layer_forward.3
= control target key start
LH: loop header
LB: loop body
LE: loop exit
PB: predicated region body
PF: predicated region fallthrough
CT: control target
= control target key end

     0   :  { %s7809_s0 = inlined_call_operand.vmem [shape: f32[2,16,32], index: 0, kind: input, shape index: {}]   ;;  %s7810_s1 = inlined_call_operand.vmem [shape: f32[2,16,32], index: 1, kind: input, shape index: {}]   ;;  %s7811_s2 = inlined_call_operand.vmem [shape: f32[1,32], index: 2, kind: input, shape index: {}]   ;;  %s7812_s3 = inlined_call_operand.vmem [shape: f32[1,32], index: 3, kind: input, shape index: {}]   ;;  %s7813_s4 = inlined_call_operand.vmem [shape: f32[32,64], index: 4, kind: input, shape index: {}]   ;;  %s7814_s5 = inlined_call_operand.vmem [shape: f32[32,64], index: 5, kind: input, shape index: {}]   ;;  %s7815_s6 = inlined_call_operand.vmem [shape: f32[4,64], index: 6, kind: input, shape index: {}]   ;;  %s7816_s7 = inlined_call_operand.vmem [shape: f32[1,64], index: 7, kind: input, shape index: {}]   ;;  %s7817_s8 = inlined_call_operand.vmem [shape: f32[64,34], index: 8, kind: input, shape index: {}]   ;;  %s7818_s9 = inlined_call_operand.vmem [shape: f32[2,64], index: 9, kind: input, shape index: {}]   ;;  %s7819_s10 = inlined_call_operand.vmem [shape: f32[1,64], index: 10, kind: input, shape index: {}]   ;;  %s7820_s11 = inlined_call_operand.vmem [shape: f32[16,64], index: 11, kind: input, shape index: {}]   ;;  %s7821_s12 = inlined_call_operand.vmem [shape: f32[1,64], index: 12, kind: input, shape index: {}]   ;;  %s7822_s13 = inlined_call_operand.vmem [shape: f32[64,32], index: 13, kind: input, shape index: {}]   ;;  %s7823_s14 = inlined_call_operand.hbm [shape: f32[2,16,32], index: 14, kind: output, shape index: {0}]   ;;  %s7824_s15 = inlined_call_operand.hbm [shape: f32[2,16,32], index: 15, kind: output, shape index: {1}]  }
   0x1   :  { %7841 = sst [smem:[#allocation23_spill]] %s7809_s0 }
   0x2   :  { %7842 = sst [smem:[#allocation24_spill]] %s7810_s1 }
   0x3   :  { %7843 = sst [smem:[#allocation25_spill]] %s7811_s2 }
   0x4   :  { %7844 = sst [smem:[#allocation26_spill]] %s7812_s3 }
   0x5   :  { %7845 = sst [smem:[#allocation27_spill]] %s7813_s4 }
   0x6   :  { %7846 = sst [smem:[#allocation28_spill]] %s7824_s15 }
   0x7   :  { %21 = vsyncpa [#allocation8], 0 }
   0x8   :  { %23 = vsyncpa [#allocation8 + $0x1], 0 }
   0x9   :  { %24 = vsyncpa [#allocation10], 0 }
   0xa   :  { %26 = vsyncpa [#allocation10 + $0x1], 0  ;;  %s6513_s18 = smov 0   ;;  %s6515_s19 = smov 0  }
   0xb   :  { %s6517_s20 = smov 0   ;;  %s6519_s21 = smov 0  }
   0xc   :  { %s6521_s22 = smov 0   ;;  %s6523_s23 = smov 0  }
   0xd   :  { %s6525_s24 = smov 0   ;;  %s6527_s25 = smov 0  }
   0xe LB: > { %7847 = sst [smem:[#allocation13_spill]] %s6357_s18  ;;  %s5232_s26 = sadd.s32 4294967295, %s6385_s25   ;;  %s6385_s25 = sphi %s6527_s25, %s32_s25   ;;  %s6381_s24 = sphi %s6525_s24, %s7879_s24   ;;  %s6377_s23 = sphi %s6523_s23, %s7878_s23   ;;  %s6373_s22 = sphi %s6521_s22, %s7877_s22   ;;  %s6369_s21 = sphi %s6519_s21, %s7876_s21   ;;  %s6365_s20 = sphi %s6517_s20, %s7882_s20   ;;  %s6361_s19 = sphi %s6515_s19, %s7881_s19   ;;  %s6357_s18 = sphi %s6513_s18, %s7880_s18  }
   0xf   : > { %7848 = sst [smem:[#allocation14_spill]] %s6377_s23  ;;  %s5233_s27 = sadd.s32 4294967294, %s6385_s25  }
  0x10   : > { %7849 = sst [smem:[#allocation15_spill]] %s6381_s24  ;;  %s41_s28 = sadd.s32 1, %s6377_s23 }
  0x11   : > { %7850 = sst [smem:[#allocation16_spill]] %s6385_s25  ;;  %p42_p0 = scmp.ge.s32.totalorder %s41_s28, 2 }
  0x12   : > { %s44_s29 = sadd.s32 1, %s6381_s24  ;;  %p365_p1 = scmp.ne.s32.totalorder %s6365_s20, %s6361_s19 }
  0x13   : > { %p366_p2 = scmp.eq.s32.totalorder %s5232_s26, 3  ;;  %s7884_s28 = smov (%p42_p0, %s41_s28), 0 }
  0x14   : > { %7851 = sst [smem:[#allocation17_spill]] %s7884_s28  ;;  %s7886_s29 = smov (!%p42_p0, %s44_s29), %s6381_s24 }
  0x15   : > { %p6562_p3 = por %p366_p2, %p365_p1  ;;  %p371_p4 = scmp.ne.s32.totalorder %s6361_s19, %s6357_s18 }
  0x16   : > { %p46_p5 = scmp.ge.s32.totalorder %s7886_s29, 2  ;;  %p372_p6 = scmp.eq.s32.totalorder %s5233_s27, 3 }
  0x17   : > { %p5236_p7 = scmp.ge.s32.totalorder %s6385_s25, 1  ;;  %p468_p8 = scmp.lt.s32.totalorder %s6385_s25, 5 }
  0x18   : > { %s7888_s29 = smov (%p46_p5, %s7886_s29), 0  ;;  %p6572_p9 = por %p372_p6, %p371_p4 }
  0x19   : > { %7853 = sst [smem:[#allocation18_spill]] %s7888_s29  ;;  %p469_p10 = pnand %p5236_p7, %p468_p8 }
  0x1a   : > { %s7854_s16 = scalar_select %p6572_p9, 1, 0 }
  0x1b   : > { %s352_s17 = ssub.s32 %s6381_s24, %s7888_s29  ;;  %s355_s26 = sadd.s32 1, %s6365_s20 }
  0x1c   : > { %7855 = sst [smem:[#allocation19_spill]] %s7854_s16  ;;  %p353_p11 = scmp.eq.s32.totalorder %s352_s17, 0 }
  0x1d   : > { %472 = sbr.rel (%p469_p10) target bundleno = 2866 (0xb32), region = 76 }
  0x1e   : > { %s6580_s28 = scalar_select %p353_p11, %s6365_s20, %s355_s26  }
  0x20   : > { %7856 = sst [smem:[#allocation20_spill]] %s6580_s28 }
  0x24   : > { %p526_p12 = scmp.lt.s32.totalorder %s6373_s22, 1  ;;  %s6584_s27 = sand.u32 1, %s6361_s19   ;;  %vm543_vm0 = vcmask 261120   ;;  %vm676_vm1 = vcmask 523264   ;;  %v6387_v40 = vmov 0.0   ;;  %v688_v41 = vlaneseq  ;;  %v755_v42 = vld [vmem:[%s7817_s8] sm:$0xff] }
  0x25   : > { %s7833_s23 = sshll.u32 %s6584_s27, 4  ;;  %s7857_s0 = sld [smem:[#allocation23_spill]]  ;;  %677 = vst.msk [vmem:[#allocation2] sm:$0xff] %vm676_vm1, %v6387_v40  ;;  %679 = vst.msk [vmem:[#allocation2 + $0x10] sm:$0xff] %vm676_vm1, %v6387_v40  ;;  %v756_v43 = vld [vmem:[%s7817_s8 + $0x8] sm:$0xff]  ;;  %v757_v44 = vld [vmem:[%s7817_s8 + $0x10] sm:$0xff] }
  0x26   : > { %s527_s18 = scalar_select %p526_p12, %s6373_s22, 1  ;;  %680 = vst.msk [vmem:[#allocation2 + $0x18] sm:$0xff] %vm676_vm1, %v6387_v40  ;;  %678 = vst.msk [vmem:[#allocation2 + $0x8] sm:$0xff] %vm676_vm1, %v6387_v40  ;;  %v6645_v45 = vshrl.u32 %v688_v41, 7  ;;  %v974_v46 = vand.u32 127, %v688_v41  ;;  %v5767_v47 = vpack.c.bf16 %v756_v43, %v755_v42  ;;  %v758_v48 = vld [vmem:[%s7817_s8 + $0x18] sm:$0xff] }
  0x27   : > { %s7858_s1 = sld [smem:[#allocation24_spill]]  ;;  %s6597_s28 = scalar_lea.vmem [#allocation9], %s7833_s23  ;;  %v5771_v49 = vpack.c.bf16 %v758_v48, %v757_v44  ;;  %v759_v50 = vld [vmem:[%s7817_s8 + $0x20] sm:$0xff]  ;;  %v760_v51 = vld [vmem:[%s7817_s8 + $0x28] sm:$0xff]  ;;  %v761_v56 = vld [vmem:[%s7817_s8 + $0x30] sm:$0xff]  ;;  %vm865_vm4 = vcmask 1041408  }
  0x28   : > { %s5313_s25 = sshll.u32 %s527_s18, 4  ;;  %s7859_s4 = sld [smem:[#allocation27_spill]]  ;;  %v6657_v52 = vadd.s32 8, %v6645_v45  ;;  %vm975_vm2 = vcmp.eq.s32.totalorder %v6645_v45, %v974_v46  ;;  %5768 = vmatprep.subr.bf16.mxu1 %v5767_v47  ;;  %v5775_v54 = vpack.c.bf16 %v760_v51, %v759_v50  ;;  %v762_v57 = vld [vmem:[%s7817_s8 + $0x38] sm:$0xff]  ;;  %v6675_v61 = vsub.s32 0, %v6645_v45  ;;  %v6708_v51 = vld [vmem:[%s7820_s11] sm:$0xff] }
  0x29   : > { %s7860_s2 = sld [smem:[#allocation25_spill]]  ;;  %s7861_s3 = sld [smem:[#allocation26_spill]]  ;;  %v6660_v53 = vsel %vm975_vm2, 1.0, %v6387_v40  ;;  %5770 = vmatpush3.bf16.msra.mxu1 %v5767_v47  ;;  %v5779_v58 = vpack.c.bf16 %v762_v57, %v761_v56  ;;  %v6678_v62 = vsub.s32 1, %v6645_v45  ;;  %v683_v63 = vld [vmem:[%s7815_s6] sm:$0xf] }
  0x2a   : > { %vm976_vm3 = vcmp.eq.s32.totalorder %v6657_v52, %v974_v46  ;;  %5772 = vmatprep.subr.bf16.mxu1 %v5771_v49  ;;  %p536_p13 = scmp.eq.s32.totalorder %s6369_s21, 0  ;;  %v846_v46 = vld [vmem:[%s7818_s9] sm:$0x3]  ;;  %s6388_s16 = smov 96   ;;  %vm860_vm5 = vcmask 15360  }
  0x2b   : > { %s530_s29 = scalar_lea.vmem %s7857_s0, %s5313_s25  ;;  %v6663_v55 = vsel %vm976_vm3, 1.0, %v6387_v40  ;;  %v5250_v56 = vld [vmem:[%s7819_s10] ss:$0 sm:$0xff]  ;;  %p5256_p0 = scmp.ne.s32.totalorder %s6369_s21, 0 }
  0x2c   : > { %v539_v1 = vld [vmem:[%s530_s29] sm:$0xff]  ;;  %v540_v4 = vld [vmem:[%s530_s29 + $0x8] sm:$0xff]  ;;  %s684_s24 = scalar_select %p536_p13, 5, 11 }
  0x2d   : > { %s535_s26 = scalar_lea.vmem %s7858_s1, %s5313_s25  ;;  %5774 = vmatpush3.bf16.msra.mxu1 %v5771_v49  ;;  %vm992_vm6 = vcmask (!%p5256_p0), 130048   ;;  %vm6403_vm8 = vmmov (!%p5256_p0), 0   ;;  %vm1184_vm9 = vcmp.eq.s32.totalorder (!%p5256_p0), %v6645_v45, 0  ;;  %vm1299_vm10 = vcmp.eq.s32.totalorder (!%p5256_p0), %v6645_v45, 1 }
  0x2e   : > { %v537_v0 = vld [vmem:[%s535_s26] sm:$0xff]  ;;  %v538_v2 = vld [vmem:[%s535_s26 + $0x8] sm:$0xff]  ;;  %v593_v20 = vld [vmem:[%s7859_s4 + $0x10] sm:$0xff]  ;;  %5776 = vmatprep.subr.bf16.mxu1 %v5775_v54  ;;  %s696_s25 = scalar_select %p536_p13, 6, 10 }
  0x2f   : > { %v541_v3 = vadd.f32 %v539_v1, %v537_v0  ;;  %v542_v5 = vadd.f32 %v540_v4, %v538_v2  ;;  %v591_v18 = vld [vmem:[%s7859_s4] sm:$0xff]  ;;  %v592_v19 = vld [vmem:[%s7859_s4 + $0x8] sm:$0xff]  ;;  %v594_v22 = vld [vmem:[%s7859_s4 + $0x18] sm:$0xff]  ;;  %s708_s17 = scalar_select %p536_p13, 7, 9  ;;  %v6684_v0 = vsub.s32 2, %v6645_v45  ;;  %v691_v1 = vrot.slane %v683_v63, %v6675_v61 }
  0x30   : > { %v5759_v21 = vpack.c.bf16 %v592_v19, %v591_v18  ;;  %v5763_v23 = vpack.c.bf16 %v594_v22, %v593_v20  ;;  %v5243_v31 = vld [vmem:[%s7860_s2] ss:$0 sm:$0xff]  ;;  %v703_v2 = vrot.slane %v683_v63, %v6678_v62  ;;  %s685_s23 = scalar_lea.vmem [#allocation2], %s684_s24  ;;  %s697_s26 = scalar_lea.vmem [#allocation2], %s696_s25  ;;  %vm5784_vm7 = vmpackc.low (!%p5256_p0), %vm992_vm6, %vm992_vm6  ;;  %vm1414_vm11 = vcmp.eq.s32.totalorder (!%p5256_p0), %v6645_v45, 2 }
  0x31   : > { %v546_v6 = vsel %vm543_vm0, %v541_v3, 0.0  ;;  %544 = vst.msk [vmem:[%s6597_s28] sm:$0xff] %vm543_vm0, %v541_v3  ;;  %545 = vst.msk [vmem:[%s6597_s28 + $0x8] sm:$0xff] %vm543_vm0, %v542_v5  ;;  %v549_v7 = vsel %vm543_vm0, %v542_v5, 0.0  ;;  %v5244_v33 = vld [vmem:[%s7861_s3] ss:$0 sm:$0xff]  ;;  %5778 = vmatpush3.bf16.msra.mxu1 %v5775_v54  ;;  %v715_v4 = vrot.slane %v683_v63, %v6684_v0 }
  0x32   : > { %547 = vadd.xlane.f32.xlu0 %v546_v6  ;;  %5760 = vmatprep.subr.bf16.mxu0 %v5759_v21  ;;  %s709_s15 = scalar_lea.vmem [#allocation2], %s708_s17  ;;  %v6713_v54 = vld [vmem:[%s7820_s11 + $0x8] sm:$0xff]  ;;  %s7864_s25 = sshll.u32 %s6584_s27, 4  ;;  %vm1529_vm12 = vcmp.eq.s32.totalorder (!%p5256_p0), %v6645_v45, 3  ;;  %vm1644_vm13 = vcmp.eq.s32.totalorder (!%p5256_p0), %v6645_v45, 4  ;;  %vm1759_vm14 = vcmp.eq.s32.totalorder (!%p5256_p0), %v6645_v45, 5 }
  0x33   : > { %5762 = vmatpush3.bf16.msra.mxu0 %v5759_v21  ;;  %5780 = vmatprep.subr.bf16.mxu1 %v5779_v58  ;;  %s6722_s29 = scalar_lea.vmem [#allocation7], %s7864_s25  ;;  %vm1874_vm15 = vcmp.eq.s32.totalorder (!%p5256_p0), %v6645_v45, 6  ;;  %vm1989_vm2 = vcmp.eq.s32.totalorder (!%p5256_p0), %v6645_v45, 7  ;;  %vm2104_vm3 = vcmp.eq.s32.totalorder (!%p5256_p0), %v6657_v52, 8 }
  0x34   : > { %5764 = vmatprep.subr.bf16.mxu0 %v5763_v23 }
  0x35   : > { %5782 = vmatpush3.bf16.msra.mxu1 %v5779_v58 }
  0x36   : > { %550 = vadd.xlane.f32.xlu0 %v549_v7 }
  0x37   : > { %5766 = vmatpush3.bf16.msra.mxu0 %v5763_v23 }
  0x38   : > { %5486 = vmatprep.subr.msk.mxu0 %vm865_vm4, %v846_v46 }
  0xbf   : > { %v548_v8 = vpop.xlane.xlu0 %547 }
  0xc0   : > { %v553_v9 = vmul.f32 0.03125, %v548_v8 }
  0xc2   : > { %v555_v10 = vsub.f32 %v541_v3, %v553_v9  ;;  %v6689_v3 = vsub.s32 3, %v6645_v45 }
  0xc3   : > { %v551_v11 = vpop.xlane.xlu0 %550 }
  0xc4   : > { %v554_v12 = vmul.f32 0.03125, %v551_v11  ;;  %v557_v13 = vmul.f32 %v555_v10, %v555_v10 }
  0xc6   : > { %v556_v14 = vsub.f32 %v542_v5, %v554_v12  ;;  %v559_v15 = vsel %vm543_vm0, %v557_v13, 0.0 }
  0xc7   : > { %560 = vadd.xlane.f32.xlu1 %v559_v15 }
  0xc8   : > { %v558_v16 = vmul.f32 %v556_v14, %v556_v14 }
  0xca   : > { %v562_v17 = vsel %vm543_vm0, %v558_v16, 0.0 }
  0xcb   : > { %563 = vadd.xlane.f32.xlu1 %v562_v17 }
 0x154   : > { %v561_v24 = vpop.xlane.xlu1 %560 }
 0x155   : > { %v565_v25 = vmul.f32 0.03125, %v561_v24 }
 0x157   : > { %v567_v26 = vadd.f32 1e-05, %v565_v25 }
 0x158   : > { %v564_v27 = vpop.xlane.xlu1 %563 }
 0x159   : > { %6035 = vrsqrt.f32 %v567_v26  ;;  %v566_v28 = vmul.f32 0.03125, %v564_v27  ;;  %v5247_v26 = vld [vmem:[%s7816_s7] ss:$0 sm:$0xff] }
 0x15b   : > { %v568_v29 = vadd.f32 1e-05, %v566_v28 }
 0x15d   : > { %6037 = vrsqrt.f32 %v568_v29 }
 0x163   : > { %v6036_v30 = vpop.eup %6035 }
 0x164   : > { %v571_v32 = vmul.f32 %v6036_v30, %v555_v10 }
 0x166   : > { %v580_v34 = vmul.f32 %v5243_v31, %v571_v32 }
 0x167   : > { %v6038_v35 = vpop.eup %6037 }
 0x168   : > { %v572_v36 = vmul.f32 %v6038_v35, %v556_v14  ;;  %v6624_v37 = vadd.f32 %v5244_v33, %v580_v34  ;;  %v725_v14 = vrot.slane %v683_v63, %v6689_v3 }
 0x16a   : > { %7862 = vst [vmem:[#allocation21_spill] sm:$0xff] %v6624_v37  ;;  %v581_v38 = vmul.f32 %v5243_v31, %v572_v36  ;;  %5464 = vmatprep.mubr.msk.f32.mxu0 %vm543_vm0, %v6624_v37 }
 0x16c   : > { %v6628_v39 = vadd.f32 %v5244_v33, %v581_v38 }
 0x16e   : > { %7863 = vst [vmem:[#allocation22_spill] sm:$0xff] %v6628_v39  ;;  %5465 = vmatmul.mubr.msk.f32.vlgmr.msra.gmra.mrb[0].mxu0 %vm543_vm0, %v6628_v39 }
 0x16f   : > { %5487 = vmatpush3.msk.msra.mxu0 %vm865_vm4, %v846_v46  ;;  %v6405_v46 = vmov (!%p5256_p0), 12   ;;  %vm2219_vm4 = vcmp.eq.s32.totalorder (!%p5256_p0), %v6657_v52, 9 }
 0x241   : > { %v5466_v59 = vpop.f32.mrb[0].mxu0 }
 0x242   : > { %682 = vst.msk [vmem:[#allocation2 + $0x10] sm:$0xff] %vm676_vm1, %v5466_v59  ;;  %v667_v60 = vpop.f32.mrb[1].mxu0 }
 0x243   : > { %681 = vst.msk [vmem:[#allocation2 + $0x8] sm:$0xff] %vm676_vm1, %v667_v60 }
 0x249   : > { %v721_v19 = vld [vmem:[#allocation2 + $0x10] sm:$0xff] }
 0x24a   : > { %v686_v5 = vld [vmem:[%s685_s23] sm:$0xff]  ;;  %v687_v6 = vld [vmem:[%s685_s23 + $0x8] sm:$0xff]  ;;  %v727_v25 = vmul.f32 %v725_v14, %v721_v19 }
 0x24b   : > { %v698_v7 = vld [vmem:[%s697_s26] sm:$0xff]  ;;  %v692_v8 = vmul.f32 %v691_v1, %v686_v5  ;;  %v693_v9 = vmul.f32 %v691_v1, %v687_v6  ;;  %v699_v10 = vld [vmem:[%s697_s26 + $0x8] sm:$0xff] }
 0x24c   : > { %v704_v11 = vmul.f32 %v703_v2, %v698_v7  ;;  %v710_v12 = vld [vmem:[%s709_s15] sm:$0xff]  ;;  %v711_v13 = vld [vmem:[%s709_s15 + $0x8] sm:$0xff]  ;;  %v705_v15 = vmul.f32 %v703_v2, %v699_v10 }
 0x24d   : > { %v720_v16 = vld [vmem:[#allocation2 + $0x8] sm:$0xff]  ;;  %v716_v18 = vmul.f32 %v715_v4, %v710_v12  ;;  %v717_v21 = vmul.f32 %v715_v4, %v711_v13 }
 0x24e   : > { %v706_v17 = vadd.f32 %v704_v11, %v692_v8  ;;  %v707_v20 = vadd.f32 %v705_v15, %v693_v9  ;;  %v726_v23 = vmul.f32 %v725_v14, %v720_v16 }
 0x250   : > { %v718_v22 = vadd.f32 %v716_v18, %v706_v17  ;;  %v719_v24 = vadd.f32 %v717_v21, %v707_v20 }
 0x252   : > { %v728_v27 = vadd.f32 %v726_v23, %v718_v22  ;;  %v729_v28 = vadd.f32 %v727_v25, %v719_v24 }
 0x254   : > { %v737_v29 = vadd.f32 %v5247_v26, %v728_v27  ;;  %v738_v30 = vadd.f32 %v5247_v26, %v729_v28  ;;  %v6390_v27 = vmov (!%p5256_p0), 1   ;;  %v6391_v28 = vmov (!%p5256_p0), 0  }
 0x255   : > { %6060 = vset.pattern.permute.xlu1 (!%p5256_p0), %v6390_v27  ;;  %6059 = vset.pattern.permute.xlu0 (!%p5256_p0), %v6391_v28 }
 0x256   : > { %v739_v31 = vsub.f32 0.0, %v737_v29  ;;  %v740_v32 = vsub.f32 0.0, %v738_v30 }
 0x258   : > { %v741_v33 = vmul.f32 1.442695, %v739_v31  ;;  %v743_v34 = vmul.f32 1.442695, %v740_v32  ;;  %v6392_v31 = vmov (!%p5256_p0), 2   ;;  %v6393_v32 = vmov (!%p5256_p0), 3  }
 0x25a   : > { %6039 = vpow2.f32 %v741_v33  ;;  %v6394_v33 = vmov (!%p5256_p0), 4  }
 0x25b   : > { %6041 = vpow2.f32 %v743_v34  ;;  %v6395_v34 = vmov (!%p5256_p0), 6  }
 0x264   : > { %v6040_v35 = vpop.eup %6039 }
 0x265   : > { %v6042_v36 = vpop.eup %6041  ;;  %v745_v38 = vadd.f32 1.0, %v6040_v35  ;;  %v6396_v35 = vmov (!%p5256_p0), 5  }
 0x266   : > { %v746_v40 = vadd.f32 1.0, %v6042_v36  ;;  %v6397_v36 = vmov (!%p5256_p0), 9  }
 0x267   : > { %6043 = vrcp.f32 %v745_v38  ;;  %v6398_v38 = vmov (!%p5256_p0), 7  }
 0x268   : > { %6045 = vrcp.f32 %v746_v40  ;;  %v6399_v40 = vmov (!%p5256_p0), 11  }
 0x271   : > { %v6044_v41 = vpop.eup %6043 }
 0x272   : > { %v6046_v42 = vpop.eup %6045  ;;  %v751_v43 = vmul.f32 %v6044_v41, %v737_v29  ;;  %v6400_v41 = vmov (!%p5256_p0), 8  }
 0x273   : > { %v752_v44 = vmul.f32 %v6046_v42, %v738_v30  ;;  %v6401_v42 = vmov (!%p5256_p0), 10  }
 0x274   : > { %753 = vst.msk [vmem:[#allocation4] sm:$0xff] %vm676_vm1, %v751_v43  ;;  %5483 = vmatprep.mubr.msk.f32.mxu1 %vm676_vm1, %v751_v43  ;;  %v7836_v43 = vmov (!%p5256_p0), 0.0|0.0  }
 0x275   : > { %754 = vst.msk [vmem:[#allocation4 + $0x8] sm:$0xff] %vm676_vm1, %v752_v44  ;;  %5484 = vmatmul.mubr.msk.f32.vlgmr.msra.gmra.mrb[0].mxu1 %vm676_vm1, %v752_v44  ;;  %5789 = vmatprep.subr.bf16.mxu1 (!%p5256_p0), %v7836_v43  ;;  %v7834_v44 = vmov (!%p5256_p0), 0.0  }
 0x276   : > { %5502 = vmatprep.mubr.msk.f32.mxu1 (!%p5256_p0), %vm6403_vm8, %v7834_v44 }
 0x348   : > { %v5485_v47 = vpop.f32.mrb[0].mxu1 }
 0x349   : > { %845 = vst.msk [vmem:[#allocation5 + $0x8] sm:$0xff] %vm543_vm0, %v5485_v47  ;;  %858 = vrot.lane.b32.xlu1 %v5485_v47, %s6388_s16  ;;  %v835_v48 = vpop.f32.mrb[1].mxu1 }
 0x34a   : > { %844 = vst.msk [vmem:[#allocation5] sm:$0xff] %vm543_vm0, %v835_v48  ;;  %856 = vrot.lane.b32.xlu0 %v835_v48, %s6388_s16  ;;  %s6389_s16 = smov (!%p5256_p0), 112  }
 0x350   : > { %v6729_v24 = vld [vmem:[#allocation5 + $0x8] sm:$0xff] (!%p5256_p0) }
 0x351   : > { %v6727_v23 = vld [vmem:[#allocation5] sm:$0xff] (!%p5256_p0) }
 0x352   : > { %v5783_v25 = vpack.c.bf16 (!%p5256_p0), %v6729_v24, %v6727_v23  ;;  %1110 = vrot.lane.b32.xlu0 (!%p5256_p0), %v6727_v23, %s6389_s16  ;;  %v1224_v26 = vrot.slane (!%p5256_p0), %v6727_v23, 1  ;;  %v1339_v47 = vrot.slane (!%p5256_p0), %v6727_v23, 2  ;;  %v1454_v48 = vrot.slane (!%p5256_p0), %v6727_v23, 3 }
 0x354   : > { %5785 = vmatprep.subr.msk.bf16.mxu0 (!%p5256_p0), %vm5784_vm7, %v5783_v25  ;;  %1225 = vrot.lane.b32.xlu1 (!%p5256_p0), %v1224_v26, %s6389_s16 }
 0x3bb   : > { %v859_v50 = vpop.permute.xlu1 %858 }
 0x3bc   : > { %v857_v49 = vpop.permute.xlu0 %856 }
 0x3bd   : > { %5488 = vmatprep.mubr.msk.f32.mxu0 %vm860_vm5, %v857_v49  ;;  %v1684_v49 = vrot.slane (!%p5256_p0), %v6727_v23, 5 }
 0x3be   : > { %5489 = vmatmul.mubr.msk.f32.vlgmr.msra.gmra.mrb[2].mxu0 %vm860_vm5, %v859_v50  ;;  %v6406_v50 = vmov (!%p5256_p0), 13   ;;  %vm2334_vm5 = vcmp.eq.s32.totalorder (!%p5256_p0), %v6657_v52, 10 }
 0x3bf   : > { %5495 = vmatprep.mubr.msk.f32.mxu0 (!%p5256_p0), %vm992_vm6, %v6660_v53  ;;  %5788 = vmatpush3.bf16.xpose.msk.msra.mxu0 (!%p5256_p0), %vm5784_vm7, %v5783_v25  ;;  %vm2564_vm7 = vcmp.eq.s32.totalorder (!%p5256_p0), %v6657_v52, 12 }
 0x3c0   : > { %5795 = vmatprep.subr.bf16.mxu0 (!%p5256_p0), %v7836_v43 }
 0x3c4   : > { %v6846_v26 = vpop.permute.xlu0 (!%p5256_p0), %1110 }
 0x3c6   : > { %5496 = vmatmul.mubr.msk.f32.vlgmr.msra.gmra.mrb[0].mxu0 (!%p5256_p0), %vm992_vm6, %v6663_v55 }
 0x3c7   : > { %5516 = vmatprep.mubr.msk.f32.mxu0 (!%p5256_p0), %vm6403_vm8, %v7834_v44 }
 0x491   : > { %v5490_v57 = vpop.f32.mrb[2].mxu0 }
 0x492   : > { %v941_v58 = vadd.f32 %v5490_v57, %v5250_v56  ;;  %v935_v59 = vpop.f32.mrb[3].mxu0  ;;  %v1569_v57 = vrot.slane (!%p5256_p0), %v6727_v23, 4 }
 0x493   : > { %v936_v60 = vadd.f32 %v5250_v56, %v935_v59  ;;  %v6407_v56 = vmov (!%p5256_p0), 14   ;;  %v6408_v59 = vmov (!%p5256_p0), 15  }
 0x494   : > { %v945_v63 = vmax.f32 %v941_v58, 0.0 }
 0x495   : > { %v944_v1 = vmax.f32 %v936_v60, 0.0 }
 0x496   : > { %v947_v2 = vsub.f32 %v941_v58, %v945_v63  ;;  %v953_v4 = vsub.f32 0.0, %v945_v63  ;;  %v2143_v58 = vrot.slane (!%p5256_p0), %v6729_v24, 1 }
 0x497   : > { %v946_v5 = vsub.f32 %v936_v60, %v944_v1  ;;  %v952_v6 = vsub.f32 0.0, %v944_v1  ;;  %v2373_v60 = vrot.slane (!%p5256_p0), %v6729_v24, 3 }
 0x498   : > { %v950_v7 = vmul.f32 1.442695, %v947_v2  ;;  %v956_v8 = vmul.f32 1.442695, %v953_v4  ;;  %v2833_v2 = vrot.slane (!%p5256_p0), %v6729_v24, 7  ;;  %v1914_v4 = vrot.slane (!%p5256_p0), %v6727_v23, 7 }
 0x499   : > { %v948_v9 = vmul.f32 1.442695, %v946_v5  ;;  %v954_v10 = vmul.f32 1.442695, %v952_v6  ;;  %v6743_v29 = vpop.f32.mrb[0].mxu0 (!%p5256_p0) }
 0x49a   : > { %6047 = vpow2.f32 %v950_v7  ;;  %1213 = vperm.xlu1 (!%p5256_p0), %6060, %v6743_v29   ;;  %1099 = vperm.xlu0 (!%p5256_p0), %6059, %v6743_v29   ;;  %v6747_v30 = vpop.f32.mrb[1].mxu0 (!%p5256_p0) }
 0x49b   : > { %6049 = vpow2.f32 %v956_v8 }
 0x49c   : > { %6051 = vpow2.f32 %v948_v9 }
 0x49d   : > { %6053 = vpow2.f32 %v954_v10  ;;  %v2258_v10 = vrot.slane (!%p5256_p0), %v6729_v24, 2 }
 0x49e   : > { %6061 = vset.pattern.permute.xlu1 (!%p5256_p0), %v6392_v31  ;;  %6062 = vset.pattern.permute.xlu0 (!%p5256_p0), %v6393_v32 }
 0x49f   : > { %1328 = vperm.xlu1 (!%p5256_p0), %6061, %v6743_v29   ;;  %1443 = vperm.xlu0 (!%p5256_p0), %6062, %v6743_v29  }
 0x4a3   : > { %6063 = vset.pattern.permute.xlu1 (!%p5256_p0), %v6394_v33  ;;  %6065 = vset.pattern.permute.xlu0 (!%p5256_p0), %v6395_v34 }
 0x4a4   : > { %v6048_v11 = vpop.eup %6047  ;;  %1558 = vperm.xlu1 (!%p5256_p0), %6063, %v6743_v29   ;;  %1788 = vperm.xlu0 (!%p5256_p0), %6065, %v6743_v29  }
 0x4a5   : > { %v6050_v12 = vpop.eup %6049 }
 0x4a6   : > { %v6052_v13 = vpop.eup %6051  ;;  %v959_v14 = vadd.f32 %v6050_v12, %v6048_v11 }
 0x4a7   : > { %v6054_v15 = vpop.eup %6053 }
 0x4a8   : > { %6055 = vlog2.f32 %v959_v14  ;;  %v958_v16 = vadd.f32 %v6054_v15, %v6052_v13  ;;  %6064 = vset.pattern.permute.xlu1 (!%p5256_p0), %v6396_v35  ;;  %6068 = vset.pattern.permute.xlu0 (!%p5256_p0), %v6397_v36  ;;  %v2488_v13 = vrot.slane (!%p5256_p0), %v6729_v24, 4 }
 0x4a9   : > { %1673 = vperm.xlu1 (!%p5256_p0), %6064, %v6743_v29   ;;  %2132 = vperm.xlu0 (!%p5256_p0), %6068, %v6743_v29  }
 0x4aa   : > { %6057 = vlog2.f32 %v958_v16 }
 0x4ad   : > { %6066 = vset.pattern.permute.xlu1 (!%p5256_p0), %v6398_v38  ;;  %6070 = vset.pattern.permute.xlu0 (!%p5256_p0), %v6399_v40 }
 0x4ae   : > { %1903 = vperm.xlu1 (!%p5256_p0), %6066, %v6743_v29   ;;  %2362 = vperm.xlu0 (!%p5256_p0), %6070, %v6743_v29  }
 0x4b2   : > { %v6056_v17 = vpop.eup %6055  ;;  %6067 = vset.pattern.permute.xlu1 (!%p5256_p0), %v6400_v41  ;;  %6071 = vset.pattern.permute.xlu0 (!%p5256_p0), %v6391_v28 }
 0x4b3   : > { %v963_v18 = vmul.f32 0.6931472, %v6056_v17  ;;  %983 = sbr.rel (%p5256_p0) target bundleno = 1645 (0x66d), region = 80  ;;  %2018 = vperm.xlu1 (!%p5256_p0), %6067, %v6743_v29   ;;  %1094 = vperm.xlu0 (!%p5256_p0), %6071, %v6747_v30   ;;  %v6832_v17 = vsub.s32 (!%p5256_p0), 4, %v6645_v45 }
 0x4b4   : > { %v6058_v19 = vpop.eup %6057 }
 0x4b5   : > { %v965_v20 = vadd.f32 %v963_v18, %v945_v63  ;;  %v961_v21 = vmul.f32 0.6931472, %v6058_v19  ;;  %v1799_v63 = vrot.slane (!%p5256_p0), %v6727_v23, 6  ;;  %v986_v18 = vld [vmem:[#allocation4] sm:$0xff] (!%p5256_p0)  ;;  %v6842_v23 = vsub.s32 (!%p5256_p0), 5, %v6645_v45 }
 0x4b7   : > { %967 = vst.msk [vmem:[#allocation3 + $0x8] sm:$0xff] %vm676_vm1, %v965_v20  ;;  %v964_v22 = vadd.f32 %v961_v21, %v944_v1  ;;  %6069 = vset.pattern.permute.xlu1 (!%p5256_p0), %v6401_v42  ;;  %6073 = vset.pattern.permute.xlu0 (!%p5256_p0), %v6392_v31  ;;  %v2603_v1 = vrot.slane (!%p5256_p0), %v6729_v24, 5  ;;  %v2718_v20 = vrot.slane (!%p5256_p0), %v6729_v24, 6 }
 0x4b8   : > { %2247 = vperm.xlu1 (!%p5256_p0), %6069, %v6743_v29   ;;  %1324 = vperm.xlu0 (!%p5256_p0), %6073, %v6747_v30  }
 0x4b9   : > { %966 = vst.msk [vmem:[#allocation3] sm:$0xff] %vm676_vm1, %v964_v22 }
 0x4bc   : > { %6072 = vset.pattern.permute.xlu1 %v6390_v27  ;;  %6074 = vset.pattern.permute.xlu0 %v6405_v46 }
 0x4bd   : > { %1209 = vperm.xlu1 %6072, %v6747_v30   ;;  %2477 = vperm.xlu0 %6074, %v6743_v29  }
 0x4c0   : > { %v984_v5 = vld [vmem:[#allocation3] sm:$0xff] }
 0x4c1   : > { %1340 = vrot.lane.b32.xlu1 %v1339_v47, %s6389_s16  ;;  %6078 = vset.pattern.permute.xlu0 %v6396_v35  ;;  %v1083_v6 = vrot.slane %v984_v5, %v6675_v61  ;;  %v6814_v8 = vrot.slane %v984_v5, %v6678_v62  ;;  %v6822_v12 = vrot.slane %v984_v5, %v6684_v0 }
 0x4c2   : > { %1669 = vperm.xlu0 %6078, %v6747_v30   ;;  %6075 = vset.pattern.permute.xlu1 %v6406_v50  ;;  %v6827_v14 = vrot.slane %v984_v5, %v6689_v3  ;;  %v6839_v22 = vrot.slane %v984_v5, %v6832_v17  ;;  %v6844_v25 = vmul.f32 %v986_v18, %v984_v5 }
 0x4c3   : > { %v1085_v7 = vmul.f32 %v1083_v6, %v6713_v54  ;;  %v1201_v11 = vmul.f32 %v6814_v8, %v6713_v54  ;;  %v1316_v16 = vmul.f32 %v6822_v12, %v6713_v54  ;;  %v6857_v31 = vrot.slane %v984_v5, %v6842_v23 }
 0x4c4   : > { %v1431_v19 = vmul.f32 %v6827_v14, %v6713_v54 }
 0x4c5   : > { %1455 = vrot.lane.b32.xlu1 %v1454_v48, %s6389_s16  ;;  %v1088_v9 = vmul.f32 1.442695, %v1085_v7  ;;  %v1204_v15 = vmul.f32 1.442695, %v1201_v11  ;;  %v1319_v21 = vmul.f32 1.442695, %v1316_v16  ;;  %v6904_v16 = vrot.slane %v6844_v25, %v6689_v3 }
 0x4c6   : > { %1685 = vrot.lane.b32.xlu0 %v1684_v49, %s6389_s16  ;;  %v1434_v27 = vmul.f32 1.442695, %v1431_v19  ;;  %v1084_v49 = vmul.f32 %v1083_v6, %v6708_v51  ;;  %v6892_v6 = vld [vmem:[#allocation3 + $0x8] sm:$0xff] }
 0x4c7   : > { %6081 = vset.pattern.permute.xlu0 %v6400_v41  ;;  %6091 = vpow2.f32 %v1088_v9  ;;  %v6869_v41 = vsub.s32 7, %v6645_v45 }
 0x4c8   : > { %6093 = vpow2.f32 %v1204_v15  ;;  %v1086_v7 = vmul.f32 1.442695, %v1084_v49 }
 0x4c9   : > { %2592 = vperm.xlu1 %6075, %v6743_v29   ;;  %6095 = vpow2.f32 %v1319_v21 }
 0x4ca   : > { %2014 = vperm.xlu0 %6081, %v6747_v30   ;;  %6097 = vpow2.f32 %v1434_v27 }
 0x4cd   : > { %6076 = vset.pattern.permute.xlu1 %v6393_v32  ;;  %v6861_v32 = vrot.slane %v6844_v25, %v6675_v61 }
 0x4ce   : > { %1439 = vperm.xlu1 %6076, %v6747_v30   ;;  %6082 = vset.pattern.permute.xlu0 %v6407_v56 }
 0x4cf   : > { %2707 = vperm.xlu0 %6082, %v6743_v29  }
 0x4d1   : > { %v6092_v28 = vpop.eup %6091 }
 0x4d2   : > { %6077 = vset.pattern.permute.xlu1 %v6394_v33  ;;  %v1091_v33 = vmul.f32 0.0, %v6092_v28  ;;  %v6094_v47 = vpop.eup %6093  ;;  %v6912_v28 = vrot.slane %v6892_v6, %v6678_v62 }
 0x4d3   : > { %1554 = vperm.xlu1 %6077, %v6747_v30   ;;  %6087 = vset.pattern.permute.xlu0 %v6406_v50 }
 0x4d4   : > { %2588 = vperm.xlu0 %6087, %v6747_v30  }
 0x4d7   : > { %1570 = vrot.lane.b32.xlu1 %v1569_v57, %s6389_s16  ;;  %v6882_v57 = vrot.slane %v984_v5, %v6869_v41 }
 0x4d8   : > { %2144 = vrot.lane.b32.xlu0 %v2143_v58, %s6389_s16  ;;  %6079 = vset.pattern.permute.xlu1 %v6395_v34 }
 0x4d9   : > { %6090 = vset.pattern.permute.xlu0 %v6408_v59 }
 0x4db   : > { %1784 = vperm.xlu1 %6079, %v6747_v30  }
 0x4dc   : > { %2818 = vperm.xlu0 %6090, %v6747_v30  }
 0x4df   : > { %6080 = vset.pattern.permute.xlu1 %v6398_v38  ;;  %v1661_v38 = vmul.f32 %v6857_v31, %v6713_v54 }
 0x4e0   : > { %1899 = vperm.xlu1 %6080, %v6747_v30   ;;  %2374 = vrot.lane.b32.xlu0 %v2373_v60, %s6389_s16 }
 0x4e1   : > { %v1664_v50 = vmul.f32 1.442695, %v1661_v38 }
 0x4e4   : > { %1800 = vrot.lane.b32.xlu1 %v1799_v63, %s6389_s16  ;;  %2604 = vrot.lane.b32.xlu0 %v2603_v1, %s6389_s16  ;;  %v6888_v63 = vrot.slane %v6844_v25, %v6684_v0 }
 0x4e5   : > { %6083 = vset.pattern.permute.xlu1 %v6397_v36 }
 0x4e8   : > { %2128 = vperm.xlu1 %6083, %v6747_v30   ;;  %2834 = vrot.lane.b32.xlu0 %v2833_v2, %s6389_s16  ;;  %v6096_v2 = vpop.eup %6095 }
 0x4e9   : > { %v6098_v11 = vpop.eup %6097 }
 0x4ec   : > { %6084 = vset.pattern.permute.xlu1 %v6401_v42  ;;  %v6873_v42 = vrot.slane %v6844_v25, %v6678_v62 }
 0x4ed   : > { %2243 = vperm.xlu1 %6084, %v6747_v30  }
 0x4f1   : > { %6085 = vset.pattern.permute.xlu1 %v6399_v40 }
 0x4f2   : > { %2358 = vperm.xlu1 %6085, %v6747_v30  }
 0x4f6   : > { %6086 = vset.pattern.permute.xlu1 %v6405_v46 }
 0x4f7   : > { %2473 = vperm.xlu1 %6086, %v6747_v30  }
 0x4fb   : > { %1915 = vrot.lane.b32.xlu1 %v1914_v4, %s6389_s16 }
 0x4fc   : > { %6088 = vset.pattern.permute.xlu1 %v6407_v56 }
 0x4ff   : > { %2703 = vperm.xlu1 %6088, %v6747_v30   ;;  %v6854_v30 = vsub.s32 6, %v6645_v45 }
 0x501   : > { %v6866_v40 = vrot.slane %v984_v5, %v6854_v30  ;;  %v1891_v5 = vmul.f32 %v6882_v57, %v6713_v54 }
 0x503   : > { %6089 = vset.pattern.permute.xlu1 %v6408_v59  ;;  %v1776_v56 = vmul.f32 %v6866_v40, %v6713_v54  ;;  %v1894_v21 = vmul.f32 1.442695, %v1891_v5 }
 0x504   : > { %2822 = vperm.xlu1 %6089, %v6743_v29   ;;  %v6849_v29 = vpop.permute.xlu1 %1225 }
 0x505   : > { %v1779_v9 = vmul.f32 1.442695, %v1776_v56  ;;  %v6930_v56 = vrot.slane %v6892_v6, %v6684_v0 }
 0x508   : > { %2029 = vrot.lane.b32.xlu1 %v6729_v24, %s6389_s16  ;;  %v1546_v24 = vmul.f32 %v6839_v22, %v6713_v54 }
 0x50a   : > { %v1549_v36 = vmul.f32 1.442695, %v1546_v24 }
 0x50c   : > { %2259 = vrot.lane.b32.xlu1 %v2258_v10, %s6389_s16  ;;  %6099 = vpow2.f32 %v1549_v36  ;;  %v6898_v10 = vrot.slane %v6892_v6, %v6675_v61 }
 0x50d   : > { %6101 = vpow2.f32 %v1664_v50  ;;  %v2120_v50 = vmul.f32 %v6912_v28, %v6713_v54 }
 0x50e   : > { %6103 = vpow2.f32 %v1086_v7  ;;  %v2006_v27 = vmul.f32 %v6898_v10, %v6713_v54  ;;  %v1315_v7 = vmul.f32 %v6822_v12, %v6708_v51 }
 0x50f   : > { %6105 = vpow2.f32 %v1779_v9 }
 0x510   : > { %2489 = vrot.lane.b32.xlu1 %v2488_v13, %s6389_s16  ;;  %6107 = vpow2.f32 %v1894_v21  ;;  %v2009_v49 = vmul.f32 1.442695, %v2006_v27  ;;  %v6952_v21 = vrot.slane %v6844_v25, %v6854_v30 }
 0x512   : > { %6109 = vpow2.f32 %v2009_v49 }
 0x514   : > { %2719 = vrot.lane.b32.xlu1 %v2718_v20, %s6389_s16 }
 0x519   : > { %v1214_v34 = vpop.permute.xlu1 %1213  ;;  %v1100_v35 = vpop.permute.xlu0 %1099 }
 0x51a   : > { %v1107_v46 = vmul.f32 %v6861_v32, %v1100_v35  ;;  %v1221_v58 = vmul.f32 %v6873_v42, %v1214_v34  ;;  %v6918_v34 = vrot.slane %v6844_v25, %v6832_v17  ;;  %v6100_v35 = vpop.eup %6099 }
 0x51c   : > { %v6876_v48 = vadd.f32 %v1107_v46, %v1091_v33 }
 0x51e   : > { %v1207_v59 = vmul.f32 %v6094_v47, %v6876_v48  ;;  %v1329_v60 = vpop.permute.xlu1 %1328  ;;  %v1444_v1 = vpop.permute.xlu0 %1443  ;;  %v1200_v47 = vmul.f32 %v6814_v8, %v6708_v51 }
 0x51f   : > { %v1336_v15 = vmul.f32 %v6888_v63, %v1329_v60  ;;  %v1451_v33 = vmul.f32 %v6904_v16, %v1444_v1  ;;  %v6936_v60 = vrot.slane %v6844_v25, %v6842_v23  ;;  %v6102_v1 = vpop.eup %6101 }
 0x520   : > { %v6890_v4 = vadd.f32 %v1221_v58, %v1207_v59  ;;  %v1202_v8 = vmul.f32 1.442695, %v1200_v47  ;;  %v987_v47 = vld [vmem:[#allocation4 + $0x8] sm:$0xff] }
 0x522   : > { %v1322_v13 = vmul.f32 %v6096_v2, %v6890_v4  ;;  %6111 = vpow2.f32 %v1202_v8 }
 0x523   : > { %v1559_v18 = vpop.permute.xlu1 %1558  ;;  %v1789_v19 = vpop.permute.xlu0 %1788 }
 0x524   : > { %v6906_v20 = vadd.f32 %v1336_v15, %v1322_v13  ;;  %v1566_v59 = vmul.f32 %v6918_v34, %v1559_v18  ;;  %v2235_v13 = vmul.f32 %v6930_v56, %v6713_v54  ;;  %v6948_v15 = vrot.slane %v6892_v6, %v6689_v3  ;;  %v6104_v18 = vpop.eup %6103 }
 0x525   : > { %v1090_v49 = vmul.f32 0.0, %v6104_v18 }
 0x526   : > { %v1437_v24 = vmul.f32 %v6098_v11, %v6906_v20  ;;  %v2123_v11 = vmul.f32 1.442695, %v2120_v50  ;;  %v2238_v50 = vmul.f32 1.442695, %v2235_v13 }
 0x528   : > { %v6920_v36 = vadd.f32 %v1451_v33, %v1437_v24  ;;  %v1674_v38 = vpop.permute.xlu1 %1673  ;;  %v6922_v46 = vpop.permute.xlu0 %2132  ;;  %6113 = vpow2.f32 %v2123_v11 }
 0x529   : > { %v1681_v12 = vmul.f32 %v6936_v60, %v1674_v38  ;;  %v6106_v24 = vpop.eup %6105 }
 0x52a   : > { %v1552_v58 = vmul.f32 %v6100_v35, %v6920_v36  ;;  %v1317_v35 = vmul.f32 1.442695, %v1315_v7  ;;  %v6968_v7 = vmul.f32 %v987_v47, %v6892_v6 }
 0x52c   : > { %v6938_v2 = vadd.f32 %v1566_v59, %v1552_v58  ;;  %v2350_v58 = vmul.f32 %v6948_v15, %v6713_v54  ;;  %v1796_v59 = vmul.f32 %v6952_v21, %v1789_v19  ;;  %6115 = vpow2.f32 %v1317_v35 }
 0x52d   : > { %v1904_v9 = vpop.permute.xlu1 %1903  ;;  %v6942_v5 = vpop.permute.xlu0 %2362  ;;  %6117 = vpow2.f32 %v2238_v50 }
 0x52e   : > { %v1667_v27 = vmul.f32 %v6102_v1, %v6938_v2  ;;  %v6964_v1 = vrot.slane %v6844_v25, %v6869_v41  ;;  %v2353_v19 = vmul.f32 1.442695, %v2350_v58  ;;  %v6976_v25 = vrot.slane %v6968_v7, %v6675_v61 }
 0x52f   : > { %v7865_v58 = vmov 0.0|0.0  }
 0x530   : > { %v6956_v33 = vadd.f32 %v1681_v12, %v1667_v27  ;;  %v6108_v12 = vpop.eup %6107  ;;  %6119 = vpow2.f32 %v2353_v19  ;;  %v7866_v19 = vmov 0.0  }
 0x531   : > { %v6110_v43 = vpop.eup %6109 }
 0x532   : > { %v1782_v44 = vmul.f32 %v6106_v24, %v6956_v33  ;;  %v2019_v38 = vpop.permute.xlu1 %2018  ;;  %v1095_v27 = vpop.permute.xlu0 %1094  ;;  %v1911_v24 = vmul.f32 %v6964_v1, %v1904_v9 }
 0x533   : > { %v1106_v8 = vmul.f32 %v6861_v32, %v1095_v27  ;;  %v6112_v35 = vpop.eup %6111  ;;  %v2026_v50 = vmul.f32 %v6976_v25, %v2019_v38 }
 0x534   : > { %v6970_v11 = vadd.f32 %v1796_v59, %v1782_v44  ;;  %v1430_v44 = vmul.f32 %v6827_v14, %v6708_v51  ;;  %v6114_v59 = vpop.eup %6113 }
 0x535   : > { %v1108_v13 = vadd.f32 %v1106_v8, %v1090_v49  ;;  %v6985_v49 = vrot.slane %v6968_v7, %v6678_v62 }
 0x536   : > { %v1897_v18 = vmul.f32 %v6108_v12, %v6970_v11  ;;  %v1432_v14 = vmul.f32 1.442695, %v1430_v44  ;;  %v6116_v38 = vpop.eup %6115 }
 0x537   : > { %v2248_v39 = vpop.permute.xlu1 %2247  ;;  %v5790_v32 = vpack.c.bf16 %v6876_v48, %v1108_v13  ;;  %v1206_v12 = vmul.f32 %v6112_v35, %v1108_v13  ;;  %v6118_v13 = vpop.eup %6117 }
 0x538   : > { %v6979_v47 = vadd.f32 %v1911_v24, %v1897_v18  ;;  %v2140_v18 = vmul.f32 %v6985_v49, %v6922_v46  ;;  %6121 = vpow2.f32 %v1432_v14  ;;  %v7012_v46 = vrot.slane %v6968_v7, %v6689_v3 }
 0x539   : > { %5791 = vmatpush3.bf16.msra.mxu1 %v5790_v32  ;;  %v7004_v32 = vrot.slane %v6968_v7, %v6684_v0 }
 0x53a   : > { %v2012_v9 = vmul.f32 %v6110_v43, %v6979_v47  ;;  %5792 = vmatprep.subr.bf16.mxu1 %v7865_v58  ;;  %v1545_v43 = vmul.f32 %v6839_v22, %v6708_v51 }
 0x53b   : > { %v2255_v37 = vmul.f32 %v7004_v32, %v2248_v39 }
 0x53c   : > { %v6990_v48 = vadd.f32 %v2026_v50, %v2012_v9  ;;  %v1210_v27 = vpop.permute.xlu1 %1209  ;;  %5503 = vmatmul.mubr.msk.f32.vlgmr.msra.gmra.mrb[0].mxu1 %vm992_vm6, %v6846_v26  ;;  %v1325_v26 = vpop.permute.xlu0 %1324 }
 0x53d   : > { %v1220_v8 = vmul.f32 %v6873_v42, %v1210_v27  ;;  %5509 = vmatprep.mubr.msk.f32.mxu1 %vm6403_vm8, %v7866_v19  ;;  %v1335_v9 = vmul.f32 %v6888_v63, %v1325_v26  ;;  %v1547_v27 = vmul.f32 1.442695, %v1545_v43  ;;  %v2370_v43 = vmul.f32 %v7012_v46, %v6942_v5 }
 0x53e   : > { %v2126_v24 = vmul.f32 %v6114_v59, %v6990_v48  ;;  %v1890_v5 = vmul.f32 %v6882_v57, %v6708_v51 }
 0x53f   : > { %v1222_v44 = vadd.f32 %v1220_v8, %v1206_v12  ;;  %v1660_v12 = vmul.f32 %v6857_v31, %v6708_v51  ;;  %v6120_v8 = vpop.eup %6119  ;;  %6123 = vpow2.f32 %v1547_v27  ;;  %v1775_v31 = vmul.f32 %v6866_v40, %v6708_v51 }
 0x540   : > { %v7006_v42 = vadd.f32 %v2140_v18, %v2126_v24  ;;  %v1341_v35 = vpop.permute.xlu1 %1340  ;;  %v1892_v26 = vmul.f32 1.442695, %v1890_v5 }
 0x541   : > { %v5793_v22 = vpack.c.bf16 %v6890_v4, %v1222_v44  ;;  %v1321_v50 = vmul.f32 %v6116_v38, %v1222_v44  ;;  %v1662_v39 = vmul.f32 1.442695, %v1660_v12 }
 0x542   : > { %v2241_v59 = vmul.f32 %v6118_v13, %v7006_v42  ;;  %v6122_v24 = vpop.eup %6121  ;;  %v7041_v13 = vpop.permute.xlu0 %2477 }
 0x543   : > { %v1337_v18 = vadd.f32 %v1335_v9, %v1321_v50  ;;  %5794 = vmatpush3.bf16.msra.mxu1 %v5793_v22  ;;  %6125 = vpow2.f32 %v1662_v39  ;;  %v2005_v22 = vmul.f32 %v6898_v10, %v6708_v51 }
 0x544   : > { %v7018_v14 = vadd.f32 %v2255_v37, %v2241_v59  ;;  %v1456_v63 = vpop.permute.xlu1 %1455  ;;  %5798 = vmatprep.subr.bf16.mxu1 %v7865_v58 }
 0x545   : > { %v5796_v4 = vpack.c.bf16 %v6906_v20, %v1337_v18  ;;  %v1436_v44 = vmul.f32 %v6122_v24, %v1337_v18  ;;  %v2119_v18 = vmul.f32 %v6912_v28, %v6708_v51  ;;  %v2234_v28 = vmul.f32 %v6930_v56, %v6708_v51 }
 0x546   : > { %v2356_v38 = vmul.f32 %v6120_v8, %v7018_v14  ;;  %5510 = vmatmul.mubr.msk.f32.vlgmr.msra.gmra.mrb[2].mxu1 %vm992_vm6, %v6849_v29  ;;  %v1777_v29 = vmul.f32 1.442695, %v1775_v31  ;;  %v2007_v8 = vmul.f32 1.442695, %v2005_v22 }
 0x547   : > { %5797 = vmatpush3.bf16.msra.mxu0 %v5796_v4  ;;  %5523 = vmatprep.mubr.msk.f32.mxu1 %vm6403_vm8, %v7866_v19  ;;  %v2121_v31 = vmul.f32 1.442695, %v2119_v18  ;;  %v2236_v22 = vmul.f32 1.442695, %v2234_v28 }
 0x548   : > { %v7031_v37 = vadd.f32 %v2370_v43, %v2356_v38  ;;  %v7033_v20 = vpop.permute.xlu1 %2592  ;;  %5801 = vmatprep.subr.bf16.mxu0 %v7865_v58  ;;  %6127 = vpow2.f32 %v1777_v29  ;;  %v1670_v43 = vpop.permute.xlu0 %1669 }
 0x549   : > { %v6124_v57 = vpop.eup %6123  ;;  %6129 = vpow2.f32 %v1892_v26  ;;  %v2578_v26 = vrot.slane %v6892_v6, %v6842_v23 }
 0x54a   : > { %5517 = vmatmul.mubr.msk.f32.vlgmr.msra.gmra.mrb[2].mxu0 %vm992_vm6, %v1341_v35  ;;  %v2463_v35 = vrot.slane %v6892_v6, %v6832_v17  ;;  %6131 = vpow2.f32 %v2007_v8 }
 0x54b   : > { %5530 = vmatprep.mubr.msk.f32.mxu0 %vm6403_vm8, %v7866_v19  ;;  %6133 = vpow2.f32 %v2121_v31 }
 0x54c   : > { %v2465_v38 = vmul.f32 %v2463_v35, %v6713_v54 }
 0x54d   : > { %v1440_v40 = vpop.permute.xlu1 %1439  ;;  %v6126_v4 = vpop.eup %6125 }
 0x54e   : > { %v1450_v9 = vmul.f32 %v6904_v16, %v1440_v40  ;;  %v2468_v40 = vmul.f32 1.442695, %v2465_v38 }
 0x550   : > { %v1452_v50 = vadd.f32 %v1450_v9, %v1436_v44  ;;  %6135 = vpow2.f32 %v2468_v40 }
 0x551   : > { %6137 = vpow2.f32 %v2236_v22 }
 0x552   : > { %v5799_v27 = vpack.c.bf16 %v6920_v36, %v1452_v50  ;;  %v1555_v59 = vpop.permute.xlu1 %1554  ;;  %v1551_v12 = vmul.f32 %v6124_v57, %v1452_v50  ;;  %v1680_v36 = vmul.f32 %v6936_v60, %v1670_v43  ;;  %v2349_v57 = vmul.f32 %v6948_v15, %v6708_v51 }
 0x553   : > { %v1565_v16 = vmul.f32 %v6918_v34, %v1555_v59  ;;  %v6128_v34 = vpop.eup %6127  ;;  %v2693_v43 = vrot.slane %v6892_v6, %v6854_v30 }
 0x554   : > { %5800 = vmatpush3.bf16.msra.mxu1 %v5799_v27  ;;  %v6130_v60 = vpop.eup %6129  ;;  %v2580_v27 = vmul.f32 %v2578_v26, %v6713_v54  ;;  %v2351_v15 = vmul.f32 1.442695, %v2349_v57 }
 0x555   : > { %v1567_v10 = vadd.f32 %v1565_v16, %v1551_v12  ;;  %5804 = vmatprep.subr.bf16.mxu1 %v7865_v58  ;;  %v6132_v12 = vpop.eup %6131  ;;  %v2464_v16 = vmul.f32 %v2463_v35, %v6708_v51 }
 0x556   : > { %v1571_v39 = vpop.permute.xlu1 %1570  ;;  %v6134_v38 = vpop.eup %6133  ;;  %6139 = vpow2.f32 %v2351_v15 }
 0x557   : > { %v5802_v5 = vpack.c.bf16 %v6938_v2, %v1567_v10  ;;  %v1666_v24 = vmul.f32 %v6126_v4, %v1567_v10  ;;  %5524 = vmatmul.mubr.msk.f32.vlgmr.msra.gmra.mrb[4].mxu1 %vm992_vm6, %v1456_v63  ;;  %v1686_v2 = vpop.permute.xlu0 %1685  ;;  %v2466_v35 = vmul.f32 1.442695, %v2464_v16 }
 0x558   : > { %5537 = vmatprep.mubr.msk.f32.mxu1 %vm6403_vm8, %v7866_v19 }
 0x559   : > { %5803 = vmatpush3.bf16.msra.mxu0 %v5802_v5  ;;  %v1682_v29 = vadd.f32 %v1680_v36, %v1666_v24  ;;  %v2579_v5 = vmul.f32 %v2578_v26, %v6708_v51  ;;  %v2695_v24 = vmul.f32 %v2693_v43, %v6713_v54 }
 0x55a   : > { %v1785_v44 = vpop.permute.xlu1 %1784  ;;  %5807 = vmatprep.subr.bf16.mxu0 %v7865_v58 }
 0x55b   : > { %v1781_v63 = vmul.f32 %v6128_v34, %v1682_v29  ;;  %v1795_v9 = vmul.f32 %v6952_v21, %v1785_v44  ;;  %v5805_v56 = vpack.c.bf16 %v6956_v33, %v1682_v29  ;;  %v2015_v18 = vpop.permute.xlu0 %2014  ;;  %v2483_v44 = vrot.slane %v6968_v7, %v6832_v17 }
 0x55c   : > { %5531 = vmatmul.mubr.msk.f32.vlgmr.msra.gmra.mrb[4].mxu0 %vm992_vm6, %v1571_v39  ;;  %v2581_v26 = vmul.f32 1.442695, %v2579_v5 }
 0x55d   : > { %v1797_v50 = vadd.f32 %v1795_v9, %v1781_v63  ;;  %5806 = vmatpush3.bf16.msra.mxu1 %v5805_v56  ;;  %5544 = vmatprep.mubr.msk.f32.mxu0 %vm6403_vm8, %v7866_v19  ;;  %v2694_v63 = vmul.f32 %v2693_v43, %v6708_v51  ;;  %v2698_v9 = vmul.f32 1.442695, %v2695_v24  ;;  %v2808_v56 = vrot.slane %v6892_v6, %v6869_v41 }
 0x55e   : > { %5810 = vmatprep.subr.bf16.mxu1 %v7865_v58  ;;  %v2485_v17 = vmul.f32 %v2483_v44, %v7041_v13 }
 0x55f   : > { %v5808_v21 = vpack.c.bf16 %v6970_v11, %v1797_v50  ;;  %v1900_v59 = vpop.permute.xlu1 %1899  ;;  %v1896_v33 = vmul.f32 %v6130_v60, %v1797_v50  ;;  %v2583_v11 = vmul.f32 1.442695, %v2580_v27  ;;  %v2708_v60 = vpop.permute.xlu0 %2707  ;;  %v2696_v27 = vmul.f32 1.442695, %v2694_v63 }
 0x560   : > { %v1910_v8 = vmul.f32 %v6964_v1, %v1900_v59  ;;  %5538 = vmatmul.mubr.msk.f32.vlgmr.msra.gmra.mrb[6].mxu1 %vm992_vm6, %v1686_v2  ;;  %v2025_v1 = vmul.f32 %v6976_v25, %v2015_v18  ;;  %v6136_v25 = vpop.eup %6135  ;;  %v2810_v6 = vmul.f32 %v2808_v56, %v6713_v54 }
 0x561   : > { %5809 = vmatpush3.bf16.msra.mxu0 %v5808_v21  ;;  %5551 = vmatprep.mubr.msk.f32.mxu1 %vm6403_vm8, %v7866_v19  ;;  %6141 = vpow2.f32 %v2583_v11  ;;  %v6138_v40 = vpop.eup %6137  ;;  %v2809_v21 = vmul.f32 %v2808_v56, %v6708_v51 }
 0x562   : > { %v1912_v4 = vadd.f32 %v1910_v8, %v1896_v33  ;;  %5813 = vmatprep.subr.bf16.mxu0 %v7865_v58  ;;  %6143 = vpow2.f32 %v2466_v35  ;;  %v6140_v50 = vpop.eup %6139  ;;  %v2813_v11 = vmul.f32 1.442695, %v2810_v6 }
 0x563   : > { %v1801_v10 = vpop.permute.xlu1 %1800  ;;  %6145 = vpow2.f32 %v2581_v26  ;;  %v2811_v16 = vmul.f32 1.442695, %v2809_v21 }
 0x564   : > { %v5811_v39 = vpack.c.bf16 %v6979_v47, %v1912_v4  ;;  %v2011_v31 = vmul.f32 %v6132_v12, %v1912_v4  ;;  %5545 = vmatmul.mubr.msk.f32.vlgmr.msra.gmra.mrb[6].mxu0 %vm992_vm6, %v1801_v10  ;;  %6147 = vpow2.f32 %v2698_v9  ;;  %v2589_v12 = vpop.permute.xlu0 %2588 }
 0x565   : > { %5558 = vmatprep.mubr.msk.f32.mxu0 %vm6403_vm8, %v7866_v19  ;;  %6149 = vpow2.f32 %v2696_v27 }
 0x566   : > { %5812 = vmatpush3.bf16.msra.mxu1 %v5811_v39  ;;  %v2027_v36 = vadd.f32 %v2025_v1, %v2011_v31  ;;  %6151 = vpow2.f32 %v2811_v16 }
 0x567   : > { %v2129_v28 = vpop.permute.xlu1 %2128  ;;  %5816 = vmatprep.subr.bf16.mxu1 %v7865_v58  ;;  %6153 = vpow2.f32 %v2813_v11 }
 0x568   : > { %v2125_v47 = vmul.f32 %v6134_v38, %v2027_v36  ;;  %v2139_v34 = vmul.f32 %v6985_v49, %v2129_v28  ;;  %v5814_v29 = vpack.c.bf16 %v6990_v48, %v2027_v36  ;;  %v2471_v49 = vmul.f32 %v6136_v25, %v7031_v37  ;;  %v2145_v1 = vpop.permute.xlu0 %2144 }
 0x56a   : > { %v2141_v2 = vadd.f32 %v2139_v34, %v2125_v47  ;;  %5815 = vmatpush3.bf16.msra.mxu0 %v5814_v29  ;;  %v7105_v33 = vadd.f32 %v2485_v17, %v2471_v49 }
 0x56b   : > { %5819 = vmatprep.subr.bf16.mxu0 %v7865_v58  ;;  %v6142_v8 = vpop.eup %6141 }
 0x56c   : > { %v2244_v48 = vpop.permute.xlu1 %2243  ;;  %v2240_v22 = vmul.f32 %v6138_v40, %v2141_v2  ;;  %v6144_v4 = vpop.eup %6143  ;;  %v2586_v43 = vmul.f32 %v6142_v8, %v7105_v33  ;;  %v5817_v28 = vpack.c.bf16 %v7006_v42, %v2141_v2  ;;  %v2828_v42 = vrot.slane %v6968_v7, %v6869_v41 }
 0x56d   : > { %v2254_v57 = vmul.f32 %v7004_v32, %v2244_v48  ;;  %v2598_v32 = vrot.slane %v6968_v7, %v6842_v23  ;;  %v6146_v36 = vpop.eup %6145  ;;  %v2819_v40 = vpop.permute.xlu0 %2818 }
 0x56e   : > { %v6148_v23 = vpop.eup %6147 }
 0x56f   : > { %v7102_v59 = vadd.f32 %v2254_v57, %v2240_v22  ;;  %v2600_v38 = vmul.f32 %v2598_v32, %v7033_v20  ;;  %v2599_v47 = vmul.f32 %v2598_v32, %v2589_v12  ;;  %v6150_v20 = vpop.eup %6149 }
 0x570   : > { %v6152_v56 = vpop.eup %6151 }
 0x571   : > { %v2359_v15 = vpop.permute.xlu1 %2358  ;;  %v2355_v18 = vmul.f32 %v6140_v50, %v7102_v59  ;;  %v2602_v5 = vadd.f32 %v2600_v38, %v2586_v43  ;;  %v2375_v48 = vpop.permute.xlu0 %2374  ;;  %v5820_v12 = vpack.c.bf16 %v7018_v14, %v7102_v59 }
 0x572   : > { %v2369_v13 = vmul.f32 %v7012_v46, %v2359_v15  ;;  %v2713_v46 = vrot.slane %v6968_v7, %v6854_v30  ;;  %v6154_v22 = vpop.eup %6153 }
 0x573   : > { %v2701_v29 = vmul.f32 %v6148_v23, %v2602_v5 }
 0x574   : > { %v2371_v10 = vadd.f32 %v2369_v13, %v2355_v18  ;;  %v2715_v26 = vmul.f32 %v2713_v46, %v2708_v60  ;;  %v2829_v60 = vmul.f32 %v2828_v42, %v2819_v40 }
 0x575   : > { %v2605_v27 = vpop.permute.xlu0 %2604 }
 0x576   : > { %v2474_v39 = vpop.permute.xlu1 %2473  ;;  %v2470_v31 = vmul.f32 %v6144_v4, %v2371_v10  ;;  %v5823_v30 = vpack.c.bf16 %v7031_v37, %v2371_v10  ;;  %v2717_v49 = vadd.f32 %v2715_v26, %v2701_v29 }
 0x577   : > { %v2484_v35 = vmul.f32 %v2483_v44, %v2474_v39 }
 0x578   : > { %v2816_v41 = vmul.f32 %v6154_v22, %v2717_v49 }
 0x579   : > { %v2486_v24 = vadd.f32 %v2484_v35, %v2470_v31  ;;  %v2835_v14 = vpop.permute.xlu0 %2834 }
 0x57a   : > { %v1916_v25 = vpop.permute.xlu1 %1915 }
 0x57b   : > { %v2585_v34 = vmul.f32 %v6146_v36, %v2486_v24  ;;  %5552 = vmatmul.mubr.msk.f32.vlgmr.msra.gmra.mrb[8].mxu1 %vm992_vm6, %v1916_v25  ;;  %v5826_v18 = vpack.c.bf16 %v7105_v33, %v2486_v24 }
 0x57c   : > { %5818 = vmatpush3.bf16.msra.mxu1 %v5817_v28  ;;  %5565 = vmatprep.mubr.msk.f32.mxu1 %vm6403_vm8, %v7866_v19 }
 0x57d   : > { %v2601_v44 = vadd.f32 %v2599_v47, %v2585_v34  ;;  %5822 = vmatprep.subr.bf16.mxu1 %v7865_v58 }
 0x57e   : > { %v2704_v63 = vpop.permute.xlu1 %2703 }
 0x57f   : > { %v2700_v2 = vmul.f32 %v6150_v20, %v2601_v44  ;;  %v2714_v9 = vmul.f32 %v2713_v46, %v2704_v63  ;;  %5566 = vmatmul.mubr.msk.f32.vlgmr.msra.gmra.mrb[10].mxu1 %vm992_vm6, %v2145_v1  ;;  %v5829_v37 = vpack.c.bf16 %v2602_v5, %v2601_v44 }
 0x580   : > { %5824 = vmatpush3.bf16.msra.mxu1 %v5823_v30  ;;  %5579 = vmatprep.mubr.msk.f32.mxu1 %vm6403_vm8, %v7866_v19 }
 0x581   : > { %v2716_v57 = vadd.f32 %v2714_v9, %v2700_v2  ;;  %5828 = vmatprep.subr.bf16.mxu1 %v7865_v58 }
 0x583   : > { %v2815_v50 = vmul.f32 %v6152_v56, %v2716_v57  ;;  %v2823_v17 = vpop.permute.xlu1 %2822  ;;  %5580 = vmatmul.mubr.msk.f32.vlgmr.msra.gmra.mrb[12].mxu1 %vm992_vm6, %v2375_v48  ;;  %v5832_v59 = vpack.c.bf16 %v2717_v49, %v2716_v57 }
 0x584   : > { %v2830_v7 = vmul.f32 %v2828_v42, %v2823_v17  ;;  %5830 = vmatpush3.bf16.msra.mxu1 %v5829_v37  ;;  %5593 = vmatprep.mubr.msk.f32.mxu1 %vm6403_vm8, %v7866_v19 }
 0x585   : > { %v2831_v21 = vadd.f32 %v2829_v60, %v2815_v50  ;;  %5834 = vmatprep.subr.bf16.mxu1 %v7865_v58 }
 0x586   : > { %v2832_v6 = vadd.f32 %v2830_v7, %v2816_v41 }
 0x587   : > { %v2030_v8 = vpop.permute.xlu1 %2029  ;;  %5594 = vmatmul.mubr.msk.f32.vlgmr.msra.gmra.mrb[14].mxu1 %vm992_vm6, %v2605_v27 }
 0x588   : > { %v5835_v15 = vpack.c.bf16 %v2832_v6, %v2831_v21  ;;  %5559 = vmatmul.mubr.msk.f32.vlgmr.msra.gmra.mrb[8].mxu0 %vm992_vm6, %v2030_v8  ;;  %5607 = vmatprep.mubr.msk.f32.mxu1 %vm6403_vm8, %v7866_v19 }
 0x589   : > { %5821 = vmatpush3.bf16.msra.mxu0 %v5820_v12  ;;  %5572 = vmatprep.mubr.msk.f32.mxu0 %vm6403_vm8, %v7866_v19 }
 0x58a   : > { %5836 = vmatpush3.bf16.msra.mxu1 %v5835_v15  ;;  %5825 = vmatprep.subr.bf16.mxu0 %v7865_v58 }
 0x58b   : > { %v2260_v32 = vpop.permute.xlu1 %2259 }
 0x58c   : > { %5573 = vmatmul.mubr.msk.f32.vlgmr.msra.gmra.mrb[10].mxu0 %vm992_vm6, %v2260_v32 }
 0x58d   : > { %5827 = vmatpush3.bf16.msra.mxu0 %v5826_v18  ;;  %5586 = vmatprep.mubr.msk.f32.mxu0 %vm6403_vm8, %v7866_v19 }
 0x58e   : > { %5831 = vmatprep.subr.bf16.mxu0 %v7865_v58  ;;  %5608 = vmatmul.mubr.msk.f32.vlgmr.msra.gmra.mrb[16].mxu1 %vm992_vm6, %v2835_v14 }
 0x58f   : > { %v2490_v13 = vpop.permute.xlu1 %2489 }
 0x590   : > { %5587 = vmatmul.mubr.msk.f32.vlgmr.msra.gmra.mrb[12].mxu0 %vm992_vm6, %v2490_v13 }
 0x591   : > { %5833 = vmatpush3.bf16.msra.mxu0 %v5832_v59  ;;  %5600 = vmatprep.mubr.msk.f32.mxu0 %vm6403_vm8, %v7866_v19  ;;  %vm2679_vm8 = vcmp.eq.s32.totalorder %v6657_v52, 13 }
 0x593   : > { %v2720_v33 = vpop.permute.xlu1 %2719 }
 0x594   : > { %5601 = vmatmul.mubr.msk.f32.vlgmr.msra.gmra.mrb[14].mxu0 %vm992_vm6, %v2720_v33  ;;  %vm2449_vm6 = vcmp.eq.s32.totalorder %v6657_v52, 11 }
 0x60f   : > { %v1180_v16 = vpop.f32.mrb[0].mxu1 }
 0x610   : > { %v5504_v4 = vpop.f32.mrb[1].mxu1  ;;  %v1193_v11 = vrot.slane %v1180_v16, %v6675_v61 }
 0x612   : > { %v1194_v38 = vsel %vm1184_vm9, %v1193_v11, 0.0  ;;  %vm2794_vm9 = vcmp.eq.s32.totalorder %v6657_v52, 14 }
 0x619   : > { %v1295_v58 = vpop.f32.mrb[2].mxu1 }
 0x61a   : > { %v1308_v43 = vrot.slane %v1295_v58, %v6675_v61  ;;  %v5511_v10 = vpop.f32.mrb[3].mxu1 }
 0x61c   : > { %v1309_v1 = vsel %vm1299_vm10, %v1308_v43, %v1194_v38  ;;  %vm2909_vm10 = vcmp.eq.s32.totalorder %v6657_v52, 15 }
 0x61d   : > { %v1410_v39 = vpop.f32.mrb[2].mxu0 }
 0x61e   : > { %v1423_v19 = vrot.slane %v1410_v39, %v6675_v61  ;;  %v5518_v31 = vpop.f32.mrb[3].mxu0 }
 0x620   : > { %v1424_v35 = vsel %vm1414_vm11, %v1423_v19, %v1309_v1 }
 0x62a   : > { %v1525_v36 = vpop.f32.mrb[4].mxu1 }
 0x62b   : > { %v1538_v5 = vrot.slane %v1525_v36, %v6675_v61  ;;  %v5525_v23 = vpop.f32.mrb[5].mxu1 }
 0x62d   : > { %v1539_v24 = vsel %vm1529_vm12, %v1538_v5, %v1424_v35 }
 0x62f   : > { %v1640_v46 = vpop.f32.mrb[4].mxu0 }
 0x630   : > { %v1653_v28 = vrot.slane %v1640_v46, %v6675_v61  ;;  %v5532_v25 = vpop.f32.mrb[5].mxu0 }
 0x632   : > { %v1654_v47 = vsel %vm1644_vm13, %v1653_v28, %v1539_v24 }
 0x633   : > { %v1755_v34 = vpop.f32.mrb[6].mxu1 }
 0x634   : > { %v1768_v20 = vrot.slane %v1755_v34, %v6675_v61  ;;  %v5539_v29 = vpop.f32.mrb[7].mxu1 }
 0x636   : > { %v1769_v40 = vsel %vm1759_vm14, %v1768_v20, %v1654_v47 }
 0x637   : > { %v1870_v44 = vpop.f32.mrb[6].mxu0 }
 0x638   : > { %v1883_v26 = vrot.slane %v1870_v44, %v6675_v61  ;;  %v5546_v30 = vpop.f32.mrb[7].mxu0 }
 0x63a   : > { %v1884_v63 = vsel %vm1874_vm15, %v1883_v26, %v1769_v40 }
 0x64e   : > { %v1985_v42 = vpop.f32.mrb[8].mxu1 }
 0x64f   : > { %v1998_v2 = vrot.slane %v1985_v42, %v6675_v61  ;;  %v5553_v9 = vpop.f32.mrb[9].mxu1 }
 0x651   : > { %v1999_v56 = vsel %vm1989_vm2, %v1998_v2, %v1884_v63 }
 0x652   : > { %2920 = vst.msk [vmem:[#allocation6] sm:$0xff] %vm676_vm1, %v1999_v56  ;;  %v2214_v49 = vpop.f32.mrb[10].mxu1 }
 0x653   : > { %v5567_v48 = vpop.f32.mrb[11].mxu1  ;;  %v2227_v7 = vrot.slane %v2214_v49, %v6675_v61 }
 0x656   : > { %v2444_v22 = vpop.f32.mrb[12].mxu1 }
 0x657   : > { %v5581_v57 = vpop.f32.mrb[13].mxu1  ;;  %v2457_v12 = vrot.slane %v2444_v22, %v6675_v61 }
 0x65a   : > { %v2674_v37 = vpop.f32.mrb[14].mxu1 }
 0x65b   : > { %v2099_v60 = vpop.f32.mrb[8].mxu0  ;;  %v5595_v50 = vpop.f32.mrb[15].mxu1  ;;  %v2687_v33 = vrot.slane %v2674_v37, %v6675_v61 }
 0x65c   : > { %v2112_v17 = vrot.slane %v2099_v60, %v6675_v61  ;;  %v5560_v41 = vpop.f32.mrb[9].mxu0 }
 0x65e   : > { %v2114_v27 = vsel %vm2104_vm3, %v2112_v17, 0.0 }
 0x65f   : > { %v2229_v21 = vsel %vm2219_vm4, %v2227_v7, %v2114_v27  ;;  %v2329_v6 = vpop.f32.mrb[10].mxu0 }
 0x660   : > { %v2342_v8 = vrot.slane %v2329_v6, %v6675_v61  ;;  %v5574_v15 = vpop.f32.mrb[11].mxu0 }
 0x661   : > { %v2904_v18 = vpop.f32.mrb[16].mxu1 }
 0x662   : > { %v2344_v32 = vsel %vm2334_vm5, %v2342_v8, %v2229_v21  ;;  %v5609_v14 = vpop.f32.mrb[17].mxu1  ;;  %v2917_v10 = vrot.slane %v2904_v18, %v6675_v61 }
 0x663   : > { %v2459_v59 = vsel %vm2449_vm6, %v2457_v12, %v2344_v32  ;;  %v2559_v13 = vpop.f32.mrb[12].mxu0 }
 0x664   : > { %v2572_v16 = vrot.slane %v2559_v13, %v6675_v61  ;;  %v5588_v4 = vpop.f32.mrb[13].mxu0 }
 0x666   : > { %v2574_v11 = vsel %vm2564_vm7, %v2572_v16, %v2459_v59 }
 0x667   : > { %v2689_v58 = vsel %vm2679_vm8, %v2687_v33, %v2574_v11  ;;  %v2789_v43 = vpop.f32.mrb[14].mxu0 }
 0x668   : > { %v2802_v38 = vrot.slane %v2789_v43, %v6675_v61  ;;  %v5602_v1 = vpop.f32.mrb[15].mxu0 }
 0x66a   : > { %v2804_v39 = vsel %vm2794_vm9, %v2802_v38, %v2689_v58 }
 0x66b   : > { %v2919_v19 = vsel %vm2909_vm10, %v2917_v10, %v2804_v39 }
 0x66c   : > { %2921 = vst.msk [vmem:[#allocation6 + $0x8] sm:$0xff] %vm676_vm1, %v2919_v19 }
 0x66d PF: > { %p5277_p1 = scmp.ne.s32.totalorder %s6369_s21, 1 }
 0x66e   : > { %v7187_v31 = vld [vmem:[#allocation5] sm:$0xff] (!%p5277_p1)  ;;  %v7189_v35 = vld [vmem:[#allocation5 + $0x8] sm:$0xff] (!%p5277_p1)  ;;  %vm2934_vm11 = vcmask (!%p5277_p1), 130048   ;;  %v6409_v24 = vmov (!%p5277_p1), 14   ;;  %v6410_v46 = vmov (!%p5277_p1), 15   ;;  %s6411_s17 = smov (!%p5277_p1), 112  }
 0x66f   : > { %2925 = sbr.rel (%p5277_p1) target bundleno = 2336 (0x920), region = 84  ;;  %v5837_v36 = vpack.c.bf16 (!%p5277_p1), %v7189_v35, %v7187_v31  ;;  %vm5838_vm12 = vmpackc.low (!%p5277_p1), %vm2934_vm11, %vm2934_vm11  ;;  %5614 = vmatprep.mubr.msk.f32.mxu0 (!%p5277_p1), %vm2934_vm11, %v6660_v53  ;;  %v3167_v5 = vrot.slane (!%p5277_p1), %v7189_v35, 6  ;;  %v3052_v23 = vrot.slane (!%p5277_p1), %v7189_v35, 7  ;;  %6156 = vset.pattern.permute.xlu1 (!%p5277_p1), %v6409_v24  ;;  %v6412_v25 = vmov (!%p5277_p1), 13   ;;  %v2929_v43 = vld [vmem:[#allocation4 + $0x8] sm:$0xff] (!%p5277_p1) }
 0x670   : > { %6155 = vset.pattern.permute.xlu0 (!%p5277_p1), %v6410_v46  ;;  %v6413_v47 = vmov (!%p5277_p1), 12   ;;  %v6414_v34 = vmov (!%p5277_p1), 11   ;;  %v6415_v20 = vmov (!%p5277_p1), 9   ;;  %v6417_v29 = vmov (!%p5277_p1), 6  }
 0x671   : > { %5839 = vmatprep.subr.msk.bf16.mxu0 (!%p5277_p1), %vm5838_vm12, %v5837_v36  ;;  %3168 = vrot.lane.b32.xlu1 (!%p5277_p1), %v3167_v5, %s6411_s17  ;;  %v6418_v40 = vmov (!%p5277_p1), 8   ;;  %v6419_v44 = vmov (!%p5277_p1), 4   ;;  %v6420_v26 = vmov (!%p5277_p1), 7   ;;  %v6421_v30 = vmov (!%p5277_p1), 5   ;;  %v2927_v27 = vld [vmem:[#allocation3 + $0x8] sm:$0xff] (!%p5277_p1) }
 0x672   : > { %5842 = vmatpush3.bf16.xpose.msk.msra.mxu0 (!%p5277_p1), %vm5838_vm12, %v5837_v36  ;;  %3053 = vrot.lane.b32.xlu0 (!%p5277_p1), %v3052_v23, %s6411_s17  ;;  %v6422_v63 = vmov (!%p5277_p1), 0.0|0.0   ;;  %vm6423_vm13 = vmmov (!%p5277_p1), 0   ;;  %v6424_v42 = vmov (!%p5277_p1), 0.0   ;;  %v6425_v2 = vmov (!%p5277_p1), 3  }
 0x673   : > { %5843 = vmatprep.subr.bf16.mxu1 (!%p5277_p1), %v6422_v63  ;;  %5849 = vmatprep.subr.bf16.mxu0 (!%p5277_p1), %v6422_v63  ;;  %v3282_v9 = vrot.slane (!%p5277_p1), %v7189_v35, 5  ;;  %v3397_v56 = vrot.slane (!%p5277_p1), %v7189_v35, 4  ;;  %v3627_v49 = vrot.slane (!%p5277_p1), %v7189_v35, 2  ;;  %v6426_v48 = vmov (!%p5277_p1), 2  }
 0x674   : > { %5621 = vmatprep.mubr.msk.f32.mxu1 (!%p5277_p1), %vm6423_vm13, %v6424_v42  ;;  %v6427_v22 = vmov (!%p5277_p1), 1   ;;  %v3512_v57 = vrot.slane (!%p5277_p1), %v7189_v35, 3  ;;  %v4086_v37 = vrot.slane (!%p5277_p1), %v7187_v31, 6  ;;  %v6428_v60 = vmov (!%p5277_p1), 0  }
 0x675   : > { %v4316_v50 = vrot.slane (!%p5277_p1), %v7187_v31, 4  ;;  %v3742_v17 = vrot.slane (!%p5277_p1), %v7189_v35, 1  ;;  %v4546_v41 = vrot.slane (!%p5277_p1), %v7187_v31, 2  ;;  %v7270_v7 = vsub.s32 (!%p5277_p1), 7, %v6645_v45 }
 0x676   : > { %v7275_v6 = vsub.s32 6, %v6645_v45  ;;  %v3971_v8 = vrot.slane %v7187_v31, 7  ;;  %v7284_v18 = vsub.s32 5, %v6645_v45  ;;  %v4201_v14 = vrot.slane %v7187_v31, 5 }
 0x677   : > { %v3025_v21 = vrot.slane %v2927_v27, %v7270_v7  ;;  %v7294_v33 = vsub.s32 4, %v6645_v45  ;;  %v4431_v16 = vrot.slane %v7187_v31, 3  ;;  %v4661_v10 = vrot.slane %v7187_v31, 1 }
 0x678   : > { %v7281_v15 = vrot.slane %v2927_v27, %v7275_v6  ;;  %v7291_v13 = vrot.slane %v2927_v27, %v7284_v18  ;;  %v7308_v39 = vrot.slane %v2927_v27, %v6689_v3  ;;  %v7310_v19 = vmul.f32 %v2929_v43, %v2927_v27 }
 0x679   : > { %5615 = vmatmul.mubr.msk.f32.vlgmr.msra.gmra.mrb[0].mxu0 %vm2934_vm11, %v6663_v55  ;;  %v6416_v55 = vmov 10   ;;  %v3027_v12 = vmul.f32 %v3025_v21, %v6713_v54  ;;  %v7301_v58 = vrot.slane %v2927_v27, %v7294_v33  ;;  %vm3128_vm14 = vcmp.eq.s32.totalorder %v6657_v52, 15 }
 0x67a   : > { %5635 = vmatprep.mubr.msk.f32.mxu0 %vm6423_vm13, %v6424_v42  ;;  %v3144_v59 = vmul.f32 %v7281_v15, %v6713_v54  ;;  %v3259_v11 = vmul.f32 %v7291_v13, %v6713_v54  ;;  %vm3243_vm15 = vcmp.eq.s32.totalorder %v6657_v52, 14  ;;  %vm3358_vm2 = vcmp.eq.s32.totalorder %v6657_v52, 13 }
 0x67b   : > { %v3030_v32 = vmul.f32 1.442695, %v3027_v12  ;;  %v3374_v1 = vmul.f32 %v7301_v58, %v6713_v54  ;;  %vm3473_vm3 = vcmp.eq.s32.totalorder %v6657_v52, 12  ;;  %vm3588_vm4 = vcmp.eq.s32.totalorder %v6657_v52, 11 }
 0x67c   : > { %v3147_v4 = vmul.f32 1.442695, %v3144_v59  ;;  %v3262_v38 = vmul.f32 1.442695, %v3259_v11  ;;  %vm3703_vm5 = vcmp.eq.s32.totalorder %v6657_v52, 10  ;;  %vm3818_vm6 = vcmp.eq.s32.totalorder %v6657_v52, 9 }
 0x67d   : > { %6187 = vpow2.f32 %v3030_v32  ;;  %v3377_v23 = vmul.f32 1.442695, %v3374_v1  ;;  %v7364_v32 = vrot.slane %v7310_v19, %v7294_v33  ;;  %vm3932_vm7 = vcmp.eq.s32.totalorder %v6657_v52, 8 }
 0x67e   : > { %6189 = vpow2.f32 %v3147_v4  ;;  %vm4046_vm8 = vcmp.eq.s32.totalorder %v6645_v45, 7  ;;  %vm4161_vm9 = vcmp.eq.s32.totalorder %v6645_v45, 6  ;;  %vm4276_vm10 = vcmp.eq.s32.totalorder %v6645_v45, 5 }
 0x67f   : > { %6191 = vpow2.f32 %v3262_v38  ;;  %vm4506_vm12 = vcmp.eq.s32.totalorder %v6645_v45, 3 }
 0x680   : > { %6193 = vpow2.f32 %v3377_v23 }
 0x687   : > { %v6188_v36 = vpop.eup %6187 }
 0x6e3   : > { %v7315_v5 = vpop.permute.xlu1 %3168 }
 0x74c   : > { %v7203_v28 = vpop.f32.mrb[0].mxu0 }
 0x74d   : > { %3156 = vperm.xlu1 %6156, %v7203_v28   ;;  %3041 = vperm.xlu0 %6155, %v7203_v28   ;;  %v7207_v53 = vpop.f32.mrb[1].mxu0 }
 0x751   : > { %6157 = vset.pattern.permute.xlu1 %v6412_v25  ;;  %6158 = vset.pattern.permute.xlu0 %v6413_v47 }
 0x752   : > { %3271 = vperm.xlu1 %6157, %v7203_v28   ;;  %3386 = vperm.xlu0 %6158, %v7203_v28  }
 0x756   : > { %6159 = vset.pattern.permute.xlu1 %v6414_v34  ;;  %6161 = vset.pattern.permute.xlu0 %v6415_v20 }
 0x757   : > { %3501 = vperm.xlu1 %6159, %v7203_v28   ;;  %3731 = vperm.xlu0 %6161, %v7203_v28  }
 0x75b   : > { %6160 = vset.pattern.permute.xlu1 %v6416_v55  ;;  %6164 = vset.pattern.permute.xlu0 %v6417_v29 }
 0x75c   : > { %3616 = vperm.xlu1 %6160, %v7203_v28   ;;  %4075 = vperm.xlu0 %6164, %v7203_v28  }
 0x760   : > { %6162 = vset.pattern.permute.xlu1 %v6418_v40  ;;  %6166 = vset.pattern.permute.xlu0 %v6419_v44 }
 0x761   : > { %3846 = vperm.xlu1 %6162, %v7203_v28   ;;  %4305 = vperm.xlu0 %6166, %v7203_v28  }
 0x765   : > { %6163 = vset.pattern.permute.xlu1 %v6420_v26  ;;  %6167 = vset.pattern.permute.xlu0 %v6410_v46  ;;  %v7324_v46 = vrot.slane %v7310_v19, %v7270_v7 }
 0x766   : > { %3960 = vperm.xlu1 %6163, %v7203_v28   ;;  %3036 = vperm.xlu0 %6167, %v7207_v53  }
 0x76a   : > { %6165 = vset.pattern.permute.xlu1 %v6421_v30  ;;  %6169 = vset.pattern.permute.xlu0 %v6412_v25 }
 0x76b   : > { %4190 = vperm.xlu1 %6165, %v7203_v28   ;;  %3267 = vperm.xlu0 %6169, %v7207_v53  }
 0x76f   : > { %6168 = vset.pattern.permute.xlu1 %v6409_v24  ;;  %6170 = vset.pattern.permute.xlu0 %v6425_v2  ;;  %v7320_v24 = vrot.slane %v2927_v27, %v6684_v0 }
 0x770   : > { %3152 = vperm.xlu1 %6168, %v7207_v53   ;;  %4420 = vperm.xlu0 %6170, %v7203_v28  }
 0x774   : > { %3283 = vrot.lane.b32.xlu1 %v3282_v9, %s6411_s17  ;;  %6174 = vset.pattern.permute.xlu0 %v6416_v55  ;;  %v7333_v55 = vrot.slane %v7310_v19, %v7275_v6  ;;  %v7342_v9 = vrot.slane %v2927_v27, %v6675_v61 }
 0x775   : > { %3612 = vperm.xlu0 %6174, %v7207_v53   ;;  %6171 = vset.pattern.permute.xlu1 %v6426_v48 }
 0x778   : > { %3398 = vrot.lane.b32.xlu1 %v3397_v56, %s6411_s17 }
 0x779   : > { %3628 = vrot.lane.b32.xlu0 %v3627_v49, %s6411_s17 }
 0x77a   : > { %6177 = vset.pattern.permute.xlu0 %v6420_v26  ;;  %v3026_v26 = vmul.f32 %v3025_v21, %v6708_v51 }
 0x77c   : > { %4535 = vperm.xlu1 %6171, %v7203_v28  }
 0x77d   : > { %3956 = vperm.xlu0 %6177, %v7207_v53  }
 0x780   : > { %6172 = vset.pattern.permute.xlu1 %v6413_v47 }
 0x781   : > { %3382 = vperm.xlu1 %6172, %v7207_v53   ;;  %6178 = vset.pattern.permute.xlu0 %v6427_v22 }
 0x782   : > { %4650 = vperm.xlu0 %6178, %v7203_v28  }
 0x785   : > { %6173 = vset.pattern.permute.xlu1 %v6414_v34  ;;  %v3604_v34 = vmul.f32 %v7320_v24, %v6713_v54 }
 0x786   : > { %3497 = vperm.xlu1 %6173, %v7207_v53   ;;  %6183 = vset.pattern.permute.xlu0 %v6426_v48 }
 0x787   : > { %4531 = vperm.xlu0 %6183, %v7207_v53  }
 0x78a   : > { %3513 = vrot.lane.b32.xlu1 %v3512_v57, %s6411_s17 }
 0x78b   : > { %4087 = vrot.lane.b32.xlu0 %v4086_v37, %s6411_s17  ;;  %6175 = vset.pattern.permute.xlu1 %v6415_v20  ;;  %v7329_v20 = vrot.slane %v2927_v27, %v6678_v62  ;;  %v3834_v27 = vmul.f32 %v7342_v9, %v6713_v54 }
 0x78c   : > { %6186 = vset.pattern.permute.xlu0 %v6428_v60 }
 0x78d   : > { %v3837_v11 = vmul.f32 1.442695, %v3834_v27 }
 0x78e   : > { %3727 = vperm.xlu1 %6175, %v7207_v53  }
 0x78f   : > { %4761 = vperm.xlu0 %6186, %v7207_v53  }
 0x792   : > { %6176 = vset.pattern.permute.xlu1 %v6418_v40  ;;  %v6190_v40 = vpop.eup %6189 }
 0x793   : > { %3842 = vperm.xlu1 %6176, %v7207_v53   ;;  %4317 = vrot.lane.b32.xlu0 %v4316_v50, %s6411_s17  ;;  %v6192_v37 = vpop.eup %6191  ;;  %v7352_v50 = vld [vmem:[#allocation3] sm:$0xff] }
 0x794   : > { %v7358_v21 = vrot.slane %v7352_v50, %v7270_v7 }
 0x796   : > { %v3948_v43 = vmul.f32 %v7358_v21, %v6713_v54 }
 0x797   : > { %3743 = vrot.lane.b32.xlu1 %v3742_v17, %s6411_s17  ;;  %4547 = vrot.lane.b32.xlu0 %v4546_v41, %s6411_s17  ;;  %v3028_v17 = vmul.f32 1.442695, %v3026_v26 }
 0x798   : > { %6179 = vset.pattern.permute.xlu1 %v6417_v29 }
 0x79b   : > { %4071 = vperm.xlu1 %6179, %v7207_v53   ;;  %4776 = vrot.lane.b32.xlu0 %v7187_v31, %s6411_s17  ;;  %v3489_v31 = vmul.f32 %v7308_v39, %v6713_v54 }
 0x79d   : > { %v3492_v47 = vmul.f32 1.442695, %v3489_v31 }
 0x79f   : > { %6180 = vset.pattern.permute.xlu1 %v6421_v30  ;;  %6195 = vpow2.f32 %v3492_v47  ;;  %v3607_v30 = vmul.f32 1.442695, %v3604_v34  ;;  %v3951_v47 = vmul.f32 1.442695, %v3948_v43  ;;  %v2928_v43 = vld [vmem:[#allocation4] sm:$0xff] }
 0x7a0   : > { %4186 = vperm.xlu1 %6180, %v7207_v53  }
 0x7a1   : > { %6197 = vpow2.f32 %v3607_v30  ;;  %v7396_v30 = vrot.slane %v7310_v19, %v6684_v0 }
 0x7a2   : > { %6199 = vpow2.f32 %v3028_v17 }
 0x7a4   : > { %6181 = vset.pattern.permute.xlu1 %v6419_v44 }
 0x7a5   : > { %4301 = vperm.xlu1 %6181, %v7207_v53  }
 0x7a9   : > { %6182 = vset.pattern.permute.xlu1 %v6425_v2  ;;  %v3719_v2 = vmul.f32 %v7329_v20, %v6713_v54 }
 0x7aa   : > { %4416 = vperm.xlu1 %6182, %v7207_v53  }
 0x7ab   : > { %v3722_v41 = vmul.f32 1.442695, %v3719_v2 }
 0x7ad   : > { %6201 = vpow2.f32 %v3722_v41  ;;  %v7408_v41 = vrot.slane %v7352_v50, %v7294_v33 }
 0x7ae   : > { %3857 = vrot.lane.b32.xlu1 %v7189_v35, %s6411_s17  ;;  %v7312_v35 = vpop.permute.xlu0 %3053  ;;  %6203 = vpow2.f32 %v3837_v11 }
 0x7af   : > { %6184 = vset.pattern.permute.xlu1 %v6427_v22  ;;  %v7348_v22 = vrot.slane %v7310_v19, %v7284_v18  ;;  %6205 = vpow2.f32 %v3951_v47 }
 0x7b2   : > { %4646 = vperm.xlu1 %6184, %v7207_v53  }
 0x7b6   : > { %6185 = vset.pattern.permute.xlu1 %v6428_v60 }
 0x7b7   : > { %4765 = vperm.xlu1 %6185, %v7203_v28   ;;  %v3033_v28 = vmul.f32 0.0, %v6188_v36  ;;  %v7378_v36 = vrot.slane %v7310_v19, %v6689_v3 }
 0x7bb   : > { %3972 = vrot.lane.b32.xlu1 %v3971_v8, %s6411_s17 }
 0x7bf   : > { %4202 = vrot.lane.b32.xlu1 %v4201_v14, %s6411_s17  ;;  %v6194_v14 = vpop.eup %6193 }
 0x7c0   : > { %v6196_v23 = vpop.eup %6195 }
 0x7c1   : > { %v6198_v2 = vpop.eup %6197 }
 0x7c2   : > { %v6200_v27 = vpop.eup %6199 }
 0x7c3   : > { %4432 = vrot.lane.b32.xlu1 %v4431_v16, %s6411_s17 }
 0x7c7   : > { %4662 = vrot.lane.b32.xlu1 %v4661_v10, %s6411_s17  ;;  %v7372_v10 = vrot.slane %v7352_v50, %v7275_v6 }
 0x7c9   : > { %v4063_v34 = vmul.f32 %v7372_v10, %v6713_v54 }
 0x7cc   : > { %v3157_v53 = vpop.permute.xlu1 %3156  ;;  %v3042_v25 = vpop.permute.xlu0 %3041 }
 0x7cd   : > { %v3049_v29 = vmul.f32 %v7324_v46, %v3042_v25  ;;  %v3164_v56 = vmul.f32 %v7333_v55, %v3157_v53  ;;  %v3143_v25 = vmul.f32 %v7281_v15, %v6708_v51 }
 0x7cf   : > { %v7336_v44 = vadd.f32 %v3049_v29, %v3033_v28  ;;  %v7390_v29 = vrot.slane %v7352_v50, %v7284_v18  ;;  %v3145_v15 = vmul.f32 1.442695, %v3143_v25 }
 0x7d1   : > { %v3150_v49 = vmul.f32 %v6190_v40, %v7336_v44  ;;  %v3272_v48 = vpop.permute.xlu1 %3271  ;;  %v3387_v57 = vpop.permute.xlu0 %3386  ;;  %v4178_v17 = vmul.f32 %v7390_v29, %v6713_v54  ;;  %6207 = vpow2.f32 %v3145_v15  ;;  %v7428_v15 = vmul.f32 %v2928_v43, %v7352_v50 }
 0x7d2   : > { %v3279_v8 = vmul.f32 %v7348_v22, %v3272_v48  ;;  %v3394_v1 = vmul.f32 %v7364_v32, %v3387_v57 }
 0x7d3   : > { %v7350_v60 = vadd.f32 %v3164_v56, %v3150_v49  ;;  %v3258_v49 = vmul.f32 %v7291_v13, %v6708_v51 }
 0x7d5   : > { %v3265_v12 = vmul.f32 %v6192_v37, %v7350_v60  ;;  %v4066_v37 = vmul.f32 1.442695, %v4063_v34  ;;  %v3260_v11 = vmul.f32 1.442695, %v3258_v49  ;;  %v7424_v34 = vrot.slane %v7310_v19, %v6675_v61 }
 0x7d6   : > { %v3502_v59 = vpop.permute.xlu1 %3501  ;;  %v3732_v16 = vpop.permute.xlu0 %3731 }
 0x7d7   : > { %v7366_v4 = vadd.f32 %v3279_v8, %v3265_v12  ;;  %v3509_v26 = vmul.f32 %v7378_v36, %v3502_v59  ;;  %v7412_v12 = vrot.slane %v7310_v19, %v6678_v62  ;;  %6209 = vpow2.f32 %v4066_v37 }
 0x7d8   : > { %6211 = vpow2.f32 %v3260_v11  ;;  %v7436_v19 = vrot.slane %v7428_v15, %v7270_v7  ;;  %v3373_v11 = vmul.f32 %v7301_v58, %v6708_v51 }
 0x7d9   : > { %v3380_v38 = vmul.f32 %v6194_v14, %v7366_v4  ;;  %v6202_v14 = vpop.eup %6201  ;;  %v3739_v25 = vmul.f32 %v7412_v12, %v3732_v16 }
 0x7da   : > { %v3375_v58 = vmul.f32 1.442695, %v3373_v11 }
 0x7db   : > { %v7380_v31 = vadd.f32 %v3394_v1, %v3380_v38  ;;  %v3617_v28 = vpop.permute.xlu1 %3616  ;;  %v7382_v53 = vpop.permute.xlu0 %4075  ;;  %v3032_v38 = vmul.f32 0.0, %v6200_v27  ;;  %v4181_v1 = vmul.f32 1.442695, %v4178_v17 }
 0x7dc   : > { %v3624_v13 = vmul.f32 %v7396_v30, %v3617_v28 }
 0x7dd   : > { %v3495_v40 = vmul.f32 %v6196_v23, %v7380_v31  ;;  %v4293_v23 = vmul.f32 %v7408_v41, %v6713_v54  ;;  %6213 = vpow2.f32 %v4181_v1 }
 0x7df   : > { %v7398_v56 = vadd.f32 %v3509_v26, %v3495_v40  ;;  %v6204_v26 = vpop.eup %6203  ;;  %v4296_v16 = vmul.f32 1.442695, %v4293_v23 }
 0x7e0   : > { %v3847_v48 = vpop.permute.xlu1 %3846  ;;  %v7402_v57 = vpop.permute.xlu0 %4305 }
 0x7e1   : > { %v3610_v8 = vmul.f32 %v6198_v2, %v7398_v56  ;;  %v3854_v27 = vmul.f32 %v7424_v34, %v3847_v48  ;;  %6215 = vpow2.f32 %v4296_v16 }
 0x7e2   : > { %6217 = vpow2.f32 %v3375_v58 }
 0x7e3   : > { %v7416_v59 = vadd.f32 %v3624_v13, %v3610_v8  ;;  %v6206_v8 = vpop.eup %6205 }
 0x7e4   : > { %v6208_v43 = vpop.eup %6207 }
 0x7e5   : > { %v3725_v47 = vmul.f32 %v6202_v14, %v7416_v59  ;;  %v3961_v28 = vpop.permute.xlu1 %3960  ;;  %v3037_v40 = vpop.permute.xlu0 %3036 }
 0x7e6   : > { %v3048_v2 = vmul.f32 %v7324_v46, %v3037_v40  ;;  %v3968_v7 = vmul.f32 %v7436_v19, %v3961_v28  ;;  %v6210_v1 = vpop.eup %6209 }
 0x7e7   : > { %v7430_v49 = vadd.f32 %v3739_v25, %v3725_v47  ;;  %v6212_v28 = vpop.eup %6211 }
 0x7e8   : > { %v3050_v37 = vadd.f32 %v3048_v2, %v3032_v38  ;;  %v7445_v38 = vrot.slane %v7428_v15, %v7275_v6  ;;  %v3488_v6 = vmul.f32 %v7308_v39, %v6708_v51  ;;  %v7464_v2 = vrot.slane %v7428_v15, %v7284_v18 }
 0x7e9   : > { %v3840_v17 = vmul.f32 %v6204_v26, %v7430_v49 }
 0x7ea   : > { %v4191_v13 = vpop.permute.xlu1 %4190  ;;  %v5844_v46 = vpack.c.bf16 %v7336_v44, %v3050_v37  ;;  %v3149_v25 = vmul.f32 %v6208_v43, %v3050_v37  ;;  %v4083_v40 = vmul.f32 %v7445_v38, %v7382_v53  ;;  %v6214_v37 = vpop.eup %6213  ;;  %v7472_v53 = vrot.slane %v7428_v15, %v7294_v33 }
 0x7eb   : > { %v7439_v14 = vadd.f32 %v3854_v27, %v3840_v17  ;;  %v4198_v11 = vmul.f32 %v7464_v2, %v4191_v13  ;;  %v3603_v43 = vmul.f32 %v7320_v24, %v6708_v51  ;;  %v3718_v13 = vmul.f32 %v7329_v20, %v6708_v51 }
 0x7ec   : > { %5845 = vmatpush3.bf16.msra.mxu1 %v5844_v46  ;;  %v3490_v46 = vmul.f32 1.442695, %v3488_v6  ;;  %v4313_v33 = vmul.f32 %v7472_v53, %v7402_v57  ;;  %v3833_v57 = vmul.f32 %v7342_v9, %v6708_v51 }
 0x7ed   : > { %v3954_v48 = vmul.f32 %v6206_v8, %v7439_v14  ;;  %5846 = vmatprep.subr.bf16.mxu1 %v6422_v63  ;;  %v3605_v24 = vmul.f32 1.442695, %v3603_v43 }
 0x7ee   : > { %6219 = vpow2.f32 %v3490_v46 }
 0x7ef   : > { %v7450_v44 = vadd.f32 %v3968_v7, %v3954_v48  ;;  %v3153_v23 = vpop.permute.xlu1 %3152  ;;  %5622 = vmatmul.mubr.msk.f32.vlgmr.msra.gmra.mrb[0].mxu1 %vm2934_vm11, %v7312_v35  ;;  %v3268_v35 = vpop.permute.xlu0 %3267  ;;  %6221 = vpow2.f32 %v3605_v24  ;;  %v4521_v24 = vrot.slane %v7352_v50, %v6684_v0 }
 0x7f0   : > { %v3163_v47 = vmul.f32 %v7333_v55, %v3153_v23  ;;  %5628 = vmatprep.mubr.msk.f32.mxu1 %vm6423_vm13, %v6424_v42  ;;  %v3278_v27 = vmul.f32 %v7348_v22, %v3268_v35  ;;  %v6216_v48 = vpop.eup %6215 }
 0x7f1   : > { %v4069_v26 = vmul.f32 %v6210_v1, %v7450_v44 }
 0x7f2   : > { %v3165_v16 = vadd.f32 %v3163_v47, %v3149_v25  ;;  %v6218_v25 = vpop.eup %6217  ;;  %v3835_v47 = vmul.f32 1.442695, %v3833_v57 }
 0x7f3   : > { %v7466_v55 = vadd.f32 %v4083_v40, %v4069_v26  ;;  %v3284_v17 = vpop.permute.xlu1 %3283  ;;  %v7501_v6 = vpop.permute.xlu0 %4420  ;;  %v3947_v26 = vmul.f32 %v7358_v21, %v6708_v51 }
 0x7f4   : > { %v5847_v39 = vpack.c.bf16 %v7350_v60, %v3165_v16  ;;  %v3264_v8 = vmul.f32 %v6212_v28, %v3165_v16 }
 0x7f5   : > { %v4184_v18 = vmul.f32 %v6214_v37, %v7466_v55  ;;  %v4406_v37 = vrot.slane %v7352_v50, %v6689_v3 }
 0x7f6   : > { %v3280_v7 = vadd.f32 %v3278_v27, %v3264_v8  ;;  %5848 = vmatpush3.bf16.msra.mxu1 %v5847_v39  ;;  %v3949_v39 = vmul.f32 1.442695, %v3947_v26  ;;  %v4062_v8 = vmul.f32 %v7372_v10, %v6708_v51  ;;  %v4177_v10 = vmul.f32 %v7390_v29, %v6708_v51 }
 0x7f7   : > { %v7478_v1 = vadd.f32 %v4198_v11, %v4184_v18  ;;  %v3399_v22 = vpop.permute.xlu1 %3398  ;;  %5852 = vmatprep.subr.bf16.mxu1 %v6422_v63  ;;  %v3613_v18 = vpop.permute.xlu0 %3612  ;;  %v4408_v11 = vmul.f32 %v4406_v37, %v6713_v54 }
 0x7f8   : > { %v5850_v60 = vpack.c.bf16 %v7366_v4, %v3280_v7  ;;  %v3379_v28 = vmul.f32 %v6218_v25, %v3280_v7  ;;  %v6220_v9 = vpop.eup %6219  ;;  %v4179_v25 = vmul.f32 1.442695, %v4177_v10 }
 0x7f9   : > { %v4299_v23 = vmul.f32 %v6216_v48, %v7478_v1  ;;  %5629 = vmatmul.mubr.msk.f32.vlgmr.msra.gmra.mrb[2].mxu1 %vm2934_vm11, %v7315_v5  ;;  %v3720_v5 = vmul.f32 1.442695, %v3718_v13  ;;  %v6222_v46 = vpop.eup %6221  ;;  %v4064_v48 = vmul.f32 1.442695, %v4062_v8 }
 0x7fa   : > { %5851 = vmatpush3.bf16.msra.mxu0 %v5850_v60  ;;  %5642 = vmatprep.mubr.msk.f32.mxu1 %vm6423_vm13, %v6424_v42 }
 0x7fb   : > { %v7491_v58 = vadd.f32 %v4313_v33, %v4299_v23  ;;  %v7493_v4 = vpop.permute.xlu1 %4535  ;;  %5855 = vmatprep.subr.bf16.mxu0 %v6422_v63  ;;  %6223 = vpow2.f32 %v3720_v5  ;;  %v4411_v23 = vmul.f32 1.442695, %v4408_v11  ;;  %v4292_v5 = vmul.f32 %v7408_v41, %v6708_v51 }
 0x7fc   : > { %6225 = vpow2.f32 %v3835_v47  ;;  %v4523_v47 = vmul.f32 %v4521_v24, %v6713_v54 }
 0x7fd   : > { %5636 = vmatmul.mubr.msk.f32.vlgmr.msra.gmra.mrb[2].mxu0 %vm2934_vm11, %v3284_v17  ;;  %6227 = vpow2.f32 %v3949_v39  ;;  %v4294_v41 = vmul.f32 1.442695, %v4292_v5 }
 0x7fe   : > { %5649 = vmatprep.mubr.msk.f32.mxu0 %vm6423_vm13, %v6424_v42  ;;  %6229 = vpow2.f32 %v4064_v48 }
 0x7ff   : > { %6231 = vpow2.f32 %v4411_v23 }
 0x800   : > { %v3383_v20 = vpop.permute.xlu1 %3382  ;;  %6233 = vpow2.f32 %v4179_v25 }
 0x801   : > { %v3393_v40 = vmul.f32 %v7364_v32, %v3383_v20  ;;  %6235 = vpow2.f32 %v4294_v41 }
 0x803   : > { %v3395_v35 = vadd.f32 %v3393_v40, %v3379_v28 }
 0x805   : > { %v5853_v16 = vpack.c.bf16 %v7380_v31, %v3395_v35  ;;  %v3498_v17 = vpop.permute.xlu1 %3497  ;;  %v3494_v27 = vmul.f32 %v6220_v9, %v3395_v35  ;;  %v3623_v31 = vmul.f32 %v7396_v30, %v3613_v18  ;;  %v4407_v35 = vmul.f32 %v4406_v37, %v6708_v51 }
 0x806   : > { %v3508_v32 = vmul.f32 %v7378_v36, %v3498_v17  ;;  %v6224_v36 = vpop.eup %6223  ;;  %v4636_v17 = vrot.slane %v7352_v50, %v6678_v62  ;;  %v4522_v18 = vmul.f32 %v4521_v24, %v6708_v51  ;;  %v4751_v24 = vrot.slane %v7352_v50, %v6675_v61 }
 0x807   : > { %5854 = vmatpush3.bf16.msra.mxu1 %v5853_v16  ;;  %v6226_v30 = vpop.eup %6225  ;;  %v4409_v37 = vmul.f32 1.442695, %v4407_v35 }
 0x808   : > { %v3510_v21 = vadd.f32 %v3508_v32, %v3494_v27  ;;  %5858 = vmatprep.subr.bf16.mxu1 %v6422_v63  ;;  %v6228_v40 = vpop.eup %6227  ;;  %v4753_v50 = vmul.f32 %v4751_v24, %v6713_v54 }
 0x809   : > { %v3514_v43 = vpop.permute.xlu1 %3513  ;;  %v6230_v39 = vpop.eup %6229 }
 0x80a   : > { %v5856_v7 = vpack.c.bf16 %v7398_v56, %v3510_v21  ;;  %v3609_v60 = vmul.f32 %v6222_v46, %v3510_v21  ;;  %5643 = vmatmul.mubr.msk.f32.vlgmr.msra.gmra.mrb[4].mxu1 %vm2934_vm11, %v3399_v22  ;;  %v3629_v56 = vpop.permute.xlu0 %3628  ;;  %v4638_v21 = vmul.f32 %v4636_v17, %v6713_v54 }
 0x80b   : > { %5656 = vmatprep.mubr.msk.f32.mxu1 %vm6423_vm13, %v6424_v42 }
 0x80c   : > { %5857 = vmatpush3.bf16.msra.mxu0 %v5856_v7  ;;  %v3625_v33 = vadd.f32 %v3623_v31, %v3609_v60  ;;  %v4426_v7 = vrot.slane %v7428_v15, %v6689_v3  ;;  %v4641_v23 = vmul.f32 1.442695, %v4638_v21 }
 0x80d   : > { %v3728_v13 = vpop.permute.xlu1 %3727  ;;  %5861 = vmatprep.subr.bf16.mxu0 %v6422_v63 }
 0x80e   : > { %v3724_v22 = vmul.f32 %v6224_v36, %v3625_v33  ;;  %v3738_v57 = vmul.f32 %v7412_v12, %v3728_v13  ;;  %v5859_v29 = vpack.c.bf16 %v7416_v59, %v3625_v33  ;;  %v3957_v9 = vpop.permute.xlu0 %3956  ;;  %v4524_v36 = vmul.f32 1.442695, %v4522_v18 }
 0x80f   : > { %5650 = vmatmul.mubr.msk.f32.vlgmr.msra.gmra.mrb[4].mxu0 %vm2934_vm11, %v3514_v43  ;;  %v4637_v33 = vmul.f32 %v4636_v17, %v6708_v51 }
 0x810   : > { %v3740_v20 = vadd.f32 %v3738_v57, %v3724_v22  ;;  %5860 = vmatpush3.bf16.msra.mxu1 %v5859_v29  ;;  %5663 = vmatprep.mubr.msk.f32.mxu0 %vm6423_vm13, %v6424_v42  ;;  %v4428_v22 = vmul.f32 %v4426_v7, %v7501_v6  ;;  %v4752_v29 = vmul.f32 %v4751_v24, %v6708_v51 }
 0x811   : > { %5864 = vmatprep.subr.bf16.mxu1 %v6422_v63  ;;  %v4639_v57 = vmul.f32 1.442695, %v4637_v33  ;;  %v4541_v6 = vrot.slane %v7428_v15, %v6684_v0 }
 0x812   : > { %v5862_v12 = vpack.c.bf16 %v7430_v49, %v3740_v20  ;;  %v3843_v28 = vpop.permute.xlu1 %3842  ;;  %v3839_v59 = vmul.f32 %v6226_v30, %v3740_v20  ;;  %v4526_v49 = vmul.f32 1.442695, %v4523_v47  ;;  %v4651_v60 = vpop.permute.xlu0 %4650 }
 0x813   : > { %v3853_v26 = vmul.f32 %v7424_v34, %v3843_v28  ;;  %5657 = vmatmul.mubr.msk.f32.vlgmr.msra.gmra.mrb[6].mxu1 %vm2934_vm11, %v3629_v56  ;;  %v3967_v34 = vmul.f32 %v7436_v19, %v3957_v9  ;;  %v6232_v19 = vpop.eup %6231  ;;  %v4754_v28 = vmul.f32 1.442695, %v4752_v29  ;;  %v4543_v41 = vmul.f32 %v4541_v6, %v7493_v4 }
 0x814   : > { %5863 = vmatpush3.bf16.msra.mxu0 %v5862_v12  ;;  %5670 = vmatprep.mubr.msk.f32.mxu1 %vm6423_vm13, %v6424_v42  ;;  %6237 = vpow2.f32 %v4526_v49  ;;  %v6234_v31 = vpop.eup %6233 }
 0x815   : > { %v3855_v16 = vadd.f32 %v3853_v26, %v3839_v59  ;;  %5867 = vmatprep.subr.bf16.mxu0 %v6422_v63  ;;  %6239 = vpow2.f32 %v4409_v37  ;;  %v6236_v56 = vpop.eup %6235 }
 0x816   : > { %v3744_v27 = vpop.permute.xlu1 %3743  ;;  %6241 = vpow2.f32 %v4524_v36  ;;  %v4532_v20 = vpop.permute.xlu0 %4531 }
 0x817   : > { %v5865_v8 = vpack.c.bf16 %v7439_v14, %v3855_v16  ;;  %v3953_v32 = vmul.f32 %v6228_v40, %v3855_v16  ;;  %5664 = vmatmul.mubr.msk.f32.vlgmr.msra.gmra.mrb[6].mxu0 %vm2934_vm11, %v3744_v27  ;;  %6243 = vpow2.f32 %v4641_v23  ;;  %v4756_v40 = vmul.f32 1.442695, %v4753_v50 }
 0x818   : > { %5677 = vmatprep.mubr.msk.f32.mxu0 %vm6423_vm13, %v6424_v42  ;;  %6245 = vpow2.f32 %v4639_v57 }
 0x819   : > { %5866 = vmatpush3.bf16.msra.mxu1 %v5865_v8  ;;  %v3969_v46 = vadd.f32 %v3967_v34, %v3953_v32  ;;  %6247 = vpow2.f32 %v4754_v28  ;;  %v4656_v34 = vrot.slane %v7428_v15, %v6678_v62  ;;  %v4542_v32 = vmul.f32 %v4541_v6, %v4532_v20 }
 0x81a   : > { %v4072_v11 = vpop.permute.xlu1 %4071  ;;  %5870 = vmatprep.subr.bf16.mxu1 %v6422_v63  ;;  %v4088_v9 = vpop.permute.xlu0 %4087  ;;  %6249 = vpow2.f32 %v4756_v40  ;;  %v4771_v62 = vrot.slane %v7428_v15, %v6675_v61 }
 0x81b   : > { %v4068_v14 = vmul.f32 %v6230_v39, %v3969_v46  ;;  %v4082_v43 = vmul.f32 %v7445_v38, %v4072_v11  ;;  %v5868_v48 = vpack.c.bf16 %v7450_v44, %v3969_v46  ;;  %v4414_v38 = vmul.f32 %v6232_v19, %v7491_v58 }
 0x81c   : > { %v4658_v11 = vmul.f32 %v4656_v34, %v4651_v60 }
 0x81d   : > { %v4084_v10 = vadd.f32 %v4082_v43, %v4068_v14  ;;  %5869 = vmatpush3.bf16.msra.mxu0 %v5868_v48  ;;  %v7566_v5 = vadd.f32 %v4428_v22, %v4414_v38 }
 0x81e   : > { %5873 = vmatprep.subr.bf16.mxu0 %v6422_v63  ;;  %v4762_v18 = vpop.permute.xlu0 %4761 }
 0x81f   : > { %v5871_v44 = vpack.c.bf16 %v7466_v55, %v4084_v10  ;;  %v4187_v13 = vpop.permute.xlu1 %4186  ;;  %v4183_v30 = vmul.f32 %v6234_v31, %v4084_v10  ;;  %v6238_v55 = vpop.eup %6237  ;;  %v4772_v60 = vmul.f32 %v4771_v62, %v4762_v18 }
 0x820   : > { %v4197_v3 = vmul.f32 %v7464_v2, %v4187_v13  ;;  %v6240_v59 = vpop.eup %6239  ;;  %v4529_v54 = vmul.f32 %v6238_v55, %v7566_v5 }
 0x821   : > { %v6242_v0 = vpop.eup %6241 }
 0x822   : > { %v7563_v25 = vadd.f32 %v4197_v3, %v4183_v30  ;;  %v4545_v27 = vadd.f32 %v4543_v41, %v4529_v54  ;;  %v4318_v10 = vpop.permute.xlu0 %4317 }
 0x824   : > { %v5874_v47 = vpack.c.bf16 %v7478_v1, %v7563_v25  ;;  %v4302_v2 = vpop.permute.xlu1 %4301  ;;  %v4298_v12 = vmul.f32 %v6236_v56, %v7563_v25 }
 0x825   : > { %v4312_v51 = vmul.f32 %v7472_v53, %v4302_v2  ;;  %v6244_v53 = vpop.eup %6243 }
 0x826   : > { %v4644_v46 = vmul.f32 %v6244_v53, %v4545_v27  ;;  %v4548_v13 = vpop.permute.xlu0 %4547 }
 0x827   : > { %v4314_v26 = vadd.f32 %v4312_v51, %v4298_v12 }
 0x829   : > { %v5877_v35 = vpack.c.bf16 %v7491_v58, %v4314_v26  ;;  %v4417_v16 = vpop.permute.xlu1 %4416  ;;  %v4413_v49 = vmul.f32 %v6240_v59, %v4314_v26  ;;  %v6246_v58 = vpop.eup %6245 }
 0x82a   : > { %v4427_v17 = vmul.f32 %v4426_v7, %v4417_v16  ;;  %v6248_v31 = vpop.eup %6247  ;;  %v4660_v7 = vadd.f32 %v4658_v11, %v4644_v46  ;;  %v4777_v29 = vpop.permute.xlu0 %4776 }
 0x82b   : > { %v6250_v36 = vpop.eup %6249 }
 0x82c   : > { %v4429_v39 = vadd.f32 %v4427_v17, %v4413_v49  ;;  %v4759_v38 = vmul.f32 %v6250_v36, %v4660_v7 }
 0x82d   : > { %v3858_v8 = vpop.permute.xlu1 %3857 }
 0x82e   : > { %v5880_v37 = vpack.c.bf16 %v7566_v5, %v4429_v39  ;;  %v4528_v4 = vmul.f32 %v6242_v0, %v4429_v39  ;;  %5671 = vmatmul.mubr.msk.f32.vlgmr.msra.gmra.mrb[8].mxu1 %vm2934_vm11, %v3858_v8 }
 0x82f   : > { %5872 = vmatpush3.bf16.msra.mxu1 %v5871_v44  ;;  %5684 = vmatprep.mubr.msk.f32.mxu1 %vm6423_vm13, %v6424_v42 }
 0x830   : > { %v4544_v21 = vadd.f32 %v4542_v32, %v4528_v4  ;;  %5876 = vmatprep.subr.bf16.mxu1 %v6422_v63 }
 0x831   : > { %v4647_v19 = vpop.permute.xlu1 %4646 }
 0x832   : > { %v4643_v14 = vmul.f32 %v6246_v58, %v4544_v21  ;;  %v4657_v43 = vmul.f32 %v4656_v34, %v4647_v19  ;;  %5685 = vmatmul.mubr.msk.f32.vlgmr.msra.gmra.mrb[10].mxu1 %vm2934_vm11, %v4088_v9  ;;  %v5883_v48 = vpack.c.bf16 %v4545_v27, %v4544_v21 }
 0x833   : > { %5878 = vmatpush3.bf16.msra.mxu1 %v5877_v35  ;;  %5698 = vmatprep.mubr.msk.f32.mxu1 %vm6423_vm13, %v6424_v42 }
 0x834   : > { %v4659_v33 = vadd.f32 %v4657_v43, %v4643_v14  ;;  %5882 = vmatprep.subr.bf16.mxu1 %v6422_v63 }
 0x836   : > { %v5886_v23 = vpack.c.bf16 %v4660_v7, %v4659_v33  ;;  %v4758_v24 = vmul.f32 %v6248_v31, %v4659_v33  ;;  %v4766_v15 = vpop.permute.xlu1 %4765  ;;  %5699 = vmatmul.mubr.msk.f32.vlgmr.msra.gmra.mrb[12].mxu1 %vm2934_vm11, %v4318_v10 }
 0x837   : > { %v4773_v44 = vmul.f32 %v4771_v62, %v4766_v15  ;;  %5884 = vmatpush3.bf16.msra.mxu1 %v5883_v48  ;;  %5712 = vmatprep.mubr.msk.f32.mxu1 %vm6423_vm13, %v6424_v42 }
 0x838   : > { %v4774_v30 = vadd.f32 %v4772_v60, %v4758_v24  ;;  %5888 = vmatprep.subr.bf16.mxu1 %v6422_v63 }
 0x839   : > { %v4775_v3 = vadd.f32 %v4773_v44, %v4759_v38 }
 0x83a   : > { %v3973_v56 = vpop.permute.xlu1 %3972  ;;  %5713 = vmatmul.mubr.msk.f32.vlgmr.msra.gmra.mrb[14].mxu1 %vm2934_vm11, %v4548_v13 }
 0x83b   : > { %v5889_v22 = vpack.c.bf16 %v4775_v3, %v4774_v30  ;;  %5678 = vmatmul.mubr.msk.f32.vlgmr.msra.gmra.mrb[8].mxu0 %vm2934_vm11, %v3973_v56  ;;  %5726 = vmatprep.mubr.msk.f32.mxu1 %vm6423_vm13, %v6424_v42 }
 0x83c   : > { %5875 = vmatpush3.bf16.msra.mxu0 %v5874_v47  ;;  %5691 = vmatprep.mubr.msk.f32.mxu0 %vm6423_vm13, %v6424_v42 }
 0x83d   : > { %5890 = vmatpush3.bf16.msra.mxu1 %v5889_v22  ;;  %5879 = vmatprep.subr.bf16.mxu0 %v6422_v63 }
 0x83e   : > { %v4203_v57 = vpop.permute.xlu1 %4202 }
 0x83f   : > { %5692 = vmatmul.mubr.msk.f32.vlgmr.msra.gmra.mrb[10].mxu0 %vm2934_vm11, %v4203_v57 }
 0x840   : > { %5881 = vmatpush3.bf16.msra.mxu0 %v5880_v37  ;;  %5705 = vmatprep.mubr.msk.f32.mxu0 %vm6423_vm13, %v6424_v42 }
 0x841   : > { %5885 = vmatprep.subr.bf16.mxu0 %v6422_v63  ;;  %5727 = vmatmul.mubr.msk.f32.vlgmr.msra.gmra.mrb[16].mxu1 %vm2934_vm11, %v4777_v29 }
 0x842   : > { %v4433_v1 = vpop.permute.xlu1 %4432 }
 0x843   : > { %5706 = vmatmul.mubr.msk.f32.vlgmr.msra.gmra.mrb[12].mxu0 %vm2934_vm11, %v4433_v1 }
 0x844   : > { %5887 = vmatpush3.bf16.msra.mxu0 %v5886_v23  ;;  %5719 = vmatprep.mubr.msk.f32.mxu0 %vm6423_vm13, %v6424_v42  ;;  %vm4621_vm13 = vcmp.eq.s32.totalorder %v6645_v45, 2 }
 0x846   : > { %v4663_v25 = vpop.permute.xlu1 %4662 }
 0x847   : > { %5720 = vmatmul.mubr.msk.f32.vlgmr.msra.gmra.mrb[14].mxu0 %vm2934_vm11, %v4663_v25  ;;  %vm4391_vm11 = vcmp.eq.s32.totalorder %v6645_v45, 4 }
 0x8c2   : > { %v3123_v50 = vpop.f32.mrb[0].mxu1 }
 0x8c3   : > { %v5623_v5 = vpop.f32.mrb[1].mxu1  ;;  %v3136_v20 = vrot.slane %v3123_v50, %v6675_v61 }
 0x8c5   : > { %v3138_v2 = vsel %vm3128_vm14, %v3136_v20, 0.0  ;;  %vm4736_vm14 = vcmp.eq.s32.totalorder %v6645_v45, 1 }
 0x8cc   : > { %v3238_v55 = vpop.f32.mrb[2].mxu1 }
 0x8cd   : > { %v3251_v63 = vrot.slane %v3238_v55, %v6675_v61  ;;  %v5630_v47 = vpop.f32.mrb[3].mxu1 }
 0x8cf   : > { %v3253_v12 = vsel %vm3243_vm15, %v3251_v63, %v3138_v2  ;;  %vm4850_vm15 = vcmp.eq.s32.totalorder %v6645_v45, 0 }
 0x8d0   : > { %v3353_v6 = vpop.f32.mrb[2].mxu0 }
 0x8d1   : > { %v3366_v42 = vrot.slane %v3353_v6, %v6675_v61  ;;  %v5637_v51 = vpop.f32.mrb[3].mxu0 }
 0x8d3   : > { %v3368_v28 = vsel %vm3358_vm2, %v3366_v42, %v3253_v12 }
 0x8dd   : > { %v3468_v59 = vpop.f32.mrb[4].mxu1 }
 0x8de   : > { %v3481_v40 = vrot.slane %v3468_v59, %v6675_v61  ;;  %v5644_v54 = vpop.f32.mrb[5].mxu1 }
 0x8e0   : > { %v3483_v26 = vsel %vm3473_vm3, %v3481_v40, %v3368_v28 }
 0x8e2   : > { %v3583_v41 = vpop.f32.mrb[4].mxu0 }
 0x8e3   : > { %v3596_v9 = vrot.slane %v3583_v41, %v6675_v61  ;;  %v5651_v35 = vpop.f32.mrb[5].mxu0 }
 0x8e5   : > { %v3598_v16 = vsel %vm3588_vm4, %v3596_v9, %v3483_v26 }
 0x8e6   : > { %v3698_v49 = vpop.f32.mrb[6].mxu1 }
 0x8e7   : > { %v3711_v17 = vrot.slane %v3698_v49, %v6675_v61  ;;  %v5658_v0 = vpop.f32.mrb[7].mxu1 }
 0x8e9   : > { %v3713_v27 = vsel %vm3703_vm5, %v3711_v17, %v3598_v16 }
 0x8ea   : > { %v3813_v53 = vpop.f32.mrb[6].mxu0 }
 0x8eb   : > { %v3826_v39 = vrot.slane %v3813_v53, %v6675_v61  ;;  %v5665_v34 = vpop.f32.mrb[7].mxu0 }
 0x8ed   : > { %v3828_v8 = vsel %vm3818_vm6, %v3826_v39, %v3713_v27 }
 0x901   : > { %v3927_v32 = vpop.f32.mrb[8].mxu1 }
 0x902   : > { %v3940_v37 = vrot.slane %v3927_v32, %v6675_v61  ;;  %v5672_v4 = vpop.f32.mrb[9].mxu1 }
 0x904   : > { %v3942_v58 = vsel %vm3932_vm7, %v3940_v37, %v3828_v8 }
 0x905   : > { %4863 = vst.msk [vmem:[#allocation6 + $0x8] sm:$0xff] %vm676_vm1, %v3942_v58  ;;  %v4157_v46 = vpop.f32.mrb[10].mxu1 }
 0x906   : > { %v5686_v18 = vpop.f32.mrb[11].mxu1  ;;  %v4170_v48 = vrot.slane %v4157_v46, %v6675_v61 }
 0x909   : > { %v4387_v21 = vpop.f32.mrb[12].mxu1 }
 0x90a   : > { %v5700_v11 = vpop.f32.mrb[13].mxu1  ;;  %v4400_v36 = vrot.slane %v4387_v21, %v6675_v61 }
 0x90d   : > { %v4617_v19 = vpop.f32.mrb[14].mxu1 }
 0x90e   : > { %v4042_v62 = vpop.f32.mrb[8].mxu0  ;;  %v5714_v14 = vpop.f32.mrb[15].mxu1  ;;  %v4630_v13 = vrot.slane %v4617_v19, %v6675_v61 }
 0x90f   : > { %v4055_v43 = vrot.slane %v4042_v62, %v6675_v61  ;;  %v5679_v52 = vpop.f32.mrb[9].mxu0 }
 0x911   : > { %v4056_v31 = vsel %vm4046_vm8, %v4055_v43, 0.0 }
 0x912   : > { %v4171_v7 = vsel %vm4161_vm9, %v4170_v48, %v4056_v31  ;;  %v4272_v10 = vpop.f32.mrb[10].mxu0 }
 0x913   : > { %v4285_v33 = vrot.slane %v4272_v10, %v6675_v61  ;;  %v5693_v60 = vpop.f32.mrb[11].mxu0 }
 0x914   : > { %v4846_v23 = vpop.f32.mrb[16].mxu1 }
 0x915   : > { %v4286_v24 = vsel %vm4276_vm10, %v4285_v33, %v4171_v7  ;;  %v5728_v15 = vpop.f32.mrb[17].mxu1  ;;  %v4859_v29 = vrot.slane %v4846_v23, %v6675_v61 }
 0x916   : > { %v4401_v38 = vsel %vm4391_vm11, %v4400_v36, %v4286_v24  ;;  %v4502_v44 = vpop.f32.mrb[12].mxu0 }
 0x917   : > { %v4515_v30 = vrot.slane %v4502_v44, %v6675_v61  ;;  %v5707_v3 = vpop.f32.mrb[13].mxu0 }
 0x919   : > { %v4516_v56 = vsel %vm4506_vm12, %v4515_v30, %v4401_v38 }
 0x91a   : > { %v4631_v22 = vsel %vm4621_vm13, %v4630_v13, %v4516_v56  ;;  %v4732_v57 = vpop.f32.mrb[14].mxu0 }
 0x91b   : > { %v4745_v1 = vrot.slane %v4732_v57, %v6675_v61  ;;  %v5721_v25 = vpop.f32.mrb[15].mxu0 }
 0x91d   : > { %v4746_v50 = vsel %vm4736_vm14, %v4745_v1, %v4631_v22 }
 0x91e   : > { %v4860_v5 = vsel %vm4850_vm15, %v4859_v29, %v4746_v50 }
 0x91f   : > { %4862 = vst.msk [vmem:[#allocation6] sm:$0xff] %vm676_vm1, %v4860_v5 }
 0x920 PF: > { %v4864_v20 = vld [vmem:[%s7814_s5] sm:$0xff]  ;;  %v4865_v55 = vld [vmem:[%s7814_s5 + $0x8] sm:$0xff]  ;;  %v4866_v61 = vld [vmem:[%s7814_s5 + $0x10] sm:$0xff] }
 0x921   : > { %v7867_v63 = vld [vmem:[#allocation21_spill] sm:$0xff]  ;;  %v5891_v45 = vpack.c.bf16 %v4865_v55, %v4864_v20  ;;  %v4867_v47 = vld [vmem:[%s7814_s5 + $0x18] sm:$0xff]  ;;  %v7868_v12 = vld [vmem:[#allocation22_spill] sm:$0xff] }
 0x922   : > { %5737 = vmatprep.mubr.msk.f32.mxu0 %vm543_vm0, %v7867_v63  ;;  %v5895_v2 = vpack.c.bf16 %v4867_v47, %v4866_v61  ;;  %v4974_v6 = vld [vmem:[%s7822_s13] sm:$0xff]  ;;  %v4975_v42 = vld [vmem:[%s7822_s13 + $0x8] sm:$0xff]  ;;  %v4976_v28 = vld [vmem:[%s7822_s13 + $0x10] sm:$0xff] }
 0x923   : > { %5892 = vmatprep.subr.bf16.mxu0 %v5891_v45  ;;  %v5899_v51 = vpack.c.bf16 %v4975_v42, %v4974_v6  ;;  %v4977_v59 = vld [vmem:[%s7822_s13 + $0x18] sm:$0xff]  ;;  %v4978_v54 = vld [vmem:[%s7822_s13 + $0x20] sm:$0xff]  ;;  %v4979_v26 = vld [vmem:[%s7822_s13 + $0x28] sm:$0xff] }
 0x924   : > { %5894 = vmatpush3.bf16.msra.mxu0 %v5891_v45  ;;  %v5903_v40 = vpack.c.bf16 %v4977_v59, %v4976_v28  ;;  %v5907_v41 = vpack.c.bf16 %v4979_v26, %v4978_v54  ;;  %v4980_v9 = vld [vmem:[%s7822_s13 + $0x30] sm:$0xff]  ;;  %v4981_v35 = vld [vmem:[%s7822_s13 + $0x38] sm:$0xff]  ;;  %v5300_v4 = vld [vmem:[%s7821_s12] ss:$0 sm:$0xff] }
 0x925   : > { %5896 = vmatprep.subr.bf16.mxu0 %v5895_v2  ;;  %5900 = vmatprep.subr.bf16.mxu1 %v5899_v51  ;;  %v5911_v16 = vpack.c.bf16 %v4981_v35, %v4980_v9  ;;  %v4945_v58 = vld [vmem:[#allocation4] sm:$0xff]  ;;  %v4946_v46 = vld [vmem:[#allocation4 + $0x8] sm:$0xff] }
 0x926   : > { %5902 = vmatpush3.bf16.msra.mxu1 %v5899_v51  ;;  %v4954_v18 = vmul.f32 %v5300_v4, %v4945_v58  ;;  %v4955_v21 = vmul.f32 %v5300_v4, %v4946_v46  ;;  %v4943_v11 = vld [vmem:[#allocation6] sm:$0xff]  ;;  %v4944_v19 = vld [vmem:[#allocation6 + $0x8] sm:$0xff] }
 0x927   : > { %5904 = vmatprep.subr.bf16.mxu1 %v5903_v40 }
 0x928   : > { %5898 = vmatpush3.bf16.msra.mxu0 %v5895_v2  ;;  %v4956_v14 = vadd.f32 %v4954_v18, %v4943_v11  ;;  %v4957_v52 = vadd.f32 %v4955_v21, %v4944_v19 }
 0x92a   : > { %5906 = vmatpush3.bf16.msra.mxu1 %v5903_v40 }
 0x92b   : > { %5738 = vmatmul.mubr.msk.f32.vlgmr.msra.gmra.mrb[0].mxu0 %vm543_vm0, %v7868_v12  ;;  %5908 = vmatprep.subr.bf16.mxu1 %v5907_v41 }
 0x92e   : > { %5910 = vmatpush3.bf16.msra.mxu1 %v5907_v41 }
 0x92f   : > { %5912 = vmatprep.subr.bf16.mxu1 %v5911_v16 }
 0x932   : > { %5914 = vmatpush3.bf16.msra.mxu1 %v5911_v16 }
 0x9fe   : > { %v5739_v49 = vpop.f32.mrb[0].mxu0 }
 0x9ff   : > { %v4959_v17 = vsub.f32 0.0, %v5739_v49  ;;  %v4934_v0 = vpop.f32.mrb[1].mxu0 }
 0xa00   : > { %v4958_v27 = vsub.f32 0.0, %v4934_v0 }
 0xa01   : > { %v4962_v53 = vmul.f32 1.442695, %v4959_v17 }
 0xa02   : > { %v4960_v39 = vmul.f32 1.442695, %v4958_v27 }
 0xa03   : > { %6251 = vpow2.f32 %v4962_v53 }
 0xa04   : > { %6253 = vpow2.f32 %v4960_v39 }
 0xa0d   : > { %v6252_v34 = vpop.eup %6251 }
 0xa0e   : > { %v6254_v8 = vpop.eup %6253  ;;  %v4965_v32 = vadd.f32 1.0, %v6252_v34 }
 0xa0f   : > { %v4964_v37 = vadd.f32 1.0, %v6254_v8 }
 0xa10   : > { %6255 = vrcp.f32 %v4965_v32 }
 0xa11   : > { %6257 = vrcp.f32 %v4964_v37 }
 0xa1a   : > { %v6256_v62 = vpop.eup %6255 }
 0xa1b   : > { %v6258_v43 = vpop.eup %6257  ;;  %v4971_v48 = vmul.f32 %v6256_v62, %v5739_v49 }
 0xa1c   : > { %v4970_v31 = vmul.f32 %v6258_v43, %v4934_v0 }
 0xa1d   : > { %v4973_v10 = vmul.f32 %v4971_v48, %v4957_v52 }
 0xa1e   : > { %v4972_v7 = vmul.f32 %v4970_v31, %v4956_v14 }
 0xa20   : > { %5756 = vmatprep.mubr.msk.f32.mxu1 %vm676_vm1, %v4972_v7 }
 0xa21   : > { %5757 = vmatmul.mubr.msk.f32.vlgmr.msra.gmra.mrb[0].mxu1 %vm676_vm1, %v4973_v10 }
 0xaef   : > { %5065 = sbr.rel (%p5256_p0) target bundleno = 2807 (0xaf7), region = 88 }
 0xaf4   : > { %v5758_v36 = vpop.f32.mrb[0].mxu1 }
 0xaf5   : > { %v5054_v33 = vpop.f32.mrb[1].mxu1  ;;  %5067 = vst.msk [vmem:[%s6722_s29 + $0x8] sm:$0xff] (!%p5256_p0), %vm543_vm0, %v5758_v36 }
 0xaf6   : > { %5066 = vst.msk [vmem:[%s6722_s29] sm:$0xff] %vm543_vm0, %v5054_v33 }
 0xaf7 PF: > { %5070 = sbr.rel (%p5277_p1) target bundleno = 2817 (0xb01), region = 92 }
 0xafd   : > { %v5071_v60 = vld [vmem:[%s6722_s29] sm:$0xff] (!%p5277_p1)  ;;  %v5072_v23 = vld [vmem:[%s6722_s29 + $0x8] sm:$0xff] (!%p5277_p1) }
 0xafe   : > { %v5073_v24 = vadd.f32 %v5071_v60, %v5054_v33  ;;  %v5074_v15 = vadd.f32 %v5758_v36, %v5072_v23 }
 0xb00   : > { %5075 = vst.msk [vmem:[%s6722_s29] sm:$0xff] %vm543_vm0, %v5073_v24  ;;  %5076 = vst.msk [vmem:[%s6722_s29 + $0x8] sm:$0xff] %vm543_vm0, %v5074_v15 }
 0xb01 PF: > { %s7840_s21 = sshll.u32 %s6373_s22, 8  ;;  %s5096_s25 = sshll.u32 %s6722_s29, 4  ;;  %s7715_s25 = int_to_ptr.vmem [resolvable:$true] %s5096_s25 }
 0xb02   : > { %s7712_s24 = scalar_lea.hbm %s7823_s14, %s7840_s21  ;;  %s5078_s16 = scalar_lea.sflag [#allocation8], %s6584_s27 }
 0xb03   : > { %s6259_s17 = scalar_lea.vmem %s7715_s25, 256  ;;  %s6429_s23 = smov [#allocation7]  }
 0xb04   : > { %p6260_p2 = scmp.ne.s32.totalorder %s7715_s25, %s6259_s17  ;;  %s6263_s26 = sshll.u32 %s6429_s23, 4  ;;  %s6264_s26 = int_to_ptr.vmem [resolvable:$false] %s6263_s26 }
 0xb05   : > { %s6265_s0 = scalar_lea.vmem %s6264_s26, 512  ;;  %p6266_p6 = scmp.lt.s32.totalorder %s7715_s25, %s6264_s26 }
 0xb06   : > { %p6261_p4 = pnand %p6260_p2, %p6562_p3  ;;  %p6267_p7 = scmp.lt.s32.totalorder %s6265_s0, %s6259_s17 }
 0xb08   : > { %p6262_p5 = pneg %p6261_p4  ;;  %p6268_p8 = por %p6267_p7, %p6266_p6 }
 0xb0a   : > { %p6269_p10 = pnand %p6268_p8, %p6262_p5 }
 0xb0c   : > { %6272 = shalt.err (!%p6269_p10)
}
 0xb0d   : > { %s6273_s29 = scalar_lea.hbm %s7712_s24, 256  ;;  %s6277_s23 = scalar_lea.hbm %s7823_s14, 512 }
 0xb0e   : > { %p6274_p11 = scmp.ne.s32.totalorder %s7712_s24, %s6273_s29  ;;  %p6278_p0 = scmp.lt.u32.totalorder %s7712_s24, %s7823_s14 }
 0xb0f   : > { %p6279_p1 = scmp.lt.u32.totalorder %s6277_s23, %s6273_s29  ;;  %p6281_p4 = scmp.lt.u32.totalorder %s6273_s29, %s7712_s24 }
 0xb10   : > { %p6275_p12 = pnand %p6274_p11, %p6562_p3 }
 0xb11   : > { %p6280_p2 = por %p6279_p1, %p6278_p0 }
 0xb12   : > { %p6276_p13 = pneg %p6275_p12 }
 0xb13   : > { %p6282_p5 = por %p6281_p4, %p6280_p2 }
 0xb15   : > { %p6283_p6 = pnand %p6282_p5, %p6276_p13 }
 0xb17   : > { %6286 = shalt.err (!%p6283_p6)
}
 0xb18   : > { %s6430_s0 = smov 128   ;;  %s6431_s17 = smov 8  }
 0xb19   : > { %5915 = dma.vmem_to_hbm [thread:$0]  (%p6562_p3), %s7715_s25, 256, %s7712_s24, %s5078_s16, %s6430_s0, %s6430_s0, %s6431_s17  }
 0xb1a   : > { %s7869_s21 = sshll.u32 %s6373_s22, 8  ;;  %s7870_s18 = sld [smem:[#allocation28_spill]] }
 0xb1b   : > { %s5112_s1 = sshll.u32 %s6597_s28, 4  ;;  %s5083_s2 = scalar_lea.sflag [#allocation10], %s6584_s27  ;;  %s7752_s1 = int_to_ptr.vmem [resolvable:$true] %s5112_s1 }
 0xb1c   : > { %s6287_s3 = scalar_lea.vmem %s7752_s1, 256  ;;  %s6432_s4 = smov [#allocation9]  }
 0xb1d   : > { %p6288_p7 = scmp.ne.s32.totalorder %s7752_s1, %s6287_s3  ;;  %s6291_s24 = sshll.u32 %s6432_s4, 4  ;;  %s6292_s24 = int_to_ptr.vmem [resolvable:$false] %s6291_s24 }
 0xb1e   : > { %s6293_s22 = scalar_lea.vmem %s6292_s24, 512  ;;  %p6294_p11 = scmp.lt.s32.totalorder %s7752_s1, %s6292_s24 }
 0xb1f   : > { %p6289_p8 = pnand %p6288_p7, %p6562_p3  ;;  %p6295_p12 = scmp.lt.s32.totalorder %s6293_s22, %s6287_s3 }
 0xb20   : > { %s7871_s26 = smov %s7870_s18  ;;  %s7749_s23 = scalar_lea.hbm %s7870_s18, %s7869_s21 }
 0xb21   : > { %p6290_p10 = pneg %p6289_p8  ;;  %p6296_p13 = por %p6295_p12, %p6294_p11 }
 0xb23   : > { %p6297_p0 = pnand %p6296_p13, %p6290_p10 }
 0xb25   : > { %6300 = shalt.err (!%p6297_p0)
}
 0xb26   : > { %s6301_s28 = scalar_lea.hbm %s7749_s23, 256  ;;  %s6305_s4 = scalar_lea.hbm %s7871_s26, 512 }
 0xb27   : > { %p6302_p1 = scmp.ne.s32.totalorder %s7749_s23, %s6301_s28  ;;  %p6306_p5 = scmp.lt.u32.totalorder %s7749_s23, %s7871_s26 }
 0xb28   : > { %p6307_p6 = scmp.lt.u32.totalorder %s6305_s4, %s6301_s28  ;;  %p6309_p8 = scmp.lt.u32.totalorder %s6301_s28, %s7749_s23 }
 0xb29   : > { %p6303_p2 = pnand %p6302_p1, %p6562_p3 }
 0xb2a   : > { %p6308_p7 = por %p6307_p6, %p6306_p5 }
 0xb2b   : > { %p6304_p4 = pneg %p6303_p2 }
 0xb2c   : > { %p6310_p10 = por %p6309_p8, %p6308_p7 }
 0xb2e   : > { %p6311_p11 = pnand %p6310_p10, %p6304_p4 }
 0xb30   : > { %6314 = shalt.err (!%p6311_p11)
}
 0xb31   : > { %5916 = dma.vmem_to_hbm [thread:$0]  (%p6562_p3), %s7752_s1, 256, %s7749_s23, %s5083_s2, %s6430_s0, %s6430_s0, %s6431_s17  }
 0xb32 PF: > { %s7872_s3 = sld [smem:[#allocation16_spill]]  ;;  %s7873_s15 = sld [smem:[#allocation13_spill]] }
 0xb38   : > { %p5926_p12 = scmp.ge.s32.totalorder %s7872_s3, 2  ;;  %s5127_s24 = sand.u32 1, %s7873_s15  }
 0xb39   : > { %s5128_s22 = scalar_lea.sflag [#allocation8], %s5127_s24 }
 0xb3a   : > { %p5920_p13 = pnand %p5926_p12, %p6572_p9 }
 0xb3c   : > { %6348 = dma.done.wait (!%p5920_p13), %s5128_s22, 256  }
 0xb3d   : > { %6350 = vsyncadd (!%p5920_p13), %s5128_s22, 4294967040  ;;  %s5137_s30 = scalar_lea.sflag [#allocation10], %s5127_s24 }
 0xb3e   : > { %6352 = dma.done.wait (!%p5920_p13), %s5137_s30, 256  }
 0xb3f   : > { %6354 = vsyncadd (!%p5920_p13), %s5137_s30, 4294967040  ;;  %s32_s25 = sadd.s32 1, %s7872_s3   ;;  %s7875_s1 = sld [smem:[#allocation20_spill]] }
 0xb40   : > { %p29_p0 = scmp.ge.s32.totalorder %s32_s25, 6   ;;  %s7876_s21 = sld [smem:[#allocation14_spill]] }
 0xb41   : > { %s7877_s22 = sld [smem:[#allocation15_spill]]  ;;  %s7878_s23 = sld [smem:[#allocation17_spill]] }
 0xb42   : > { %s7879_s24 = sld [smem:[#allocation18_spill]]  ;;  %s7880_s18 = smov %s6361_s19 }
 0xb43   : > { %s7881_s19 = smov %s6365_s20  ;;  %31 = sbr.rel (!%p29_p0) target bundleno = 14 (0xe), region = 150 }
 0xb45   : > { %s7882_s20 = smov %s7875_s1 }
 0xb4a   :  { %5142 = vsyncpa [#allocation8], 1 }
 0xb4b   :  { %5144 = vsyncpa [#allocation8 + $0x1], 1 }
 0xb4c   :  { %5145 = vsyncpa [#allocation10], 1 }
 0xb4d   :  { %5147 = vsyncpa [#allocation10 + $0x1], 1 }

// kernel: basic_layer_forward.2
= control target key start
LH: loop header
LB: loop body
LE: loop exit
PB: predicated region body
PF: predicated region fallthrough
CT: control target
= control target key end

     0   :  { %s6342_s18 = smov 0   ;;  %s6344_s19 = smov 0   ;;  %s7505_s0 = inlined_call_operand.vmem [shape: f32[2,16,32], index: 0, kind: input, shape index: {}]   ;;  %s7506_s1 = inlined_call_operand.vmem [shape: f32[2,16,32], index: 1, kind: input, shape index: {}]   ;;  %s7507_s2 = inlined_call_operand.vmem [shape: f32[1,32], index: 2, kind: input, shape index: {}]   ;;  %s7508_s3 = inlined_call_operand.vmem [shape: f32[1,32], index: 3, kind: input, shape index: {}]   ;;  %s7509_s4 = inlined_call_operand.vmem [shape: f32[32,64], index: 4, kind: input, shape index: {}]   ;;  %s7510_s5 = inlined_call_operand.vmem [shape: f32[32,64], index: 5, kind: input, shape index: {}]   ;;  %s7511_s6 = inlined_call_operand.vmem [shape: f32[4,64], index: 6, kind: input, shape index: {}]   ;;  %s7512_s7 = inlined_call_operand.vmem [shape: f32[1,64], index: 7, kind: input, shape index: {}]   ;;  %s7513_s8 = inlined_call_operand.vmem [shape: f32[64,34], index: 8, kind: input, shape index: {}]   ;;  %s7514_s9 = inlined_call_operand.vmem [shape: f32[2,64], index: 9, kind: input, shape index: {}]   ;;  %s7515_s10 = inlined_call_operand.vmem [shape: f32[1,64], index: 10, kind: input, shape index: {}]   ;;  %s7516_s11 = inlined_call_operand.vmem [shape: f32[16,64], index: 11, kind: input, shape index: {}]   ;;  %s7517_s12 = inlined_call_operand.vmem [shape: f32[1,64], index: 12, kind: input, shape index: {}]   ;;  %s7518_s13 = inlined_call_operand.vmem [shape: f32[64,32], index: 13, kind: input, shape index: {}]   ;;  %s7519_s14 = inlined_call_operand.vmem [shape: f32[2,16,32], index: 14, kind: output, shape index: {0}]   ;;  %s7520_s15 = inlined_call_operand.vmem [shape: f32[2,16,32], index: 15, kind: output, shape index: {1}]  }
   0x1   :  { %s6346_s20 = smov 0   ;;  %s6348_s21 = smov 0  }
   0x2   :  { %s6350_s22 = smov 0  }
   0x3 LB: > { %7530 = sst [smem:[#allocation7_spill]] %s6210_s20  ;;  %s35_s23 = sadd.s32 1, %s6210_s20  ;;  %s6218_s22 = sphi %s6350_s22, %s26_s22   ;;  %s6214_s21 = sphi %s6348_s21, %s7545_s21   ;;  %s6210_s20 = sphi %s6346_s20, %s7544_s20   ;;  %s6206_s19 = sphi %s6344_s19, %s7543_s19   ;;  %s6202_s18 = sphi %s6342_s18, %s7542_s18  }
   0x4   : > { %7531 = sst [smem:[#allocation8_spill]] %s6214_s21  ;;  %s38_s24 = sadd.s32 1, %s6214_s21 }
   0x5   : > { %7532 = sst [smem:[#allocation9_spill]] %s6218_s22  ;;  %p36_p0 = scmp.ge.s32.totalorder %s35_s23, 2 }
   0x6   : > { %p5199_p1 = scmp.ge.s32.totalorder %s6218_s22, 1  ;;  %p462_p2 = scmp.lt.s32.totalorder %s6218_s22, 5 }
   0x7   : > { %s7547_s23 = smov (%p36_p0, %s35_s23), 0  ;;  %s7549_s24 = smov (!%p36_p0, %s38_s24), %s6214_s21 }
   0x8   : > { %7533 = sst [smem:[#allocation10_spill]] %s7547_s23  ;;  %p463_p3 = pnand %p5199_p1, %p462_p2 }
   0x9   : > { %p40_p4 = scmp.ge.s32.totalorder %s7549_s24, 2 }
   0xa   : > { %466 = sbr.rel (%p463_p3) target bundleno = 2794 (0xaea), region = 76 }
   0xb   : > { %s7551_s24 = smov (%p40_p4, %s7549_s24), 0 }
   0xc   : > { %7534 = sst [smem:[#allocation11_spill]] %s7551_s24 }
  0x11   : > { %p520_p5 = scmp.lt.s32.totalorder %s6206_s19, 1  ;;  %vm547_vm0 = vcmask 261120   ;;  %v595_v18 = vld [vmem:[%s7509_s4] sm:$0xff]  ;;  %v596_v19 = vld [vmem:[%s7509_s4 + $0x8] sm:$0xff]  ;;  %v597_v20 = vld [vmem:[%s7509_s4 + $0x10] sm:$0xff]  ;;  %vm680_vm1 = vcmask 523264   ;;  %v692_v41 = vlaneseq }
  0x12   : > { %v5718_v21 = vpack.c.bf16 %v596_v19, %v595_v18  ;;  %v598_v22 = vld [vmem:[%s7509_s4 + $0x18] sm:$0xff]  ;;  %v5208_v31 = vld [vmem:[%s7507_s2] ss:$0 sm:$0xff]  ;;  %v6220_v40 = vmov 0.0   ;;  %v760_v43 = vld [vmem:[%s7513_s8 + $0x8] sm:$0xff]  ;;  %p540_p6 = scmp.eq.s32.totalorder %s6202_s18, 0 }
  0x13   : > { %s7553_s19 = smov (!%p520_p5, %s6206_s19), 1  ;;  %v5722_v23 = vpack.c.bf16 %v598_v22, %v597_v20  ;;  %v5209_v33 = vld [vmem:[%s7508_s3] ss:$0 sm:$0xff]  ;;  %681 = vst.msk [vmem:[#allocation2] sm:$0xff] %vm680_vm1, %v6220_v40  ;;  %683 = vst.msk [vmem:[#allocation2 + $0x10] sm:$0xff] %vm680_vm1, %v6220_v40  ;;  %v761_v44 = vld [vmem:[%s7513_s8 + $0x10] sm:$0xff] }
  0x14   : > { %s5272_s25 = sshll.u32 %s7553_s19, 4  ;;  %5719 = vmatprep.subr.bf16.mxu0 %v5718_v21  ;;  %684 = vst.msk [vmem:[#allocation2 + $0x18] sm:$0xff] %vm680_vm1, %v6220_v40  ;;  %682 = vst.msk [vmem:[#allocation2 + $0x8] sm:$0xff] %vm680_vm1, %v6220_v40  ;;  %v759_v42 = vld [vmem:[%s7513_s8] sm:$0xff]  ;;  %v6433_v45 = vshrl.u32 %v692_v41, 7  ;;  %v978_v46 = vand.u32 127, %v692_v41 }
  0x15   : > { %s524_s28 = scalar_lea.vmem %s7505_s0, %s5272_s25  ;;  %s529_s16 = scalar_lea.vmem %s7506_s1, %s5272_s25  ;;  %5721 = vmatpush3.bf16.msra.mxu0 %v5718_v21  ;;  %v5726_v47 = vpack.c.bf16 %v760_v43, %v759_v42  ;;  %v762_v48 = vld [vmem:[%s7513_s8 + $0x18] sm:$0xff]  ;;  %v763_v50 = vld [vmem:[%s7513_s8 + $0x20] sm:$0xff]  ;;  %v764_v51 = vld [vmem:[%s7513_s8 + $0x28] sm:$0xff]  ;;  %vm869_vm4 = vcmask 1041408   ;;  %vm864_vm5 = vcmask 15360  }
  0x16   : > { %s6383_s23 = scalar_lea.vmem %s7519_s14, %s5272_s25  ;;  %s539_s24 = scalar_lea.vmem %s7520_s15, %s5272_s25  ;;  %v541_v0 = vld [vmem:[%s529_s16] sm:$0xff]  ;;  %v542_v2 = vld [vmem:[%s529_s16 + $0x8] sm:$0xff]  ;;  %5723 = vmatprep.subr.bf16.mxu0 %v5722_v23  ;;  %v5730_v49 = vpack.c.bf16 %v762_v48, %v761_v44  ;;  %v6445_v52 = vadd.s32 8, %v6433_v45  ;;  %vm979_vm2 = vcmp.eq.s32.totalorder %v6433_v45, %v978_v46  ;;  %v5734_v54 = vpack.c.bf16 %v764_v51, %v763_v50  ;;  %v765_v56 = vld [vmem:[%s7513_s8 + $0x30] sm:$0xff] }
  0x17   : > { %v543_v1 = vld [vmem:[%s524_s28] sm:$0xff]  ;;  %v544_v4 = vld [vmem:[%s524_s28 + $0x8] sm:$0xff]  ;;  %5727 = vmatprep.subr.bf16.mxu1 %v5726_v47  ;;  %v6448_v53 = vsel %vm979_vm2, 1.0, %v6220_v40  ;;  %v766_v57 = vld [vmem:[%s7513_s8 + $0x38] sm:$0xff]  ;;  %s688_s21 = scalar_select %p540_p6, 5, 11 }
  0x18   : > { %v545_v3 = vadd.f32 %v543_v1, %v541_v0  ;;  %v546_v5 = vadd.f32 %v544_v4, %v542_v2  ;;  %5729 = vmatpush3.bf16.msra.mxu1 %v5726_v47  ;;  %vm980_vm3 = vcmp.eq.s32.totalorder %v6445_v52, %v978_v46  ;;  %v5738_v58 = vpack.c.bf16 %v766_v57, %v765_v56  ;;  %s700_s22 = scalar_select %p540_p6, 6, 10  ;;  %v687_v63 = vld [vmem:[%s7511_s6] sm:$0xf] }
  0x19   : > { %5725 = vmatpush3.bf16.msra.mxu0 %v5722_v23  ;;  %5731 = vmatprep.subr.bf16.mxu1 %v5730_v49  ;;  %v6451_v55 = vsel %vm980_vm3, 1.0, %v6220_v40  ;;  %v6463_v61 = vsub.s32 0, %v6433_v45  ;;  %v6466_v62 = vsub.s32 1, %v6433_v45  ;;  %s712_s26 = scalar_select %p540_p6, 7, 9  ;;  %v6472_v0 = vsub.s32 2, %v6433_v45 }
  0x1a   : > { %v550_v6 = vsel %vm547_vm0, %v545_v3, 0.0  ;;  %548 = vst.msk [vmem:[%s539_s24] sm:$0xff] %vm547_vm0, %v545_v3  ;;  %549 = vst.msk [vmem:[%s539_s24 + $0x8] sm:$0xff] %vm547_vm0, %v546_v5  ;;  %v553_v7 = vsel %vm547_vm0, %v546_v5, 0.0  ;;  %s689_s27 = scalar_lea.vmem [#allocation2], %s688_s21  ;;  %s701_s28 = scalar_lea.vmem [#allocation2], %s700_s22 }
  0x1b   : > { %551 = vadd.xlane.f32.xlu0 %v550_v6  ;;  %v695_v1 = vrot.slane %v687_v63, %v6463_v61  ;;  %v707_v2 = vrot.slane %v687_v63, %v6466_v62  ;;  %v719_v4 = vrot.slane %v687_v63, %v6472_v0  ;;  %s713_s29 = scalar_lea.vmem [#allocation2], %s712_s26  ;;  %v850_v46 = vld [vmem:[%s7514_s9] sm:$0x3]  ;;  %s6221_s20 = smov 96  }
  0x1c   : > { %5733 = vmatpush3.bf16.msra.mxu1 %v5730_v49  ;;  %5445 = vmatprep.subr.msk.mxu0 %vm869_vm4, %v850_v46  ;;  %v6496_v51 = vld [vmem:[%s7516_s11] sm:$0xff]  ;;  %p5221_p7 = scmp.ne.s32.totalorder %s6202_s18, 0 }
  0x1d   : > { %5735 = vmatprep.subr.bf16.mxu1 %v5734_v54  ;;  %v5215_v56 = vld [vmem:[%s7515_s10] ss:$0 sm:$0xff]  ;;  %vm996_vm6 = vcmask (!%p5221_p7), 130048   ;;  %vm6236_vm8 = vmmov (!%p5221_p7), 0   ;;  %vm1188_vm9 = vcmp.eq.s32.totalorder (!%p5221_p7), %v6433_v45, 0  ;;  %vm1303_vm10 = vcmp.eq.s32.totalorder (!%p5221_p7), %v6433_v45, 1 }
  0x1e   : > { %vm5743_vm7 = vmpackc.low (!%p5221_p7), %vm996_vm6, %vm996_vm6  ;;  %vm1418_vm11 = vcmp.eq.s32.totalorder (!%p5221_p7), %v6433_v45, 2  ;;  %vm1533_vm12 = vcmp.eq.s32.totalorder (!%p5221_p7), %v6433_v45, 3  ;;  %vm1648_vm13 = vcmp.eq.s32.totalorder (!%p5221_p7), %v6433_v45, 4  ;;  %vm1763_vm14 = vcmp.eq.s32.totalorder (!%p5221_p7), %v6433_v45, 5 }
  0x1f   : > { %554 = vadd.xlane.f32.xlu0 %v553_v7  ;;  %vm1878_vm15 = vcmp.eq.s32.totalorder (!%p5221_p7), %v6433_v45, 6  ;;  %vm1993_vm2 = vcmp.eq.s32.totalorder (!%p5221_p7), %v6433_v45, 7  ;;  %vm2108_vm3 = vcmp.eq.s32.totalorder (!%p5221_p7), %v6445_v52, 8 }
  0x20   : > { %5737 = vmatpush3.bf16.msra.mxu1 %v5734_v54  ;;  %v6501_v54 = vld [vmem:[%s7516_s11 + $0x8] sm:$0xff] }
  0x21   : > { %5739 = vmatprep.subr.bf16.mxu1 %v5738_v58 }
  0x24   : > { %5741 = vmatpush3.bf16.msra.mxu1 %v5738_v58 }
  0xa8   : > { %v552_v8 = vpop.xlane.xlu0 %551 }
  0xa9   : > { %v557_v9 = vmul.f32 0.03125, %v552_v8 }
  0xab   : > { %v559_v10 = vsub.f32 %v545_v3, %v557_v9  ;;  %v6477_v3 = vsub.s32 3, %v6433_v45 }
  0xac   : > { %v555_v11 = vpop.xlane.xlu0 %554 }
  0xad   : > { %v558_v12 = vmul.f32 0.03125, %v555_v11  ;;  %v561_v13 = vmul.f32 %v559_v10, %v559_v10 }
  0xaf   : > { %v560_v14 = vsub.f32 %v546_v5, %v558_v12  ;;  %v563_v15 = vsel %vm547_vm0, %v561_v13, 0.0 }
  0xb0   : > { %564 = vadd.xlane.f32.xlu1 %v563_v15 }
  0xb1   : > { %v562_v16 = vmul.f32 %v560_v14, %v560_v14 }
  0xb3   : > { %v566_v17 = vsel %vm547_vm0, %v562_v16, 0.0 }
  0xb4   : > { %567 = vadd.xlane.f32.xlu1 %v566_v17 }
 0x13d   : > { %v565_v24 = vpop.xlane.xlu1 %564 }
 0x13e   : > { %v569_v25 = vmul.f32 0.03125, %v565_v24 }
 0x140   : > { %v571_v26 = vadd.f32 1e-05, %v569_v25 }
 0x141   : > { %v568_v27 = vpop.xlane.xlu1 %567 }
 0x142   : > { %5956 = vrsqrt.f32 %v571_v26  ;;  %v570_v28 = vmul.f32 0.03125, %v568_v27  ;;  %v5212_v26 = vld [vmem:[%s7512_s7] ss:$0 sm:$0xff] }
 0x144   : > { %v572_v29 = vadd.f32 1e-05, %v570_v28 }
 0x146   : > { %5958 = vrsqrt.f32 %v572_v29 }
 0x14c   : > { %v5957_v30 = vpop.eup %5956 }
 0x14d   : > { %v575_v32 = vmul.f32 %v5957_v30, %v559_v10 }
 0x14f   : > { %v584_v34 = vmul.f32 %v5208_v31, %v575_v32 }
 0x150   : > { %v5959_v35 = vpop.eup %5958 }
 0x151   : > { %v576_v36 = vmul.f32 %v5959_v35, %v560_v14  ;;  %v6412_v37 = vadd.f32 %v5209_v33, %v584_v34  ;;  %v729_v14 = vrot.slane %v687_v63, %v6477_v3 }
 0x153   : > { %7535 = vst [vmem:[#allocation12_spill] sm:$0xff] %v6412_v37  ;;  %v585_v38 = vmul.f32 %v5208_v31, %v576_v36  ;;  %5423 = vmatprep.mubr.msk.f32.mxu0 %vm547_vm0, %v6412_v37 }
 0x155   : > { %v6416_v39 = vadd.f32 %v5209_v33, %v585_v38 }
 0x157   : > { %7536 = vst [vmem:[#allocation13_spill] sm:$0xff] %v6416_v39  ;;  %5424 = vmatmul.mubr.msk.f32.vlgmr.msra.gmra.mrb[0].mxu0 %vm547_vm0, %v6416_v39 }
 0x158   : > { %5446 = vmatpush3.msk.msra.mxu0 %vm869_vm4, %v850_v46  ;;  %v6238_v46 = vmov (!%p5221_p7), 12   ;;  %vm2223_vm4 = vcmp.eq.s32.totalorder (!%p5221_p7), %v6445_v52, 9 }
 0x22a   : > { %v5425_v59 = vpop.f32.mrb[0].mxu0 }
 0x22b   : > { %686 = vst.msk [vmem:[#allocation2 + $0x10] sm:$0xff] %vm680_vm1, %v5425_v59  ;;  %v671_v60 = vpop.f32.mrb[1].mxu0 }
 0x22c   : > { %685 = vst.msk [vmem:[#allocation2 + $0x8] sm:$0xff] %vm680_vm1, %v671_v60 }
 0x232   : > { %v725_v19 = vld [vmem:[#allocation2 + $0x10] sm:$0xff] }
 0x233   : > { %v690_v5 = vld [vmem:[%s689_s27] sm:$0xff]  ;;  %v691_v6 = vld [vmem:[%s689_s27 + $0x8] sm:$0xff]  ;;  %v731_v25 = vmul.f32 %v729_v14, %v725_v19 }
 0x234   : > { %v702_v7 = vld [vmem:[%s701_s28] sm:$0xff]  ;;  %v696_v8 = vmul.f32 %v695_v1, %v690_v5  ;;  %v697_v9 = vmul.f32 %v695_v1, %v691_v6  ;;  %v703_v10 = vld [vmem:[%s701_s28 + $0x8] sm:$0xff]  ;;  %s6222_s28 = smov (!%p5221_p7), 112  }
 0x235   : > { %v708_v11 = vmul.f32 %v707_v2, %v702_v7  ;;  %v714_v12 = vld [vmem:[%s713_s29] sm:$0xff]  ;;  %v715_v13 = vld [vmem:[%s713_s29 + $0x8] sm:$0xff]  ;;  %v709_v15 = vmul.f32 %v707_v2, %v703_v10 }
 0x236   : > { %v724_v16 = vld [vmem:[#allocation2 + $0x8] sm:$0xff]  ;;  %v720_v18 = vmul.f32 %v719_v4, %v714_v12  ;;  %v721_v21 = vmul.f32 %v719_v4, %v715_v13 }
 0x237   : > { %v710_v17 = vadd.f32 %v708_v11, %v696_v8  ;;  %v711_v20 = vadd.f32 %v709_v15, %v697_v9  ;;  %v730_v23 = vmul.f32 %v729_v14, %v724_v16 }
 0x239   : > { %v722_v22 = vadd.f32 %v720_v18, %v710_v17  ;;  %v723_v24 = vadd.f32 %v721_v21, %v711_v20 }
 0x23b   : > { %v732_v27 = vadd.f32 %v730_v23, %v722_v22  ;;  %v733_v28 = vadd.f32 %v731_v25, %v723_v24 }
 0x23d   : > { %v741_v29 = vadd.f32 %v5212_v26, %v732_v27  ;;  %v742_v30 = vadd.f32 %v5212_v26, %v733_v28  ;;  %v6223_v27 = vmov (!%p5221_p7), 1   ;;  %v6224_v28 = vmov (!%p5221_p7), 0  }
 0x23e   : > { %5981 = vset.pattern.permute.xlu1 (!%p5221_p7), %v6223_v27  ;;  %5980 = vset.pattern.permute.xlu0 (!%p5221_p7), %v6224_v28 }
 0x23f   : > { %v743_v31 = vsub.f32 0.0, %v741_v29  ;;  %v744_v32 = vsub.f32 0.0, %v742_v30 }
 0x241   : > { %v745_v33 = vmul.f32 1.442695, %v743_v31  ;;  %v747_v34 = vmul.f32 1.442695, %v744_v32  ;;  %v6225_v31 = vmov (!%p5221_p7), 2   ;;  %v6226_v32 = vmov (!%p5221_p7), 3  }
 0x243   : > { %5960 = vpow2.f32 %v745_v33  ;;  %v6227_v33 = vmov (!%p5221_p7), 4  }
 0x244   : > { %5962 = vpow2.f32 %v747_v34  ;;  %v6228_v34 = vmov (!%p5221_p7), 6  }
 0x24d   : > { %v5961_v35 = vpop.eup %5960 }
 0x24e   : > { %v5963_v36 = vpop.eup %5962  ;;  %v749_v38 = vadd.f32 1.0, %v5961_v35  ;;  %v6229_v35 = vmov (!%p5221_p7), 5  }
 0x24f   : > { %v750_v40 = vadd.f32 1.0, %v5963_v36  ;;  %v6230_v36 = vmov (!%p5221_p7), 9  }
 0x250   : > { %5964 = vrcp.f32 %v749_v38  ;;  %v6231_v38 = vmov (!%p5221_p7), 7  }
 0x251   : > { %5966 = vrcp.f32 %v750_v40  ;;  %v6232_v40 = vmov (!%p5221_p7), 11  }
 0x25a   : > { %v5965_v41 = vpop.eup %5964 }
 0x25b   : > { %v5967_v42 = vpop.eup %5966  ;;  %v755_v43 = vmul.f32 %v5965_v41, %v741_v29  ;;  %v6233_v41 = vmov (!%p5221_p7), 8  }
 0x25c   : > { %v756_v44 = vmul.f32 %v5967_v42, %v742_v30  ;;  %v6234_v42 = vmov (!%p5221_p7), 10  }
 0x25d   : > { %757 = vst.msk [vmem:[#allocation4] sm:$0xff] %vm680_vm1, %v755_v43  ;;  %5442 = vmatprep.mubr.msk.f32.mxu1 %vm680_vm1, %v755_v43  ;;  %v7526_v43 = vmov (!%p5221_p7), 0.0|0.0  }
 0x25e   : > { %758 = vst.msk [vmem:[#allocation4 + $0x8] sm:$0xff] %vm680_vm1, %v756_v44  ;;  %5443 = vmatmul.mubr.msk.f32.vlgmr.msra.gmra.mrb[0].mxu1 %vm680_vm1, %v756_v44  ;;  %5748 = vmatprep.subr.bf16.mxu1 (!%p5221_p7), %v7526_v43  ;;  %v7524_v44 = vmov (!%p5221_p7), 0.0  }
 0x25f   : > { %5461 = vmatprep.mubr.msk.f32.mxu1 (!%p5221_p7), %vm6236_vm8, %v7524_v44 }
 0x331   : > { %v5444_v47 = vpop.f32.mrb[0].mxu1 }
 0x332   : > { %849 = vst.msk [vmem:[#allocation5 + $0x8] sm:$0xff] %vm547_vm0, %v5444_v47  ;;  %862 = vrot.lane.b32.xlu1 %v5444_v47, %s6221_s20  ;;  %v839_v48 = vpop.f32.mrb[1].mxu1 }
 0x333   : > { %848 = vst.msk [vmem:[#allocation5] sm:$0xff] %vm547_vm0, %v839_v48  ;;  %860 = vrot.lane.b32.xlu0 %v839_v48, %s6221_s20 }
 0x339   : > { %v6513_v24 = vld [vmem:[#allocation5 + $0x8] sm:$0xff] (!%p5221_p7) }
 0x33a   : > { %v6511_v23 = vld [vmem:[#allocation5] sm:$0xff] (!%p5221_p7) }
 0x33b   : > { %v5742_v25 = vpack.c.bf16 (!%p5221_p7), %v6513_v24, %v6511_v23  ;;  %1114 = vrot.lane.b32.xlu0 (!%p5221_p7), %v6511_v23, %s6222_s28  ;;  %v1228_v26 = vrot.slane (!%p5221_p7), %v6511_v23, 1  ;;  %v1343_v47 = vrot.slane (!%p5221_p7), %v6511_v23, 2  ;;  %v1458_v48 = vrot.slane (!%p5221_p7), %v6511_v23, 3 }
 0x33d   : > { %5744 = vmatprep.subr.msk.bf16.mxu0 (!%p5221_p7), %vm5743_vm7, %v5742_v25  ;;  %1229 = vrot.lane.b32.xlu1 (!%p5221_p7), %v1228_v26, %s6222_s28 }
 0x3a4   : > { %v863_v50 = vpop.permute.xlu1 %862 }
 0x3a5   : > { %v861_v49 = vpop.permute.xlu0 %860 }
 0x3a6   : > { %5447 = vmatprep.mubr.msk.f32.mxu0 %vm864_vm5, %v861_v49  ;;  %v1688_v49 = vrot.slane (!%p5221_p7), %v6511_v23, 5 }
 0x3a7   : > { %5448 = vmatmul.mubr.msk.f32.vlgmr.msra.gmra.mrb[2].mxu0 %vm864_vm5, %v863_v50  ;;  %v6239_v50 = vmov (!%p5221_p7), 13   ;;  %vm2338_vm5 = vcmp.eq.s32.totalorder (!%p5221_p7), %v6445_v52, 10 }
 0x3a8   : > { %5454 = vmatprep.mubr.msk.f32.mxu0 (!%p5221_p7), %vm996_vm6, %v6448_v53  ;;  %5747 = vmatpush3.bf16.xpose.msk.msra.mxu0 (!%p5221_p7), %vm5743_vm7, %v5742_v25  ;;  %vm2568_vm7 = vcmp.eq.s32.totalorder (!%p5221_p7), %v6445_v52, 12 }
 0x3a9   : > { %5754 = vmatprep.subr.bf16.mxu0 (!%p5221_p7), %v7526_v43 }
 0x3ad   : > { %v6630_v26 = vpop.permute.xlu0 (!%p5221_p7), %1114 }
 0x3af   : > { %5455 = vmatmul.mubr.msk.f32.vlgmr.msra.gmra.mrb[0].mxu0 (!%p5221_p7), %vm996_vm6, %v6451_v55 }
 0x3b0   : > { %5475 = vmatprep.mubr.msk.f32.mxu0 (!%p5221_p7), %vm6236_vm8, %v7524_v44 }
 0x47a   : > { %v5449_v57 = vpop.f32.mrb[2].mxu0 }
 0x47b   : > { %v945_v58 = vadd.f32 %v5449_v57, %v5215_v56  ;;  %v939_v59 = vpop.f32.mrb[3].mxu0  ;;  %v1573_v57 = vrot.slane (!%p5221_p7), %v6511_v23, 4 }
 0x47c   : > { %v940_v60 = vadd.f32 %v5215_v56, %v939_v59  ;;  %v6240_v56 = vmov (!%p5221_p7), 14   ;;  %v6241_v59 = vmov (!%p5221_p7), 15  }
 0x47d   : > { %v949_v63 = vmax.f32 %v945_v58, 0.0 }
 0x47e   : > { %v948_v1 = vmax.f32 %v940_v60, 0.0 }
 0x47f   : > { %v951_v2 = vsub.f32 %v945_v58, %v949_v63  ;;  %v957_v4 = vsub.f32 0.0, %v949_v63  ;;  %v2147_v58 = vrot.slane (!%p5221_p7), %v6513_v24, 1 }
 0x480   : > { %v950_v5 = vsub.f32 %v940_v60, %v948_v1  ;;  %v956_v6 = vsub.f32 0.0, %v948_v1  ;;  %v2377_v60 = vrot.slane (!%p5221_p7), %v6513_v24, 3 }
 0x481   : > { %v954_v7 = vmul.f32 1.442695, %v951_v2  ;;  %v960_v8 = vmul.f32 1.442695, %v957_v4  ;;  %v2837_v2 = vrot.slane (!%p5221_p7), %v6513_v24, 7  ;;  %v1918_v4 = vrot.slane (!%p5221_p7), %v6511_v23, 7 }
 0x482   : > { %v952_v9 = vmul.f32 1.442695, %v950_v5  ;;  %v958_v10 = vmul.f32 1.442695, %v956_v6  ;;  %v6527_v29 = vpop.f32.mrb[0].mxu0 (!%p5221_p7) }
 0x483   : > { %5968 = vpow2.f32 %v954_v7  ;;  %1217 = vperm.xlu1 (!%p5221_p7), %5981, %v6527_v29   ;;  %1103 = vperm.xlu0 (!%p5221_p7), %5980, %v6527_v29   ;;  %v6531_v30 = vpop.f32.mrb[1].mxu0 (!%p5221_p7) }
 0x484   : > { %5970 = vpow2.f32 %v960_v8 }
 0x485   : > { %5972 = vpow2.f32 %v952_v9 }
 0x486   : > { %5974 = vpow2.f32 %v958_v10  ;;  %v2262_v10 = vrot.slane (!%p5221_p7), %v6513_v24, 2 }
 0x487   : > { %5982 = vset.pattern.permute.xlu1 (!%p5221_p7), %v6225_v31  ;;  %5983 = vset.pattern.permute.xlu0 (!%p5221_p7), %v6226_v32 }
 0x488   : > { %1332 = vperm.xlu1 (!%p5221_p7), %5982, %v6527_v29   ;;  %1447 = vperm.xlu0 (!%p5221_p7), %5983, %v6527_v29  }
 0x48c   : > { %5984 = vset.pattern.permute.xlu1 (!%p5221_p7), %v6227_v33  ;;  %5986 = vset.pattern.permute.xlu0 (!%p5221_p7), %v6228_v34 }
 0x48d   : > { %v5969_v11 = vpop.eup %5968  ;;  %1562 = vperm.xlu1 (!%p5221_p7), %5984, %v6527_v29   ;;  %1792 = vperm.xlu0 (!%p5221_p7), %5986, %v6527_v29  }
 0x48e   : > { %v5971_v12 = vpop.eup %5970 }
 0x48f   : > { %v5973_v13 = vpop.eup %5972  ;;  %v963_v14 = vadd.f32 %v5971_v12, %v5969_v11 }
 0x490   : > { %v5975_v15 = vpop.eup %5974 }
 0x491   : > { %5976 = vlog2.f32 %v963_v14  ;;  %v962_v16 = vadd.f32 %v5975_v15, %v5973_v13  ;;  %5985 = vset.pattern.permute.xlu1 (!%p5221_p7), %v6229_v35  ;;  %5989 = vset.pattern.permute.xlu0 (!%p5221_p7), %v6230_v36  ;;  %v2492_v13 = vrot.slane (!%p5221_p7), %v6513_v24, 4 }
 0x492   : > { %1677 = vperm.xlu1 (!%p5221_p7), %5985, %v6527_v29   ;;  %2136 = vperm.xlu0 (!%p5221_p7), %5989, %v6527_v29  }
 0x493   : > { %5978 = vlog2.f32 %v962_v16 }
 0x496   : > { %5987 = vset.pattern.permute.xlu1 (!%p5221_p7), %v6231_v38  ;;  %5991 = vset.pattern.permute.xlu0 (!%p5221_p7), %v6232_v40 }
 0x497   : > { %1907 = vperm.xlu1 (!%p5221_p7), %5987, %v6527_v29   ;;  %2366 = vperm.xlu0 (!%p5221_p7), %5991, %v6527_v29  }
 0x49b   : > { %v5977_v17 = vpop.eup %5976  ;;  %5988 = vset.pattern.permute.xlu1 (!%p5221_p7), %v6233_v41  ;;  %5992 = vset.pattern.permute.xlu0 (!%p5221_p7), %v6224_v28 }
 0x49c   : > { %v967_v18 = vmul.f32 0.6931472, %v5977_v17  ;;  %987 = sbr.rel (%p5221_p7) target bundleno = 1622 (0x656), region = 80  ;;  %2022 = vperm.xlu1 (!%p5221_p7), %5988, %v6527_v29   ;;  %1098 = vperm.xlu0 (!%p5221_p7), %5992, %v6531_v30   ;;  %v6616_v17 = vsub.s32 (!%p5221_p7), 4, %v6433_v45 }
 0x49d   : > { %v5979_v19 = vpop.eup %5978 }
 0x49e   : > { %v969_v20 = vadd.f32 %v967_v18, %v949_v63  ;;  %v965_v21 = vmul.f32 0.6931472, %v5979_v19  ;;  %v1803_v63 = vrot.slane (!%p5221_p7), %v6511_v23, 6  ;;  %v990_v18 = vld [vmem:[#allocation4] sm:$0xff] (!%p5221_p7)  ;;  %v6626_v23 = vsub.s32 (!%p5221_p7), 5, %v6433_v45 }
 0x4a0   : > { %971 = vst.msk [vmem:[#allocation3 + $0x8] sm:$0xff] %vm680_vm1, %v969_v20  ;;  %v968_v22 = vadd.f32 %v965_v21, %v948_v1  ;;  %5990 = vset.pattern.permute.xlu1 (!%p5221_p7), %v6234_v42  ;;  %5994 = vset.pattern.permute.xlu0 (!%p5221_p7), %v6225_v31  ;;  %v2607_v1 = vrot.slane (!%p5221_p7), %v6513_v24, 5  ;;  %v2722_v20 = vrot.slane (!%p5221_p7), %v6513_v24, 6 }
 0x4a1   : > { %2251 = vperm.xlu1 (!%p5221_p7), %5990, %v6527_v29   ;;  %1328 = vperm.xlu0 (!%p5221_p7), %5994, %v6531_v30  }
 0x4a2   : > { %970 = vst.msk [vmem:[#allocation3] sm:$0xff] %vm680_vm1, %v968_v22 }
 0x4a5   : > { %5993 = vset.pattern.permute.xlu1 %v6223_v27  ;;  %5995 = vset.pattern.permute.xlu0 %v6238_v46 }
 0x4a6   : > { %1213 = vperm.xlu1 %5993, %v6531_v30   ;;  %2481 = vperm.xlu0 %5995, %v6527_v29  }
 0x4a9   : > { %v988_v5 = vld [vmem:[#allocation3] sm:$0xff] }
 0x4aa   : > { %1344 = vrot.lane.b32.xlu1 %v1343_v47, %s6222_s28  ;;  %5999 = vset.pattern.permute.xlu0 %v6229_v35  ;;  %v1087_v6 = vrot.slane %v988_v5, %v6463_v61  ;;  %v6598_v8 = vrot.slane %v988_v5, %v6466_v62  ;;  %v6606_v12 = vrot.slane %v988_v5, %v6472_v0 }
 0x4ab   : > { %1673 = vperm.xlu0 %5999, %v6531_v30   ;;  %5996 = vset.pattern.permute.xlu1 %v6239_v50  ;;  %v6611_v14 = vrot.slane %v988_v5, %v6477_v3  ;;  %v6623_v22 = vrot.slane %v988_v5, %v6616_v17  ;;  %v6628_v25 = vmul.f32 %v990_v18, %v988_v5 }
 0x4ac   : > { %v1089_v7 = vmul.f32 %v1087_v6, %v6501_v54  ;;  %v1205_v11 = vmul.f32 %v6598_v8, %v6501_v54  ;;  %v1320_v16 = vmul.f32 %v6606_v12, %v6501_v54  ;;  %v6641_v31 = vrot.slane %v988_v5, %v6626_v23 }
 0x4ad   : > { %v1435_v19 = vmul.f32 %v6611_v14, %v6501_v54 }
 0x4ae   : > { %1459 = vrot.lane.b32.xlu1 %v1458_v48, %s6222_s28  ;;  %v1092_v9 = vmul.f32 1.442695, %v1089_v7  ;;  %v1208_v15 = vmul.f32 1.442695, %v1205_v11  ;;  %v1323_v21 = vmul.f32 1.442695, %v1320_v16  ;;  %v6688_v16 = vrot.slane %v6628_v25, %v6477_v3 }
 0x4af   : > { %1689 = vrot.lane.b32.xlu0 %v1688_v49, %s6222_s28  ;;  %v1438_v27 = vmul.f32 1.442695, %v1435_v19  ;;  %v1088_v49 = vmul.f32 %v1087_v6, %v6496_v51  ;;  %v6676_v6 = vld [vmem:[#allocation3 + $0x8] sm:$0xff] }
 0x4b0   : > { %6002 = vset.pattern.permute.xlu0 %v6233_v41  ;;  %6012 = vpow2.f32 %v1092_v9  ;;  %v6653_v41 = vsub.s32 7, %v6433_v45 }
 0x4b1   : > { %6014 = vpow2.f32 %v1208_v15  ;;  %v1090_v7 = vmul.f32 1.442695, %v1088_v49 }
 0x4b2   : > { %2596 = vperm.xlu1 %5996, %v6527_v29   ;;  %6016 = vpow2.f32 %v1323_v21 }
 0x4b3   : > { %2018 = vperm.xlu0 %6002, %v6531_v30   ;;  %6018 = vpow2.f32 %v1438_v27 }
 0x4b6   : > { %5997 = vset.pattern.permute.xlu1 %v6226_v32  ;;  %v6645_v32 = vrot.slane %v6628_v25, %v6463_v61 }
 0x4b7   : > { %1443 = vperm.xlu1 %5997, %v6531_v30   ;;  %6003 = vset.pattern.permute.xlu0 %v6240_v56 }
 0x4b8   : > { %2711 = vperm.xlu0 %6003, %v6527_v29  }
 0x4ba   : > { %v6013_v28 = vpop.eup %6012 }
 0x4bb   : > { %5998 = vset.pattern.permute.xlu1 %v6227_v33  ;;  %v1095_v33 = vmul.f32 0.0, %v6013_v28  ;;  %v6015_v47 = vpop.eup %6014  ;;  %v6696_v28 = vrot.slane %v6676_v6, %v6466_v62 }
 0x4bc   : > { %1558 = vperm.xlu1 %5998, %v6531_v30   ;;  %6008 = vset.pattern.permute.xlu0 %v6239_v50 }
 0x4bd   : > { %2592 = vperm.xlu0 %6008, %v6531_v30  }
 0x4c0   : > { %1574 = vrot.lane.b32.xlu1 %v1573_v57, %s6222_s28  ;;  %v6666_v57 = vrot.slane %v988_v5, %v6653_v41 }
 0x4c1   : > { %2148 = vrot.lane.b32.xlu0 %v2147_v58, %s6222_s28  ;;  %6000 = vset.pattern.permute.xlu1 %v6228_v34 }
 0x4c2   : > { %6011 = vset.pattern.permute.xlu0 %v6241_v59 }
 0x4c4   : > { %1788 = vperm.xlu1 %6000, %v6531_v30  }
 0x4c5   : > { %2822 = vperm.xlu0 %6011, %v6531_v30  }
 0x4c8   : > { %6001 = vset.pattern.permute.xlu1 %v6231_v38  ;;  %v1665_v38 = vmul.f32 %v6641_v31, %v6501_v54 }
 0x4c9   : > { %1903 = vperm.xlu1 %6001, %v6531_v30   ;;  %2378 = vrot.lane.b32.xlu0 %v2377_v60, %s6222_s28 }
 0x4ca   : > { %v1668_v50 = vmul.f32 1.442695, %v1665_v38 }
 0x4cd   : > { %1804 = vrot.lane.b32.xlu1 %v1803_v63, %s6222_s28  ;;  %2608 = vrot.lane.b32.xlu0 %v2607_v1, %s6222_s28  ;;  %v6672_v63 = vrot.slane %v6628_v25, %v6472_v0 }
 0x4ce   : > { %6004 = vset.pattern.permute.xlu1 %v6230_v36 }
 0x4d1   : > { %2132 = vperm.xlu1 %6004, %v6531_v30   ;;  %2838 = vrot.lane.b32.xlu0 %v2837_v2, %s6222_s28  ;;  %v6017_v2 = vpop.eup %6016 }
 0x4d2   : > { %v6019_v11 = vpop.eup %6018 }
 0x4d5   : > { %6005 = vset.pattern.permute.xlu1 %v6234_v42  ;;  %v6657_v42 = vrot.slane %v6628_v25, %v6466_v62 }
 0x4d6   : > { %2247 = vperm.xlu1 %6005, %v6531_v30  }
 0x4da   : > { %6006 = vset.pattern.permute.xlu1 %v6232_v40 }
 0x4db   : > { %2362 = vperm.xlu1 %6006, %v6531_v30  }
 0x4df   : > { %6007 = vset.pattern.permute.xlu1 %v6238_v46 }
 0x4e0   : > { %2477 = vperm.xlu1 %6007, %v6531_v30  }
 0x4e4   : > { %1919 = vrot.lane.b32.xlu1 %v1918_v4, %s6222_s28 }
 0x4e5   : > { %6009 = vset.pattern.permute.xlu1 %v6240_v56 }
 0x4e8   : > { %2707 = vperm.xlu1 %6009, %v6531_v30   ;;  %v6638_v30 = vsub.s32 6, %v6433_v45 }
 0x4ea   : > { %v6650_v40 = vrot.slane %v988_v5, %v6638_v30  ;;  %v1895_v5 = vmul.f32 %v6666_v57, %v6501_v54 }
 0x4ec   : > { %6010 = vset.pattern.permute.xlu1 %v6241_v59  ;;  %v1780_v56 = vmul.f32 %v6650_v40, %v6501_v54  ;;  %v1898_v21 = vmul.f32 1.442695, %v1895_v5 }
 0x4ed   : > { %2826 = vperm.xlu1 %6010, %v6527_v29   ;;  %v6633_v29 = vpop.permute.xlu1 %1229 }
 0x4ee   : > { %v1783_v9 = vmul.f32 1.442695, %v1780_v56  ;;  %v6714_v56 = vrot.slane %v6676_v6, %v6472_v0 }
 0x4f1   : > { %2033 = vrot.lane.b32.xlu1 %v6513_v24, %s6222_s28  ;;  %v1550_v24 = vmul.f32 %v6623_v22, %v6501_v54 }
 0x4f3   : > { %v1553_v36 = vmul.f32 1.442695, %v1550_v24 }
 0x4f5   : > { %2263 = vrot.lane.b32.xlu1 %v2262_v10, %s6222_s28  ;;  %6020 = vpow2.f32 %v1553_v36  ;;  %v6682_v10 = vrot.slane %v6676_v6, %v6463_v61 }
 0x4f6   : > { %6022 = vpow2.f32 %v1668_v50  ;;  %v2124_v50 = vmul.f32 %v6696_v28, %v6501_v54 }
 0x4f7   : > { %6024 = vpow2.f32 %v1090_v7  ;;  %v2010_v27 = vmul.f32 %v6682_v10, %v6501_v54  ;;  %v1319_v7 = vmul.f32 %v6606_v12, %v6496_v51 }
 0x4f8   : > { %6026 = vpow2.f32 %v1783_v9 }
 0x4f9   : > { %2493 = vrot.lane.b32.xlu1 %v2492_v13, %s6222_s28  ;;  %6028 = vpow2.f32 %v1898_v21  ;;  %v2013_v49 = vmul.f32 1.442695, %v2010_v27  ;;  %v6736_v21 = vrot.slane %v6628_v25, %v6638_v30 }
 0x4fb   : > { %6030 = vpow2.f32 %v2013_v49 }
 0x4fd   : > { %2723 = vrot.lane.b32.xlu1 %v2722_v20, %s6222_s28 }
 0x502   : > { %v1218_v34 = vpop.permute.xlu1 %1217  ;;  %v1104_v35 = vpop.permute.xlu0 %1103 }
 0x503   : > { %v1111_v46 = vmul.f32 %v6645_v32, %v1104_v35  ;;  %v1225_v58 = vmul.f32 %v6657_v42, %v1218_v34  ;;  %v6702_v34 = vrot.slane %v6628_v25, %v6616_v17  ;;  %v6021_v35 = vpop.eup %6020 }
 0x505   : > { %v6660_v48 = vadd.f32 %v1111_v46, %v1095_v33 }
 0x507   : > { %v1211_v59 = vmul.f32 %v6015_v47, %v6660_v48  ;;  %v1333_v60 = vpop.permute.xlu1 %1332  ;;  %v1448_v1 = vpop.permute.xlu0 %1447  ;;  %v1204_v47 = vmul.f32 %v6598_v8, %v6496_v51 }
 0x508   : > { %v1340_v15 = vmul.f32 %v6672_v63, %v1333_v60  ;;  %v1455_v33 = vmul.f32 %v6688_v16, %v1448_v1  ;;  %v6720_v60 = vrot.slane %v6628_v25, %v6626_v23  ;;  %v6023_v1 = vpop.eup %6022 }
 0x509   : > { %v6674_v4 = vadd.f32 %v1225_v58, %v1211_v59  ;;  %v1206_v8 = vmul.f32 1.442695, %v1204_v47  ;;  %v991_v47 = vld [vmem:[#allocation4 + $0x8] sm:$0xff] }
 0x50b   : > { %v1326_v13 = vmul.f32 %v6017_v2, %v6674_v4  ;;  %6032 = vpow2.f32 %v1206_v8 }
 0x50c   : > { %v1563_v18 = vpop.permute.xlu1 %1562  ;;  %v1793_v19 = vpop.permute.xlu0 %1792 }
 0x50d   : > { %v6690_v20 = vadd.f32 %v1340_v15, %v1326_v13  ;;  %v1570_v59 = vmul.f32 %v6702_v34, %v1563_v18  ;;  %v2239_v13 = vmul.f32 %v6714_v56, %v6501_v54  ;;  %v6732_v15 = vrot.slane %v6676_v6, %v6477_v3  ;;  %v6025_v18 = vpop.eup %6024 }
 0x50e   : > { %v1094_v49 = vmul.f32 0.0, %v6025_v18 }
 0x50f   : > { %v1441_v24 = vmul.f32 %v6019_v11, %v6690_v20  ;;  %v2127_v11 = vmul.f32 1.442695, %v2124_v50  ;;  %v2242_v50 = vmul.f32 1.442695, %v2239_v13 }
 0x511   : > { %v6704_v36 = vadd.f32 %v1455_v33, %v1441_v24  ;;  %v1678_v38 = vpop.permute.xlu1 %1677  ;;  %v6706_v46 = vpop.permute.xlu0 %2136  ;;  %6034 = vpow2.f32 %v2127_v11 }
 0x512   : > { %v1685_v12 = vmul.f32 %v6720_v60, %v1678_v38  ;;  %v6027_v24 = vpop.eup %6026 }
 0x513   : > { %v1556_v58 = vmul.f32 %v6021_v35, %v6704_v36  ;;  %v1321_v35 = vmul.f32 1.442695, %v1319_v7  ;;  %v6752_v7 = vmul.f32 %v991_v47, %v6676_v6 }
 0x515   : > { %v6722_v2 = vadd.f32 %v1570_v59, %v1556_v58  ;;  %v2354_v58 = vmul.f32 %v6732_v15, %v6501_v54  ;;  %v1800_v59 = vmul.f32 %v6736_v21, %v1793_v19  ;;  %6036 = vpow2.f32 %v1321_v35 }
 0x516   : > { %v1908_v9 = vpop.permute.xlu1 %1907  ;;  %v6726_v5 = vpop.permute.xlu0 %2366  ;;  %6038 = vpow2.f32 %v2242_v50 }
 0x517   : > { %v1671_v27 = vmul.f32 %v6023_v1, %v6722_v2  ;;  %v6748_v1 = vrot.slane %v6628_v25, %v6653_v41  ;;  %v2357_v19 = vmul.f32 1.442695, %v2354_v58  ;;  %v6760_v25 = vrot.slane %v6752_v7, %v6463_v61 }
 0x518   : > { %v7537_v58 = vmov 0.0|0.0  }
 0x519   : > { %v6740_v33 = vadd.f32 %v1685_v12, %v1671_v27  ;;  %v6029_v12 = vpop.eup %6028  ;;  %6040 = vpow2.f32 %v2357_v19  ;;  %v7538_v19 = vmov 0.0  }
 0x51a   : > { %v6031_v43 = vpop.eup %6030 }
 0x51b   : > { %v1786_v44 = vmul.f32 %v6027_v24, %v6740_v33  ;;  %v2023_v38 = vpop.permute.xlu1 %2022  ;;  %v1099_v27 = vpop.permute.xlu0 %1098  ;;  %v1915_v24 = vmul.f32 %v6748_v1, %v1908_v9 }
 0x51c   : > { %v1110_v8 = vmul.f32 %v6645_v32, %v1099_v27  ;;  %v6033_v35 = vpop.eup %6032  ;;  %v2030_v50 = vmul.f32 %v6760_v25, %v2023_v38 }
 0x51d   : > { %v6754_v11 = vadd.f32 %v1800_v59, %v1786_v44  ;;  %v1434_v44 = vmul.f32 %v6611_v14, %v6496_v51  ;;  %v6035_v59 = vpop.eup %6034 }
 0x51e   : > { %v1112_v13 = vadd.f32 %v1110_v8, %v1094_v49  ;;  %v6769_v49 = vrot.slane %v6752_v7, %v6466_v62 }
 0x51f   : > { %v1901_v18 = vmul.f32 %v6029_v12, %v6754_v11  ;;  %v1436_v14 = vmul.f32 1.442695, %v1434_v44  ;;  %v6037_v38 = vpop.eup %6036 }
 0x520   : > { %v2252_v39 = vpop.permute.xlu1 %2251  ;;  %v5749_v32 = vpack.c.bf16 %v6660_v48, %v1112_v13  ;;  %v1210_v12 = vmul.f32 %v6033_v35, %v1112_v13  ;;  %v6039_v13 = vpop.eup %6038 }
 0x521   : > { %v6763_v47 = vadd.f32 %v1915_v24, %v1901_v18  ;;  %v2144_v18 = vmul.f32 %v6769_v49, %v6706_v46  ;;  %6042 = vpow2.f32 %v1436_v14  ;;  %v6796_v46 = vrot.slane %v6752_v7, %v6477_v3 }
 0x522   : > { %5750 = vmatpush3.bf16.msra.mxu1 %v5749_v32  ;;  %v6788_v32 = vrot.slane %v6752_v7, %v6472_v0 }
 0x523   : > { %v2016_v9 = vmul.f32 %v6031_v43, %v6763_v47  ;;  %5751 = vmatprep.subr.bf16.mxu1 %v7537_v58  ;;  %v1549_v43 = vmul.f32 %v6623_v22, %v6496_v51 }
 0x524   : > { %v2259_v37 = vmul.f32 %v6788_v32, %v2252_v39 }
 0x525   : > { %v6774_v48 = vadd.f32 %v2030_v50, %v2016_v9  ;;  %v1214_v27 = vpop.permute.xlu1 %1213  ;;  %5462 = vmatmul.mubr.msk.f32.vlgmr.msra.gmra.mrb[0].mxu1 %vm996_vm6, %v6630_v26  ;;  %v1329_v26 = vpop.permute.xlu0 %1328 }
 0x526   : > { %v1224_v8 = vmul.f32 %v6657_v42, %v1214_v27  ;;  %5468 = vmatprep.mubr.msk.f32.mxu1 %vm6236_vm8, %v7538_v19  ;;  %v1339_v9 = vmul.f32 %v6672_v63, %v1329_v26  ;;  %v1551_v27 = vmul.f32 1.442695, %v1549_v43  ;;  %v2374_v43 = vmul.f32 %v6796_v46, %v6726_v5 }
 0x527   : > { %v2130_v24 = vmul.f32 %v6035_v59, %v6774_v48  ;;  %v1894_v5 = vmul.f32 %v6666_v57, %v6496_v51 }
 0x528   : > { %v1226_v44 = vadd.f32 %v1224_v8, %v1210_v12  ;;  %v1664_v12 = vmul.f32 %v6641_v31, %v6496_v51  ;;  %v6041_v8 = vpop.eup %6040  ;;  %6044 = vpow2.f32 %v1551_v27  ;;  %v1779_v31 = vmul.f32 %v6650_v40, %v6496_v51 }
 0x529   : > { %v6790_v42 = vadd.f32 %v2144_v18, %v2130_v24  ;;  %v1345_v35 = vpop.permute.xlu1 %1344  ;;  %v1896_v26 = vmul.f32 1.442695, %v1894_v5 }
 0x52a   : > { %v5752_v22 = vpack.c.bf16 %v6674_v4, %v1226_v44  ;;  %v1325_v50 = vmul.f32 %v6037_v38, %v1226_v44  ;;  %v1666_v39 = vmul.f32 1.442695, %v1664_v12 }
 0x52b   : > { %v2245_v59 = vmul.f32 %v6039_v13, %v6790_v42  ;;  %v6043_v24 = vpop.eup %6042  ;;  %v6825_v13 = vpop.permute.xlu0 %2481 }
 0x52c   : > { %v1341_v18 = vadd.f32 %v1339_v9, %v1325_v50  ;;  %5753 = vmatpush3.bf16.msra.mxu1 %v5752_v22  ;;  %6046 = vpow2.f32 %v1666_v39  ;;  %v2009_v22 = vmul.f32 %v6682_v10, %v6496_v51 }
 0x52d   : > { %v6802_v14 = vadd.f32 %v2259_v37, %v2245_v59  ;;  %v1460_v63 = vpop.permute.xlu1 %1459  ;;  %5757 = vmatprep.subr.bf16.mxu1 %v7537_v58 }
 0x52e   : > { %v5755_v4 = vpack.c.bf16 %v6690_v20, %v1341_v18  ;;  %v1440_v44 = vmul.f32 %v6043_v24, %v1341_v18  ;;  %v2123_v18 = vmul.f32 %v6696_v28, %v6496_v51  ;;  %v2238_v28 = vmul.f32 %v6714_v56, %v6496_v51 }
 0x52f   : > { %v2360_v38 = vmul.f32 %v6041_v8, %v6802_v14  ;;  %5469 = vmatmul.mubr.msk.f32.vlgmr.msra.gmra.mrb[2].mxu1 %vm996_vm6, %v6633_v29  ;;  %v1781_v29 = vmul.f32 1.442695, %v1779_v31  ;;  %v2011_v8 = vmul.f32 1.442695, %v2009_v22 }
 0x530   : > { %5756 = vmatpush3.bf16.msra.mxu0 %v5755_v4  ;;  %5482 = vmatprep.mubr.msk.f32.mxu1 %vm6236_vm8, %v7538_v19  ;;  %v2125_v31 = vmul.f32 1.442695, %v2123_v18  ;;  %v2240_v22 = vmul.f32 1.442695, %v2238_v28 }
 0x531   : > { %v6815_v37 = vadd.f32 %v2374_v43, %v2360_v38  ;;  %v6817_v20 = vpop.permute.xlu1 %2596  ;;  %5760 = vmatprep.subr.bf16.mxu0 %v7537_v58  ;;  %6048 = vpow2.f32 %v1781_v29  ;;  %v1674_v43 = vpop.permute.xlu0 %1673 }
 0x532   : > { %v6045_v57 = vpop.eup %6044  ;;  %6050 = vpow2.f32 %v1896_v26  ;;  %v2582_v26 = vrot.slane %v6676_v6, %v6626_v23 }
 0x533   : > { %5476 = vmatmul.mubr.msk.f32.vlgmr.msra.gmra.mrb[2].mxu0 %vm996_vm6, %v1345_v35  ;;  %v2467_v35 = vrot.slane %v6676_v6, %v6616_v17  ;;  %6052 = vpow2.f32 %v2011_v8 }
 0x534   : > { %5489 = vmatprep.mubr.msk.f32.mxu0 %vm6236_vm8, %v7538_v19  ;;  %6054 = vpow2.f32 %v2125_v31 }
 0x535   : > { %v2469_v38 = vmul.f32 %v2467_v35, %v6501_v54 }
 0x536   : > { %v1444_v40 = vpop.permute.xlu1 %1443  ;;  %v6047_v4 = vpop.eup %6046 }
 0x537   : > { %v1454_v9 = vmul.f32 %v6688_v16, %v1444_v40  ;;  %v2472_v40 = vmul.f32 1.442695, %v2469_v38 }
 0x539   : > { %v1456_v50 = vadd.f32 %v1454_v9, %v1440_v44  ;;  %6056 = vpow2.f32 %v2472_v40 }
 0x53a   : > { %6058 = vpow2.f32 %v2240_v22 }
 0x53b   : > { %v5758_v27 = vpack.c.bf16 %v6704_v36, %v1456_v50  ;;  %v1559_v59 = vpop.permute.xlu1 %1558  ;;  %v1555_v12 = vmul.f32 %v6045_v57, %v1456_v50  ;;  %v1684_v36 = vmul.f32 %v6720_v60, %v1674_v43  ;;  %v2353_v57 = vmul.f32 %v6732_v15, %v6496_v51 }
 0x53c   : > { %v1569_v16 = vmul.f32 %v6702_v34, %v1559_v59  ;;  %v6049_v34 = vpop.eup %6048  ;;  %v2697_v43 = vrot.slane %v6676_v6, %v6638_v30 }
 0x53d   : > { %5759 = vmatpush3.bf16.msra.mxu1 %v5758_v27  ;;  %v6051_v60 = vpop.eup %6050  ;;  %v2584_v27 = vmul.f32 %v2582_v26, %v6501_v54  ;;  %v2355_v15 = vmul.f32 1.442695, %v2353_v57 }
 0x53e   : > { %v1571_v10 = vadd.f32 %v1569_v16, %v1555_v12  ;;  %5763 = vmatprep.subr.bf16.mxu1 %v7537_v58  ;;  %v6053_v12 = vpop.eup %6052  ;;  %v2468_v16 = vmul.f32 %v2467_v35, %v6496_v51 }
 0x53f   : > { %v1575_v39 = vpop.permute.xlu1 %1574  ;;  %v6055_v38 = vpop.eup %6054  ;;  %6060 = vpow2.f32 %v2355_v15 }
 0x540   : > { %v5761_v5 = vpack.c.bf16 %v6722_v2, %v1571_v10  ;;  %v1670_v24 = vmul.f32 %v6047_v4, %v1571_v10  ;;  %5483 = vmatmul.mubr.msk.f32.vlgmr.msra.gmra.mrb[4].mxu1 %vm996_vm6, %v1460_v63  ;;  %v1690_v2 = vpop.permute.xlu0 %1689  ;;  %v2470_v35 = vmul.f32 1.442695, %v2468_v16 }
 0x541   : > { %5496 = vmatprep.mubr.msk.f32.mxu1 %vm6236_vm8, %v7538_v19 }
 0x542   : > { %5762 = vmatpush3.bf16.msra.mxu0 %v5761_v5  ;;  %v1686_v29 = vadd.f32 %v1684_v36, %v1670_v24  ;;  %v2583_v5 = vmul.f32 %v2582_v26, %v6496_v51  ;;  %v2699_v24 = vmul.f32 %v2697_v43, %v6501_v54 }
 0x543   : > { %v1789_v44 = vpop.permute.xlu1 %1788  ;;  %5766 = vmatprep.subr.bf16.mxu0 %v7537_v58 }
 0x544   : > { %v1785_v63 = vmul.f32 %v6049_v34, %v1686_v29  ;;  %v1799_v9 = vmul.f32 %v6736_v21, %v1789_v44  ;;  %v5764_v56 = vpack.c.bf16 %v6740_v33, %v1686_v29  ;;  %v2019_v18 = vpop.permute.xlu0 %2018  ;;  %v2487_v44 = vrot.slane %v6752_v7, %v6616_v17 }
 0x545   : > { %5490 = vmatmul.mubr.msk.f32.vlgmr.msra.gmra.mrb[4].mxu0 %vm996_vm6, %v1575_v39  ;;  %v2585_v26 = vmul.f32 1.442695, %v2583_v5 }
 0x546   : > { %v1801_v50 = vadd.f32 %v1799_v9, %v1785_v63  ;;  %5765 = vmatpush3.bf16.msra.mxu1 %v5764_v56  ;;  %5503 = vmatprep.mubr.msk.f32.mxu0 %vm6236_vm8, %v7538_v19  ;;  %v2698_v63 = vmul.f32 %v2697_v43, %v6496_v51  ;;  %v2702_v9 = vmul.f32 1.442695, %v2699_v24  ;;  %v2812_v56 = vrot.slane %v6676_v6, %v6653_v41 }
 0x547   : > { %5769 = vmatprep.subr.bf16.mxu1 %v7537_v58  ;;  %v2489_v17 = vmul.f32 %v2487_v44, %v6825_v13 }
 0x548   : > { %v5767_v21 = vpack.c.bf16 %v6754_v11, %v1801_v50  ;;  %v1904_v59 = vpop.permute.xlu1 %1903  ;;  %v1900_v33 = vmul.f32 %v6051_v60, %v1801_v50  ;;  %v2587_v11 = vmul.f32 1.442695, %v2584_v27  ;;  %v2712_v60 = vpop.permute.xlu0 %2711  ;;  %v2700_v27 = vmul.f32 1.442695, %v2698_v63 }
 0x549   : > { %v1914_v8 = vmul.f32 %v6748_v1, %v1904_v59  ;;  %5497 = vmatmul.mubr.msk.f32.vlgmr.msra.gmra.mrb[6].mxu1 %vm996_vm6, %v1690_v2  ;;  %v2029_v1 = vmul.f32 %v6760_v25, %v2019_v18  ;;  %v6057_v25 = vpop.eup %6056  ;;  %v2814_v6 = vmul.f32 %v2812_v56, %v6501_v54 }
 0x54a   : > { %5768 = vmatpush3.bf16.msra.mxu0 %v5767_v21  ;;  %5510 = vmatprep.mubr.msk.f32.mxu1 %vm6236_vm8, %v7538_v19  ;;  %6062 = vpow2.f32 %v2587_v11  ;;  %v6059_v40 = vpop.eup %6058  ;;  %v2813_v21 = vmul.f32 %v2812_v56, %v6496_v51 }
 0x54b   : > { %v1916_v4 = vadd.f32 %v1914_v8, %v1900_v33  ;;  %5772 = vmatprep.subr.bf16.mxu0 %v7537_v58  ;;  %6064 = vpow2.f32 %v2470_v35  ;;  %v6061_v50 = vpop.eup %6060  ;;  %v2817_v11 = vmul.f32 1.442695, %v2814_v6 }
 0x54c   : > { %v1805_v10 = vpop.permute.xlu1 %1804  ;;  %6066 = vpow2.f32 %v2585_v26  ;;  %v2815_v16 = vmul.f32 1.442695, %v2813_v21 }
 0x54d   : > { %v5770_v39 = vpack.c.bf16 %v6763_v47, %v1916_v4  ;;  %v2015_v31 = vmul.f32 %v6053_v12, %v1916_v4  ;;  %5504 = vmatmul.mubr.msk.f32.vlgmr.msra.gmra.mrb[6].mxu0 %vm996_vm6, %v1805_v10  ;;  %6068 = vpow2.f32 %v2702_v9  ;;  %v2593_v12 = vpop.permute.xlu0 %2592 }
 0x54e   : > { %5517 = vmatprep.mubr.msk.f32.mxu0 %vm6236_vm8, %v7538_v19  ;;  %6070 = vpow2.f32 %v2700_v27 }
 0x54f   : > { %5771 = vmatpush3.bf16.msra.mxu1 %v5770_v39  ;;  %v2031_v36 = vadd.f32 %v2029_v1, %v2015_v31  ;;  %6072 = vpow2.f32 %v2815_v16 }
 0x550   : > { %v2133_v28 = vpop.permute.xlu1 %2132  ;;  %5775 = vmatprep.subr.bf16.mxu1 %v7537_v58  ;;  %6074 = vpow2.f32 %v2817_v11 }
 0x551   : > { %v2129_v47 = vmul.f32 %v6055_v38, %v2031_v36  ;;  %v2143_v34 = vmul.f32 %v6769_v49, %v2133_v28  ;;  %v5773_v29 = vpack.c.bf16 %v6774_v48, %v2031_v36  ;;  %v2475_v49 = vmul.f32 %v6057_v25, %v6815_v37  ;;  %v2149_v1 = vpop.permute.xlu0 %2148 }
 0x553   : > { %v2145_v2 = vadd.f32 %v2143_v34, %v2129_v47  ;;  %5774 = vmatpush3.bf16.msra.mxu0 %v5773_v29  ;;  %v6889_v33 = vadd.f32 %v2489_v17, %v2475_v49 }
 0x554   : > { %5778 = vmatprep.subr.bf16.mxu0 %v7537_v58  ;;  %v6063_v8 = vpop.eup %6062 }
 0x555   : > { %v2248_v48 = vpop.permute.xlu1 %2247  ;;  %v2244_v22 = vmul.f32 %v6059_v40, %v2145_v2  ;;  %v6065_v4 = vpop.eup %6064  ;;  %v2590_v43 = vmul.f32 %v6063_v8, %v6889_v33  ;;  %v5776_v28 = vpack.c.bf16 %v6790_v42, %v2145_v2  ;;  %v2832_v42 = vrot.slane %v6752_v7, %v6653_v41 }
 0x556   : > { %v2258_v57 = vmul.f32 %v6788_v32, %v2248_v48  ;;  %v2602_v32 = vrot.slane %v6752_v7, %v6626_v23  ;;  %v6067_v36 = vpop.eup %6066  ;;  %v2823_v40 = vpop.permute.xlu0 %2822 }
 0x557   : > { %v6069_v23 = vpop.eup %6068 }
 0x558   : > { %v6886_v59 = vadd.f32 %v2258_v57, %v2244_v22  ;;  %v2604_v38 = vmul.f32 %v2602_v32, %v6817_v20  ;;  %v2603_v47 = vmul.f32 %v2602_v32, %v2593_v12  ;;  %v6071_v20 = vpop.eup %6070 }
 0x559   : > { %v6073_v56 = vpop.eup %6072 }
 0x55a   : > { %v2363_v15 = vpop.permute.xlu1 %2362  ;;  %v2359_v18 = vmul.f32 %v6061_v50, %v6886_v59  ;;  %v2606_v5 = vadd.f32 %v2604_v38, %v2590_v43  ;;  %v2379_v48 = vpop.permute.xlu0 %2378  ;;  %v5779_v12 = vpack.c.bf16 %v6802_v14, %v6886_v59 }
 0x55b   : > { %v2373_v13 = vmul.f32 %v6796_v46, %v2363_v15  ;;  %v2717_v46 = vrot.slane %v6752_v7, %v6638_v30  ;;  %v6075_v22 = vpop.eup %6074 }
 0x55c   : > { %v2705_v29 = vmul.f32 %v6069_v23, %v2606_v5 }
 0x55d   : > { %v2375_v10 = vadd.f32 %v2373_v13, %v2359_v18  ;;  %v2719_v26 = vmul.f32 %v2717_v46, %v2712_v60  ;;  %v2833_v60 = vmul.f32 %v2832_v42, %v2823_v40 }
 0x55e   : > { %v2609_v27 = vpop.permute.xlu0 %2608 }
 0x55f   : > { %v2478_v39 = vpop.permute.xlu1 %2477  ;;  %v2474_v31 = vmul.f32 %v6065_v4, %v2375_v10  ;;  %v5782_v30 = vpack.c.bf16 %v6815_v37, %v2375_v10  ;;  %v2721_v49 = vadd.f32 %v2719_v26, %v2705_v29 }
 0x560   : > { %v2488_v35 = vmul.f32 %v2487_v44, %v2478_v39 }
 0x561   : > { %v2820_v41 = vmul.f32 %v6075_v22, %v2721_v49 }
 0x562   : > { %v2490_v24 = vadd.f32 %v2488_v35, %v2474_v31  ;;  %v2839_v14 = vpop.permute.xlu0 %2838 }
 0x563   : > { %v1920_v25 = vpop.permute.xlu1 %1919 }
 0x564   : > { %v2589_v34 = vmul.f32 %v6067_v36, %v2490_v24  ;;  %5511 = vmatmul.mubr.msk.f32.vlgmr.msra.gmra.mrb[8].mxu1 %vm996_vm6, %v1920_v25  ;;  %v5785_v18 = vpack.c.bf16 %v6889_v33, %v2490_v24 }
 0x565   : > { %5777 = vmatpush3.bf16.msra.mxu1 %v5776_v28  ;;  %5524 = vmatprep.mubr.msk.f32.mxu1 %vm6236_vm8, %v7538_v19 }
 0x566   : > { %v2605_v44 = vadd.f32 %v2603_v47, %v2589_v34  ;;  %5781 = vmatprep.subr.bf16.mxu1 %v7537_v58 }
 0x567   : > { %v2708_v63 = vpop.permute.xlu1 %2707 }
 0x568   : > { %v2704_v2 = vmul.f32 %v6071_v20, %v2605_v44  ;;  %v2718_v9 = vmul.f32 %v2717_v46, %v2708_v63  ;;  %5525 = vmatmul.mubr.msk.f32.vlgmr.msra.gmra.mrb[10].mxu1 %vm996_vm6, %v2149_v1  ;;  %v5788_v37 = vpack.c.bf16 %v2606_v5, %v2605_v44 }
 0x569   : > { %5783 = vmatpush3.bf16.msra.mxu1 %v5782_v30  ;;  %5538 = vmatprep.mubr.msk.f32.mxu1 %vm6236_vm8, %v7538_v19 }
 0x56a   : > { %v2720_v57 = vadd.f32 %v2718_v9, %v2704_v2  ;;  %5787 = vmatprep.subr.bf16.mxu1 %v7537_v58 }
 0x56c   : > { %v2819_v50 = vmul.f32 %v6073_v56, %v2720_v57  ;;  %v2827_v17 = vpop.permute.xlu1 %2826  ;;  %5539 = vmatmul.mubr.msk.f32.vlgmr.msra.gmra.mrb[12].mxu1 %vm996_vm6, %v2379_v48  ;;  %v5791_v59 = vpack.c.bf16 %v2721_v49, %v2720_v57 }
 0x56d   : > { %v2834_v7 = vmul.f32 %v2832_v42, %v2827_v17  ;;  %5789 = vmatpush3.bf16.msra.mxu1 %v5788_v37  ;;  %5552 = vmatprep.mubr.msk.f32.mxu1 %vm6236_vm8, %v7538_v19 }
 0x56e   : > { %v2835_v21 = vadd.f32 %v2833_v60, %v2819_v50  ;;  %5793 = vmatprep.subr.bf16.mxu1 %v7537_v58 }
 0x56f   : > { %v2836_v6 = vadd.f32 %v2834_v7, %v2820_v41 }
 0x570   : > { %v2034_v8 = vpop.permute.xlu1 %2033  ;;  %5553 = vmatmul.mubr.msk.f32.vlgmr.msra.gmra.mrb[14].mxu1 %vm996_vm6, %v2609_v27 }
 0x571   : > { %v5794_v15 = vpack.c.bf16 %v2836_v6, %v2835_v21  ;;  %5518 = vmatmul.mubr.msk.f32.vlgmr.msra.gmra.mrb[8].mxu0 %vm996_vm6, %v2034_v8  ;;  %5566 = vmatprep.mubr.msk.f32.mxu1 %vm6236_vm8, %v7538_v19 }
 0x572   : > { %5780 = vmatpush3.bf16.msra.mxu0 %v5779_v12  ;;  %5531 = vmatprep.mubr.msk.f32.mxu0 %vm6236_vm8, %v7538_v19 }
 0x573   : > { %5795 = vmatpush3.bf16.msra.mxu1 %v5794_v15  ;;  %5784 = vmatprep.subr.bf16.mxu0 %v7537_v58 }
 0x574   : > { %v2264_v32 = vpop.permute.xlu1 %2263 }
 0x575   : > { %5532 = vmatmul.mubr.msk.f32.vlgmr.msra.gmra.mrb[10].mxu0 %vm996_vm6, %v2264_v32 }
 0x576   : > { %5786 = vmatpush3.bf16.msra.mxu0 %v5785_v18  ;;  %5545 = vmatprep.mubr.msk.f32.mxu0 %vm6236_vm8, %v7538_v19 }
 0x577   : > { %5790 = vmatprep.subr.bf16.mxu0 %v7537_v58  ;;  %5567 = vmatmul.mubr.msk.f32.vlgmr.msra.gmra.mrb[16].mxu1 %vm996_vm6, %v2839_v14 }
 0x578   : > { %v2494_v13 = vpop.permute.xlu1 %2493 }
 0x579   : > { %5546 = vmatmul.mubr.msk.f32.vlgmr.msra.gmra.mrb[12].mxu0 %vm996_vm6, %v2494_v13 }
 0x57a   : > { %5792 = vmatpush3.bf16.msra.mxu0 %v5791_v59  ;;  %5559 = vmatprep.mubr.msk.f32.mxu0 %vm6236_vm8, %v7538_v19  ;;  %vm2683_vm8 = vcmp.eq.s32.totalorder %v6445_v52, 13 }
 0x57c   : > { %v2724_v33 = vpop.permute.xlu1 %2723 }
 0x57d   : > { %5560 = vmatmul.mubr.msk.f32.vlgmr.msra.gmra.mrb[14].mxu0 %vm996_vm6, %v2724_v33  ;;  %vm2453_vm6 = vcmp.eq.s32.totalorder %v6445_v52, 11 }
 0x5f8   : > { %v1184_v16 = vpop.f32.mrb[0].mxu1 }
 0x5f9   : > { %v5463_v4 = vpop.f32.mrb[1].mxu1  ;;  %v1197_v11 = vrot.slane %v1184_v16, %v6463_v61 }
 0x5fb   : > { %v1198_v38 = vsel %vm1188_vm9, %v1197_v11, 0.0  ;;  %vm2798_vm9 = vcmp.eq.s32.totalorder %v6445_v52, 14 }
 0x602   : > { %v1299_v58 = vpop.f32.mrb[2].mxu1 }
 0x603   : > { %v1312_v43 = vrot.slane %v1299_v58, %v6463_v61  ;;  %v5470_v10 = vpop.f32.mrb[3].mxu1 }
 0x605   : > { %v1313_v1 = vsel %vm1303_vm10, %v1312_v43, %v1198_v38  ;;  %vm2913_vm10 = vcmp.eq.s32.totalorder %v6445_v52, 15 }
 0x606   : > { %v1414_v39 = vpop.f32.mrb[2].mxu0 }
 0x607   : > { %v1427_v19 = vrot.slane %v1414_v39, %v6463_v61  ;;  %v5477_v31 = vpop.f32.mrb[3].mxu0 }
 0x609   : > { %v1428_v35 = vsel %vm1418_vm11, %v1427_v19, %v1313_v1 }
 0x613   : > { %v1529_v36 = vpop.f32.mrb[4].mxu1 }
 0x614   : > { %v1542_v5 = vrot.slane %v1529_v36, %v6463_v61  ;;  %v5484_v23 = vpop.f32.mrb[5].mxu1 }
 0x616   : > { %v1543_v24 = vsel %vm1533_vm12, %v1542_v5, %v1428_v35 }
 0x618   : > { %v1644_v46 = vpop.f32.mrb[4].mxu0 }
 0x619   : > { %v1657_v28 = vrot.slane %v1644_v46, %v6463_v61  ;;  %v5491_v25 = vpop.f32.mrb[5].mxu0 }
 0x61b   : > { %v1658_v47 = vsel %vm1648_vm13, %v1657_v28, %v1543_v24 }
 0x61c   : > { %v1759_v34 = vpop.f32.mrb[6].mxu1 }
 0x61d   : > { %v1772_v20 = vrot.slane %v1759_v34, %v6463_v61  ;;  %v5498_v29 = vpop.f32.mrb[7].mxu1 }
 0x61f   : > { %v1773_v40 = vsel %vm1763_vm14, %v1772_v20, %v1658_v47 }
 0x620   : > { %v1874_v44 = vpop.f32.mrb[6].mxu0 }
 0x621   : > { %v1887_v26 = vrot.slane %v1874_v44, %v6463_v61  ;;  %v5505_v30 = vpop.f32.mrb[7].mxu0 }
 0x623   : > { %v1888_v63 = vsel %vm1878_vm15, %v1887_v26, %v1773_v40 }
 0x637   : > { %v1989_v42 = vpop.f32.mrb[8].mxu1 }
 0x638   : > { %v2002_v2 = vrot.slane %v1989_v42, %v6463_v61  ;;  %v5512_v9 = vpop.f32.mrb[9].mxu1 }
 0x63a   : > { %v2003_v56 = vsel %vm1993_vm2, %v2002_v2, %v1888_v63 }
 0x63b   : > { %2924 = vst.msk [vmem:[#allocation6] sm:$0xff] %vm680_vm1, %v2003_v56  ;;  %v2218_v49 = vpop.f32.mrb[10].mxu1 }
 0x63c   : > { %v5526_v48 = vpop.f32.mrb[11].mxu1  ;;  %v2231_v7 = vrot.slane %v2218_v49, %v6463_v61 }
 0x63f   : > { %v2448_v22 = vpop.f32.mrb[12].mxu1 }
 0x640   : > { %v5540_v57 = vpop.f32.mrb[13].mxu1  ;;  %v2461_v12 = vrot.slane %v2448_v22, %v6463_v61 }
 0x643   : > { %v2678_v37 = vpop.f32.mrb[14].mxu1 }
 0x644   : > { %v2103_v60 = vpop.f32.mrb[8].mxu0  ;;  %v5554_v50 = vpop.f32.mrb[15].mxu1  ;;  %v2691_v33 = vrot.slane %v2678_v37, %v6463_v61 }
 0x645   : > { %v2116_v17 = vrot.slane %v2103_v60, %v6463_v61  ;;  %v5519_v41 = vpop.f32.mrb[9].mxu0 }
 0x647   : > { %v2118_v27 = vsel %vm2108_vm3, %v2116_v17, 0.0 }
 0x648   : > { %v2233_v21 = vsel %vm2223_vm4, %v2231_v7, %v2118_v27  ;;  %v2333_v6 = vpop.f32.mrb[10].mxu0 }
 0x649   : > { %v2346_v8 = vrot.slane %v2333_v6, %v6463_v61  ;;  %v5533_v15 = vpop.f32.mrb[11].mxu0 }
 0x64a   : > { %v2908_v18 = vpop.f32.mrb[16].mxu1 }
 0x64b   : > { %v2348_v32 = vsel %vm2338_vm5, %v2346_v8, %v2233_v21  ;;  %v5568_v14 = vpop.f32.mrb[17].mxu1  ;;  %v2921_v10 = vrot.slane %v2908_v18, %v6463_v61 }
 0x64c   : > { %v2463_v59 = vsel %vm2453_vm6, %v2461_v12, %v2348_v32  ;;  %v2563_v13 = vpop.f32.mrb[12].mxu0 }
 0x64d   : > { %v2576_v16 = vrot.slane %v2563_v13, %v6463_v61  ;;  %v5547_v4 = vpop.f32.mrb[13].mxu0 }
 0x64f   : > { %v2578_v11 = vsel %vm2568_vm7, %v2576_v16, %v2463_v59 }
 0x650   : > { %v2693_v58 = vsel %vm2683_vm8, %v2691_v33, %v2578_v11  ;;  %v2793_v43 = vpop.f32.mrb[14].mxu0 }
 0x651   : > { %v2806_v38 = vrot.slane %v2793_v43, %v6463_v61  ;;  %v5561_v1 = vpop.f32.mrb[15].mxu0 }
 0x653   : > { %v2808_v39 = vsel %vm2798_vm9, %v2806_v38, %v2693_v58 }
 0x654   : > { %v2923_v19 = vsel %vm2913_vm10, %v2921_v10, %v2808_v39 }
 0x655   : > { %2925 = vst.msk [vmem:[#allocation6 + $0x8] sm:$0xff] %vm680_vm1, %v2923_v19 }
 0x656 PF: > { %p5242_p8 = scmp.ne.s32.totalorder %s6202_s18, 1 }
 0x657   : > { %v6971_v31 = vld [vmem:[#allocation5] sm:$0xff] (!%p5242_p8)  ;;  %v6973_v35 = vld [vmem:[#allocation5 + $0x8] sm:$0xff] (!%p5242_p8)  ;;  %vm2938_vm11 = vcmask (!%p5242_p8), 130048   ;;  %v6242_v24 = vmov (!%p5242_p8), 14   ;;  %v6243_v46 = vmov (!%p5242_p8), 15   ;;  %s6244_s29 = smov (!%p5242_p8), 112  }
 0x658   : > { %2929 = sbr.rel (%p5242_p8) target bundleno = 2313 (0x909), region = 84  ;;  %v5796_v36 = vpack.c.bf16 (!%p5242_p8), %v6973_v35, %v6971_v31  ;;  %vm5797_vm12 = vmpackc.low (!%p5242_p8), %vm2938_vm11, %vm2938_vm11  ;;  %5573 = vmatprep.mubr.msk.f32.mxu0 (!%p5242_p8), %vm2938_vm11, %v6448_v53  ;;  %v3171_v5 = vrot.slane (!%p5242_p8), %v6973_v35, 6  ;;  %v3056_v23 = vrot.slane (!%p5242_p8), %v6973_v35, 7  ;;  %6077 = vset.pattern.permute.xlu1 (!%p5242_p8), %v6242_v24  ;;  %v6245_v25 = vmov (!%p5242_p8), 13   ;;  %v2933_v43 = vld [vmem:[#allocation4 + $0x8] sm:$0xff] (!%p5242_p8) }
 0x659   : > { %6076 = vset.pattern.permute.xlu0 (!%p5242_p8), %v6243_v46  ;;  %v6246_v47 = vmov (!%p5242_p8), 12   ;;  %v6247_v34 = vmov (!%p5242_p8), 11   ;;  %v6248_v20 = vmov (!%p5242_p8), 9   ;;  %v6250_v29 = vmov (!%p5242_p8), 6  }
 0x65a   : > { %5798 = vmatprep.subr.msk.bf16.mxu0 (!%p5242_p8), %vm5797_vm12, %v5796_v36  ;;  %3172 = vrot.lane.b32.xlu1 (!%p5242_p8), %v3171_v5, %s6244_s29  ;;  %v6251_v40 = vmov (!%p5242_p8), 8   ;;  %v6252_v44 = vmov (!%p5242_p8), 4   ;;  %v6253_v26 = vmov (!%p5242_p8), 7   ;;  %v6254_v30 = vmov (!%p5242_p8), 5   ;;  %v2931_v27 = vld [vmem:[#allocation3 + $0x8] sm:$0xff] (!%p5242_p8) }
 0x65b   : > { %5801 = vmatpush3.bf16.xpose.msk.msra.mxu0 (!%p5242_p8), %vm5797_vm12, %v5796_v36  ;;  %3057 = vrot.lane.b32.xlu0 (!%p5242_p8), %v3056_v23, %s6244_s29  ;;  %v6255_v63 = vmov (!%p5242_p8), 0.0|0.0   ;;  %vm6256_vm13 = vmmov (!%p5242_p8), 0   ;;  %v6257_v42 = vmov (!%p5242_p8), 0.0   ;;  %v6258_v2 = vmov (!%p5242_p8), 3  }
 0x65c   : > { %5802 = vmatprep.subr.bf16.mxu1 (!%p5242_p8), %v6255_v63  ;;  %5808 = vmatprep.subr.bf16.mxu0 (!%p5242_p8), %v6255_v63  ;;  %v3286_v9 = vrot.slane (!%p5242_p8), %v6973_v35, 5  ;;  %v3401_v56 = vrot.slane (!%p5242_p8), %v6973_v35, 4  ;;  %v3631_v49 = vrot.slane (!%p5242_p8), %v6973_v35, 2  ;;  %v6259_v48 = vmov (!%p5242_p8), 2  }
 0x65d   : > { %5580 = vmatprep.mubr.msk.f32.mxu1 (!%p5242_p8), %vm6256_vm13, %v6257_v42  ;;  %v6260_v22 = vmov (!%p5242_p8), 1   ;;  %v3516_v57 = vrot.slane (!%p5242_p8), %v6973_v35, 3  ;;  %v4090_v37 = vrot.slane (!%p5242_p8), %v6971_v31, 6  ;;  %v6261_v60 = vmov (!%p5242_p8), 0  }
 0x65e   : > { %v4320_v50 = vrot.slane (!%p5242_p8), %v6971_v31, 4  ;;  %v3746_v17 = vrot.slane (!%p5242_p8), %v6973_v35, 1  ;;  %v4550_v41 = vrot.slane (!%p5242_p8), %v6971_v31, 2  ;;  %v7054_v7 = vsub.s32 (!%p5242_p8), 7, %v6433_v45 }
 0x65f   : > { %v7059_v6 = vsub.s32 6, %v6433_v45  ;;  %v3975_v8 = vrot.slane %v6971_v31, 7  ;;  %v7068_v18 = vsub.s32 5, %v6433_v45  ;;  %v4205_v14 = vrot.slane %v6971_v31, 5 }
 0x660   : > { %v3029_v21 = vrot.slane %v2931_v27, %v7054_v7  ;;  %v7078_v33 = vsub.s32 4, %v6433_v45  ;;  %v4435_v16 = vrot.slane %v6971_v31, 3  ;;  %v4665_v10 = vrot.slane %v6971_v31, 1 }
 0x661   : > { %v7065_v15 = vrot.slane %v2931_v27, %v7059_v6  ;;  %v7075_v13 = vrot.slane %v2931_v27, %v7068_v18  ;;  %v7092_v39 = vrot.slane %v2931_v27, %v6477_v3  ;;  %v7094_v19 = vmul.f32 %v2933_v43, %v2931_v27 }
 0x662   : > { %5574 = vmatmul.mubr.msk.f32.vlgmr.msra.gmra.mrb[0].mxu0 %vm2938_vm11, %v6451_v55  ;;  %v6249_v55 = vmov 10   ;;  %v3031_v12 = vmul.f32 %v3029_v21, %v6501_v54  ;;  %v7085_v58 = vrot.slane %v2931_v27, %v7078_v33  ;;  %vm3132_vm14 = vcmp.eq.s32.totalorder %v6445_v52, 15 }
 0x663   : > { %5594 = vmatprep.mubr.msk.f32.mxu0 %vm6256_vm13, %v6257_v42  ;;  %v3148_v59 = vmul.f32 %v7065_v15, %v6501_v54  ;;  %v3263_v11 = vmul.f32 %v7075_v13, %v6501_v54  ;;  %vm3247_vm15 = vcmp.eq.s32.totalorder %v6445_v52, 14  ;;  %vm3362_vm2 = vcmp.eq.s32.totalorder %v6445_v52, 13 }
 0x664   : > { %v3034_v32 = vmul.f32 1.442695, %v3031_v12  ;;  %v3378_v1 = vmul.f32 %v7085_v58, %v6501_v54  ;;  %vm3477_vm3 = vcmp.eq.s32.totalorder %v6445_v52, 12  ;;  %vm3592_vm4 = vcmp.eq.s32.totalorder %v6445_v52, 11 }
 0x665   : > { %v3151_v4 = vmul.f32 1.442695, %v3148_v59  ;;  %v3266_v38 = vmul.f32 1.442695, %v3263_v11  ;;  %vm3707_vm5 = vcmp.eq.s32.totalorder %v6445_v52, 10  ;;  %vm3822_vm6 = vcmp.eq.s32.totalorder %v6445_v52, 9 }
 0x666   : > { %6108 = vpow2.f32 %v3034_v32  ;;  %v3381_v23 = vmul.f32 1.442695, %v3378_v1  ;;  %v7148_v32 = vrot.slane %v7094_v19, %v7078_v33  ;;  %vm3936_vm7 = vcmp.eq.s32.totalorder %v6445_v52, 8 }
 0x667   : > { %6110 = vpow2.f32 %v3151_v4  ;;  %vm4050_vm8 = vcmp.eq.s32.totalorder %v6433_v45, 7  ;;  %vm4165_vm9 = vcmp.eq.s32.totalorder %v6433_v45, 6  ;;  %vm4280_vm10 = vcmp.eq.s32.totalorder %v6433_v45, 5 }
 0x668   : > { %6112 = vpow2.f32 %v3266_v38  ;;  %vm4510_vm12 = vcmp.eq.s32.totalorder %v6433_v45, 3 }
 0x669   : > { %6114 = vpow2.f32 %v3381_v23 }
 0x670   : > { %v6109_v36 = vpop.eup %6108 }
 0x6cc   : > { %v7099_v5 = vpop.permute.xlu1 %3172 }
 0x735   : > { %v6987_v28 = vpop.f32.mrb[0].mxu0 }
 0x736   : > { %3160 = vperm.xlu1 %6077, %v6987_v28   ;;  %3045 = vperm.xlu0 %6076, %v6987_v28   ;;  %v6991_v53 = vpop.f32.mrb[1].mxu0 }
 0x73a   : > { %6078 = vset.pattern.permute.xlu1 %v6245_v25  ;;  %6079 = vset.pattern.permute.xlu0 %v6246_v47 }
 0x73b   : > { %3275 = vperm.xlu1 %6078, %v6987_v28   ;;  %3390 = vperm.xlu0 %6079, %v6987_v28  }
 0x73f   : > { %6080 = vset.pattern.permute.xlu1 %v6247_v34  ;;  %6082 = vset.pattern.permute.xlu0 %v6248_v20 }
 0x740   : > { %3505 = vperm.xlu1 %6080, %v6987_v28   ;;  %3735 = vperm.xlu0 %6082, %v6987_v28  }
 0x744   : > { %6081 = vset.pattern.permute.xlu1 %v6249_v55  ;;  %6085 = vset.pattern.permute.xlu0 %v6250_v29 }
 0x745   : > { %3620 = vperm.xlu1 %6081, %v6987_v28   ;;  %4079 = vperm.xlu0 %6085, %v6987_v28  }
 0x749   : > { %6083 = vset.pattern.permute.xlu1 %v6251_v40  ;;  %6087 = vset.pattern.permute.xlu0 %v6252_v44 }
 0x74a   : > { %3850 = vperm.xlu1 %6083, %v6987_v28   ;;  %4309 = vperm.xlu0 %6087, %v6987_v28  }
 0x74e   : > { %6084 = vset.pattern.permute.xlu1 %v6253_v26  ;;  %6088 = vset.pattern.permute.xlu0 %v6243_v46  ;;  %v7108_v46 = vrot.slane %v7094_v19, %v7054_v7 }
 0x74f   : > { %3964 = vperm.xlu1 %6084, %v6987_v28   ;;  %3040 = vperm.xlu0 %6088, %v6991_v53  }
 0x753   : > { %6086 = vset.pattern.permute.xlu1 %v6254_v30  ;;  %6090 = vset.pattern.permute.xlu0 %v6245_v25 }
 0x754   : > { %4194 = vperm.xlu1 %6086, %v6987_v28   ;;  %3271 = vperm.xlu0 %6090, %v6991_v53  }
 0x758   : > { %6089 = vset.pattern.permute.xlu1 %v6242_v24  ;;  %6091 = vset.pattern.permute.xlu0 %v6258_v2  ;;  %v7104_v24 = vrot.slane %v2931_v27, %v6472_v0 }
 0x759   : > { %3156 = vperm.xlu1 %6089, %v6991_v53   ;;  %4424 = vperm.xlu0 %6091, %v6987_v28  }
 0x75d   : > { %3287 = vrot.lane.b32.xlu1 %v3286_v9, %s6244_s29  ;;  %6095 = vset.pattern.permute.xlu0 %v6249_v55  ;;  %v7117_v55 = vrot.slane %v7094_v19, %v7059_v6  ;;  %v7126_v9 = vrot.slane %v2931_v27, %v6463_v61 }
 0x75e   : > { %3616 = vperm.xlu0 %6095, %v6991_v53   ;;  %6092 = vset.pattern.permute.xlu1 %v6259_v48 }
 0x761   : > { %3402 = vrot.lane.b32.xlu1 %v3401_v56, %s6244_s29 }
 0x762   : > { %3632 = vrot.lane.b32.xlu0 %v3631_v49, %s6244_s29 }
 0x763   : > { %6098 = vset.pattern.permute.xlu0 %v6253_v26  ;;  %v3030_v26 = vmul.f32 %v3029_v21, %v6496_v51 }
 0x765   : > { %4539 = vperm.xlu1 %6092, %v6987_v28  }
 0x766   : > { %3960 = vperm.xlu0 %6098, %v6991_v53  }
 0x769   : > { %6093 = vset.pattern.permute.xlu1 %v6246_v47 }
 0x76a   : > { %3386 = vperm.xlu1 %6093, %v6991_v53   ;;  %6099 = vset.pattern.permute.xlu0 %v6260_v22 }
 0x76b   : > { %4654 = vperm.xlu0 %6099, %v6987_v28  }
 0x76e   : > { %6094 = vset.pattern.permute.xlu1 %v6247_v34  ;;  %v3608_v34 = vmul.f32 %v7104_v24, %v6501_v54 }
 0x76f   : > { %3501 = vperm.xlu1 %6094, %v6991_v53   ;;  %6104 = vset.pattern.permute.xlu0 %v6259_v48 }
 0x770   : > { %4535 = vperm.xlu0 %6104, %v6991_v53  }
 0x773   : > { %3517 = vrot.lane.b32.xlu1 %v3516_v57, %s6244_s29 }
 0x774   : > { %4091 = vrot.lane.b32.xlu0 %v4090_v37, %s6244_s29  ;;  %6096 = vset.pattern.permute.xlu1 %v6248_v20  ;;  %v7113_v20 = vrot.slane %v2931_v27, %v6466_v62  ;;  %v3838_v27 = vmul.f32 %v7126_v9, %v6501_v54 }
 0x775   : > { %6107 = vset.pattern.permute.xlu0 %v6261_v60 }
 0x776   : > { %v3841_v11 = vmul.f32 1.442695, %v3838_v27 }
 0x777   : > { %3731 = vperm.xlu1 %6096, %v6991_v53  }
 0x778   : > { %4765 = vperm.xlu0 %6107, %v6991_v53  }
 0x77b   : > { %6097 = vset.pattern.permute.xlu1 %v6251_v40  ;;  %v6111_v40 = vpop.eup %6110 }
 0x77c   : > { %3846 = vperm.xlu1 %6097, %v6991_v53   ;;  %4321 = vrot.lane.b32.xlu0 %v4320_v50, %s6244_s29  ;;  %v6113_v37 = vpop.eup %6112  ;;  %v7136_v50 = vld [vmem:[#allocation3] sm:$0xff] }
 0x77d   : > { %v7142_v21 = vrot.slane %v7136_v50, %v7054_v7 }
 0x77f   : > { %v3952_v43 = vmul.f32 %v7142_v21, %v6501_v54 }
 0x780   : > { %3747 = vrot.lane.b32.xlu1 %v3746_v17, %s6244_s29  ;;  %4551 = vrot.lane.b32.xlu0 %v4550_v41, %s6244_s29  ;;  %v3032_v17 = vmul.f32 1.442695, %v3030_v26 }
 0x781   : > { %6100 = vset.pattern.permute.xlu1 %v6250_v29 }
 0x784   : > { %4075 = vperm.xlu1 %6100, %v6991_v53   ;;  %4780 = vrot.lane.b32.xlu0 %v6971_v31, %s6244_s29  ;;  %v3493_v31 = vmul.f32 %v7092_v39, %v6501_v54 }
 0x786   : > { %v3496_v47 = vmul.f32 1.442695, %v3493_v31 }
 0x788   : > { %6101 = vset.pattern.permute.xlu1 %v6254_v30  ;;  %6116 = vpow2.f32 %v3496_v47  ;;  %v3611_v30 = vmul.f32 1.442695, %v3608_v34  ;;  %v3955_v47 = vmul.f32 1.442695, %v3952_v43  ;;  %v2932_v43 = vld [vmem:[#allocation4] sm:$0xff] }
 0x789   : > { %4190 = vperm.xlu1 %6101, %v6991_v53  }
 0x78a   : > { %6118 = vpow2.f32 %v3611_v30  ;;  %v7180_v30 = vrot.slane %v7094_v19, %v6472_v0 }
 0x78b   : > { %6120 = vpow2.f32 %v3032_v17 }
 0x78d   : > { %6102 = vset.pattern.permute.xlu1 %v6252_v44 }
 0x78e   : > { %4305 = vperm.xlu1 %6102, %v6991_v53  }
 0x792   : > { %6103 = vset.pattern.permute.xlu1 %v6258_v2  ;;  %v3723_v2 = vmul.f32 %v7113_v20, %v6501_v54 }
 0x793   : > { %4420 = vperm.xlu1 %6103, %v6991_v53  }
 0x794   : > { %v3726_v41 = vmul.f32 1.442695, %v3723_v2 }
 0x796   : > { %6122 = vpow2.f32 %v3726_v41  ;;  %v7192_v41 = vrot.slane %v7136_v50, %v7078_v33 }
 0x797   : > { %3861 = vrot.lane.b32.xlu1 %v6973_v35, %s6244_s29  ;;  %v7096_v35 = vpop.permute.xlu0 %3057  ;;  %6124 = vpow2.f32 %v3841_v11 }
 0x798   : > { %6105 = vset.pattern.permute.xlu1 %v6260_v22  ;;  %v7132_v22 = vrot.slane %v7094_v19, %v7068_v18  ;;  %6126 = vpow2.f32 %v3955_v47 }
 0x79b   : > { %4650 = vperm.xlu1 %6105, %v6991_v53  }
 0x79f   : > { %6106 = vset.pattern.permute.xlu1 %v6261_v60 }
 0x7a0   : > { %4769 = vperm.xlu1 %6106, %v6987_v28   ;;  %v3037_v28 = vmul.f32 0.0, %v6109_v36  ;;  %v7162_v36 = vrot.slane %v7094_v19, %v6477_v3 }
 0x7a4   : > { %3976 = vrot.lane.b32.xlu1 %v3975_v8, %s6244_s29 }
 0x7a8   : > { %4206 = vrot.lane.b32.xlu1 %v4205_v14, %s6244_s29  ;;  %v6115_v14 = vpop.eup %6114 }
 0x7a9   : > { %v6117_v23 = vpop.eup %6116 }
 0x7aa   : > { %v6119_v2 = vpop.eup %6118 }
 0x7ab   : > { %v6121_v27 = vpop.eup %6120 }
 0x7ac   : > { %4436 = vrot.lane.b32.xlu1 %v4435_v16, %s6244_s29 }
 0x7b0   : > { %4666 = vrot.lane.b32.xlu1 %v4665_v10, %s6244_s29  ;;  %v7156_v10 = vrot.slane %v7136_v50, %v7059_v6 }
 0x7b2   : > { %v4067_v34 = vmul.f32 %v7156_v10, %v6501_v54 }
 0x7b5   : > { %v3161_v53 = vpop.permute.xlu1 %3160  ;;  %v3046_v25 = vpop.permute.xlu0 %3045 }
 0x7b6   : > { %v3053_v29 = vmul.f32 %v7108_v46, %v3046_v25  ;;  %v3168_v56 = vmul.f32 %v7117_v55, %v3161_v53  ;;  %v3147_v25 = vmul.f32 %v7065_v15, %v6496_v51 }
 0x7b8   : > { %v7120_v44 = vadd.f32 %v3053_v29, %v3037_v28  ;;  %v7174_v29 = vrot.slane %v7136_v50, %v7068_v18  ;;  %v3149_v15 = vmul.f32 1.442695, %v3147_v25 }
 0x7ba   : > { %v3154_v49 = vmul.f32 %v6111_v40, %v7120_v44  ;;  %v3276_v48 = vpop.permute.xlu1 %3275  ;;  %v3391_v57 = vpop.permute.xlu0 %3390  ;;  %v4182_v17 = vmul.f32 %v7174_v29, %v6501_v54  ;;  %6128 = vpow2.f32 %v3149_v15  ;;  %v7212_v15 = vmul.f32 %v2932_v43, %v7136_v50 }
 0x7bb   : > { %v3283_v8 = vmul.f32 %v7132_v22, %v3276_v48  ;;  %v3398_v1 = vmul.f32 %v7148_v32, %v3391_v57 }
 0x7bc   : > { %v7134_v60 = vadd.f32 %v3168_v56, %v3154_v49  ;;  %v3262_v49 = vmul.f32 %v7075_v13, %v6496_v51 }
 0x7be   : > { %v3269_v12 = vmul.f32 %v6113_v37, %v7134_v60  ;;  %v4070_v37 = vmul.f32 1.442695, %v4067_v34  ;;  %v3264_v11 = vmul.f32 1.442695, %v3262_v49  ;;  %v7208_v34 = vrot.slane %v7094_v19, %v6463_v61 }
 0x7bf   : > { %v3506_v59 = vpop.permute.xlu1 %3505  ;;  %v3736_v16 = vpop.permute.xlu0 %3735 }
 0x7c0   : > { %v7150_v4 = vadd.f32 %v3283_v8, %v3269_v12  ;;  %v3513_v26 = vmul.f32 %v7162_v36, %v3506_v59  ;;  %v7196_v12 = vrot.slane %v7094_v19, %v6466_v62  ;;  %6130 = vpow2.f32 %v4070_v37 }
 0x7c1   : > { %6132 = vpow2.f32 %v3264_v11  ;;  %v7220_v19 = vrot.slane %v7212_v15, %v7054_v7  ;;  %v3377_v11 = vmul.f32 %v7085_v58, %v6496_v51 }
 0x7c2   : > { %v3384_v38 = vmul.f32 %v6115_v14, %v7150_v4  ;;  %v6123_v14 = vpop.eup %6122  ;;  %v3743_v25 = vmul.f32 %v7196_v12, %v3736_v16 }
 0x7c3   : > { %v3379_v58 = vmul.f32 1.442695, %v3377_v11 }
 0x7c4   : > { %v7164_v31 = vadd.f32 %v3398_v1, %v3384_v38  ;;  %v3621_v28 = vpop.permute.xlu1 %3620  ;;  %v7166_v53 = vpop.permute.xlu0 %4079  ;;  %v3036_v38 = vmul.f32 0.0, %v6121_v27  ;;  %v4185_v1 = vmul.f32 1.442695, %v4182_v17 }
 0x7c5   : > { %v3628_v13 = vmul.f32 %v7180_v30, %v3621_v28 }
 0x7c6   : > { %v3499_v40 = vmul.f32 %v6117_v23, %v7164_v31  ;;  %v4297_v23 = vmul.f32 %v7192_v41, %v6501_v54  ;;  %6134 = vpow2.f32 %v4185_v1 }
 0x7c8   : > { %v7182_v56 = vadd.f32 %v3513_v26, %v3499_v40  ;;  %v6125_v26 = vpop.eup %6124  ;;  %v4300_v16 = vmul.f32 1.442695, %v4297_v23 }
 0x7c9   : > { %v3851_v48 = vpop.permute.xlu1 %3850  ;;  %v7186_v57 = vpop.permute.xlu0 %4309 }
 0x7ca   : > { %v3614_v8 = vmul.f32 %v6119_v2, %v7182_v56  ;;  %v3858_v27 = vmul.f32 %v7208_v34, %v3851_v48  ;;  %6136 = vpow2.f32 %v4300_v16 }
 0x7cb   : > { %6138 = vpow2.f32 %v3379_v58 }
 0x7cc   : > { %v7200_v59 = vadd.f32 %v3628_v13, %v3614_v8  ;;  %v6127_v8 = vpop.eup %6126 }
 0x7cd   : > { %v6129_v43 = vpop.eup %6128 }
 0x7ce   : > { %v3729_v47 = vmul.f32 %v6123_v14, %v7200_v59  ;;  %v3965_v28 = vpop.permute.xlu1 %3964  ;;  %v3041_v40 = vpop.permute.xlu0 %3040 }
 0x7cf   : > { %v3052_v2 = vmul.f32 %v7108_v46, %v3041_v40  ;;  %v3972_v7 = vmul.f32 %v7220_v19, %v3965_v28  ;;  %v6131_v1 = vpop.eup %6130 }
 0x7d0   : > { %v7214_v49 = vadd.f32 %v3743_v25, %v3729_v47  ;;  %v6133_v28 = vpop.eup %6132 }
 0x7d1   : > { %v3054_v37 = vadd.f32 %v3052_v2, %v3036_v38  ;;  %v7229_v38 = vrot.slane %v7212_v15, %v7059_v6  ;;  %v3492_v6 = vmul.f32 %v7092_v39, %v6496_v51  ;;  %v7248_v2 = vrot.slane %v7212_v15, %v7068_v18 }
 0x7d2   : > { %v3844_v17 = vmul.f32 %v6125_v26, %v7214_v49 }
 0x7d3   : > { %v4195_v13 = vpop.permute.xlu1 %4194  ;;  %v5803_v46 = vpack.c.bf16 %v7120_v44, %v3054_v37  ;;  %v3153_v25 = vmul.f32 %v6129_v43, %v3054_v37  ;;  %v4087_v40 = vmul.f32 %v7229_v38, %v7166_v53  ;;  %v6135_v37 = vpop.eup %6134  ;;  %v7256_v53 = vrot.slane %v7212_v15, %v7078_v33 }
 0x7d4   : > { %v7223_v14 = vadd.f32 %v3858_v27, %v3844_v17  ;;  %v4202_v11 = vmul.f32 %v7248_v2, %v4195_v13  ;;  %v3607_v43 = vmul.f32 %v7104_v24, %v6496_v51  ;;  %v3722_v13 = vmul.f32 %v7113_v20, %v6496_v51 }
 0x7d5   : > { %5804 = vmatpush3.bf16.msra.mxu1 %v5803_v46  ;;  %v3494_v46 = vmul.f32 1.442695, %v3492_v6  ;;  %v4317_v33 = vmul.f32 %v7256_v53, %v7186_v57  ;;  %v3837_v57 = vmul.f32 %v7126_v9, %v6496_v51 }
 0x7d6   : > { %v3958_v48 = vmul.f32 %v6127_v8, %v7223_v14  ;;  %5805 = vmatprep.subr.bf16.mxu1 %v6255_v63  ;;  %v3609_v24 = vmul.f32 1.442695, %v3607_v43 }
 0x7d7   : > { %6140 = vpow2.f32 %v3494_v46 }
 0x7d8   : > { %v7234_v44 = vadd.f32 %v3972_v7, %v3958_v48  ;;  %v3157_v23 = vpop.permute.xlu1 %3156  ;;  %5581 = vmatmul.mubr.msk.f32.vlgmr.msra.gmra.mrb[0].mxu1 %vm2938_vm11, %v7096_v35  ;;  %v3272_v35 = vpop.permute.xlu0 %3271  ;;  %6142 = vpow2.f32 %v3609_v24  ;;  %v4525_v24 = vrot.slane %v7136_v50, %v6472_v0 }
 0x7d9   : > { %v3167_v47 = vmul.f32 %v7117_v55, %v3157_v23  ;;  %5587 = vmatprep.mubr.msk.f32.mxu1 %vm6256_vm13, %v6257_v42  ;;  %v3282_v27 = vmul.f32 %v7132_v22, %v3272_v35  ;;  %v6137_v48 = vpop.eup %6136 }
 0x7da   : > { %v4073_v26 = vmul.f32 %v6131_v1, %v7234_v44 }
 0x7db   : > { %v3169_v16 = vadd.f32 %v3167_v47, %v3153_v25  ;;  %v6139_v25 = vpop.eup %6138  ;;  %v3839_v47 = vmul.f32 1.442695, %v3837_v57 }
 0x7dc   : > { %v7250_v55 = vadd.f32 %v4087_v40, %v4073_v26  ;;  %v3288_v17 = vpop.permute.xlu1 %3287  ;;  %v7285_v6 = vpop.permute.xlu0 %4424  ;;  %v3951_v26 = vmul.f32 %v7142_v21, %v6496_v51 }
 0x7dd   : > { %v5806_v39 = vpack.c.bf16 %v7134_v60, %v3169_v16  ;;  %v3268_v8 = vmul.f32 %v6133_v28, %v3169_v16 }
 0x7de   : > { %v4188_v18 = vmul.f32 %v6135_v37, %v7250_v55  ;;  %v4410_v37 = vrot.slane %v7136_v50, %v6477_v3 }
 0x7df   : > { %v3284_v7 = vadd.f32 %v3282_v27, %v3268_v8  ;;  %5807 = vmatpush3.bf16.msra.mxu1 %v5806_v39  ;;  %v3953_v39 = vmul.f32 1.442695, %v3951_v26  ;;  %v4066_v8 = vmul.f32 %v7156_v10, %v6496_v51  ;;  %v4181_v10 = vmul.f32 %v7174_v29, %v6496_v51 }
 0x7e0   : > { %v7262_v1 = vadd.f32 %v4202_v11, %v4188_v18  ;;  %v3403_v22 = vpop.permute.xlu1 %3402  ;;  %5811 = vmatprep.subr.bf16.mxu1 %v6255_v63  ;;  %v3617_v18 = vpop.permute.xlu0 %3616  ;;  %v4412_v11 = vmul.f32 %v4410_v37, %v6501_v54 }
 0x7e1   : > { %v5809_v60 = vpack.c.bf16 %v7150_v4, %v3284_v7  ;;  %v3383_v28 = vmul.f32 %v6139_v25, %v3284_v7  ;;  %v6141_v9 = vpop.eup %6140  ;;  %v4183_v25 = vmul.f32 1.442695, %v4181_v10 }
 0x7e2   : > { %v4303_v23 = vmul.f32 %v6137_v48, %v7262_v1  ;;  %5588 = vmatmul.mubr.msk.f32.vlgmr.msra.gmra.mrb[2].mxu1 %vm2938_vm11, %v7099_v5  ;;  %v3724_v5 = vmul.f32 1.442695, %v3722_v13  ;;  %v6143_v46 = vpop.eup %6142  ;;  %v4068_v48 = vmul.f32 1.442695, %v4066_v8 }
 0x7e3   : > { %5810 = vmatpush3.bf16.msra.mxu0 %v5809_v60  ;;  %5601 = vmatprep.mubr.msk.f32.mxu1 %vm6256_vm13, %v6257_v42 }
 0x7e4   : > { %v7275_v58 = vadd.f32 %v4317_v33, %v4303_v23  ;;  %v7277_v4 = vpop.permute.xlu1 %4539  ;;  %5814 = vmatprep.subr.bf16.mxu0 %v6255_v63  ;;  %6144 = vpow2.f32 %v3724_v5  ;;  %v4415_v23 = vmul.f32 1.442695, %v4412_v11  ;;  %v4296_v5 = vmul.f32 %v7192_v41, %v6496_v51 }
 0x7e5   : > { %6146 = vpow2.f32 %v3839_v47  ;;  %v4527_v47 = vmul.f32 %v4525_v24, %v6501_v54 }
 0x7e6   : > { %5595 = vmatmul.mubr.msk.f32.vlgmr.msra.gmra.mrb[2].mxu0 %vm2938_vm11, %v3288_v17  ;;  %6148 = vpow2.f32 %v3953_v39  ;;  %v4298_v41 = vmul.f32 1.442695, %v4296_v5 }
 0x7e7   : > { %5608 = vmatprep.mubr.msk.f32.mxu0 %vm6256_vm13, %v6257_v42  ;;  %6150 = vpow2.f32 %v4068_v48 }
 0x7e8   : > { %6152 = vpow2.f32 %v4415_v23 }
 0x7e9   : > { %v3387_v20 = vpop.permute.xlu1 %3386  ;;  %6154 = vpow2.f32 %v4183_v25 }
 0x7ea   : > { %v3397_v40 = vmul.f32 %v7148_v32, %v3387_v20  ;;  %6156 = vpow2.f32 %v4298_v41 }
 0x7ec   : > { %v3399_v35 = vadd.f32 %v3397_v40, %v3383_v28 }
 0x7ee   : > { %v5812_v16 = vpack.c.bf16 %v7164_v31, %v3399_v35  ;;  %v3502_v17 = vpop.permute.xlu1 %3501  ;;  %v3498_v27 = vmul.f32 %v6141_v9, %v3399_v35  ;;  %v3627_v31 = vmul.f32 %v7180_v30, %v3617_v18  ;;  %v4411_v35 = vmul.f32 %v4410_v37, %v6496_v51 }
 0x7ef   : > { %v3512_v32 = vmul.f32 %v7162_v36, %v3502_v17  ;;  %v6145_v36 = vpop.eup %6144  ;;  %v4640_v17 = vrot.slane %v7136_v50, %v6466_v62  ;;  %v4526_v18 = vmul.f32 %v4525_v24, %v6496_v51  ;;  %v4755_v24 = vrot.slane %v7136_v50, %v6463_v61 }
 0x7f0   : > { %5813 = vmatpush3.bf16.msra.mxu1 %v5812_v16  ;;  %v6147_v30 = vpop.eup %6146  ;;  %v4413_v37 = vmul.f32 1.442695, %v4411_v35 }
 0x7f1   : > { %v3514_v21 = vadd.f32 %v3512_v32, %v3498_v27  ;;  %5817 = vmatprep.subr.bf16.mxu1 %v6255_v63  ;;  %v6149_v40 = vpop.eup %6148  ;;  %v4757_v50 = vmul.f32 %v4755_v24, %v6501_v54 }
 0x7f2   : > { %v3518_v43 = vpop.permute.xlu1 %3517  ;;  %v6151_v39 = vpop.eup %6150 }
 0x7f3   : > { %v5815_v7 = vpack.c.bf16 %v7182_v56, %v3514_v21  ;;  %v3613_v60 = vmul.f32 %v6143_v46, %v3514_v21  ;;  %5602 = vmatmul.mubr.msk.f32.vlgmr.msra.gmra.mrb[4].mxu1 %vm2938_vm11, %v3403_v22  ;;  %v3633_v56 = vpop.permute.xlu0 %3632  ;;  %v4642_v21 = vmul.f32 %v4640_v17, %v6501_v54 }
 0x7f4   : > { %5615 = vmatprep.mubr.msk.f32.mxu1 %vm6256_vm13, %v6257_v42 }
 0x7f5   : > { %5816 = vmatpush3.bf16.msra.mxu0 %v5815_v7  ;;  %v3629_v33 = vadd.f32 %v3627_v31, %v3613_v60  ;;  %v4430_v7 = vrot.slane %v7212_v15, %v6477_v3  ;;  %v4645_v23 = vmul.f32 1.442695, %v4642_v21 }
 0x7f6   : > { %v3732_v13 = vpop.permute.xlu1 %3731  ;;  %5820 = vmatprep.subr.bf16.mxu0 %v6255_v63 }
 0x7f7   : > { %v3728_v22 = vmul.f32 %v6145_v36, %v3629_v33  ;;  %v3742_v57 = vmul.f32 %v7196_v12, %v3732_v13  ;;  %v5818_v29 = vpack.c.bf16 %v7200_v59, %v3629_v33  ;;  %v3961_v9 = vpop.permute.xlu0 %3960  ;;  %v4528_v36 = vmul.f32 1.442695, %v4526_v18 }
 0x7f8   : > { %5609 = vmatmul.mubr.msk.f32.vlgmr.msra.gmra.mrb[4].mxu0 %vm2938_vm11, %v3518_v43  ;;  %v4641_v33 = vmul.f32 %v4640_v17, %v6496_v51 }
 0x7f9   : > { %v3744_v20 = vadd.f32 %v3742_v57, %v3728_v22  ;;  %5819 = vmatpush3.bf16.msra.mxu1 %v5818_v29  ;;  %5622 = vmatprep.mubr.msk.f32.mxu0 %vm6256_vm13, %v6257_v42  ;;  %v4432_v22 = vmul.f32 %v4430_v7, %v7285_v6  ;;  %v4756_v29 = vmul.f32 %v4755_v24, %v6496_v51 }
 0x7fa   : > { %5823 = vmatprep.subr.bf16.mxu1 %v6255_v63  ;;  %v4643_v57 = vmul.f32 1.442695, %v4641_v33  ;;  %v4545_v6 = vrot.slane %v7212_v15, %v6472_v0 }
 0x7fb   : > { %v5821_v12 = vpack.c.bf16 %v7214_v49, %v3744_v20  ;;  %v3847_v28 = vpop.permute.xlu1 %3846  ;;  %v3843_v59 = vmul.f32 %v6147_v30, %v3744_v20  ;;  %v4530_v49 = vmul.f32 1.442695, %v4527_v47  ;;  %v4655_v60 = vpop.permute.xlu0 %4654 }
 0x7fc   : > { %v3857_v26 = vmul.f32 %v7208_v34, %v3847_v28  ;;  %5616 = vmatmul.mubr.msk.f32.vlgmr.msra.gmra.mrb[6].mxu1 %vm2938_vm11, %v3633_v56  ;;  %v3971_v34 = vmul.f32 %v7220_v19, %v3961_v9  ;;  %v6153_v19 = vpop.eup %6152  ;;  %v4758_v28 = vmul.f32 1.442695, %v4756_v29  ;;  %v4547_v41 = vmul.f32 %v4545_v6, %v7277_v4 }
 0x7fd   : > { %5822 = vmatpush3.bf16.msra.mxu0 %v5821_v12  ;;  %5629 = vmatprep.mubr.msk.f32.mxu1 %vm6256_vm13, %v6257_v42  ;;  %6158 = vpow2.f32 %v4530_v49  ;;  %v6155_v31 = vpop.eup %6154 }
 0x7fe   : > { %v3859_v16 = vadd.f32 %v3857_v26, %v3843_v59  ;;  %5826 = vmatprep.subr.bf16.mxu0 %v6255_v63  ;;  %6160 = vpow2.f32 %v4413_v37  ;;  %v6157_v56 = vpop.eup %6156 }
 0x7ff   : > { %v3748_v27 = vpop.permute.xlu1 %3747  ;;  %6162 = vpow2.f32 %v4528_v36  ;;  %v4536_v20 = vpop.permute.xlu0 %4535 }
 0x800   : > { %v5824_v8 = vpack.c.bf16 %v7223_v14, %v3859_v16  ;;  %v3957_v32 = vmul.f32 %v6149_v40, %v3859_v16  ;;  %5623 = vmatmul.mubr.msk.f32.vlgmr.msra.gmra.mrb[6].mxu0 %vm2938_vm11, %v3748_v27  ;;  %6164 = vpow2.f32 %v4645_v23  ;;  %v4760_v40 = vmul.f32 1.442695, %v4757_v50 }
 0x801   : > { %5636 = vmatprep.mubr.msk.f32.mxu0 %vm6256_vm13, %v6257_v42  ;;  %6166 = vpow2.f32 %v4643_v57 }
 0x802   : > { %5825 = vmatpush3.bf16.msra.mxu1 %v5824_v8  ;;  %v3973_v46 = vadd.f32 %v3971_v34, %v3957_v32  ;;  %6168 = vpow2.f32 %v4758_v28  ;;  %v4660_v34 = vrot.slane %v7212_v15, %v6466_v62  ;;  %v4546_v32 = vmul.f32 %v4545_v6, %v4536_v20 }
 0x803   : > { %v4076_v11 = vpop.permute.xlu1 %4075  ;;  %5829 = vmatprep.subr.bf16.mxu1 %v6255_v63  ;;  %v4092_v9 = vpop.permute.xlu0 %4091  ;;  %6170 = vpow2.f32 %v4760_v40  ;;  %v4775_v62 = vrot.slane %v7212_v15, %v6463_v61 }
 0x804   : > { %v4072_v14 = vmul.f32 %v6151_v39, %v3973_v46  ;;  %v4086_v43 = vmul.f32 %v7229_v38, %v4076_v11  ;;  %v5827_v48 = vpack.c.bf16 %v7234_v44, %v3973_v46  ;;  %v4418_v38 = vmul.f32 %v6153_v19, %v7275_v58 }
 0x805   : > { %v4662_v11 = vmul.f32 %v4660_v34, %v4655_v60 }
 0x806   : > { %v4088_v10 = vadd.f32 %v4086_v43, %v4072_v14  ;;  %5828 = vmatpush3.bf16.msra.mxu0 %v5827_v48  ;;  %v7350_v5 = vadd.f32 %v4432_v22, %v4418_v38 }
 0x807   : > { %5832 = vmatprep.subr.bf16.mxu0 %v6255_v63  ;;  %v4766_v18 = vpop.permute.xlu0 %4765 }
 0x808   : > { %v5830_v44 = vpack.c.bf16 %v7250_v55, %v4088_v10  ;;  %v4191_v13 = vpop.permute.xlu1 %4190  ;;  %v4187_v30 = vmul.f32 %v6155_v31, %v4088_v10  ;;  %v6159_v55 = vpop.eup %6158  ;;  %v4776_v60 = vmul.f32 %v4775_v62, %v4766_v18 }
 0x809   : > { %v4201_v3 = vmul.f32 %v7248_v2, %v4191_v13  ;;  %v6161_v59 = vpop.eup %6160  ;;  %v4533_v54 = vmul.f32 %v6159_v55, %v7350_v5 }
 0x80a   : > { %v6163_v0 = vpop.eup %6162 }
 0x80b   : > { %v7347_v25 = vadd.f32 %v4201_v3, %v4187_v30  ;;  %v4549_v27 = vadd.f32 %v4547_v41, %v4533_v54  ;;  %v4322_v10 = vpop.permute.xlu0 %4321 }
 0x80d   : > { %v5833_v47 = vpack.c.bf16 %v7262_v1, %v7347_v25  ;;  %v4306_v2 = vpop.permute.xlu1 %4305  ;;  %v4302_v12 = vmul.f32 %v6157_v56, %v7347_v25 }
 0x80e   : > { %v4316_v51 = vmul.f32 %v7256_v53, %v4306_v2  ;;  %v6165_v53 = vpop.eup %6164 }
 0x80f   : > { %v4648_v46 = vmul.f32 %v6165_v53, %v4549_v27  ;;  %v4552_v13 = vpop.permute.xlu0 %4551 }
 0x810   : > { %v4318_v26 = vadd.f32 %v4316_v51, %v4302_v12 }
 0x812   : > { %v5836_v35 = vpack.c.bf16 %v7275_v58, %v4318_v26  ;;  %v4421_v16 = vpop.permute.xlu1 %4420  ;;  %v4417_v49 = vmul.f32 %v6161_v59, %v4318_v26  ;;  %v6167_v58 = vpop.eup %6166 }
 0x813   : > { %v4431_v17 = vmul.f32 %v4430_v7, %v4421_v16  ;;  %v6169_v31 = vpop.eup %6168  ;;  %v4664_v7 = vadd.f32 %v4662_v11, %v4648_v46  ;;  %v4781_v29 = vpop.permute.xlu0 %4780 }
 0x814   : > { %v6171_v36 = vpop.eup %6170 }
 0x815   : > { %v4433_v39 = vadd.f32 %v4431_v17, %v4417_v49  ;;  %v4763_v38 = vmul.f32 %v6171_v36, %v4664_v7 }
 0x816   : > { %v3862_v8 = vpop.permute.xlu1 %3861 }
 0x817   : > { %v5839_v37 = vpack.c.bf16 %v7350_v5, %v4433_v39  ;;  %v4532_v4 = vmul.f32 %v6163_v0, %v4433_v39  ;;  %5630 = vmatmul.mubr.msk.f32.vlgmr.msra.gmra.mrb[8].mxu1 %vm2938_vm11, %v3862_v8 }
 0x818   : > { %5831 = vmatpush3.bf16.msra.mxu1 %v5830_v44  ;;  %5643 = vmatprep.mubr.msk.f32.mxu1 %vm6256_vm13, %v6257_v42 }
 0x819   : > { %v4548_v21 = vadd.f32 %v4546_v32, %v4532_v4  ;;  %5835 = vmatprep.subr.bf16.mxu1 %v6255_v63 }
 0x81a   : > { %v4651_v19 = vpop.permute.xlu1 %4650 }
 0x81b   : > { %v4647_v14 = vmul.f32 %v6167_v58, %v4548_v21  ;;  %v4661_v43 = vmul.f32 %v4660_v34, %v4651_v19  ;;  %5644 = vmatmul.mubr.msk.f32.vlgmr.msra.gmra.mrb[10].mxu1 %vm2938_vm11, %v4092_v9  ;;  %v5842_v48 = vpack.c.bf16 %v4549_v27, %v4548_v21 }
 0x81c   : > { %5837 = vmatpush3.bf16.msra.mxu1 %v5836_v35  ;;  %5657 = vmatprep.mubr.msk.f32.mxu1 %vm6256_vm13, %v6257_v42 }
 0x81d   : > { %v4663_v33 = vadd.f32 %v4661_v43, %v4647_v14  ;;  %5841 = vmatprep.subr.bf16.mxu1 %v6255_v63 }
 0x81f   : > { %v5845_v23 = vpack.c.bf16 %v4664_v7, %v4663_v33  ;;  %v4762_v24 = vmul.f32 %v6169_v31, %v4663_v33  ;;  %v4770_v15 = vpop.permute.xlu1 %4769  ;;  %5658 = vmatmul.mubr.msk.f32.vlgmr.msra.gmra.mrb[12].mxu1 %vm2938_vm11, %v4322_v10 }
 0x820   : > { %v4777_v44 = vmul.f32 %v4775_v62, %v4770_v15  ;;  %5843 = vmatpush3.bf16.msra.mxu1 %v5842_v48  ;;  %5671 = vmatprep.mubr.msk.f32.mxu1 %vm6256_vm13, %v6257_v42 }
 0x821   : > { %v4778_v30 = vadd.f32 %v4776_v60, %v4762_v24  ;;  %5847 = vmatprep.subr.bf16.mxu1 %v6255_v63 }
 0x822   : > { %v4779_v3 = vadd.f32 %v4777_v44, %v4763_v38 }
 0x823   : > { %v3977_v56 = vpop.permute.xlu1 %3976  ;;  %5672 = vmatmul.mubr.msk.f32.vlgmr.msra.gmra.mrb[14].mxu1 %vm2938_vm11, %v4552_v13 }
 0x824   : > { %v5848_v22 = vpack.c.bf16 %v4779_v3, %v4778_v30  ;;  %5637 = vmatmul.mubr.msk.f32.vlgmr.msra.gmra.mrb[8].mxu0 %vm2938_vm11, %v3977_v56  ;;  %5685 = vmatprep.mubr.msk.f32.mxu1 %vm6256_vm13, %v6257_v42 }
 0x825   : > { %5834 = vmatpush3.bf16.msra.mxu0 %v5833_v47  ;;  %5650 = vmatprep.mubr.msk.f32.mxu0 %vm6256_vm13, %v6257_v42 }
 0x826   : > { %5849 = vmatpush3.bf16.msra.mxu1 %v5848_v22  ;;  %5838 = vmatprep.subr.bf16.mxu0 %v6255_v63 }
 0x827   : > { %v4207_v57 = vpop.permute.xlu1 %4206 }
 0x828   : > { %5651 = vmatmul.mubr.msk.f32.vlgmr.msra.gmra.mrb[10].mxu0 %vm2938_vm11, %v4207_v57 }
 0x829   : > { %5840 = vmatpush3.bf16.msra.mxu0 %v5839_v37  ;;  %5664 = vmatprep.mubr.msk.f32.mxu0 %vm6256_vm13, %v6257_v42 }
 0x82a   : > { %5844 = vmatprep.subr.bf16.mxu0 %v6255_v63  ;;  %5686 = vmatmul.mubr.msk.f32.vlgmr.msra.gmra.mrb[16].mxu1 %vm2938_vm11, %v4781_v29 }
 0x82b   : > { %v4437_v1 = vpop.permute.xlu1 %4436 }
 0x82c   : > { %5665 = vmatmul.mubr.msk.f32.vlgmr.msra.gmra.mrb[12].mxu0 %vm2938_vm11, %v4437_v1 }
 0x82d   : > { %5846 = vmatpush3.bf16.msra.mxu0 %v5845_v23  ;;  %5678 = vmatprep.mubr.msk.f32.mxu0 %vm6256_vm13, %v6257_v42  ;;  %vm4625_vm13 = vcmp.eq.s32.totalorder %v6433_v45, 2 }
 0x82f   : > { %v4667_v25 = vpop.permute.xlu1 %4666 }
 0x830   : > { %5679 = vmatmul.mubr.msk.f32.vlgmr.msra.gmra.mrb[14].mxu0 %vm2938_vm11, %v4667_v25  ;;  %vm4395_vm11 = vcmp.eq.s32.totalorder %v6433_v45, 4 }
 0x8ab   : > { %v3127_v50 = vpop.f32.mrb[0].mxu1 }
 0x8ac   : > { %v5582_v5 = vpop.f32.mrb[1].mxu1  ;;  %v3140_v20 = vrot.slane %v3127_v50, %v6463_v61 }
 0x8ae   : > { %v3142_v2 = vsel %vm3132_vm14, %v3140_v20, 0.0  ;;  %vm4740_vm14 = vcmp.eq.s32.totalorder %v6433_v45, 1 }
 0x8b5   : > { %v3242_v55 = vpop.f32.mrb[2].mxu1 }
 0x8b6   : > { %v3255_v63 = vrot.slane %v3242_v55, %v6463_v61  ;;  %v5589_v47 = vpop.f32.mrb[3].mxu1 }
 0x8b8   : > { %v3257_v12 = vsel %vm3247_vm15, %v3255_v63, %v3142_v2  ;;  %vm4854_vm15 = vcmp.eq.s32.totalorder %v6433_v45, 0 }
 0x8b9   : > { %v3357_v6 = vpop.f32.mrb[2].mxu0 }
 0x8ba   : > { %v3370_v42 = vrot.slane %v3357_v6, %v6463_v61  ;;  %v5596_v51 = vpop.f32.mrb[3].mxu0 }
 0x8bc   : > { %v3372_v28 = vsel %vm3362_vm2, %v3370_v42, %v3257_v12 }
 0x8c6   : > { %v3472_v59 = vpop.f32.mrb[4].mxu1 }
 0x8c7   : > { %v3485_v40 = vrot.slane %v3472_v59, %v6463_v61  ;;  %v5603_v54 = vpop.f32.mrb[5].mxu1 }
 0x8c9   : > { %v3487_v26 = vsel %vm3477_vm3, %v3485_v40, %v3372_v28 }
 0x8cb   : > { %v3587_v41 = vpop.f32.mrb[4].mxu0 }
 0x8cc   : > { %v3600_v9 = vrot.slane %v3587_v41, %v6463_v61  ;;  %v5610_v35 = vpop.f32.mrb[5].mxu0 }
 0x8ce   : > { %v3602_v16 = vsel %vm3592_vm4, %v3600_v9, %v3487_v26 }
 0x8cf   : > { %v3702_v49 = vpop.f32.mrb[6].mxu1 }
 0x8d0   : > { %v3715_v17 = vrot.slane %v3702_v49, %v6463_v61  ;;  %v5617_v0 = vpop.f32.mrb[7].mxu1 }
 0x8d2   : > { %v3717_v27 = vsel %vm3707_vm5, %v3715_v17, %v3602_v16 }
 0x8d3   : > { %v3817_v53 = vpop.f32.mrb[6].mxu0 }
 0x8d4   : > { %v3830_v39 = vrot.slane %v3817_v53, %v6463_v61  ;;  %v5624_v34 = vpop.f32.mrb[7].mxu0 }
 0x8d6   : > { %v3832_v8 = vsel %vm3822_vm6, %v3830_v39, %v3717_v27 }
 0x8ea   : > { %v3931_v32 = vpop.f32.mrb[8].mxu1 }
 0x8eb   : > { %v3944_v37 = vrot.slane %v3931_v32, %v6463_v61  ;;  %v5631_v4 = vpop.f32.mrb[9].mxu1 }
 0x8ed   : > { %v3946_v58 = vsel %vm3936_vm7, %v3944_v37, %v3832_v8 }
 0x8ee   : > { %4867 = vst.msk [vmem:[#allocation6 + $0x8] sm:$0xff] %vm680_vm1, %v3946_v58  ;;  %v4161_v46 = vpop.f32.mrb[10].mxu1 }
 0x8ef   : > { %v5645_v18 = vpop.f32.mrb[11].mxu1  ;;  %v4174_v48 = vrot.slane %v4161_v46, %v6463_v61 }
 0x8f2   : > { %v4391_v21 = vpop.f32.mrb[12].mxu1 }
 0x8f3   : > { %v5659_v11 = vpop.f32.mrb[13].mxu1  ;;  %v4404_v36 = vrot.slane %v4391_v21, %v6463_v61 }
 0x8f6   : > { %v4621_v19 = vpop.f32.mrb[14].mxu1 }
 0x8f7   : > { %v4046_v62 = vpop.f32.mrb[8].mxu0  ;;  %v5673_v14 = vpop.f32.mrb[15].mxu1  ;;  %v4634_v13 = vrot.slane %v4621_v19, %v6463_v61 }
 0x8f8   : > { %v4059_v43 = vrot.slane %v4046_v62, %v6463_v61  ;;  %v5638_v52 = vpop.f32.mrb[9].mxu0 }
 0x8fa   : > { %v4060_v31 = vsel %vm4050_vm8, %v4059_v43, 0.0 }
 0x8fb   : > { %v4175_v7 = vsel %vm4165_vm9, %v4174_v48, %v4060_v31  ;;  %v4276_v10 = vpop.f32.mrb[10].mxu0 }
 0x8fc   : > { %v4289_v33 = vrot.slane %v4276_v10, %v6463_v61  ;;  %v5652_v60 = vpop.f32.mrb[11].mxu0 }
 0x8fd   : > { %v4850_v23 = vpop.f32.mrb[16].mxu1 }
 0x8fe   : > { %v4290_v24 = vsel %vm4280_vm10, %v4289_v33, %v4175_v7  ;;  %v5687_v15 = vpop.f32.mrb[17].mxu1  ;;  %v4863_v29 = vrot.slane %v4850_v23, %v6463_v61 }
 0x8ff   : > { %v4405_v38 = vsel %vm4395_vm11, %v4404_v36, %v4290_v24  ;;  %v4506_v44 = vpop.f32.mrb[12].mxu0 }
 0x900   : > { %v4519_v30 = vrot.slane %v4506_v44, %v6463_v61  ;;  %v5666_v3 = vpop.f32.mrb[13].mxu0 }
 0x902   : > { %v4520_v56 = vsel %vm4510_vm12, %v4519_v30, %v4405_v38 }
 0x903   : > { %v4635_v22 = vsel %vm4625_vm13, %v4634_v13, %v4520_v56  ;;  %v4736_v57 = vpop.f32.mrb[14].mxu0 }
 0x904   : > { %v4749_v1 = vrot.slane %v4736_v57, %v6463_v61  ;;  %v5680_v25 = vpop.f32.mrb[15].mxu0 }
 0x906   : > { %v4750_v50 = vsel %vm4740_vm14, %v4749_v1, %v4635_v22 }
 0x907   : > { %v4864_v5 = vsel %vm4854_vm15, %v4863_v29, %v4750_v50 }
 0x908   : > { %4866 = vst.msk [vmem:[#allocation6] sm:$0xff] %vm680_vm1, %v4864_v5 }
 0x909 PF: > { %v4868_v20 = vld [vmem:[%s7510_s5] sm:$0xff]  ;;  %v4869_v55 = vld [vmem:[%s7510_s5 + $0x8] sm:$0xff]  ;;  %v4870_v61 = vld [vmem:[%s7510_s5 + $0x10] sm:$0xff] }
 0x90a   : > { %v7539_v63 = vld [vmem:[#allocation12_spill] sm:$0xff]  ;;  %v5850_v45 = vpack.c.bf16 %v4869_v55, %v4868_v20  ;;  %v4871_v47 = vld [vmem:[%s7510_s5 + $0x18] sm:$0xff]  ;;  %v7540_v12 = vld [vmem:[#allocation13_spill] sm:$0xff] }
 0x90b   : > { %5696 = vmatprep.mubr.msk.f32.mxu0 %vm547_vm0, %v7539_v63  ;;  %v5854_v2 = vpack.c.bf16 %v4871_v47, %v4870_v61  ;;  %v4978_v6 = vld [vmem:[%s7518_s13] sm:$0xff]  ;;  %v4979_v42 = vld [vmem:[%s7518_s13 + $0x8] sm:$0xff]  ;;  %v4980_v28 = vld [vmem:[%s7518_s13 + $0x10] sm:$0xff] }
 0x90c   : > { %5851 = vmatprep.subr.bf16.mxu0 %v5850_v45  ;;  %v5858_v51 = vpack.c.bf16 %v4979_v42, %v4978_v6  ;;  %v4981_v59 = vld [vmem:[%s7518_s13 + $0x18] sm:$0xff]  ;;  %v4982_v54 = vld [vmem:[%s7518_s13 + $0x20] sm:$0xff]  ;;  %v4983_v26 = vld [vmem:[%s7518_s13 + $0x28] sm:$0xff] }
 0x90d   : > { %5853 = vmatpush3.bf16.msra.mxu0 %v5850_v45  ;;  %v5862_v40 = vpack.c.bf16 %v4981_v59, %v4980_v28  ;;  %v5866_v41 = vpack.c.bf16 %v4983_v26, %v4982_v54  ;;  %v4984_v9 = vld [vmem:[%s7518_s13 + $0x30] sm:$0xff]  ;;  %v4985_v35 = vld [vmem:[%s7518_s13 + $0x38] sm:$0xff]  ;;  %v5265_v4 = vld [vmem:[%s7517_s12] ss:$0 sm:$0xff] }
 0x90e   : > { %5855 = vmatprep.subr.bf16.mxu0 %v5854_v2  ;;  %5859 = vmatprep.subr.bf16.mxu1 %v5858_v51  ;;  %v5870_v16 = vpack.c.bf16 %v4985_v35, %v4984_v9  ;;  %v4949_v58 = vld [vmem:[#allocation4] sm:$0xff]  ;;  %v4950_v46 = vld [vmem:[#allocation4 + $0x8] sm:$0xff] }
 0x90f   : > { %5861 = vmatpush3.bf16.msra.mxu1 %v5858_v51  ;;  %v4958_v18 = vmul.f32 %v5265_v4, %v4949_v58  ;;  %v4959_v21 = vmul.f32 %v5265_v4, %v4950_v46  ;;  %v4947_v11 = vld [vmem:[#allocation6] sm:$0xff]  ;;  %v4948_v19 = vld [vmem:[#allocation6 + $0x8] sm:$0xff] }
 0x910   : > { %5863 = vmatprep.subr.bf16.mxu1 %v5862_v40 }
 0x911   : > { %5857 = vmatpush3.bf16.msra.mxu0 %v5854_v2  ;;  %v4960_v14 = vadd.f32 %v4958_v18, %v4947_v11  ;;  %v4961_v52 = vadd.f32 %v4959_v21, %v4948_v19 }
 0x913   : > { %5865 = vmatpush3.bf16.msra.mxu1 %v5862_v40 }
 0x914   : > { %5697 = vmatmul.mubr.msk.f32.vlgmr.msra.gmra.mrb[0].mxu0 %vm547_vm0, %v7540_v12  ;;  %5867 = vmatprep.subr.bf16.mxu1 %v5866_v41 }
 0x917   : > { %5869 = vmatpush3.bf16.msra.mxu1 %v5866_v41 }
 0x918   : > { %5871 = vmatprep.subr.bf16.mxu1 %v5870_v16 }
 0x91b   : > { %5873 = vmatpush3.bf16.msra.mxu1 %v5870_v16 }
 0x9e7   : > { %v5698_v49 = vpop.f32.mrb[0].mxu0 }
 0x9e8   : > { %v4963_v17 = vsub.f32 0.0, %v5698_v49  ;;  %v4938_v0 = vpop.f32.mrb[1].mxu0 }
 0x9e9   : > { %v4962_v27 = vsub.f32 0.0, %v4938_v0 }
 0x9ea   : > { %v4966_v53 = vmul.f32 1.442695, %v4963_v17 }
 0x9eb   : > { %v4964_v39 = vmul.f32 1.442695, %v4962_v27 }
 0x9ec   : > { %6172 = vpow2.f32 %v4966_v53 }
 0x9ed   : > { %6174 = vpow2.f32 %v4964_v39 }
 0x9f6   : > { %v6173_v34 = vpop.eup %6172 }
 0x9f7   : > { %v6175_v8 = vpop.eup %6174  ;;  %v4969_v32 = vadd.f32 1.0, %v6173_v34 }
 0x9f8   : > { %v4968_v37 = vadd.f32 1.0, %v6175_v8 }
 0x9f9   : > { %6176 = vrcp.f32 %v4969_v32 }
 0x9fa   : > { %6178 = vrcp.f32 %v4968_v37 }
 0xa03   : > { %v6177_v62 = vpop.eup %6176 }
 0xa04   : > { %v6179_v43 = vpop.eup %6178  ;;  %v4975_v48 = vmul.f32 %v6177_v62, %v5698_v49 }
 0xa05   : > { %v4974_v31 = vmul.f32 %v6179_v43, %v4938_v0 }
 0xa06   : > { %v4977_v10 = vmul.f32 %v4975_v48, %v4961_v52 }
 0xa07   : > { %v4976_v7 = vmul.f32 %v4974_v31, %v4960_v14 }
 0xa09   : > { %5715 = vmatprep.mubr.msk.f32.mxu1 %vm680_vm1, %v4976_v7 }
 0xa0a   : > { %5716 = vmatmul.mubr.msk.f32.vlgmr.msra.gmra.mrb[0].mxu1 %vm680_vm1, %v4977_v10 }
 0xad8   : > { %5069 = sbr.rel (%p5221_p7) target bundleno = 2784 (0xae0), region = 88 }
 0xadd   : > { %v5717_v36 = vpop.f32.mrb[0].mxu1 }
 0xade   : > { %v5058_v33 = vpop.f32.mrb[1].mxu1  ;;  %5071 = vst.msk [vmem:[%s6383_s23 + $0x8] sm:$0xff] (!%p5221_p7), %vm547_vm0, %v5717_v36 }
 0xadf   : > { %5070 = vst.msk [vmem:[%s6383_s23] sm:$0xff] %vm547_vm0, %v5058_v33 }
 0xae0 PF: > { %5074 = sbr.rel (%p5242_p8) target bundleno = 2794 (0xaea), region = 92 }
 0xae6   : > { %v5075_v60 = vld [vmem:[%s6383_s23] sm:$0xff] (!%p5242_p8)  ;;  %v5076_v23 = vld [vmem:[%s6383_s23 + $0x8] sm:$0xff] (!%p5242_p8) }
 0xae7   : > { %v5077_v24 = vadd.f32 %v5075_v60, %v5058_v33  ;;  %v5078_v15 = vadd.f32 %v5717_v36, %v5076_v23 }
 0xae9   : > { %5079 = vst.msk [vmem:[%s6383_s23] sm:$0xff] %vm547_vm0, %v5077_v24  ;;  %5080 = vst.msk [vmem:[%s6383_s23 + $0x8] sm:$0xff] %vm547_vm0, %v5078_v15 }
 0xaea PF: > { %s7541_s30 = sld [smem:[#allocation9_spill]]  ;;  %s7542_s18 = sld [smem:[#allocation7_spill]] }
 0xaeb   : > { %s7543_s19 = sld [smem:[#allocation8_spill]]  ;;  %s7544_s20 = sld [smem:[#allocation10_spill]] }
 0xaec   : > { %s7545_s21 = sld [smem:[#allocation11_spill]] }
 0xaf0   : > { %s26_s22 = sadd.s32 1, %s7541_s30  }
 0xaf1   : > { %p23_p9 = scmp.ge.s32.totalorder %s26_s22, 6  }
 0xaf3   :  { %25 = sbr.rel (!%p23_p9) target bundleno = 3 (0x3), region = 140 }

</bundles_post_ra>
